<compile_context>
chip_gen: v7x
topology: tpu7x:2x2x1
jax: 0.10.0
libtpu: 0.0.40
codegen_flags: <defaults>
</compile_context>

<pallas_src>
import math
from functools import partial

import jax
import jax.numpy as jnp
from jax.experimental import pallas as pl
from jax.experimental.pallas import tpu as pltpu


# ----------------------------------------------------------------------------
# Single-buffering probe for constant-index parameter blocks.
# ----------------------------------------------------------------------------
_PARAM_PIPELINE_MODE = None   # None = not probed; False = unsupported; else pl.Buffered(1)


def _param_pipeline_mode():
    """Constant-index parameter blocks don't need double buffering: pl.Buffered(1) halves
    their VMEM footprint and drops redundant per-step DMA descriptors.  Probe once with a
    tiny kernel and fall back to default (double-buffered) specs if this build rejects it."""
    global _PARAM_PIPELINE_MODE
    if _PARAM_PIPELINE_MODE is None:
        try:
            def _k(p_ref, x_ref, o_ref):
                o_ref[...] = x_ref[...] + p_ref[...]

            mode = pl.Buffered(1)
            f = pl.pallas_call(
                _k,
                out_shape=jax.ShapeDtypeStruct((16, 128), jnp.float32),
                grid=(2,),
                in_specs=[pl.BlockSpec((8, 128), lambda i: (0, 0), pipeline_mode=mode),
                          pl.BlockSpec((8, 128), lambda i: (i, 0))],
                out_specs=pl.BlockSpec((8, 128), lambda i: (i, 0)),
            )
            res = f(jnp.ones((8, 128), jnp.float32), jnp.ones((16, 128), jnp.float32))
            jax.block_until_ready(res)
            _PARAM_PIPELINE_MODE = mode if bool(jnp.all(res == 2.0)) else False
        except Exception:
            _PARAM_PIPELINE_MODE = False
    return None if _PARAM_PIPELINE_MODE is False else _PARAM_PIPELINE_MODE


# ----------------------------------------------------------------------------
# One MAB block (runs inside the fused kernel, on plain jnp values).
#   Q' = q_in Wq + bq ; [K'|V'] = k_in Wkv + [bk|bv]   (scale pre-folded into K half)
#   per head h:  A = softmax(Qh Kh^T) ;  Oh = Qh + A Vh      (residual in f32)
#   O = concat(heads)  ;  O = O + relu(O Wo + bo)
# NOTE: attention scale is 1/sqrt(dim_V) (FULL value dim), matching the reference
#       SetTransformer, not the standard 1/sqrt(d_head).  Intentional.
# NOTE: the dh-wide per-head contractions underfill v6e/v7x's 256-deep MXU by design of
#       the model; the well-shaped dots are the (nb*n, d) projections, so nb is sized to
#       make those as tall as VMEM allows.
# ----------------------------------------------------------------------------
def _mab_block(q_in, k_in, nb, wq, wkv, bias, wo, *, num_heads, dv, cdt):
    dh = dv // num_heads
    nk, dk = k_in.shape[-2], k_in.shape[-1]

    # Fused K|V projection: one dense (nb*nk, dk) @ (dk, 2*dv) matmul (bf16 in, f32 acc).
    kv = jnp.dot(k_in.reshape(nb * nk, dk).astype(cdt), wkv,
                 preferred_element_type=jnp.float32) + bias[:, dv:3 * dv]
    k3 = kv[:, :dv].reshape(nb, nk, dv).astype(cdt)
    v3 = kv[:, dv:].reshape(nb, nk, dv).astype(cdt)

    shared_q = (q_in.ndim == 2)
    if shared_q:
        # shared queries (inducing points / PMA seeds): project once, keep 2-D f32
        nq = q_in.shape[0]
        q = jnp.dot(q_in.astype(cdt), wq,
                    preferred_element_type=jnp.float32) + bias[:, :dv]        # (nq, dv)
    else:
        nq = q_in.shape[-2]
        q = (jnp.dot(q_in.reshape(nb * nq, q_in.shape[-1]).astype(cdt), wq,
                     preferred_element_type=jnp.float32) + bias[:, :dv]
             ).reshape(nb, nq, dv)                                            # (nb, nq, dv)

    heads = []
    for h in range(num_heads):                 # static head loop; each step batched over nb
        sl = slice(h * dh, (h + 1) * dh)
        kh, vh = k3[:, :, sl], v3[:, :, sl]
        if shared_q:
            qh_f32 = q[:, sl]                                                  # (nq, dh) f32
            # small, short-lived per-head broadcast only for the score dot operand
            qh = jnp.broadcast_to(qh_f32.astype(cdt)[None], (nb, nq, dh))
        else:
            qh_f32 = q[:, :, sl]                                               # (nb,nq,dh) f32
            qh = qh_f32.astype(cdt)

        s = jnp.einsum("bqd,bkd->bqk", qh, kh,
                       preferred_element_type=jnp.float32)        # scale folded into K
        s = s - jnp.max(s, axis=-1, keepdims=True)
        p = jnp.exp(s)
        # EUP reciprocal: rows sum to ~1 (approx) — deliberate deviation from exact torch
        p = p * pl.reciprocal(jnp.sum(p, axis=-1, keepdims=True), approx=True)
        av = jnp.einsum("bqk,bkd->bqd", p.astype(cdt), vh,
                        preferred_element_type=jnp.float32)
        # residual uses the f32 projected query, not the bf16-rounded matmul operand
        if shared_q:
            heads.append(qh_f32[None, :, :] + av)
        else:
            heads.append(qh_f32 + av)

    # Single lane-dense assembly of all heads (no masked dh-wide VMEM stores + reload).
    o = jnp.concatenate(heads, axis=-1)                                        # (nb, nq, dv) f32

    ff = jnp.dot(o.reshape(nb * nq, dv).astype(cdt), wo,
                 preferred_element_type=jnp.float32) + bias[:, 3 * dv:]
    o = o + jnp.maximum(ff, 0.0).reshape(nb, nq, dv)
    return o


# ----------------------------------------------------------------------------
# Fully fused forward kernel: encoder ISABs -> PMA -> decoder ISABs -> final Linear.
# One grid step handles `nb` batch elements; every parameter is a constant-index block.
# ----------------------------------------------------------------------------
def _make_forward_kernel(n_params, *, num_heads, dv, num_enc, num_dec, cdt):
    def kernel(*refs):
        x_ref = refs[0]
        param_refs = refs[1:1 + n_params]
        out_ref = refs[1 + n_params]

        nb = x_ref.shape[0]
        it = iter(param_refs)

        def nxt():
            return next(it)[...]

        def mab(q_in, k_in):
            wq, wkv, bias, wo = nxt(), nxt(), nxt(), nxt()
            return _mab_block(q_in, k_in, nb, wq, wkv, bias, wo,
                              num_heads=num_heads, dv=dv, cdt=cdt)

        x = x_ref[...]
        # ---- encoder: stack of ISAB blocks (two fused MABs each) ----
        for _ in range(num_enc):
            ind = nxt()                  # (num_inds, dv) inducing points, shared per batch
            h_ind = mab(ind, x)          # H = MAB(I, X)
            x = mab(x, h_ind)            # MAB(X, H)
        # ---- decoder: PMA, ISAB stack, fused final bias-free Linear ----
        seeds = nxt()                    # (num_seeds, dv)
        x = mab(seeds, x)                # PMA
        for _ in range(num_dec):
            ind = nxt()
            h_ind = mab(ind, x)
            x = mab(x, h_ind)
        w_final = nxt()                  # (dv, out_pad) — lane-dense (padded) output weight
        ns = x.shape[1]                  # num_seeds
        y = jnp.dot(x.reshape(nb * ns, dv).astype(cdt), w_final,
                    preferred_element_type=jnp.float32)
        out_ref[...] = y.reshape(nb, ns, -1).astype(out_ref.dtype)   # unmasked 128-lane vst

    return kernel


# ----------------------------------------------------------------------------
# Parameter flattening: K|V weights fused, biases packed, attention scale folded into the
# K projection (keeps the residual's Q unscaled), final weight padded to 128 lanes.
# ----------------------------------------------------------------------------
def _flatten_params(params, cdt, out_pad):
    flat = []

    def add_mab(m):
        d = m["wo"].shape[0]
        scale = 1.0 / math.sqrt(d)                       # 1/sqrt(dim_V), folded into K
        wkv = jnp.concatenate([m["wkv"][:, :d] * scale, m["wkv"][:, d:]], axis=1)
        b = jnp.concatenate([m["b"][:, :d], m["b"][:, d:2 * d] * scale,
                             m["b"][:, 2 * d:]], axis=1)
        flat.append(m["wq"].astype(cdt))
        flat.append(wkv.astype(cdt))
        flat.append(b.astype(jnp.float32))               # packed [bq|bk*scale|bv|bo], f32
        flat.append(m["wo"].astype(cdt))

    for layer in params["enc"]:
        flat.append(layer["I"].astype(cdt))
        add_mab(layer["mab0"])
        add_mab(layer["mab1"])
    flat.append(params["pma"]["S"].astype(cdt))
    add_mab(params["pma"]["mab"])
    for layer in params["dec"]:
        flat.append(layer["I"].astype(cdt))
        add_mab(layer["mab0"])
        add_mab(layer["mab1"])
    fw = params["final_w"]
    if out_pad != fw.shape[1]:                           # zero-pad for lane-dense writeback
        fw = jnp.pad(fw, ((0, 0), (0, out_pad - fw.shape[1])))
    flat.append(fw.astype(cdt))
    return flat


# ----------------------------------------------------------------------------
# Generation-aware block sizing.
# ----------------------------------------------------------------------------
def _tpu_config():
    kind = ""
    try:
        kind = jax.devices()[0].device_kind.lower()
    except Exception:
        pass
    if "v7" in kind:
        # 2 TensorCores/chip but only 64 MiB VMEM: smaller blocks, keep >= 2 grid steps.
        return dict(target_rows=256, min_grid_steps=2,
                    vmem_limit=48 * 2**20, vmem_budget=40 * 2**20)
    if "v5" in kind or "v6" in kind:
        # Single TensorCore, 128 MiB VMEM: big blocks (better MXU fill on the projection
        # dots), no grid-split cap, raise the scoped VMEM limit explicitly.
        return dict(target_rows=1024, min_grid_steps=1,
                    vmem_limit=96 * 2**20, vmem_budget=80 * 2**20)
    # unknown generation: conservative, leave the compiler's default scoped limit alone
    return dict(target_rows=256, min_grid_steps=1,
                vmem_limit=None, vmem_budget=24 * 2**20)


def _pick_block_b(B, N, dv, d_in, num_inds, num_seeds, cfg):
    nb = max(1, min(B, cfg["target_rows"] // max(N, 1)))
    nq = max(N, num_inds, num_seeds)
    # rough f32 per-batch-element working set of one fused MAB over X
    per_b = 4 * (N * 2 * dv + 3 * nq * dv + nq * N) + 4 * N * max(d_in, dv)
    while nb > 1 and nb * per_b > cfg["vmem_budget"]:
        nb -= 1
    if cfg["min_grid_steps"] > 1 and B >= cfg["min_grid_steps"]:
        nb = min(nb, max(1, B // cfg["min_grid_steps"]))   # feed both v7x TensorCores
    return max(1, nb)


# ----------------------------------------------------------------------------
# Wrapper: flatten params, pick a batch block, build specs, call pallas_call once.
# ----------------------------------------------------------------------------
def set_transformer_forward(x, params, num_heads, *, block_b=None,
                            compute_dtype=jnp.bfloat16):
    B, N, d_in = x.shape
    dv, out_dim = params["final_w"].shape
    num_inds = params["enc"][0]["I"].shape[0]
    num_seeds = params["pma"]["S"].shape[0]
    num_enc = len(params["enc"])
    num_dec = len(params["dec"])
    out_pad = 128 * pl.cdiv(out_dim, 128)       # lane-dense output width

    cfg = _tpu_config()
    nb = block_b if block_b is not None else _pick_block_b(
        B, N, dv, d_in, num_inds, num_seeds, cfg)
    grid_b = pl.cdiv(B, nb)
    Bp = grid_b * nb
    xp = x.astype(compute_dtype)
    if Bp != B:                                  # pad batch to a multiple of the block
        xp = jnp.concatenate(
            [xp, jnp.zeros((Bp - B, N, d_in), compute_dtype)], axis=0)

    flat = _flatten_params(params, compute_dtype, out_pad)
    n_params = len(flat)

    kernel = _make_forward_kernel(n_params, num_heads=num_heads, dv=dv,
                                  num_enc=num_enc, num_dec=num_dec,
                                  cdt=compute_dtype)

    def _const2d(b):                             # batch-invariant full parameter block
        return (0, 0)

    pm = _param_pipeline_mode()
    if pm is not None:
        param_specs = [pl.BlockSpec(p.shape, _const2d, pipeline_mode=pm) for p in flat]
    else:
        param_specs = [pl.BlockSpec(p.shape, _const2d) for p in flat]

    in_specs = [pl.BlockSpec((nb, N, d_in), lambda b: (b, 0, 0))] + param_specs

    y = pl.pallas_call(
        kernel,
        out_shape=jax.ShapeDtypeStruct((Bp, num_seeds, out_pad), jnp.float32),
        grid=(grid_b,),
        in_specs=in_specs,
        out_specs=pl.BlockSpec((nb, num_seeds, out_pad), lambda b: (b, 0, 0)),
        compiler_params=pltpu.CompilerParams(
            dimension_semantics=("parallel",),
            vmem_limit_bytes=cfg["vmem_limit"]),
    )(xp, *flat)

    y = y[:B, :, :out_dim]                       # drop batch pad and lane pad
    if num_seeds == 1:                           # mirrors torch's x.squeeze(1)
        y = y[:, 0, :]
    return y


# ----------------------------------------------------------------------------
# Deterministic parameter init (shapes follow the PyTorch module; K|V weights fused,
# biases packed).
# ----------------------------------------------------------------------------
def _init_linear(kw, kb, d_in, d_out):
    bound = 1.0 / math.sqrt(d_in)
    w = jax.random.uniform(kw, (d_in, d_out), jnp.float32, -bound, bound)
    b = jax.random.uniform(kb, (1, d_out), jnp.float32, -bound, bound)
    return w, b


def init_mab_params(key, dim_q, dim_k, dim_v):
    ks = jax.random.split(key, 8)
    wq, bq = _init_linear(ks[0], ks[1], dim_q, dim_v)
    wk, bk = _init_linear(ks[2], ks[3], dim_k, dim_v)
    wv, bv = _init_linear(ks[4], ks[5], dim_k, dim_v)
    wo, bo = _init_linear(ks[6], ks[7], dim_v, dim_v)
    return dict(wq=wq,
                wkv=jnp.concatenate([wk, wv], axis=1),          # fused K|V projection
                b=jnp.concatenate([bq, bk, bv, bo], axis=1),    # packed biases (1, 4*dv)
                wo=wo)


def init_isab_params(key, dim_in, dim_out, num_inds):
    k0, k1, k2 = jax.random.split(key, 3)
    bound = math.sqrt(6.0 / (num_inds + dim_out))               # xavier-uniform-ish
    I = jax.random.uniform(k0, (num_inds, dim_out), jnp.float32, -bound, bound)
    return dict(I=I,
                mab0=init_mab_params(k1, dim_out, dim_in, dim_out),   # MAB(I, X)
                mab1=init_mab_params(k2, dim_in, dim_out, dim_out))   # MAB(X, H)


def init_pma_params(key, dim, num_seeds):
    k0, k1 = jax.random.split(key)
    bound = math.sqrt(6.0 / (num_seeds + dim))
    S = jax.random.uniform(k0, (num_seeds, dim), jnp.float32, -bound, bound)
    return dict(S=S, mab=init_mab_params(k1, dim, dim, dim))


def init_set_transformer(key, input_dim, output_dim, hidden_dim, num_heads,
                         num_inds, num_seeds, num_enc_layers, num_dec_layers):
    n_keys = num_enc_layers + 1 + num_dec_layers + 1
    keys = jax.random.split(key, n_keys)
    enc = [init_isab_params(keys[0], input_dim, hidden_dim, num_inds)]
    for i in range(num_enc_layers - 1):
        enc.append(init_isab_params(keys[1 + i], hidden_dim, hidden_dim, num_inds))
    pma = init_pma_params(keys[num_enc_layers], hidden_dim, num_seeds)
    dec = [init_isab_params(keys[num_enc_layers + 1 + i], hidden_dim, hidden_dim, num_inds)
           for i in range(num_dec_layers)]
    bound = 1.0 / math.sqrt(hidden_dim)
    final_w = jax.random.uniform(keys[-1], (hidden_dim, output_dim),
                                 jnp.float32, -bound, bound)
    return dict(enc=enc, pma=pma, dec=dec, final_w=final_w)


# ----------------------------------------------------------------------------
if __name__ == "__main__":
    # small config consistent with the module (use_ISAB=True defaults, scaled down)
    B, N = 2, 16
    input_dim, output_dim = 8, 8
    hidden_dim, num_heads = 32, 4
    num_inds, num_seeds = 8, 1
    num_enc_layers, num_dec_layers = 2, 2

    key = jax.random.PRNGKey(0)
    kx, kp = jax.random.split(key)
    x = jax.random.normal(kx, (B, N, input_dim), jnp.float32)
    params = init_set_transformer(kp, input_dim, output_dim, hidden_dim, num_heads,
                                  num_inds, num_seeds, num_enc_layers, num_dec_layers)

    _param_pipeline_mode()   # probe single-buffered param specs outside the jit trace

    fwd = jax.jit(partial(set_transformer_forward, num_heads=num_heads))
    out = fwd(x, params)
    jax.block_until_ready(out)
    assert out.shape == (B, output_dim), out.shape
    print("KERNEL_OK")
</pallas_src>

<mosaic_0001>
module attributes {stable_mosaic.version = 11 : i64} {
  func.func @_k(%arg0: i32, %arg1: memref<8x128xf32, #tpu.memory_space<vmem>>, %arg2: memref<8x128xf32, #tpu.memory_space<vmem>>, %arg3: memref<8x128xf32, #tpu.memory_space<vmem>>) attributes {dimension_semantics = [#tpu.dimension_semantics<arbitrary>], iteration_bounds = array<i64: 2>, scalar_prefetch = 0 : i64, scratch_operands = 0 : i64, tpu.core_type = #tpu.core_type<tc>, window_params = [{pipeline_mode = #tpu.pipeline_mode<synchronous>, transform_indices = @transform_0, window_bounds = array<i64: 8, 128>}, {transform_indices = @transform_1, window_bounds = array<i64: 8, 128>}, {transform_indices = @transform_2, window_bounds = array<i64: 8, 128>}]} {
    %c0 = arith.constant 0 : index
    %c0_0 = arith.constant 0 : index
    %0 = vector.load %arg2[%c0, %c0_0] : memref<8x128xf32, #tpu.memory_space<vmem>>, vector<8x128xf32>
    %c0_1 = arith.constant 0 : index
    %c0_2 = arith.constant 0 : index
    %1 = vector.load %arg1[%c0_1, %c0_2] : memref<8x128xf32, #tpu.memory_space<vmem>>, vector<8x128xf32>
    %2 = arith.addf %0, %1 : vector<8x128xf32>
    %c0_3 = arith.constant 0 : index
    %c0_4 = arith.constant 0 : index
    %3 = vector.load %arg3[%c0_3, %c0_4] : memref<8x128xf32, #tpu.memory_space<vmem>>, vector<8x128xf32>
    tpu.vector_store %arg3[%c0_3, %c0_4], %2 {strides = array<i32>} : memref<8x128xf32, #tpu.memory_space<vmem>>, vector<8x128xf32>,
    return
  }
  func.func @transform_0(%arg0: i32) -> (i32, i32) {
    %c0_i32 = arith.constant 0 : i32
    %c0_i32_0 = arith.constant 0 : i32
    %c0_i32_1 = arith.constant 0 : i32
    return %c0_i32, %c0_i32_0 : i32, i32
  }
  func.func @transform_1(%arg0: i32) -> (i32, i32) {
    %c0_i32 = arith.constant 0 : i32
    %c0_i32_0 = arith.constant 0 : i32
    return %arg0, %c0_i32 : i32, i32
  }
  func.func @transform_2(%arg0: i32) -> (i32, i32) {
    %c0_i32 = arith.constant 0 : i32
    %c0_i32_0 = arith.constant 0 : i32
    return %arg0, %c0_i32 : i32, i32
  }
}

module attributes {stable_mosaic.version = 11 : i64} {
  func.func @kernel(%arg0: i32, %arg1: memref<2x16x8xbf16, #tpu.memory_space<vmem>>, %arg2: memref<8x32xbf16, #tpu.memory_space<vmem>>, %arg3: memref<32x32xbf16, #tpu.memory_space<vmem>>, %arg4: memref<8x64xbf16, #tpu.memory_space<vmem>>, %arg5: memref<1x128xf32, #tpu.memory_space<vmem>>, %arg6: memref<32x32xbf16, #tpu.memory_space<vmem>>, %arg7: memref<8x32xbf16, #tpu.memory_space<vmem>>, %arg8: memref<32x64xbf16, #tpu.memory_space<vmem>>, %arg9: memref<1x128xf32, #tpu.memory_space<vmem>>, %arg10: memref<32x32xbf16, #tpu.memory_space<vmem>>, %arg11: memref<8x32xbf16, #tpu.memory_space<vmem>>, %arg12: memref<32x32xbf16, #tpu.memory_space<vmem>>, %arg13: memref<32x64xbf16, #tpu.memory_space<vmem>>, %arg14: memref<1x128xf32, #tpu.memory_space<vmem>>, %arg15: memref<32x32xbf16, #tpu.memory_space<vmem>>, %arg16: memref<32x32xbf16, #tpu.memory_space<vmem>>, %arg17: memref<32x64xbf16, #tpu.memory_space<vmem>>, %arg18: memref<1x128xf32, #tpu.memory_space<vmem>>, %arg19: memref<32x32xbf16, #tpu.memory_space<vmem>>, %arg20: memref<1x32xbf16, #tpu.memory_space<vmem>>, %arg21: memref<32x32xbf16, #tpu.memory_space<vmem>>, %arg22: memref<32x64xbf16, #tpu.memory_space<vmem>>, %arg23: memref<1x128xf32, #tpu.memory_space<vmem>>, %arg24: memref<32x32xbf16, #tpu.memory_space<vmem>>, %arg25: memref<8x32xbf16, #tpu.memory_space<vmem>>, %arg26: memref<32x32xbf16, #tpu.memory_space<vmem>>, %arg27: memref<32x64xbf16, #tpu.memory_space<vmem>>, %arg28: memref<1x128xf32, #tpu.memory_space<vmem>>, %arg29: memref<32x32xbf16, #tpu.memory_space<vmem>>, %arg30: memref<32x32xbf16, #tpu.memory_space<vmem>>, %arg31: memref<32x64xbf16, #tpu.memory_space<vmem>>, %arg32: memref<1x128xf32, #tpu.memory_space<vmem>>, %arg33: memref<32x32xbf16, #tpu.memory_space<vmem>>, %arg34: memref<8x32xbf16, #tpu.memory_space<vmem>>, %arg35: memref<32x32xbf16, #tpu.memory_space<vmem>>, %arg36: memref<32x64xbf16, #tpu.memory_space<vmem>>, %arg37: memref<1x128xf32, #tpu.memory_space<vmem>>, %arg38: memref<32x32xbf16, #tpu.memory_space<vmem>>, %arg39: memref<32x32xbf16, #tpu.memory_space<vmem>>, %arg40: memref<32x64xbf16, #tpu.memory_space<vmem>>, %arg41: memref<1x128xf32, #tpu.memory_space<vmem>>, %arg42: memref<32x32xbf16, #tpu.memory_space<vmem>>, %arg43: memref<32x128xbf16, #tpu.memory_space<vmem>>, %arg44: memref<2x1x128xf32, #tpu.memory_space<vmem>>) attributes {dimension_semantics = [#tpu.dimension_semantics<parallel>], iteration_bounds = array<i64: 1>, scalar_prefetch = 0 : i64, scratch_operands = 0 : i64, tpu.core_type = #tpu.core_type<tc>, window_params = [{transform_indices = @transform_0, window_bounds = array<i64: 2, 16, 8>}, {pipeline_mode = #tpu.pipeline_mode<synchronous>, transform_indices = @transform_1, window_bounds = array<i64: 8, 32>}, {pipeline_mode = #tpu.pipeline_mode<synchronous>, transform_indices = @transform_2, window_bounds = array<i64: 32, 32>}, {pipeline_mode = #tpu.pipeline_mode<synchronous>, transform_indices = @transform_3, window_bounds = array<i64: 8, 64>}, {pipeline_mode = #tpu.pipeline_mode<synchronous>, transform_indices = @transform_4, window_bounds = array<i64: 1, 128>}, {pipeline_mode = #tpu.pipeline_mode<synchronous>, transform_indices = @transform_5, window_bounds = array<i64: 32, 32>}, {pipeline_mode = #tpu.pipeline_mode<synchronous>, transform_indices = @transform_6, window_bounds = array<i64: 8, 32>}, {pipeline_mode = #tpu.pipeline_mode<synchronous>, transform_indices = @transform_7, window_bounds = array<i64: 32, 64>}, {pipeline_mode = #tpu.pipeline_mode<synchronous>, transform_indices = @transform_8, window_bounds = array<i64: 1, 128>}, {pipeline_mode = #tpu.pipeline_mode<synchronous>, transform_indices = @transform_9, window_bounds = array<i64: 32, 32>}, {pipeline_mode = #tpu.pipeline_mode<synchronous>, transform_indices = @transform_10, window_bounds = array<i64: 8, 32>}, {pipeline_mode = #tpu.pipeline_mode<synchronous>, transform_indices = @transform_11, window_bounds = array<i64: 32, 32>}, {pipeline_mode = #tpu.pipeline_mode<synchronous>, transform_indices = @transform_12, window_bounds = array<i64: 32, 64>}, {pipeline_mode = #tpu.pipeline_mode<synchronous>, transform_indices = @transform_13, window_bounds = array<i64: 1, 128>}, {pipeline_mode = #tpu.pipeline_mode<synchronous>, transform_indices = @transform_14, window_bounds = array<i64: 32, 32>}, {pipeline_mode = #tpu.pipeline_mode<synchronous>, transform_indices = @transform_15, window_bounds = array<i64: 32, 32>}, {pipeline_mode = #tpu.pipeline_mode<synchronous>, transform_indices = @transform_16, window_bounds = array<i64: 32, 64>}, {pipeline_mode = #tpu.pipeline_mode<synchronous>, transform_indices = @transform_17, window_bounds = array<i64: 1, 128>}, {pipeline_mode = #tpu.pipeline_mode<synchronous>, transform_indices = @transform_18, window_bounds = array<i64: 32, 32>}, {pipeline_mode = #tpu.pipeline_mode<synchronous>, transform_indices = @transform_19, window_bounds = array<i64: 1, 32>}, {pipeline_mode = #tpu.pipeline_mode<synchronous>, transform_indices = @transform_20, window_bounds = array<i64: 32, 32>}, {pipeline_mode = #tpu.pipeline_mode<synchronous>, transform_indices = @transform_21, window_bounds = array<i64: 32, 64>}, {pipeline_mode = #tpu.pipeline_mode<synchronous>, transform_indices = @transform_22, window_bounds = array<i64: 1, 128>}, {pipeline_mode = #tpu.pipeline_mode<synchronous>, transform_indices = @transform_23, window_bounds = array<i64: 32, 32>}, {pipeline_mode = #tpu.pipeline_mode<synchronous>, transform_indices = @transform_24, window_bounds = array<i64: 8, 32>}, {pipeline_mode = #tpu.pipeline_mode<synchronous>, transform_indices = @transform_25, window_bounds = array<i64: 32, 32>}, {pipeline_mode = #tpu.pipeline_mode<synchronous>, transform_indices = @transform_26, window_bounds = array<i64: 32, 64>}, {pipeline_mode = #tpu.pipeline_mode<synchronous>, transform_indices = @transform_27, window_bounds = array<i64: 1, 128>}, {pipeline_mode = #tpu.pipeline_mode<synchronous>, transform_indices = @transform_28, window_bounds = array<i64: 32, 32>}, {pipeline_mode = #tpu.pipeline_mode<synchronous>, transform_indices = @transform_29, window_bounds = array<i64: 32, 32>}, {pipeline_mode = #tpu.pipeline_mode<synchronous>, transform_indices = @transform_30, window_bounds = array<i64: 32, 64>}, {pipeline_mode = #tpu.pipeline_mode<synchronous>, transform_indices = @transform_31, window_bounds = array<i64: 1, 128>}, {pipeline_mode = #tpu.pipeline_mode<synchronous>, transform_indices = @transform_32, window_bounds = array<i64: 32, 32>}, {pipeline_mode = #tpu.pipeline_mode<synchronous>, transform_indices = @transform_33, window_bounds = array<i64: 8, 32>}, {pipeline_mode = #tpu.pipeline_mode<synchronous>, transform_indices = @transform_34, window_bounds = array<i64: 32, 32>}, {pipeline_mode = #tpu.pipeline_mode<synchronous>, transform_indices = @transform_35, window_bounds = array<i64: 32, 64>}, {pipeline_mode = #tpu.pipeline_mode<synchronous>, transform_indices = @transform_36, window_bounds = array<i64: 1, 128>}, {pipeline_mode = #tpu.pipeline_mode<synchronous>, transform_indices = @transform_37, window_bounds = array<i64: 32, 32>}, {pipeline_mode = #tpu.pipeline_mode<synchronous>, transform_indices = @transform_38, window_bounds = array<i64: 32, 32>}, {pipeline_mode = #tpu.pipeline_mode<synchronous>, transform_indices = @transform_39, window_bounds = array<i64: 32, 64>}, {pipeline_mode = #tpu.pipeline_mode<synchronous>, transform_indices = @transform_40, window_bounds = array<i64: 1, 128>}, {pipeline_mode = #tpu.pipeline_mode<synchronous>, transform_indices = @transform_41, window_bounds = array<i64: 32, 32>}, {pipeline_mode = #tpu.pipeline_mode<synchronous>, transform_indices = @transform_42, window_bounds = array<i64: 32, 128>}, {transform_indices = @transform_43, window_bounds = array<i64: 2, 1, 128>}]} {
    %c0 = arith.constant 0 : index
    %c0_0 = arith.constant 0 : index
    %c0_1 = arith.constant 0 : index
    %0 = vector.load %arg1[%c0, %c0_0, %c0_1] : memref<2x16x8xbf16, #tpu.memory_space<vmem>>, vector<2x16x8xbf16>
    %c0_2 = arith.constant 0 : index
    %c0_3 = arith.constant 0 : index
    %1 = vector.load %arg2[%c0_2, %c0_3] : memref<8x32xbf16, #tpu.memory_space<vmem>>, vector<8x32xbf16>
    %c0_4 = arith.constant 0 : index
    %c0_5 = arith.constant 0 : index
    %2 = vector.load %arg3[%c0_4, %c0_5] : memref<32x32xbf16, #tpu.memory_space<vmem>>, vector<32x32xbf16>
    %c0_6 = arith.constant 0 : index
    %c0_7 = arith.constant 0 : index
    %3 = vector.load %arg4[%c0_6, %c0_7] : memref<8x64xbf16, #tpu.memory_space<vmem>>, vector<8x64xbf16>
    %c0_8 = arith.constant 0 : index
    %c0_9 = arith.constant 0 : index
    %4 = vector.load %arg5[%c0_8, %c0_9] : memref<1x128xf32, #tpu.memory_space<vmem>>, vector<1x128xf32>
    %c0_10 = arith.constant 0 : index
    %c0_11 = arith.constant 0 : index
    %5 = vector.load %arg6[%c0_10, %c0_11] : memref<32x32xbf16, #tpu.memory_space<vmem>>, vector<32x32xbf16>
    %6 = vector.shape_cast %0 : vector<2x16x8xbf16> to vector<32x8xbf16>
    %cst = arith.constant dense<0.000000e+00> : vector<32x64xf32>
    %7 = tpu.matmul %6, %3, %cst {dimension_numbers = #tpu.dot_dimension_numbers<[1], [0], [0], [1], [0, 0, 1, 1], [], []>} : vector<32x8xbf16>, vector<8x64xbf16>, vector<32x64xf32> -> vector<32x64xf32>
    %8 = vector.extract_strided_slice %4 {offsets = [0, 32], sizes = [1, 64], strides = [1, 1]} : vector<1x128xf32> to vector<1x64xf32>
    %9 = vector.broadcast %8 : vector<1x64xf32> to vector<32x64xf32>
    %10 = arith.addf %7, %9 : vector<32x64xf32>
    %11 = vector.extract_strided_slice %10 {offsets = [0, 0], sizes = [32, 32], strides = [1, 1]} : vector<32x64xf32> to vector<32x32xf32>
    %12 = vector.shape_cast %11 : vector<32x32xf32> to vector<2x16x32xf32>
    %13 = arith.truncf %12 : vector<2x16x32xf32> to vector<2x16x32xbf16>
    %14 = vector.extract_strided_slice %10 {offsets = [0, 32], sizes = [32, 32], strides = [1, 1]} : vector<32x64xf32> to vector<32x32xf32>
    %15 = vector.shape_cast %14 : vector<32x32xf32> to vector<2x16x32xf32>
    %16 = arith.truncf %15 : vector<2x16x32xf32> to vector<2x16x32xbf16>
    %cst_12 = arith.constant dense<0.000000e+00> : vector<8x32xf32>
    %17 = tpu.matmul %1, %2, %cst_12 {dimension_numbers = #tpu.dot_dimension_numbers<[1], [0], [0], [1], [0, 0, 1, 1], [], []>} : vector<8x32xbf16>, vector<32x32xbf16>, vector<8x32xf32> -> vector<8x32xf32>
    %18 = vector.extract_strided_slice %4 {offsets = [0, 0], sizes = [1, 32], strides = [1, 1]} : vector<1x128xf32> to vector<1x32xf32>
    %19 = vector.broadcast %18 : vector<1x32xf32> to vector<8x32xf32>
    %20 = arith.addf %17, %19 : vector<8x32xf32>
    %21 = vector.extract_strided_slice %13 {offsets = [0, 0, 0], sizes = [2, 16, 8], strides = [1, 1, 1]} : vector<2x16x32xbf16> to vector<2x16x8xbf16>
    %22 = vector.extract_strided_slice %16 {offsets = [0, 0, 0], sizes = [2, 16, 8], strides = [1, 1, 1]} : vector<2x16x32xbf16> to vector<2x16x8xbf16>
    %23 = vector.extract_strided_slice %20 {offsets = [0, 0], sizes = [8, 8], strides = [1, 1]} : vector<8x32xf32> to vector<8x8xf32>
    %24 = arith.truncf %23 : vector<8x8xf32> to vector<8x8xbf16>
    %25 = vector.shape_cast %24 : vector<8x8xbf16> to vector<1x8x8xbf16>
    %26 = vector.shape_cast %25 : vector<1x8x8xbf16> to vector<1x8x8xbf16>
    %27 = vector.broadcast %26 : vector<1x8x8xbf16> to vector<2x8x8xbf16>
    "tpu.trace_start"() <{level = 10 : i32, message = "bqd,bkd->bqk"}> : () -> ()
    %cst_13 = arith.constant dense<0.000000e+00> : vector<2x8x16xf32>
    %28 = tpu.matmul %27, %21, %cst_13 {dimension_numbers = #tpu.dot_dimension_numbers<[2], [2], [1], [1], [0, 0, 0, 1, 1, 1], [0], [0]>} : vector<2x8x8xbf16>, vector<2x16x8xbf16>, vector<2x8x16xf32> -> vector<2x8x16xf32>
    "tpu.trace_stop"() : () -> ()
    %cst_14 = arith.constant dense<0xFF800000> : vector<2x8xf32>
    %29 = vector.multi_reduction <maximumf>, %28, %cst_14 [2] : vector<2x8x16xf32> to vector<2x8xf32>
    %30 = vector.shape_cast %29 : vector<2x8xf32> to vector<2x8x1xf32>
    %31 = vector.broadcast %30 : vector<2x8x1xf32> to vector<2x8x16xf32>
    %32 = arith.subf %28, %31 : vector<2x8x16xf32>
    %33 = math.exp %32 : vector<2x8x16xf32>
    %cst_15 = arith.constant dense<0.000000e+00> : vector<2x8xf32>
    %34 = vector.multi_reduction <add>, %33, %cst_15 [2] : vector<2x8x16xf32> to vector<2x8xf32>
    %35 = vector.shape_cast %34 : vector<2x8xf32> to vector<2x8x1xf32>
    %36 = tpu.reciprocal %35 {approx = true} : vector<2x8x1xf32> -> vector<2x8x1xf32>
    %37 = vector.broadcast %36 : vector<2x8x1xf32> to vector<2x8x16xf32>
    %38 = arith.mulf %33, %37 : vector<2x8x16xf32>
    %39 = arith.truncf %38 : vector<2x8x16xf32> to vector<2x8x16xbf16>
    "tpu.trace_start"() <{level = 10 : i32, message = "bqk,bkd->bqd"}> : () -> ()
    %cst_16 = arith.constant dense<0.000000e+00> : vector<2x8x8xf32>
    %40 = tpu.matmul %39, %22, %cst_16 {dimension_numbers = #tpu.dot_dimension_numbers<[2], [1], [1], [2], [0, 0, 0, 1, 1, 2], [0], [0]>} : vector<2x8x16xbf16>, vector<2x16x8xbf16>, vector<2x8x8xf32> -> vector<2x8x8xf32>
    "tpu.trace_stop"() : () -> ()
    %41 = vector.shape_cast %23 : vector<8x8xf32> to vector<1x8x8xf32>
    %42 = vector.broadcast %41 : vector<1x8x8xf32> to vector<2x8x8xf32>
    %43 = arith.addf %42, %40 : vector<2x8x8xf32>
    %44 = vector.extract_strided_slice %13 {offsets = [0, 0, 8], sizes = [2, 16, 8], strides = [1, 1, 1]} : vector<2x16x32xbf16> to vector<2x16x8xbf16>
    %45 = vector.extract_strided_slice %16 {offsets = [0, 0, 8], sizes = [2, 16, 8], strides = [1, 1, 1]} : vector<2x16x32xbf16> to vector<2x16x8xbf16>
    %46 = vector.extract_strided_slice %20 {offsets = [0, 8], sizes = [8, 8], strides = [1, 1]} : vector<8x32xf32> to vector<8x8xf32>
    %47 = arith.truncf %46 : vector<8x8xf32> to vector<8x8xbf16>
    %48 = vector.shape_cast %47 : vector<8x8xbf16> to vector<1x8x8xbf16>
    %49 = vector.shape_cast %48 : vector<1x8x8xbf16> to vector<1x8x8xbf16>
    %50 = vector.broadcast %49 : vector<1x8x8xbf16> to vector<2x8x8xbf16>
    "tpu.trace_start"() <{level = 10 : i32, message = "bqd,bkd->bqk"}> : () -> ()
    %cst_17 = arith.constant dense<0.000000e+00> : vector<2x8x16xf32>
    %51 = tpu.matmul %50, %44, %cst_17 {dimension_numbers = #tpu.dot_dimension_numbers<[2], [2], [1], [1], [0, 0, 0, 1, 1, 1], [0], [0]>} : vector<2x8x8xbf16>, vector<2x16x8xbf16>, vector<2x8x16xf32> -> vector<2x8x16xf32>
    "tpu.trace_stop"() : () -> ()
    %cst_18 = arith.constant dense<0xFF800000> : vector<2x8xf32>
    %52 = vector.multi_reduction <maximumf>, %51, %cst_18 [2] : vector<2x8x16xf32> to vector<2x8xf32>
    %53 = vector.shape_cast %52 : vector<2x8xf32> to vector<2x8x1xf32>
    %54 = vector.broadcast %53 : vector<2x8x1xf32> to vector<2x8x16xf32>
    %55 = arith.subf %51, %54 : vector<2x8x16xf32>
    %56 = math.exp %55 : vector<2x8x16xf32>
    %cst_19 = arith.constant dense<0.000000e+00> : vector<2x8xf32>
    %57 = vector.multi_reduction <add>, %56, %cst_19 [2] : vector<2x8x16xf32> to vector<2x8xf32>
    %58 = vector.shape_cast %57 : vector<2x8xf32> to vector<2x8x1xf32>
    %59 = tpu.reciprocal %58 {approx = true} : vector<2x8x1xf32> -> vector<2x8x1xf32>
    %60 = vector.broadcast %59 : vector<2x8x1xf32> to vector<2x8x16xf32>
    %61 = arith.mulf %56, %60 : vector<2x8x16xf32>
    %62 = arith.truncf %61 : vector<2x8x16xf32> to vector<2x8x16xbf16>
    "tpu.trace_start"() <{level = 10 : i32, message = "bqk,bkd->bqd"}> : () -> ()
    %cst_20 = arith.constant dense<0.000000e+00> : vector<2x8x8xf32>
    %63 = tpu.matmul %62, %45, %cst_20 {dimension_numbers = #tpu.dot_dimension_numbers<[2], [1], [1], [2], [0, 0, 0, 1, 1, 2], [0], [0]>} : vector<2x8x16xbf16>, vector<2x16x8xbf16>, vector<2x8x8xf32> -> vector<2x8x8xf32>
    "tpu.trace_stop"() : () -> ()
    %64 = vector.shape_cast %46 : vector<8x8xf32> to vector<1x8x8xf32>
    %65 = vector.broadcast %64 : vector<1x8x8xf32> to vector<2x8x8xf32>
    %66 = arith.addf %65, %63 : vector<2x8x8xf32>
    %67 = vector.extract_strided_slice %13 {offsets = [0, 0, 16], sizes = [2, 16, 8], strides = [1, 1, 1]} : vector<2x16x32xbf16> to vector<2x16x8xbf16>
    %68 = vector.extract_strided_slice %16 {offsets = [0, 0, 16], sizes = [2, 16, 8], strides = [1, 1, 1]} : vector<2x16x32xbf16> to vector<2x16x8xbf16>
    %69 = vector.extract_strided_slice %20 {offsets = [0, 16], sizes = [8, 8], strides = [1, 1]} : vector<8x32xf32> to vector<8x8xf32>
    %70 = arith.truncf %69 : vector<8x8xf32> to vector<8x8xbf16>
    %71 = vector.shape_cast %70 : vector<8x8xbf16> to vector<1x8x8xbf16>
    %72 = vector.shape_cast %71 : vector<1x8x8xbf16> to vector<1x8x8xbf16>
    %73 = vector.broadcast %72 : vector<1x8x8xbf16> to vector<2x8x8xbf16>
    "tpu.trace_start"() <{level = 10 : i32, message = "bqd,bkd->bqk"}> : () -> ()
    %cst_21 = arith.constant dense<0.000000e+00> : vector<2x8x16xf32>
    %74 = tpu.matmul %73, %67, %cst_21 {dimension_numbers = #tpu.dot_dimension_numbers<[2], [2], [1], [1], [0, 0, 0, 1, 1, 1], [0], [0]>} : vector<2x8x8xbf16>, vector<2x16x8xbf16>, vector<2x8x16xf32> -> vector<2x8x16xf32>
    "tpu.trace_stop"() : () -> ()
    %cst_22 = arith.constant dense<0xFF800000> : vector<2x8xf32>
    %75 = vector.multi_reduction <maximumf>, %74, %cst_22 [2] : vector<2x8x16xf32> to vector<2x8xf32>
    %76 = vector.shape_cast %75 : vector<2x8xf32> to vector<2x8x1xf32>
    %77 = vector.broadcast %76 : vector<2x8x1xf32> to vector<2x8x16xf32>
    %78 = arith.subf %74, %77 : vector<2x8x16xf32>
    %79 = math.exp %78 : vector<2x8x16xf32>
    %cst_23 = arith.constant dense<0.000000e+00> : vector<2x8xf32>
    %80 = vector.multi_reduction <add>, %79, %cst_23 [2] : vector<2x8x16xf32> to vector<2x8xf32>
    %81 = vector.shape_cast %80 : vector<2x8xf32> to vector<2x8x1xf32>
    %82 = tpu.reciprocal %81 {approx = true} : vector<2x8x1xf32> -> vector<2x8x1xf32>
    %83 = vector.broadcast %82 : vector<2x8x1xf32> to vector<2x8x16xf32>
    %84 = arith.mulf %79, %83 : vector<2x8x16xf32>
    %85 = arith.truncf %84 : vector<2x8x16xf32> to vector<2x8x16xbf16>
    "tpu.trace_start"() <{level = 10 : i32, message = "bqk,bkd->bqd"}> : () -> ()
    %cst_24 = arith.constant dense<0.000000e+00> : vector<2x8x8xf32>
    %86 = tpu.matmul %85, %68, %cst_24 {dimension_numbers = #tpu.dot_dimension_numbers<[2], [1], [1], [2], [0, 0, 0, 1, 1, 2], [0], [0]>} : vector<2x8x16xbf16>, vector<2x16x8xbf16>, vector<2x8x8xf32> -> vector<2x8x8xf32>
    "tpu.trace_stop"() : () -> ()
    %87 = vector.shape_cast %69 : vector<8x8xf32> to vector<1x8x8xf32>
    %88 = vector.broadcast %87 : vector<1x8x8xf32> to vector<2x8x8xf32>
    %89 = arith.addf %88, %86 : vector<2x8x8xf32>
    %90 = vector.extract_strided_slice %13 {offsets = [0, 0, 24], sizes = [2, 16, 8], strides = [1, 1, 1]} : vector<2x16x32xbf16> to vector<2x16x8xbf16>
    %91 = vector.extract_strided_slice %16 {offsets = [0, 0, 24], sizes = [2, 16, 8], strides = [1, 1, 1]} : vector<2x16x32xbf16> to vector<2x16x8xbf16>
    %92 = vector.extract_strided_slice %20 {offsets = [0, 24], sizes = [8, 8], strides = [1, 1]} : vector<8x32xf32> to vector<8x8xf32>
    %93 = arith.truncf %92 : vector<8x8xf32> to vector<8x8xbf16>
    %94 = vector.shape_cast %93 : vector<8x8xbf16> to vector<1x8x8xbf16>
    %95 = vector.shape_cast %94 : vector<1x8x8xbf16> to vector<1x8x8xbf16>
    %96 = vector.broadcast %95 : vector<1x8x8xbf16> to vector<2x8x8xbf16>
    "tpu.trace_start"() <{level = 10 : i32, message = "bqd,bkd->bqk"}> : () -> ()
    %cst_25 = arith.constant dense<0.000000e+00> : vector<2x8x16xf32>
    %97 = tpu.matmul %96, %90, %cst_25 {dimension_numbers = #tpu.dot_dimension_numbers<[2], [2], [1], [1], [0, 0, 0, 1, 1, 1], [0], [0]>} : vector<2x8x8xbf16>, vector<2x16x8xbf16>, vector<2x8x16xf32> -> vector<2x8x16xf32>
    "tpu.trace_stop"() : () -> ()
    %cst_26 = arith.constant dense<0xFF800000> : vector<2x8xf32>
    %98 = vector.multi_reduction <maximumf>, %97, %cst_26 [2] : vector<2x8x16xf32> to vector<2x8xf32>
    %99 = vector.shape_cast %98 : vector<2x8xf32> to vector<2x8x1xf32>
    %100 = vector.broadcast %99 : vector<2x8x1xf32> to vector<2x8x16xf32>
    %101 = arith.subf %97, %100 : vector<2x8x16xf32>
    %102 = math.exp %101 : vector<2x8x16xf32>
    %cst_27 = arith.constant dense<0.000000e+00> : vector<2x8xf32>
    %103 = vector.multi_reduction <add>, %102, %cst_27 [2] : vector<2x8x16xf32> to vector<2x8xf32>
    %104 = vector.shape_cast %103 : vector<2x8xf32> to vector<2x8x1xf32>
    %105 = tpu.reciprocal %104 {approx = true} : vector<2x8x1xf32> -> vector<2x8x1xf32>
    %106 = vector.broadcast %105 : vector<2x8x1xf32> to vector<2x8x16xf32>
    %107 = arith.mulf %102, %106 : vector<2x8x16xf32>
    %108 = arith.truncf %107 : vector<2x8x16xf32> to vector<2x8x16xbf16>
    "tpu.trace_start"() <{level = 10 : i32, message = "bqk,bkd->bqd"}> : () -> ()
    %cst_28 = arith.constant dense<0.000000e+00> : vector<2x8x8xf32>
    %109 = tpu.matmul %108, %91, %cst_28 {dimension_numbers = #tpu.dot_dimension_numbers<[2], [1], [1], [2], [0, 0, 0, 1, 1, 2], [0], [0]>} : vector<2x8x16xbf16>, vector<2x16x8xbf16>, vector<2x8x8xf32> -> vector<2x8x8xf32>
    "tpu.trace_stop"() : () -> ()
    %110 = vector.shape_cast %92 : vector<8x8xf32> to vector<1x8x8xf32>
    %111 = vector.broadcast %110 : vector<1x8x8xf32> to vector<2x8x8xf32>
    %112 = arith.addf %111, %109 : vector<2x8x8xf32>
    %113 = tpu.concatenate %43, %66, %89, %112 in 2 : vector<2x8x8xf32>, vector<2x8x8xf32>, vector<2x8x8xf32>, vector<2x8x8xf32> -> vector<2x8x32xf32>
    %114 = vector.shape_cast %113 : vector<2x8x32xf32> to vector<16x32xf32>
    %115 = arith.truncf %114 : vector<16x32xf32> to vector<16x32xbf16>
    %cst_29 = arith.constant dense<0.000000e+00> : vector<16x32xf32>
    %116 = tpu.matmul %115, %5, %cst_29 {dimension_numbers = #tpu.dot_dimension_numbers<[1], [0], [0], [1], [0, 0, 1, 1], [], []>} : vector<16x32xbf16>, vector<32x32xbf16>, vector<16x32xf32> -> vector<16x32xf32>
    %117 = vector.extract_strided_slice %4 {offsets = [0, 96], sizes = [1, 32], strides = [1, 1]} : vector<1x128xf32> to vector<1x32xf32>
    %118 = vector.broadcast %117 : vector<1x32xf32> to vector<16x32xf32>
    %119 = arith.addf %116, %118 : vector<16x32xf32>
    %cst_30 = arith.constant 0.000000e+00 : f32
    %120 = vector.broadcast %cst_30 : f32 to vector<16x32xf32>
    %121 = arith.maximumf %119, %120 : vector<16x32xf32>
    %122 = vector.shape_cast %121 : vector<16x32xf32> to vector<2x8x32xf32>
    %123 = arith.addf %113, %122 : vector<2x8x32xf32>
    %c0_31 = arith.constant 0 : index
    %c0_32 = arith.constant 0 : index
    %124 = vector.load %arg7[%c0_31, %c0_32] : memref<8x32xbf16, #tpu.memory_space<vmem>>, vector<8x32xbf16>
    %c0_33 = arith.constant 0 : index
    %c0_34 = arith.constant 0 : index
    %125 = vector.load %arg8[%c0_33, %c0_34] : memref<32x64xbf16, #tpu.memory_space<vmem>>, vector<32x64xbf16>
    %c0_35 = arith.constant 0 : index
    %c0_36 = arith.constant 0 : index
    %126 = vector.load %arg9[%c0_35, %c0_36] : memref<1x128xf32, #tpu.memory_space<vmem>>, vector<1x128xf32>
    %c0_37 = arith.constant 0 : index
    %c0_38 = arith.constant 0 : index
    %127 = vector.load %arg10[%c0_37, %c0_38] : memref<32x32xbf16, #tpu.memory_space<vmem>>, vector<32x32xbf16>
    %128 = vector.shape_cast %123 : vector<2x8x32xf32> to vector<16x32xf32>
    %129 = arith.truncf %128 : vector<16x32xf32> to vector<16x32xbf16>
    %cst_39 = arith.constant dense<0.000000e+00> : vector<16x64xf32>
    %130 = tpu.matmul %129, %125, %cst_39 {dimension_numbers = #tpu.dot_dimension_numbers<[1], [0], [0], [1], [0, 0, 1, 1], [], []>} : vector<16x32xbf16>, vector<32x64xbf16>, vector<16x64xf32> -> vector<16x64xf32>
    %131 = vector.extract_strided_slice %126 {offsets = [0, 32], sizes = [1, 64], strides = [1, 1]} : vector<1x128xf32> to vector<1x64xf32>
    %132 = vector.broadcast %131 : vector<1x64xf32> to vector<16x64xf32>
    %133 = arith.addf %130, %132 : vector<16x64xf32>
    %134 = vector.extract_strided_slice %133 {offsets = [0, 0], sizes = [16, 32], strides = [1, 1]} : vector<16x64xf32> to vector<16x32xf32>
    %135 = vector.shape_cast %134 : vector<16x32xf32> to vector<2x8x32xf32>
    %136 = arith.truncf %135 : vector<2x8x32xf32> to vector<2x8x32xbf16>
    %137 = vector.extract_strided_slice %133 {offsets = [0, 32], sizes = [16, 32], strides = [1, 1]} : vector<16x64xf32> to vector<16x32xf32>
    %138 = vector.shape_cast %137 : vector<16x32xf32> to vector<2x8x32xf32>
    %139 = arith.truncf %138 : vector<2x8x32xf32> to vector<2x8x32xbf16>
    %140 = vector.shape_cast %0 : vector<2x16x8xbf16> to vector<32x8xbf16>
    %cst_40 = arith.constant dense<0.000000e+00> : vector<32x32xf32>
    %141 = tpu.matmul %140, %124, %cst_40 {dimension_numbers = #tpu.dot_dimension_numbers<[1], [0], [0], [1], [0, 0, 1, 1], [], []>} : vector<32x8xbf16>, vector<8x32xbf16>, vector<32x32xf32> -> vector<32x32xf32>
    %142 = vector.extract_strided_slice %126 {offsets = [0, 0], sizes = [1, 32], strides = [1, 1]} : vector<1x128xf32> to vector<1x32xf32>
    %143 = vector.broadcast %142 : vector<1x32xf32> to vector<32x32xf32>
    %144 = arith.addf %141, %143 : vector<32x32xf32>
    %145 = vector.shape_cast %144 : vector<32x32xf32> to vector<2x16x32xf32>
    %146 = vector.extract_strided_slice %136 {offsets = [0, 0, 0], sizes = [2, 8, 8], strides = [1, 1, 1]} : vector<2x8x32xbf16> to vector<2x8x8xbf16>
    %147 = vector.extract_strided_slice %139 {offsets = [0, 0, 0], sizes = [2, 8, 8], strides = [1, 1, 1]} : vector<2x8x32xbf16> to vector<2x8x8xbf16>
    %148 = vector.extract_strided_slice %145 {offsets = [0, 0, 0], sizes = [2, 16, 8], strides = [1, 1, 1]} : vector<2x16x32xf32> to vector<2x16x8xf32>
    %149 = arith.truncf %148 : vector<2x16x8xf32> to vector<2x16x8xbf16>
    "tpu.trace_start"() <{level = 10 : i32, message = "bqd,bkd->bqk"}> : () -> ()
    %cst_41 = arith.constant dense<0.000000e+00> : vector<2x16x8xf32>
    %150 = tpu.matmul %149, %146, %cst_41 {dimension_numbers = #tpu.dot_dimension_numbers<[2], [2], [1], [1], [0, 0, 0, 1, 1, 1], [0], [0]>} : vector<2x16x8xbf16>, vector<2x8x8xbf16>, vector<2x16x8xf32> -> vector<2x16x8xf32>
    "tpu.trace_stop"() : () -> ()
    %cst_42 = arith.constant dense<0xFF800000> : vector<2x16xf32>
    %151 = vector.multi_reduction <maximumf>, %150, %cst_42 [2] : vector<2x16x8xf32> to vector<2x16xf32>
    %152 = vector.shape_cast %151 : vector<2x16xf32> to vector<2x16x1xf32>
    %153 = vector.broadcast %152 : vector<2x16x1xf32> to vector<2x16x8xf32>
    %154 = arith.subf %150, %153 : vector<2x16x8xf32>
    %155 = math.exp %154 : vector<2x16x8xf32>
    %cst_43 = arith.constant dense<0.000000e+00> : vector<2x16xf32>
    %156 = vector.multi_reduction <add>, %155, %cst_43 [2] : vector<2x16x8xf32> to vector<2x16xf32>
    %157 = vector.shape_cast %156 : vector<2x16xf32> to vector<2x16x1xf32>
    %158 = tpu.reciprocal %157 {approx = true} : vector<2x16x1xf32> -> vector<2x16x1xf32>
    %159 = vector.broadcast %158 : vector<2x16x1xf32> to vector<2x16x8xf32>
    %160 = arith.mulf %155, %159 : vector<2x16x8xf32>
    %161 = arith.truncf %160 : vector<2x16x8xf32> to vector<2x16x8xbf16>
    "tpu.trace_start"() <{level = 10 : i32, message = "bqk,bkd->bqd"}> : () -> ()
    %cst_44 = arith.constant dense<0.000000e+00> : vector<2x16x8xf32>
    %162 = tpu.matmul %161, %147, %cst_44 {dimension_numbers = #tpu.dot_dimension_numbers<[2], [1], [1], [2], [0, 0, 0, 1, 1, 2], [0], [0]>} : vector<2x16x8xbf16>, vector<2x8x8xbf16>, vector<2x16x8xf32> -> vector<2x16x8xf32>
    "tpu.trace_stop"() : () -> ()
    %163 = arith.addf %148, %162 : vector<2x16x8xf32>
    %164 = vector.extract_strided_slice %136 {offsets = [0, 0, 8], sizes = [2, 8, 8], strides = [1, 1, 1]} : vector<2x8x32xbf16> to vector<2x8x8xbf16>
    %165 = vector.extract_strided_slice %139 {offsets = [0, 0, 8], sizes = [2, 8, 8], strides = [1, 1, 1]} : vector<2x8x32xbf16> to vector<2x8x8xbf16>
    %166 = vector.extract_strided_slice %145 {offsets = [0, 0, 8], sizes = [2, 16, 8], strides = [1, 1, 1]} : vector<2x16x32xf32> to vector<2x16x8xf32>
    %167 = arith.truncf %166 : vector<2x16x8xf32> to vector<2x16x8xbf16>
    "tpu.trace_start"() <{level = 10 : i32, message = "bqd,bkd->bqk"}> : () -> ()
    %cst_45 = arith.constant dense<0.000000e+00> : vector<2x16x8xf32>
    %168 = tpu.matmul %167, %164, %cst_45 {dimension_numbers = #tpu.dot_dimension_numbers<[2], [2], [1], [1], [0, 0, 0, 1, 1, 1], [0], [0]>} : vector<2x16x8xbf16>, vector<2x8x8xbf16>, vector<2x16x8xf32> -> vector<2x16x8xf32>
    "tpu.trace_stop"() : () -> ()
    %cst_46 = arith.constant dense<0xFF800000> : vector<2x16xf32>
    %169 = vector.multi_reduction <maximumf>, %168, %cst_46 [2] : vector<2x16x8xf32> to vector<2x16xf32>
    %170 = vector.shape_cast %169 : vector<2x16xf32> to vector<2x16x1xf32>
    %171 = vector.broadcast %170 : vector<2x16x1xf32> to vector<2x16x8xf32>
    %172 = arith.subf %168, %171 : vector<2x16x8xf32>
    %173 = math.exp %172 : vector<2x16x8xf32>
    %cst_47 = arith.constant dense<0.000000e+00> : vector<2x16xf32>
    %174 = vector.multi_reduction <add>, %173, %cst_47 [2] : vector<2x16x8xf32> to vector<2x16xf32>
    %175 = vector.shape_cast %174 : vector<2x16xf32> to vector<2x16x1xf32>
    %176 = tpu.reciprocal %175 {approx = true} : vector<2x16x1xf32> -> vector<2x16x1xf32>
    %177 = vector.broadcast %176 : vector<2x16x1xf32> to vector<2x16x8xf32>
    %178 = arith.mulf %173, %177 : vector<2x16x8xf32>
    %179 = arith.truncf %178 : vector<2x16x8xf32> to vector<2x16x8xbf16>
    "tpu.trace_start"() <{level = 10 : i32, message = "bqk,bkd->bqd"}> : () -> ()
    %cst_48 = arith.constant dense<0.000000e+00> : vector<2x16x8xf32>
    %180 = tpu.matmul %179, %165, %cst_48 {dimension_numbers = #tpu.dot_dimension_numbers<[2], [1], [1], [2], [0, 0, 0, 1, 1, 2], [0], [0]>} : vector<2x16x8xbf16>, vector<2x8x8xbf16>, vector<2x16x8xf32> -> vector<2x16x8xf32>
    "tpu.trace_stop"() : () -> ()
    %181 = arith.addf %166, %180 : vector<2x16x8xf32>
    %182 = vector.extract_strided_slice %136 {offsets = [0, 0, 16], sizes = [2, 8, 8], strides = [1, 1, 1]} : vector<2x8x32xbf16> to vector<2x8x8xbf16>
    %183 = vector.extract_strided_slice %139 {offsets = [0, 0, 16], sizes = [2, 8, 8], strides = [1, 1, 1]} : vector<2x8x32xbf16> to vector<2x8x8xbf16>
    %184 = vector.extract_strided_slice %145 {offsets = [0, 0, 16], sizes = [2, 16, 8], strides = [1, 1, 1]} : vector<2x16x32xf32> to vector<2x16x8xf32>
    %185 = arith.truncf %184 : vector<2x16x8xf32> to vector<2x16x8xbf16>
    "tpu.trace_start"() <{level = 10 : i32, message = "bqd,bkd->bqk"}> : () -> ()
    %cst_49 = arith.constant dense<0.000000e+00> : vector<2x16x8xf32>
    %186 = tpu.matmul %185, %182, %cst_49 {dimension_numbers = #tpu.dot_dimension_numbers<[2], [2], [1], [1], [0, 0, 0, 1, 1, 1], [0], [0]>} : vector<2x16x8xbf16>, vector<2x8x8xbf16>, vector<2x16x8xf32> -> vector<2x16x8xf32>
    "tpu.trace_stop"() : () -> ()
    %cst_50 = arith.constant dense<0xFF800000> : vector<2x16xf32>
    %187 = vector.multi_reduction <maximumf>, %186, %cst_50 [2] : vector<2x16x8xf32> to vector<2x16xf32>
    %188 = vector.shape_cast %187 : vector<2x16xf32> to vector<2x16x1xf32>
    %189 = vector.broadcast %188 : vector<2x16x1xf32> to vector<2x16x8xf32>
    %190 = arith.subf %186, %189 : vector<2x16x8xf32>
    %191 = math.exp %190 : vector<2x16x8xf32>
    %cst_51 = arith.constant dense<0.000000e+00> : vector<2x16xf32>
    %192 = vector.multi_reduction <add>, %191, %cst_51 [2] : vector<2x16x8xf32> to vector<2x16xf32>
    %193 = vector.shape_cast %192 : vector<2x16xf32> to vector<2x16x1xf32>
    %194 = tpu.reciprocal %193 {approx = true} : vector<2x16x1xf32> -> vector<2x16x1xf32>
    %195 = vector.broadcast %194 : vector<2x16x1xf32> to vector<2x16x8xf32>
    %196 = arith.mulf %191, %195 : vector<2x16x8xf32>
    %197 = arith.truncf %196 : vector<2x16x8xf32> to vector<2x16x8xbf16>
    "tpu.trace_start"() <{level = 10 : i32, message = "bqk,bkd->bqd"}> : () -> ()
    %cst_52 = arith.constant dense<0.000000e+00> : vector<2x16x8xf32>
    %198 = tpu.matmul %197, %183, %cst_52 {dimension_numbers = #tpu.dot_dimension_numbers<[2], [1], [1], [2], [0, 0, 0, 1, 1, 2], [0], [0]>} : vector<2x16x8xbf16>, vector<2x8x8xbf16>, vector<2x16x8xf32> -> vector<2x16x8xf32>
    "tpu.trace_stop"() : () -> ()
    %199 = arith.addf %184, %198 : vector<2x16x8xf32>
    %200 = vector.extract_strided_slice %136 {offsets = [0, 0, 24], sizes = [2, 8, 8], strides = [1, 1, 1]} : vector<2x8x32xbf16> to vector<2x8x8xbf16>
    %201 = vector.extract_strided_slice %139 {offsets = [0, 0, 24], sizes = [2, 8, 8], strides = [1, 1, 1]} : vector<2x8x32xbf16> to vector<2x8x8xbf16>
    %202 = vector.extract_strided_slice %145 {offsets = [0, 0, 24], sizes = [2, 16, 8], strides = [1, 1, 1]} : vector<2x16x32xf32> to vector<2x16x8xf32>
    %203 = arith.truncf %202 : vector<2x16x8xf32> to vector<2x16x8xbf16>
    "tpu.trace_start"() <{level = 10 : i32, message = "bqd,bkd->bqk"}> : () -> ()
    %cst_53 = arith.constant dense<0.000000e+00> : vector<2x16x8xf32>
    %204 = tpu.matmul %203, %200, %cst_53 {dimension_numbers = #tpu.dot_dimension_numbers<[2], [2], [1], [1], [0, 0, 0, 1, 1, 1], [0], [0]>} : vector<2x16x8xbf16>, vector<2x8x8xbf16>, vector<2x16x8xf32> -> vector<2x16x8xf32>
    "tpu.trace_stop"() : () -> ()
    %cst_54 = arith.constant dense<0xFF800000> : vector<2x16xf32>
    %205 = vector.multi_reduction <maximumf>, %204, %cst_54 [2] : vector<2x16x8xf32> to vector<2x16xf32>
    %206 = vector.shape_cast %205 : vector<2x16xf32> to vector<2x16x1xf32>
    %207 = vector.broadcast %206 : vector<2x16x1xf32> to vector<2x16x8xf32>
    %208 = arith.subf %204, %207 : vector<2x16x8xf32>
    %209 = math.exp %208 : vector<2x16x8xf32>
    %cst_55 = arith.constant dense<0.000000e+00> : vector<2x16xf32>
    %210 = vector.multi_reduction <add>, %209, %cst_55 [2] : vector<2x16x8xf32> to vector<2x16xf32>
    %211 = vector.shape_cast %210 : vector<2x16xf32> to vector<2x16x1xf32>
    %212 = tpu.reciprocal %211 {approx = true} : vector<2x16x1xf32> -> vector<2x16x1xf32>
    %213 = vector.broadcast %212 : vector<2x16x1xf32> to vector<2x16x8xf32>
    %214 = arith.mulf %209, %213 : vector<2x16x8xf32>
    %215 = arith.truncf %214 : vector<2x16x8xf32> to vector<2x16x8xbf16>
    "tpu.trace_start"() <{level = 10 : i32, message = "bqk,bkd->bqd"}> : () -> ()
    %cst_56 = arith.constant dense<0.000000e+00> : vector<2x16x8xf32>
    %216 = tpu.matmul %215, %201, %cst_56 {dimension_numbers = #tpu.dot_dimension_numbers<[2], [1], [1], [2], [0, 0, 0, 1, 1, 2], [0], [0]>} : vector<2x16x8xbf16>, vector<2x8x8xbf16>, vector<2x16x8xf32> -> vector<2x16x8xf32>
    "tpu.trace_stop"() : () -> ()
    %217 = arith.addf %202, %216 : vector<2x16x8xf32>
    %218 = tpu.concatenate %163, %181, %199, %217 in 2 : vector<2x16x8xf32>, vector<2x16x8xf32>, vector<2x16x8xf32>, vector<2x16x8xf32> -> vector<2x16x32xf32>
    %219 = vector.shape_cast %218 : vector<2x16x32xf32> to vector<32x32xf32>
    %220 = arith.truncf %219 : vector<32x32xf32> to vector<32x32xbf16>
    %cst_57 = arith.constant dense<0.000000e+00> : vector<32x32xf32>
    %221 = tpu.matmul %220, %127, %cst_57 {dimension_numbers = #tpu.dot_dimension_numbers<[1], [0], [0], [1], [0, 0, 1, 1], [], []>} : vector<32x32xbf16>, vector<32x32xbf16>, vector<32x32xf32> -> vector<32x32xf32>
    %222 = vector.extract_strided_slice %126 {offsets = [0, 96], sizes = [1, 32], strides = [1, 1]} : vector<1x128xf32> to vector<1x32xf32>
    %223 = vector.broadcast %222 : vector<1x32xf32> to vector<32x32xf32>
    %224 = arith.addf %221, %223 : vector<32x32xf32>
    %cst_58 = arith.constant 0.000000e+00 : f32
    %225 = vector.broadcast %cst_58 : f32 to vector<32x32xf32>
    %226 = arith.maximumf %224, %225 : vector<32x32xf32>
    %227 = vector.shape_cast %226 : vector<32x32xf32> to vector<2x16x32xf32>
    %228 = arith.addf %218, %227 : vector<2x16x32xf32>
    %c0_59 = arith.constant 0 : index
    %c0_60 = arith.constant 0 : index
    %229 = vector.load %arg11[%c0_59, %c0_60] : memref<8x32xbf16, #tpu.memory_space<vmem>>, vector<8x32xbf16>
    %c0_61 = arith.constant 0 : index
    %c0_62 = arith.constant 0 : index
    %230 = vector.load %arg12[%c0_61, %c0_62] : memref<32x32xbf16, #tpu.memory_space<vmem>>, vector<32x32xbf16>
    %c0_63 = arith.constant 0 : index
    %c0_64 = arith.constant 0 : index
    %231 = vector.load %arg13[%c0_63, %c0_64] : memref<32x64xbf16, #tpu.memory_space<vmem>>, vector<32x64xbf16>
    %c0_65 = arith.constant 0 : index
    %c0_66 = arith.constant 0 : index
    %232 = vector.load %arg14[%c0_65, %c0_66] : memref<1x128xf32, #tpu.memory_space<vmem>>, vector<1x128xf32>
    %c0_67 = arith.constant 0 : index
    %c0_68 = arith.constant 0 : index
    %233 = vector.load %arg15[%c0_67, %c0_68] : memref<32x32xbf16, #tpu.memory_space<vmem>>, vector<32x32xbf16>
    %234 = vector.shape_cast %228 : vector<2x16x32xf32> to vector<32x32xf32>
    %235 = arith.truncf %234 : vector<32x32xf32> to vector<32x32xbf16>
    %cst_69 = arith.constant dense<0.000000e+00> : vector<32x64xf32>
    %236 = tpu.matmul %235, %231, %cst_69 {dimension_numbers = #tpu.dot_dimension_numbers<[1], [0], [0], [1], [0, 0, 1, 1], [], []>} : vector<32x32xbf16>, vector<32x64xbf16>, vector<32x64xf32> -> vector<32x64xf32>
    %237 = vector.extract_strided_slice %232 {offsets = [0, 32], sizes = [1, 64], strides = [1, 1]} : vector<1x128xf32> to vector<1x64xf32>
    %238 = vector.broadcast %237 : vector<1x64xf32> to vector<32x64xf32>
    %239 = arith.addf %236, %238 : vector<32x64xf32>
    %240 = vector.extract_strided_slice %239 {offsets = [0, 0], sizes = [32, 32], strides = [1, 1]} : vector<32x64xf32> to vector<32x32xf32>
    %241 = vector.shape_cast %240 : vector<32x32xf32> to vector<2x16x32xf32>
    %242 = arith.truncf %241 : vector<2x16x32xf32> to vector<2x16x32xbf16>
    %243 = vector.extract_strided_slice %239 {offsets = [0, 32], sizes = [32, 32], strides = [1, 1]} : vector<32x64xf32> to vector<32x32xf32>
    %244 = vector.shape_cast %243 : vector<32x32xf32> to vector<2x16x32xf32>
    %245 = arith.truncf %244 : vector<2x16x32xf32> to vector<2x16x32xbf16>
    %cst_70 = arith.constant dense<0.000000e+00> : vector<8x32xf32>
    %246 = tpu.matmul %229, %230, %cst_70 {dimension_numbers = #tpu.dot_dimension_numbers<[1], [0], [0], [1], [0, 0, 1, 1], [], []>} : vector<8x32xbf16>, vector<32x32xbf16>, vector<8x32xf32> -> vector<8x32xf32>
    %247 = vector.extract_strided_slice %232 {offsets = [0, 0], sizes = [1, 32], strides = [1, 1]} : vector<1x128xf32> to vector<1x32xf32>
    %248 = vector.broadcast %247 : vector<1x32xf32> to vector<8x32xf32>
    %249 = arith.addf %246, %248 : vector<8x32xf32>
    %250 = vector.extract_strided_slice %242 {offsets = [0, 0, 0], sizes = [2, 16, 8], strides = [1, 1, 1]} : vector<2x16x32xbf16> to vector<2x16x8xbf16>
    %251 = vector.extract_strided_slice %245 {offsets = [0, 0, 0], sizes = [2, 16, 8], strides = [1, 1, 1]} : vector<2x16x32xbf16> to vector<2x16x8xbf16>
    %252 = vector.extract_strided_slice %249 {offsets = [0, 0], sizes = [8, 8], strides = [1, 1]} : vector<8x32xf32> to vector<8x8xf32>
    %253 = arith.truncf %252 : vector<8x8xf32> to vector<8x8xbf16>
    %254 = vector.shape_cast %253 : vector<8x8xbf16> to vector<1x8x8xbf16>
    %255 = vector.shape_cast %254 : vector<1x8x8xbf16> to vector<1x8x8xbf16>
    %256 = vector.broadcast %255 : vector<1x8x8xbf16> to vector<2x8x8xbf16>
    "tpu.trace_start"() <{level = 10 : i32, message = "bqd,bkd->bqk"}> : () -> ()
    %cst_71 = arith.constant dense<0.000000e+00> : vector<2x8x16xf32>
    %257 = tpu.matmul %256, %250, %cst_71 {dimension_numbers = #tpu.dot_dimension_numbers<[2], [2], [1], [1], [0, 0, 0, 1, 1, 1], [0], [0]>} : vector<2x8x8xbf16>, vector<2x16x8xbf16>, vector<2x8x16xf32> -> vector<2x8x16xf32>
    "tpu.trace_stop"() : () -> ()
    %cst_72 = arith.constant dense<0xFF800000> : vector<2x8xf32>
    %258 = vector.multi_reduction <maximumf>, %257, %cst_72 [2] : vector<2x8x16xf32> to vector<2x8xf32>
    %259 = vector.shape_cast %258 : vector<2x8xf32> to vector<2x8x1xf32>
    %260 = vector.broadcast %259 : vector<2x8x1xf32> to vector<2x8x16xf32>
    %261 = arith.subf %257, %260 : vector<2x8x16xf32>
    %262 = math.exp %261 : vector<2x8x16xf32>
    %cst_73 = arith.constant dense<0.000000e+00> : vector<2x8xf32>
    %263 = vector.multi_reduction <add>, %262, %cst_73 [2] : vector<2x8x16xf32> to vector<2x8xf32>
    %264 = vector.shape_cast %263 : vector<2x8xf32> to vector<2x8x1xf32>
    %265 = tpu.reciprocal %264 {approx = true} : vector<2x8x1xf32> -> vector<2x8x1xf32>
    %266 = vector.broadcast %265 : vector<2x8x1xf32> to vector<2x8x16xf32>
    %267 = arith.mulf %262, %266 : vector<2x8x16xf32>
    %268 = arith.truncf %267 : vector<2x8x16xf32> to vector<2x8x16xbf16>
    "tpu.trace_start"() <{level = 10 : i32, message = "bqk,bkd->bqd"}> : () -> ()
    %cst_74 = arith.constant dense<0.000000e+00> : vector<2x8x8xf32>
    %269 = tpu.matmul %268, %251, %cst_74 {dimension_numbers = #tpu.dot_dimension_numbers<[2], [1], [1], [2], [0, 0, 0, 1, 1, 2], [0], [0]>} : vector<2x8x16xbf16>, vector<2x16x8xbf16>, vector<2x8x8xf32> -> vector<2x8x8xf32>
    "tpu.trace_stop"() : () -> ()
    %270 = vector.shape_cast %252 : vector<8x8xf32> to vector<1x8x8xf32>
    %271 = vector.broadcast %270 : vector<1x8x8xf32> to vector<2x8x8xf32>
    %272 = arith.addf %271, %269 : vector<2x8x8xf32>
    %273 = vector.extract_strided_slice %242 {offsets = [0, 0, 8], sizes = [2, 16, 8], strides = [1, 1, 1]} : vector<2x16x32xbf16> to vector<2x16x8xbf16>
    %274 = vector.extract_strided_slice %245 {offsets = [0, 0, 8], sizes = [2, 16, 8], strides = [1, 1, 1]} : vector<2x16x32xbf16> to vector<2x16x8xbf16>
    %275 = vector.extract_strided_slice %249 {offsets = [0, 8], sizes = [8, 8], strides = [1, 1]} : vector<8x32xf32> to vector<8x8xf32>
    %276 = arith.truncf %275 : vector<8x8xf32> to vector<8x8xbf16>
    %277 = vector.shape_cast %276 : vector<8x8xbf16> to vector<1x8x8xbf16>
    %278 = vector.shape_cast %277 : vector<1x8x8xbf16> to vector<1x8x8xbf16>
    %279 = vector.broadcast %278 : vector<1x8x8xbf16> to vector<2x8x8xbf16>
    "tpu.trace_start"() <{level = 10 : i32, message = "bqd,bkd->bqk"}> : () -> ()
    %cst_75 = arith.constant dense<0.000000e+00> : vector<2x8x16xf32>
    %280 = tpu.matmul %279, %273, %cst_75 {dimension_numbers = #tpu.dot_dimension_numbers<[2], [2], [1], [1], [0, 0, 0, 1, 1, 1], [0], [0]>} : vector<2x8x8xbf16>, vector<2x16x8xbf16>, vector<2x8x16xf32> -> vector<2x8x16xf32>
    "tpu.trace_stop"() : () -> ()
    %cst_76 = arith.constant dense<0xFF800000> : vector<2x8xf32>
    %281 = vector.multi_reduction <maximumf>, %280, %cst_76 [2] : vector<2x8x16xf32> to vector<2x8xf32>
    %282 = vector.shape_cast %281 : vector<2x8xf32> to vector<2x8x1xf32>
    %283 = vector.broadcast %282 : vector<2x8x1xf32> to vector<2x8x16xf32>
    %284 = arith.subf %280, %283 : vector<2x8x16xf32>
    %285 = math.exp %284 : vector<2x8x16xf32>
    %cst_77 = arith.constant dense<0.000000e+00> : vector<2x8xf32>
    %286 = vector.multi_reduction <add>, %285, %cst_77 [2] : vector<2x8x16xf32> to vector<2x8xf32>
    %287 = vector.shape_cast %286 : vector<2x8xf32> to vector<2x8x1xf32>
    %288 = tpu.reciprocal %287 {approx = true} : vector<2x8x1xf32> -> vector<2x8x1xf32>
    %289 = vector.broadcast %288 : vector<2x8x1xf32> to vector<2x8x16xf32>
    %290 = arith.mulf %285, %289 : vector<2x8x16xf32>
    %291 = arith.truncf %290 : vector<2x8x16xf32> to vector<2x8x16xbf16>
    "tpu.trace_start"() <{level = 10 : i32, message = "bqk,bkd->bqd"}> : () -> ()
    %cst_78 = arith.constant dense<0.000000e+00> : vector<2x8x8xf32>
    %292 = tpu.matmul %291, %274, %cst_78 {dimension_numbers = #tpu.dot_dimension_numbers<[2], [1], [1], [2], [0, 0, 0, 1, 1, 2], [0], [0]>} : vector<2x8x16xbf16>, vector<2x16x8xbf16>, vector<2x8x8xf32> -> vector<2x8x8xf32>
    "tpu.trace_stop"() : () -> ()
    %293 = vector.shape_cast %275 : vector<8x8xf32> to vector<1x8x8xf32>
    %294 = vector.broadcast %293 : vector<1x8x8xf32> to vector<2x8x8xf32>
    %295 = arith.addf %294, %292 : vector<2x8x8xf32>
    %296 = vector.extract_strided_slice %242 {offsets = [0, 0, 16], sizes = [2, 16, 8], strides = [1, 1, 1]} : vector<2x16x32xbf16> to vector<2x16x8xbf16>
    %297 = vector.extract_strided_slice %245 {offsets = [0, 0, 16], sizes = [2, 16, 8], strides = [1, 1, 1]} : vector<2x16x32xbf16> to vector<2x16x8xbf16>
    %298 = vector.extract_strided_slice %249 {offsets = [0, 16], sizes = [8, 8], strides = [1, 1]} : vector<8x32xf32> to vector<8x8xf32>
    %299 = arith.truncf %298 : vector<8x8xf32> to vector<8x8xbf16>
    %300 = vector.shape_cast %299 : vector<8x8xbf16> to vector<1x8x8xbf16>
    %301 = vector.shape_cast %300 : vector<1x8x8xbf16> to vector<1x8x8xbf16>
    %302 = vector.broadcast %301 : vector<1x8x8xbf16> to vector<2x8x8xbf16>
    "tpu.trace_start"() <{level = 10 : i32, message = "bqd,bkd->bqk"}> : () -> ()
    %cst_79 = arith.constant dense<0.000000e+00> : vector<2x8x16xf32>
    %303 = tpu.matmul %302, %296, %cst_79 {dimension_numbers = #tpu.dot_dimension_numbers<[2], [2], [1], [1], [0, 0, 0, 1, 1, 1], [0], [0]>} : vector<2x8x8xbf16>, vector<2x16x8xbf16>, vector<2x8x16xf32> -> vector<2x8x16xf32>
    "tpu.trace_stop"() : () -> ()
    %cst_80 = arith.constant dense<0xFF800000> : vector<2x8xf32>
    %304 = vector.multi_reduction <maximumf>, %303, %cst_80 [2] : vector<2x8x16xf32> to vector<2x8xf32>
    %305 = vector.shape_cast %304 : vector<2x8xf32> to vector<2x8x1xf32>
    %306 = vector.broadcast %305 : vector<2x8x1xf32> to vector<2x8x16xf32>
    %307 = arith.subf %303, %306 : vector<2x8x16xf32>
    %308 = math.exp %307 : vector<2x8x16xf32>
    %cst_81 = arith.constant dense<0.000000e+00> : vector<2x8xf32>
    %309 = vector.multi_reduction <add>, %308, %cst_81 [2] : vector<2x8x16xf32> to vector<2x8xf32>
    %310 = vector.shape_cast %309 : vector<2x8xf32> to vector<2x8x1xf32>
    %311 = tpu.reciprocal %310 {approx = true} : vector<2x8x1xf32> -> vector<2x8x1xf32>
    %312 = vector.broadcast %311 : vector<2x8x1xf32> to vector<2x8x16xf32>
    %313 = arith.mulf %308, %312 : vector<2x8x16xf32>
    %314 = arith.truncf %313 : vector<2x8x16xf32> to vector<2x8x16xbf16>
    "tpu.trace_start"() <{level = 10 : i32, message = "bqk,bkd->bqd"}> : () -> ()
    %cst_82 = arith.constant dense<0.000000e+00> : vector<2x8x8xf32>
    %315 = tpu.matmul %314, %297, %cst_82 {dimension_numbers = #tpu.dot_dimension_numbers<[2], [1], [1], [2], [0, 0, 0, 1, 1, 2], [0], [0]>} : vector<2x8x16xbf16>, vector<2x16x8xbf16>, vector<2x8x8xf32> -> vector<2x8x8xf32>
    "tpu.trace_stop"() : () -> ()
    %316 = vector.shape_cast %298 : vector<8x8xf32> to vector<1x8x8xf32>
    %317 = vector.broadcast %316 : vector<1x8x8xf32> to vector<2x8x8xf32>
    %318 = arith.addf %317, %315 : vector<2x8x8xf32>
    %319 = vector.extract_strided_slice %242 {offsets = [0, 0, 24], sizes = [2, 16, 8], strides = [1, 1, 1]} : vector<2x16x32xbf16> to vector<2x16x8xbf16>
    %320 = vector.extract_strided_slice %245 {offsets = [0, 0, 24], sizes = [2, 16, 8], strides = [1, 1, 1]} : vector<2x16x32xbf16> to vector<2x16x8xbf16>
    %321 = vector.extract_strided_slice %249 {offsets = [0, 24], sizes = [8, 8], strides = [1, 1]} : vector<8x32xf32> to vector<8x8xf32>
    %322 = arith.truncf %321 : vector<8x8xf32> to vector<8x8xbf16>
    %323 = vector.shape_cast %322 : vector<8x8xbf16> to vector<1x8x8xbf16>
    %324 = vector.shape_cast %323 : vector<1x8x8xbf16> to vector<1x8x8xbf16>
    %325 = vector.broadcast %324 : vector<1x8x8xbf16> to vector<2x8x8xbf16>
    "tpu.trace_start"() <{level = 10 : i32, message = "bqd,bkd->bqk"}> : () -> ()
    %cst_83 = arith.constant dense<0.000000e+00> : vector<2x8x16xf32>
    %326 = tpu.matmul %325, %319, %cst_83 {dimension_numbers = #tpu.dot_dimension_numbers<[2], [2], [1], [1], [0, 0, 0, 1, 1, 1], [0], [0]>} : vector<2x8x8xbf16>, vector<2x16x8xbf16>, vector<2x8x16xf32> -> vector<2x8x16xf32>
    "tpu.trace_stop"() : () -> ()
    %cst_84 = arith.constant dense<0xFF800000> : vector<2x8xf32>
    %327 = vector.multi_reduction <maximumf>, %326, %cst_84 [2] : vector<2x8x16xf32> to vector<2x8xf32>
    %328 = vector.shape_cast %327 : vector<2x8xf32> to vector<2x8x1xf32>
    %329 = vector.broadcast %328 : vector<2x8x1xf32> to vector<2x8x16xf32>
    %330 = arith.subf %326, %329 : vector<2x8x16xf32>
    %331 = math.exp %330 : vector<2x8x16xf32>
    %cst_85 = arith.constant dense<0.000000e+00> : vector<2x8xf32>
    %332 = vector.multi_reduction <add>, %331, %cst_85 [2] : vector<2x8x16xf32> to vector<2x8xf32>
    %333 = vector.shape_cast %332 : vector<2x8xf32> to vector<2x8x1xf32>
    %334 = tpu.reciprocal %333 {approx = true} : vector<2x8x1xf32> -> vector<2x8x1xf32>
    %335 = vector.broadcast %334 : vector<2x8x1xf32> to vector<2x8x16xf32>
    %336 = arith.mulf %331, %335 : vector<2x8x16xf32>
    %337 = arith.truncf %336 : vector<2x8x16xf32> to vector<2x8x16xbf16>
    "tpu.trace_start"() <{level = 10 : i32, message = "bqk,bkd->bqd"}> : () -> ()
    %cst_86 = arith.constant dense<0.000000e+00> : vector<2x8x8xf32>
    %338 = tpu.matmul %337, %320, %cst_86 {dimension_numbers = #tpu.dot_dimension_numbers<[2], [1], [1], [2], [0, 0, 0, 1, 1, 2], [0], [0]>} : vector<2x8x16xbf16>, vector<2x16x8xbf16>, vector<2x8x8xf32> -> vector<2x8x8xf32>
    "tpu.trace_stop"() : () -> ()
    %339 = vector.shape_cast %321 : vector<8x8xf32> to vector<1x8x8xf32>
    %340 = vector.broadcast %339 : vector<1x8x8xf32> to vector<2x8x8xf32>
    %341 = arith.addf %340, %338 : vector<2x8x8xf32>
    %342 = tpu.concatenate %272, %295, %318, %341 in 2 : vector<2x8x8xf32>, vector<2x8x8xf32>, vector<2x8x8xf32>, vector<2x8x8xf32> -> vector<2x8x32xf32>
    %343 = vector.shape_cast %342 : vector<2x8x32xf32> to vector<16x32xf32>
    %344 = arith.truncf %343 : vector<16x32xf32> to vector<16x32xbf16>
    %cst_87 = arith.constant dense<0.000000e+00> : vector<16x32xf32>
    %345 = tpu.matmul %344, %233, %cst_87 {dimension_numbers = #tpu.dot_dimension_numbers<[1], [0], [0], [1], [0, 0, 1, 1], [], []>} : vector<16x32xbf16>, vector<32x32xbf16>, vector<16x32xf32> -> vector<16x32xf32>
    %346 = vector.extract_strided_slice %232 {offsets = [0, 96], sizes = [1, 32], strides = [1, 1]} : vector<1x128xf32> to vector<1x32xf32>
    %347 = vector.broadcast %346 : vector<1x32xf32> to vector<16x32xf32>
    %348 = arith.addf %345, %347 : vector<16x32xf32>
    %cst_88 = arith.constant 0.000000e+00 : f32
    %349 = vector.broadcast %cst_88 : f32 to vector<16x32xf32>
    %350 = arith.maximumf %348, %349 : vector<16x32xf32>
    %351 = vector.shape_cast %350 : vector<16x32xf32> to vector<2x8x32xf32>
    %352 = arith.addf %342, %351 : vector<2x8x32xf32>
    %c0_89 = arith.constant 0 : index
    %c0_90 = arith.constant 0 : index
    %353 = vector.load %arg16[%c0_89, %c0_90] : memref<32x32xbf16, #tpu.memory_space<vmem>>, vector<32x32xbf16>
    %c0_91 = arith.constant 0 : index
    %c0_92 = arith.constant 0 : index
    %354 = vector.load %arg17[%c0_91, %c0_92] : memref<32x64xbf16, #tpu.memory_space<vmem>>, vector<32x64xbf16>
    %c0_93 = arith.constant 0 : index
    %c0_94 = arith.constant 0 : index
    %355 = vector.load %arg18[%c0_93, %c0_94] : memref<1x128xf32, #tpu.memory_space<vmem>>, vector<1x128xf32>
    %c0_95 = arith.constant 0 : index
    %c0_96 = arith.constant 0 : index
    %356 = vector.load %arg19[%c0_95, %c0_96] : memref<32x32xbf16, #tpu.memory_space<vmem>>, vector<32x32xbf16>
    %357 = vector.shape_cast %352 : vector<2x8x32xf32> to vector<16x32xf32>
    %358 = arith.truncf %357 : vector<16x32xf32> to vector<16x32xbf16>
    %cst_97 = arith.constant dense<0.000000e+00> : vector<16x64xf32>
    %359 = tpu.matmul %358, %354, %cst_97 {dimension_numbers = #tpu.dot_dimension_numbers<[1], [0], [0], [1], [0, 0, 1, 1], [], []>} : vector<16x32xbf16>, vector<32x64xbf16>, vector<16x64xf32> -> vector<16x64xf32>
    %360 = vector.extract_strided_slice %355 {offsets = [0, 32], sizes = [1, 64], strides = [1, 1]} : vector<1x128xf32> to vector<1x64xf32>
    %361 = vector.broadcast %360 : vector<1x64xf32> to vector<16x64xf32>
    %362 = arith.addf %359, %361 : vector<16x64xf32>
    %363 = vector.extract_strided_slice %362 {offsets = [0, 0], sizes = [16, 32], strides = [1, 1]} : vector<16x64xf32> to vector<16x32xf32>
    %364 = vector.shape_cast %363 : vector<16x32xf32> to vector<2x8x32xf32>
    %365 = arith.truncf %364 : vector<2x8x32xf32> to vector<2x8x32xbf16>
    %366 = vector.extract_strided_slice %362 {offsets = [0, 32], sizes = [16, 32], strides = [1, 1]} : vector<16x64xf32> to vector<16x32xf32>
    %367 = vector.shape_cast %366 : vector<16x32xf32> to vector<2x8x32xf32>
    %368 = arith.truncf %367 : vector<2x8x32xf32> to vector<2x8x32xbf16>
    %369 = vector.shape_cast %228 : vector<2x16x32xf32> to vector<32x32xf32>
    %370 = arith.truncf %369 : vector<32x32xf32> to vector<32x32xbf16>
    %cst_98 = arith.constant dense<0.000000e+00> : vector<32x32xf32>
    %371 = tpu.matmul %370, %353, %cst_98 {dimension_numbers = #tpu.dot_dimension_numbers<[1], [0], [0], [1], [0, 0, 1, 1], [], []>} : vector<32x32xbf16>, vector<32x32xbf16>, vector<32x32xf32> -> vector<32x32xf32>
    %372 = vector.extract_strided_slice %355 {offsets = [0, 0], sizes = [1, 32], strides = [1, 1]} : vector<1x128xf32> to vector<1x32xf32>
    %373 = vector.broadcast %372 : vector<1x32xf32> to vector<32x32xf32>
    %374 = arith.addf %371, %373 : vector<32x32xf32>
    %375 = vector.shape_cast %374 : vector<32x32xf32> to vector<2x16x32xf32>
    %376 = vector.extract_strided_slice %365 {offsets = [0, 0, 0], sizes = [2, 8, 8], strides = [1, 1, 1]} : vector<2x8x32xbf16> to vector<2x8x8xbf16>
    %377 = vector.extract_strided_slice %368 {offsets = [0, 0, 0], sizes = [2, 8, 8], strides = [1, 1, 1]} : vector<2x8x32xbf16> to vector<2x8x8xbf16>
    %378 = vector.extract_strided_slice %375 {offsets = [0, 0, 0], sizes = [2, 16, 8], strides = [1, 1, 1]} : vector<2x16x32xf32> to vector<2x16x8xf32>
    %379 = arith.truncf %378 : vector<2x16x8xf32> to vector<2x16x8xbf16>
    "tpu.trace_start"() <{level = 10 : i32, message = "bqd,bkd->bqk"}> : () -> ()
    %cst_99 = arith.constant dense<0.000000e+00> : vector<2x16x8xf32>
    %380 = tpu.matmul %379, %376, %cst_99 {dimension_numbers = #tpu.dot_dimension_numbers<[2], [2], [1], [1], [0, 0, 0, 1, 1, 1], [0], [0]>} : vector<2x16x8xbf16>, vector<2x8x8xbf16>, vector<2x16x8xf32> -> vector<2x16x8xf32>
    "tpu.trace_stop"() : () -> ()
    %cst_100 = arith.constant dense<0xFF800000> : vector<2x16xf32>
    %381 = vector.multi_reduction <maximumf>, %380, %cst_100 [2] : vector<2x16x8xf32> to vector<2x16xf32>
    %382 = vector.shape_cast %381 : vector<2x16xf32> to vector<2x16x1xf32>
    %383 = vector.broadcast %382 : vector<2x16x1xf32> to vector<2x16x8xf32>
    %384 = arith.subf %380, %383 : vector<2x16x8xf32>
    %385 = math.exp %384 : vector<2x16x8xf32>
    %cst_101 = arith.constant dense<0.000000e+00> : vector<2x16xf32>
    %386 = vector.multi_reduction <add>, %385, %cst_101 [2] : vector<2x16x8xf32> to vector<2x16xf32>
    %387 = vector.shape_cast %386 : vector<2x16xf32> to vector<2x16x1xf32>
    %388 = tpu.reciprocal %387 {approx = true} : vector<2x16x1xf32> -> vector<2x16x1xf32>
    %389 = vector.broadcast %388 : vector<2x16x1xf32> to vector<2x16x8xf32>
    %390 = arith.mulf %385, %389 : vector<2x16x8xf32>
    %391 = arith.truncf %390 : vector<2x16x8xf32> to vector<2x16x8xbf16>
    "tpu.trace_start"() <{level = 10 : i32, message = "bqk,bkd->bqd"}> : () -> ()
    %cst_102 = arith.constant dense<0.000000e+00> : vector<2x16x8xf32>
    %392 = tpu.matmul %391, %377, %cst_102 {dimension_numbers = #tpu.dot_dimension_numbers<[2], [1], [1], [2], [0, 0, 0, 1, 1, 2], [0], [0]>} : vector<2x16x8xbf16>, vector<2x8x8xbf16>, vector<2x16x8xf32> -> vector<2x16x8xf32>
    "tpu.trace_stop"() : () -> ()
    %393 = arith.addf %378, %392 : vector<2x16x8xf32>
    %394 = vector.extract_strided_slice %365 {offsets = [0, 0, 8], sizes = [2, 8, 8], strides = [1, 1, 1]} : vector<2x8x32xbf16> to vector<2x8x8xbf16>
    %395 = vector.extract_strided_slice %368 {offsets = [0, 0, 8], sizes = [2, 8, 8], strides = [1, 1, 1]} : vector<2x8x32xbf16> to vector<2x8x8xbf16>
    %396 = vector.extract_strided_slice %375 {offsets = [0, 0, 8], sizes = [2, 16, 8], strides = [1, 1, 1]} : vector<2x16x32xf32> to vector<2x16x8xf32>
    %397 = arith.truncf %396 : vector<2x16x8xf32> to vector<2x16x8xbf16>
    "tpu.trace_start"() <{level = 10 : i32, message = "bqd,bkd->bqk"}> : () -> ()
    %cst_103 = arith.constant dense<0.000000e+00> : vector<2x16x8xf32>
    %398 = tpu.matmul %397, %394, %cst_103 {dimension_numbers = #tpu.dot_dimension_numbers<[2], [2], [1], [1], [0, 0, 0, 1, 1, 1], [0], [0]>} : vector<2x16x8xbf16>, vector<2x8x8xbf16>, vector<2x16x8xf32> -> vector<2x16x8xf32>
    "tpu.trace_stop"() : () -> ()
    %cst_104 = arith.constant dense<0xFF800000> : vector<2x16xf32>
    %399 = vector.multi_reduction <maximumf>, %398, %cst_104 [2] : vector<2x16x8xf32> to vector<2x16xf32>
    %400 = vector.shape_cast %399 : vector<2x16xf32> to vector<2x16x1xf32>
    %401 = vector.broadcast %400 : vector<2x16x1xf32> to vector<2x16x8xf32>
    %402 = arith.subf %398, %401 : vector<2x16x8xf32>
    %403 = math.exp %402 : vector<2x16x8xf32>
    %cst_105 = arith.constant dense<0.000000e+00> : vector<2x16xf32>
    %404 = vector.multi_reduction <add>, %403, %cst_105 [2] : vector<2x16x8xf32> to vector<2x16xf32>
    %405 = vector.shape_cast %404 : vector<2x16xf32> to vector<2x16x1xf32>
    %406 = tpu.reciprocal %405 {approx = true} : vector<2x16x1xf32> -> vector<2x16x1xf32>
    %407 = vector.broadcast %406 : vector<2x16x1xf32> to vector<2x16x8xf32>
    %408 = arith.mulf %403, %407 : vector<2x16x8xf32>
    %409 = arith.truncf %408 : vector<2x16x8xf32> to vector<2x16x8xbf16>
    "tpu.trace_start"() <{level = 10 : i32, message = "bqk,bkd->bqd"}> : () -> ()
    %cst_106 = arith.constant dense<0.000000e+00> : vector<2x16x8xf32>
    %410 = tpu.matmul %409, %395, %cst_106 {dimension_numbers = #tpu.dot_dimension_numbers<[2], [1], [1], [2], [0, 0, 0, 1, 1, 2], [0], [0]>} : vector<2x16x8xbf16>, vector<2x8x8xbf16>, vector<2x16x8xf32> -> vector<2x16x8xf32>
    "tpu.trace_stop"() : () -> ()
    %411 = arith.addf %396, %410 : vector<2x16x8xf32>
    %412 = vector.extract_strided_slice %365 {offsets = [0, 0, 16], sizes = [2, 8, 8], strides = [1, 1, 1]} : vector<2x8x32xbf16> to vector<2x8x8xbf16>
    %413 = vector.extract_strided_slice %368 {offsets = [0, 0, 16], sizes = [2, 8, 8], strides = [1, 1, 1]} : vector<2x8x32xbf16> to vector<2x8x8xbf16>
    %414 = vector.extract_strided_slice %375 {offsets = [0, 0, 16], sizes = [2, 16, 8], strides = [1, 1, 1]} : vector<2x16x32xf32> to vector<2x16x8xf32>
    %415 = arith.truncf %414 : vector<2x16x8xf32> to vector<2x16x8xbf16>
    "tpu.trace_start"() <{level = 10 : i32, message = "bqd,bkd->bqk"}> : () -> ()
    %cst_107 = arith.constant dense<0.000000e+00> : vector<2x16x8xf32>
    %416 = tpu.matmul %415, %412, %cst_107 {dimension_numbers = #tpu.dot_dimension_numbers<[2], [2], [1], [1], [0, 0, 0, 1, 1, 1], [0], [0]>} : vector<2x16x8xbf16>, vector<2x8x8xbf16>, vector<2x16x8xf32> -> vector<2x16x8xf32>
    "tpu.trace_stop"() : () -> ()
    %cst_108 = arith.constant dense<0xFF800000> : vector<2x16xf32>
    %417 = vector.multi_reduction <maximumf>, %416, %cst_108 [2] : vector<2x16x8xf32> to vector<2x16xf32>
    %418 = vector.shape_cast %417 : vector<2x16xf32> to vector<2x16x1xf32>
    %419 = vector.broadcast %418 : vector<2x16x1xf32> to vector<2x16x8xf32>
    %420 = arith.subf %416, %419 : vector<2x16x8xf32>
    %421 = math.exp %420 : vector<2x16x8xf32>
    %cst_109 = arith.constant dense<0.000000e+00> : vector<2x16xf32>
    %422 = vector.multi_reduction <add>, %421, %cst_109 [2] : vector<2x16x8xf32> to vector<2x16xf32>
    %423 = vector.shape_cast %422 : vector<2x16xf32> to vector<2x16x1xf32>
    %424 = tpu.reciprocal %423 {approx = true} : vector<2x16x1xf32> -> vector<2x16x1xf32>
    %425 = vector.broadcast %424 : vector<2x16x1xf32> to vector<2x16x8xf32>
    %426 = arith.mulf %421, %425 : vector<2x16x8xf32>
    %427 = arith.truncf %426 : vector<2x16x8xf32> to vector<2x16x8xbf16>
    "tpu.trace_start"() <{level = 10 : i32, message = "bqk,bkd->bqd"}> : () -> ()
    %cst_110 = arith.constant dense<0.000000e+00> : vector<2x16x8xf32>
    %428 = tpu.matmul %427, %413, %cst_110 {dimension_numbers = #tpu.dot_dimension_numbers<[2], [1], [1], [2], [0, 0, 0, 1, 1, 2], [0], [0]>} : vector<2x16x8xbf16>, vector<2x8x8xbf16>, vector<2x16x8xf32> -> vector<2x16x8xf32>
    "tpu.trace_stop"() : () -> ()
    %429 = arith.addf %414, %428 : vector<2x16x8xf32>
    %430 = vector.extract_strided_slice %365 {offsets = [0, 0, 24], sizes = [2, 8, 8], strides = [1, 1, 1]} : vector<2x8x32xbf16> to vector<2x8x8xbf16>
    %431 = vector.extract_strided_slice %368 {offsets = [0, 0, 24], sizes = [2, 8, 8], strides = [1, 1, 1]} : vector<2x8x32xbf16> to vector<2x8x8xbf16>
    %432 = vector.extract_strided_slice %375 {offsets = [0, 0, 24], sizes = [2, 16, 8], strides = [1, 1, 1]} : vector<2x16x32xf32> to vector<2x16x8xf32>
    %433 = arith.truncf %432 : vector<2x16x8xf32> to vector<2x16x8xbf16>
    "tpu.trace_start"() <{level = 10 : i32, message = "bqd,bkd->bqk"}> : () -> ()
    %cst_111 = arith.constant dense<0.000000e+00> : vector<2x16x8xf32>
    %434 = tpu.matmul %433, %430, %cst_111 {dimension_numbers = #tpu.dot_dimension_numbers<[2], [2], [1], [1], [0, 0, 0, 1, 1, 1], [0], [0]>} : vector<2x16x8xbf16>, vector<2x8x8xbf16>, vector<2x16x8xf32> -> vector<2x16x8xf32>
    "tpu.trace_stop"() : () -> ()
    %cst_112 = arith.constant dense<0xFF800000> : vector<2x16xf32>
    %435 = vector.multi_reduction <maximumf>, %434, %cst_112 [2] : vector<2x16x8xf32> to vector<2x16xf32>
    %436 = vector.shape_cast %435 : vector<2x16xf32> to vector<2x16x1xf32>
    %437 = vector.broadcast %436 : vector<2x16x1xf32> to vector<2x16x8xf32>
    %438 = arith.subf %434, %437 : vector<2x16x8xf32>
    %439 = math.exp %438 : vector<2x16x8xf32>
    %cst_113 = arith.constant dense<0.000000e+00> : vector<2x16xf32>
    %440 = vector.multi_reduction <add>, %439, %cst_113 [2] : vector<2x16x8xf32> to vector<2x16xf32>
    %441 = vector.shape_cast %440 : vector<2x16xf32> to vector<2x16x1xf32>
    %442 = tpu.reciprocal %441 {approx = true} : vector<2x16x1xf32> -> vector<2x16x1xf32>
    %443 = vector.broadcast %442 : vector<2x16x1xf32> to vector<2x16x8xf32>
    %444 = arith.mulf %439, %443 : vector<2x16x8xf32>
    %445 = arith.truncf %444 : vector<2x16x8xf32> to vector<2x16x8xbf16>
    "tpu.trace_start"() <{level = 10 : i32, message = "bqk,bkd->bqd"}> : () -> ()
    %cst_114 = arith.constant dense<0.000000e+00> : vector<2x16x8xf32>
    %446 = tpu.matmul %445, %431, %cst_114 {dimension_numbers = #tpu.dot_dimension_numbers<[2], [1], [1], [2], [0, 0, 0, 1, 1, 2], [0], [0]>} : vector<2x16x8xbf16>, vector<2x8x8xbf16>, vector<2x16x8xf32> -> vector<2x16x8xf32>
    "tpu.trace_stop"() : () -> ()
    %447 = arith.addf %432, %446 : vector<2x16x8xf32>
    %448 = tpu.concatenate %393, %411, %429, %447 in 2 : vector<2x16x8xf32>, vector<2x16x8xf32>, vector<2x16x8xf32>, vector<2x16x8xf32> -> vector<2x16x32xf32>
    %449 = vector.shape_cast %448 : vector<2x16x32xf32> to vector<32x32xf32>
    %450 = arith.truncf %449 : vector<32x32xf32> to vector<32x32xbf16>
    %cst_115 = arith.constant dense<0.000000e+00> : vector<32x32xf32>
    %451 = tpu.matmul %450, %356, %cst_115 {dimension_numbers = #tpu.dot_dimension_numbers<[1], [0], [0], [1], [0, 0, 1, 1], [], []>} : vector<32x32xbf16>, vector<32x32xbf16>, vector<32x32xf32> -> vector<32x32xf32>
    %452 = vector.extract_strided_slice %355 {offsets = [0, 96], sizes = [1, 32], strides = [1, 1]} : vector<1x128xf32> to vector<1x32xf32>
    %453 = vector.broadcast %452 : vector<1x32xf32> to vector<32x32xf32>
    %454 = arith.addf %451, %453 : vector<32x32xf32>
    %cst_116 = arith.constant 0.000000e+00 : f32
    %455 = vector.broadcast %cst_116 : f32 to vector<32x32xf32>
    %456 = arith.maximumf %454, %455 : vector<32x32xf32>
    %457 = vector.shape_cast %456 : vector<32x32xf32> to vector<2x16x32xf32>
    %458 = arith.addf %448, %457 : vector<2x16x32xf32>
    %c0_117 = arith.constant 0 : index
    %c0_118 = arith.constant 0 : index
    %459 = vector.load %arg20[%c0_117, %c0_118] : memref<1x32xbf16, #tpu.memory_space<vmem>>, vector<1x32xbf16>
    %c0_119 = arith.constant 0 : index
    %c0_120 = arith.constant 0 : index
    %460 = vector.load %arg21[%c0_119, %c0_120] : memref<32x32xbf16, #tpu.memory_space<vmem>>, vector<32x32xbf16>
    %c0_121 = arith.constant 0 : index
    %c0_122 = arith.constant 0 : index
    %461 = vector.load %arg22[%c0_121, %c0_122] : memref<32x64xbf16, #tpu.memory_space<vmem>>, vector<32x64xbf16>
    %c0_123 = arith.constant 0 : index
    %c0_124 = arith.constant 0 : index
    %462 = vector.load %arg23[%c0_123, %c0_124] : memref<1x128xf32, #tpu.memory_space<vmem>>, vector<1x128xf32>
    %c0_125 = arith.constant 0 : index
    %c0_126 = arith.constant 0 : index
    %463 = vector.load %arg24[%c0_125, %c0_126] : memref<32x32xbf16, #tpu.memory_space<vmem>>, vector<32x32xbf16>
    %464 = vector.shape_cast %458 : vector<2x16x32xf32> to vector<32x32xf32>
    %465 = arith.truncf %464 : vector<32x32xf32> to vector<32x32xbf16>
    %cst_127 = arith.constant dense<0.000000e+00> : vector<32x64xf32>
    %466 = tpu.matmul %465, %461, %cst_127 {dimension_numbers = #tpu.dot_dimension_numbers<[1], [0], [0], [1], [0, 0, 1, 1], [], []>} : vector<32x32xbf16>, vector<32x64xbf16>, vector<32x64xf32> -> vector<32x64xf32>
    %467 = vector.extract_strided_slice %462 {offsets = [0, 32], sizes = [1, 64], strides = [1, 1]} : vector<1x128xf32> to vector<1x64xf32>
    %468 = vector.broadcast %467 : vector<1x64xf32> to vector<32x64xf32>
    %469 = arith.addf %466, %468 : vector<32x64xf32>
    %470 = vector.extract_strided_slice %469 {offsets = [0, 0], sizes = [32, 32], strides = [1, 1]} : vector<32x64xf32> to vector<32x32xf32>
    %471 = vector.shape_cast %470 : vector<32x32xf32> to vector<2x16x32xf32>
    %472 = arith.truncf %471 : vector<2x16x32xf32> to vector<2x16x32xbf16>
    %473 = vector.extract_strided_slice %469 {offsets = [0, 32], sizes = [32, 32], strides = [1, 1]} : vector<32x64xf32> to vector<32x32xf32>
    %474 = vector.shape_cast %473 : vector<32x32xf32> to vector<2x16x32xf32>
    %475 = arith.truncf %474 : vector<2x16x32xf32> to vector<2x16x32xbf16>
    %cst_128 = arith.constant dense<0.000000e+00> : vector<1x32xf32>
    %476 = tpu.matmul %459, %460, %cst_128 {dimension_numbers = #tpu.dot_dimension_numbers<[1], [0], [0], [1], [0, 0, 1, 1], [], []>} : vector<1x32xbf16>, vector<32x32xbf16>, vector<1x32xf32> -> vector<1x32xf32>
    %477 = vector.extract_strided_slice %462 {offsets = [0, 0], sizes = [1, 32], strides = [1, 1]} : vector<1x128xf32> to vector<1x32xf32>
    %478 = arith.addf %476, %477 : vector<1x32xf32>
    %479 = vector.extract_strided_slice %472 {offsets = [0, 0, 0], sizes = [2, 16, 8], strides = [1, 1, 1]} : vector<2x16x32xbf16> to vector<2x16x8xbf16>
    %480 = vector.extract_strided_slice %475 {offsets = [0, 0, 0], sizes = [2, 16, 8], strides = [1, 1, 1]} : vector<2x16x32xbf16> to vector<2x16x8xbf16>
    %481 = vector.extract_strided_slice %478 {offsets = [0, 0], sizes = [1, 8], strides = [1, 1]} : vector<1x32xf32> to vector<1x8xf32>
    %482 = arith.truncf %481 : vector<1x8xf32> to vector<1x8xbf16>
    %483 = vector.shape_cast %482 : vector<1x8xbf16> to vector<1x1x8xbf16>
    %484 = vector.shape_cast %483 : vector<1x1x8xbf16> to vector<1x1x8xbf16>
    %485 = vector.broadcast %484 : vector<1x1x8xbf16> to vector<2x1x8xbf16>
    "tpu.trace_start"() <{level = 10 : i32, message = "bqd,bkd->bqk"}> : () -> ()
    %cst_129 = arith.constant dense<0.000000e+00> : vector<2x1x16xf32>
    %486 = tpu.matmul %485, %479, %cst_129 {dimension_numbers = #tpu.dot_dimension_numbers<[2], [2], [1], [1], [0, 0, 0, 1, 1, 1], [0], [0]>} : vector<2x1x8xbf16>, vector<2x16x8xbf16>, vector<2x1x16xf32> -> vector<2x1x16xf32>
    "tpu.trace_stop"() : () -> ()
    %cst_130 = arith.constant dense<0xFF800000> : vector<2x1xf32>
    %487 = vector.multi_reduction <maximumf>, %486, %cst_130 [2] : vector<2x1x16xf32> to vector<2x1xf32>
    %488 = vector.shape_cast %487 : vector<2x1xf32> to vector<2x1x1xf32>
    %489 = vector.broadcast %488 : vector<2x1x1xf32> to vector<2x1x16xf32>
    %490 = arith.subf %486, %489 : vector<2x1x16xf32>
    %491 = math.exp %490 : vector<2x1x16xf32>
    %cst_131 = arith.constant dense<0.000000e+00> : vector<2x1xf32>
    %492 = vector.multi_reduction <add>, %491, %cst_131 [2] : vector<2x1x16xf32> to vector<2x1xf32>
    %493 = vector.shape_cast %492 : vector<2x1xf32> to vector<2x1x1xf32>
    %494 = tpu.reciprocal %493 {approx = true} : vector<2x1x1xf32> -> vector<2x1x1xf32>
    %495 = vector.broadcast %494 : vector<2x1x1xf32> to vector<2x1x16xf32>
    %496 = arith.mulf %491, %495 : vector<2x1x16xf32>
    %497 = arith.truncf %496 : vector<2x1x16xf32> to vector<2x1x16xbf16>
    "tpu.trace_start"() <{level = 10 : i32, message = "bqk,bkd->bqd"}> : () -> ()
    %cst_132 = arith.constant dense<0.000000e+00> : vector<2x1x8xf32>
    %498 = tpu.matmul %497, %480, %cst_132 {dimension_numbers = #tpu.dot_dimension_numbers<[2], [1], [1], [2], [0, 0, 0, 1, 1, 2], [0], [0]>} : vector<2x1x16xbf16>, vector<2x16x8xbf16>, vector<2x1x8xf32> -> vector<2x1x8xf32>
    "tpu.trace_stop"() : () -> ()
    %499 = vector.shape_cast %481 : vector<1x8xf32> to vector<1x1x8xf32>
    %500 = vector.broadcast %499 : vector<1x1x8xf32> to vector<2x1x8xf32>
    %501 = arith.addf %500, %498 : vector<2x1x8xf32>
    %502 = vector.extract_strided_slice %472 {offsets = [0, 0, 8], sizes = [2, 16, 8], strides = [1, 1, 1]} : vector<2x16x32xbf16> to vector<2x16x8xbf16>
    %503 = vector.extract_strided_slice %475 {offsets = [0, 0, 8], sizes = [2, 16, 8], strides = [1, 1, 1]} : vector<2x16x32xbf16> to vector<2x16x8xbf16>
    %504 = vector.extract_strided_slice %478 {offsets = [0, 8], sizes = [1, 8], strides = [1, 1]} : vector<1x32xf32> to vector<1x8xf32>
    %505 = arith.truncf %504 : vector<1x8xf32> to vector<1x8xbf16>
    %506 = vector.shape_cast %505 : vector<1x8xbf16> to vector<1x1x8xbf16>
    %507 = vector.shape_cast %506 : vector<1x1x8xbf16> to vector<1x1x8xbf16>
    %508 = vector.broadcast %507 : vector<1x1x8xbf16> to vector<2x1x8xbf16>
    "tpu.trace_start"() <{level = 10 : i32, message = "bqd,bkd->bqk"}> : () -> ()
    %cst_133 = arith.constant dense<0.000000e+00> : vector<2x1x16xf32>
    %509 = tpu.matmul %508, %502, %cst_133 {dimension_numbers = #tpu.dot_dimension_numbers<[2], [2], [1], [1], [0, 0, 0, 1, 1, 1], [0], [0]>} : vector<2x1x8xbf16>, vector<2x16x8xbf16>, vector<2x1x16xf32> -> vector<2x1x16xf32>
    "tpu.trace_stop"() : () -> ()
    %cst_134 = arith.constant dense<0xFF800000> : vector<2x1xf32>
    %510 = vector.multi_reduction <maximumf>, %509, %cst_134 [2] : vector<2x1x16xf32> to vector<2x1xf32>
    %511 = vector.shape_cast %510 : vector<2x1xf32> to vector<2x1x1xf32>
    %512 = vector.broadcast %511 : vector<2x1x1xf32> to vector<2x1x16xf32>
    %513 = arith.subf %509, %512 : vector<2x1x16xf32>
    %514 = math.exp %513 : vector<2x1x16xf32>
    %cst_135 = arith.constant dense<0.000000e+00> : vector<2x1xf32>
    %515 = vector.multi_reduction <add>, %514, %cst_135 [2] : vector<2x1x16xf32> to vector<2x1xf32>
    %516 = vector.shape_cast %515 : vector<2x1xf32> to vector<2x1x1xf32>
    %517 = tpu.reciprocal %516 {approx = true} : vector<2x1x1xf32> -> vector<2x1x1xf32>
    %518 = vector.broadcast %517 : vector<2x1x1xf32> to vector<2x1x16xf32>
    %519 = arith.mulf %514, %518 : vector<2x1x16xf32>
    %520 = arith.truncf %519 : vector<2x1x16xf32> to vector<2x1x16xbf16>
    "tpu.trace_start"() <{level = 10 : i32, message = "bqk,bkd->bqd"}> : () -> ()
    %cst_136 = arith.constant dense<0.000000e+00> : vector<2x1x8xf32>
    %521 = tpu.matmul %520, %503, %cst_136 {dimension_numbers = #tpu.dot_dimension_numbers<[2], [1], [1], [2], [0, 0, 0, 1, 1, 2], [0], [0]>} : vector<2x1x16xbf16>, vector<2x16x8xbf16>, vector<2x1x8xf32> -> vector<2x1x8xf32>
    "tpu.trace_stop"() : () -> ()
    %522 = vector.shape_cast %504 : vector<1x8xf32> to vector<1x1x8xf32>
    %523 = vector.broadcast %522 : vector<1x1x8xf32> to vector<2x1x8xf32>
    %524 = arith.addf %523, %521 : vector<2x1x8xf32>
    %525 = vector.extract_strided_slice %472 {offsets = [0, 0, 16], sizes = [2, 16, 8], strides = [1, 1, 1]} : vector<2x16x32xbf16> to vector<2x16x8xbf16>
    %526 = vector.extract_strided_slice %475 {offsets = [0, 0, 16], sizes = [2, 16, 8], strides = [1, 1, 1]} : vector<2x16x32xbf16> to vector<2x16x8xbf16>
    %527 = vector.extract_strided_slice %478 {offsets = [0, 16], sizes = [1, 8], strides = [1, 1]} : vector<1x32xf32> to vector<1x8xf32>
    %528 = arith.truncf %527 : vector<1x8xf32> to vector<1x8xbf16>
    %529 = vector.shape_cast %528 : vector<1x8xbf16> to vector<1x1x8xbf16>
    %530 = vector.shape_cast %529 : vector<1x1x8xbf16> to vector<1x1x8xbf16>
    %531 = vector.broadcast %530 : vector<1x1x8xbf16> to vector<2x1x8xbf16>
    "tpu.trace_start"() <{level = 10 : i32, message = "bqd,bkd->bqk"}> : () -> ()
    %cst_137 = arith.constant dense<0.000000e+00> : vector<2x1x16xf32>
    %532 = tpu.matmul %531, %525, %cst_137 {dimension_numbers = #tpu.dot_dimension_numbers<[2], [2], [1], [1], [0, 0, 0, 1, 1, 1], [0], [0]>} : vector<2x1x8xbf16>, vector<2x16x8xbf16>, vector<2x1x16xf32> -> vector<2x1x16xf32>
    "tpu.trace_stop"() : () -> ()
    %cst_138 = arith.constant dense<0xFF800000> : vector<2x1xf32>
    %533 = vector.multi_reduction <maximumf>, %532, %cst_138 [2] : vector<2x1x16xf32> to vector<2x1xf32>
    %534 = vector.shape_cast %533 : vector<2x1xf32> to vector<2x1x1xf32>
    %535 = vector.broadcast %534 : vector<2x1x1xf32> to vector<2x1x16xf32>
    %536 = arith.subf %532, %535 : vector<2x1x16xf32>
    %537 = math.exp %536 : vector<2x1x16xf32>
    %cst_139 = arith.constant dense<0.000000e+00> : vector<2x1xf32>
    %538 = vector.multi_reduction <add>, %537, %cst_139 [2] : vector<2x1x16xf32> to vector<2x1xf32>
    %539 = vector.shape_cast %538 : vector<2x1xf32> to vector<2x1x1xf32>
    %540 = tpu.reciprocal %539 {approx = true} : vector<2x1x1xf32> -> vector<2x1x1xf32>
    %541 = vector.broadcast %540 : vector<2x1x1xf32> to vector<2x1x16xf32>
    %542 = arith.mulf %537, %541 : vector<2x1x16xf32>
    %543 = arith.truncf %542 : vector<2x1x16xf32> to vector<2x1x16xbf16>
    "tpu.trace_start"() <{level = 10 : i32, message = "bqk,bkd->bqd"}> : () -> ()
    %cst_140 = arith.constant dense<0.000000e+00> : vector<2x1x8xf32>
    %544 = tpu.matmul %543, %526, %cst_140 {dimension_numbers = #tpu.dot_dimension_numbers<[2], [1], [1], [2], [0, 0, 0, 1, 1, 2], [0], [0]>} : vector<2x1x16xbf16>, vector<2x16x8xbf16>, vector<2x1x8xf32> -> vector<2x1x8xf32>
    "tpu.trace_stop"() : () -> ()
    %545 = vector.shape_cast %527 : vector<1x8xf32> to vector<1x1x8xf32>
    %546 = vector.broadcast %545 : vector<1x1x8xf32> to vector<2x1x8xf32>
    %547 = arith.addf %546, %544 : vector<2x1x8xf32>
    %548 = vector.extract_strided_slice %472 {offsets = [0, 0, 24], sizes = [2, 16, 8], strides = [1, 1, 1]} : vector<2x16x32xbf16> to vector<2x16x8xbf16>
    %549 = vector.extract_strided_slice %475 {offsets = [0, 0, 24], sizes = [2, 16, 8], strides = [1, 1, 1]} : vector<2x16x32xbf16> to vector<2x16x8xbf16>
    %550 = vector.extract_strided_slice %478 {offsets = [0, 24], sizes = [1, 8], strides = [1, 1]} : vector<1x32xf32> to vector<1x8xf32>
    %551 = arith.truncf %550 : vector<1x8xf32> to vector<1x8xbf16>
    %552 = vector.shape_cast %551 : vector<1x8xbf16> to vector<1x1x8xbf16>
    %553 = vector.shape_cast %552 : vector<1x1x8xbf16> to vector<1x1x8xbf16>
    %554 = vector.broadcast %553 : vector<1x1x8xbf16> to vector<2x1x8xbf16>
    "tpu.trace_start"() <{level = 10 : i32, message = "bqd,bkd->bqk"}> : () -> ()
    %cst_141 = arith.constant dense<0.000000e+00> : vector<2x1x16xf32>
    %555 = tpu.matmul %554, %548, %cst_141 {dimension_numbers = #tpu.dot_dimension_numbers<[2], [2], [1], [1], [0, 0, 0, 1, 1, 1], [0], [0]>} : vector<2x1x8xbf16>, vector<2x16x8xbf16>, vector<2x1x16xf32> -> vector<2x1x16xf32>
    "tpu.trace_stop"() : () -> ()
    %cst_142 = arith.constant dense<0xFF800000> : vector<2x1xf32>
    %556 = vector.multi_reduction <maximumf>, %555, %cst_142 [2] : vector<2x1x16xf32> to vector<2x1xf32>
    %557 = vector.shape_cast %556 : vector<2x1xf32> to vector<2x1x1xf32>
    %558 = vector.broadcast %557 : vector<2x1x1xf32> to vector<2x1x16xf32>
    %559 = arith.subf %555, %558 : vector<2x1x16xf32>
    %560 = math.exp %559 : vector<2x1x16xf32>
    %cst_143 = arith.constant dense<0.000000e+00> : vector<2x1xf32>
    %561 = vector.multi_reduction <add>, %560, %cst_143 [2] : vector<2x1x16xf32> to vector<2x1xf32>
    %562 = vector.shape_cast %561 : vector<2x1xf32> to vector<2x1x1xf32>
    %563 = tpu.reciprocal %562 {approx = true} : vector<2x1x1xf32> -> vector<2x1x1xf32>
    %564 = vector.broadcast %563 : vector<2x1x1xf32> to vector<2x1x16xf32>
    %565 = arith.mulf %560, %564 : vector<2x1x16xf32>
    %566 = arith.truncf %565 : vector<2x1x16xf32> to vector<2x1x16xbf16>
    "tpu.trace_start"() <{level = 10 : i32, message = "bqk,bkd->bqd"}> : () -> ()
    %cst_144 = arith.constant dense<0.000000e+00> : vector<2x1x8xf32>
    %567 = tpu.matmul %566, %549, %cst_144 {dimension_numbers = #tpu.dot_dimension_numbers<[2], [1], [1], [2], [0, 0, 0, 1, 1, 2], [0], [0]>} : vector<2x1x16xbf16>, vector<2x16x8xbf16>, vector<2x1x8xf32> -> vector<2x1x8xf32>
    "tpu.trace_stop"() : () -> ()
    %568 = vector.shape_cast %550 : vector<1x8xf32> to vector<1x1x8xf32>
    %569 = vector.broadcast %568 : vector<1x1x8xf32> to vector<2x1x8xf32>
    %570 = arith.addf %569, %567 : vector<2x1x8xf32>
    %571 = tpu.concatenate %501, %524, %547, %570 in 2 : vector<2x1x8xf32>, vector<2x1x8xf32>, vector<2x1x8xf32>, vector<2x1x8xf32> -> vector<2x1x32xf32>
    %572 = vector.shape_cast %571 : vector<2x1x32xf32> to vector<2x32xf32>
    %573 = arith.truncf %572 : vector<2x32xf32> to vector<2x32xbf16>
    %cst_145 = arith.constant dense<0.000000e+00> : vector<2x32xf32>
    %574 = tpu.matmul %573, %463, %cst_145 {dimension_numbers = #tpu.dot_dimension_numbers<[1], [0], [0], [1], [0, 0, 1, 1], [], []>} : vector<2x32xbf16>, vector<32x32xbf16>, vector<2x32xf32> -> vector<2x32xf32>
    %575 = vector.extract_strided_slice %462 {offsets = [0, 96], sizes = [1, 32], strides = [1, 1]} : vector<1x128xf32> to vector<1x32xf32>
    %576 = vector.broadcast %575 : vector<1x32xf32> to vector<2x32xf32>
    %577 = arith.addf %574, %576 : vector<2x32xf32>
    %cst_146 = arith.constant 0.000000e+00 : f32
    %578 = vector.broadcast %cst_146 : f32 to vector<2x32xf32>
    %579 = arith.maximumf %577, %578 : vector<2x32xf32>
    %580 = vector.shape_cast %579 : vector<2x32xf32> to vector<2x1x32xf32>
    %581 = arith.addf %571, %580 : vector<2x1x32xf32>
    %c0_147 = arith.constant 0 : index
    %c0_148 = arith.constant 0 : index
    %582 = vector.load %arg25[%c0_147, %c0_148] : memref<8x32xbf16, #tpu.memory_space<vmem>>, vector<8x32xbf16>
    %c0_149 = arith.constant 0 : index
    %c0_150 = arith.constant 0 : index
    %583 = vector.load %arg26[%c0_149, %c0_150] : memref<32x32xbf16, #tpu.memory_space<vmem>>, vector<32x32xbf16>
    %c0_151 = arith.constant 0 : index
    %c0_152 = arith.constant 0 : index
    %584 = vector.load %arg27[%c0_151, %c0_152] : memref<32x64xbf16, #tpu.memory_space<vmem>>, vector<32x64xbf16>
    %c0_153 = arith.constant 0 : index
    %c0_154 = arith.constant 0 : index
    %585 = vector.load %arg28[%c0_153, %c0_154] : memref<1x128xf32, #tpu.memory_space<vmem>>, vector<1x128xf32>
    %c0_155 = arith.constant 0 : index
    %c0_156 = arith.constant 0 : index
    %586 = vector.load %arg29[%c0_155, %c0_156] : memref<32x32xbf16, #tpu.memory_space<vmem>>, vector<32x32xbf16>
    %587 = vector.shape_cast %581 : vector<2x1x32xf32> to vector<2x32xf32>
    %588 = arith.truncf %587 : vector<2x32xf32> to vector<2x32xbf16>
    %cst_157 = arith.constant dense<0.000000e+00> : vector<2x64xf32>
    %589 = tpu.matmul %588, %584, %cst_157 {dimension_numbers = #tpu.dot_dimension_numbers<[1], [0], [0], [1], [0, 0, 1, 1], [], []>} : vector<2x32xbf16>, vector<32x64xbf16>, vector<2x64xf32> -> vector<2x64xf32>
    %590 = vector.extract_strided_slice %585 {offsets = [0, 32], sizes = [1, 64], strides = [1, 1]} : vector<1x128xf32> to vector<1x64xf32>
    %591 = vector.broadcast %590 : vector<1x64xf32> to vector<2x64xf32>
    %592 = arith.addf %589, %591 : vector<2x64xf32>
    %593 = vector.extract_strided_slice %592 {offsets = [0, 0], sizes = [2, 32], strides = [1, 1]} : vector<2x64xf32> to vector<2x32xf32>
    %594 = vector.shape_cast %593 : vector<2x32xf32> to vector<2x1x32xf32>
    %595 = arith.truncf %594 : vector<2x1x32xf32> to vector<2x1x32xbf16>
    %596 = vector.extract_strided_slice %592 {offsets = [0, 32], sizes = [2, 32], strides = [1, 1]} : vector<2x64xf32> to vector<2x32xf32>
    %597 = vector.shape_cast %596 : vector<2x32xf32> to vector<2x1x32xf32>
    %598 = arith.truncf %597 : vector<2x1x32xf32> to vector<2x1x32xbf16>
    %cst_158 = arith.constant dense<0.000000e+00> : vector<8x32xf32>
    %599 = tpu.matmul %582, %583, %cst_158 {dimension_numbers = #tpu.dot_dimension_numbers<[1], [0], [0], [1], [0, 0, 1, 1], [], []>} : vector<8x32xbf16>, vector<32x32xbf16>, vector<8x32xf32> -> vector<8x32xf32>
    %600 = vector.extract_strided_slice %585 {offsets = [0, 0], sizes = [1, 32], strides = [1, 1]} : vector<1x128xf32> to vector<1x32xf32>
    %601 = vector.broadcast %600 : vector<1x32xf32> to vector<8x32xf32>
    %602 = arith.addf %599, %601 : vector<8x32xf32>
    %603 = vector.extract_strided_slice %595 {offsets = [0, 0, 0], sizes = [2, 1, 8], strides = [1, 1, 1]} : vector<2x1x32xbf16> to vector<2x1x8xbf16>
    %604 = vector.extract_strided_slice %598 {offsets = [0, 0, 0], sizes = [2, 1, 8], strides = [1, 1, 1]} : vector<2x1x32xbf16> to vector<2x1x8xbf16>
    %605 = vector.extract_strided_slice %602 {offsets = [0, 0], sizes = [8, 8], strides = [1, 1]} : vector<8x32xf32> to vector<8x8xf32>
    %606 = arith.truncf %605 : vector<8x8xf32> to vector<8x8xbf16>
    %607 = vector.shape_cast %606 : vector<8x8xbf16> to vector<1x8x8xbf16>
    %608 = vector.shape_cast %607 : vector<1x8x8xbf16> to vector<1x8x8xbf16>
    %609 = vector.broadcast %608 : vector<1x8x8xbf16> to vector<2x8x8xbf16>
    "tpu.trace_start"() <{level = 10 : i32, message = "bqd,bkd->bqk"}> : () -> ()
    %cst_159 = arith.constant dense<0.000000e+00> : vector<2x8x1xf32>
    %610 = tpu.matmul %609, %603, %cst_159 {dimension_numbers = #tpu.dot_dimension_numbers<[2], [2], [1], [1], [0, 0, 0, 1, 1, 1], [0], [0]>} : vector<2x8x8xbf16>, vector<2x1x8xbf16>, vector<2x8x1xf32> -> vector<2x8x1xf32>
    "tpu.trace_stop"() : () -> ()
    %cst_160 = arith.constant dense<0xFF800000> : vector<2x8xf32>
    %611 = vector.multi_reduction <maximumf>, %610, %cst_160 [2] : vector<2x8x1xf32> to vector<2x8xf32>
    %612 = vector.shape_cast %611 : vector<2x8xf32> to vector<2x8x1xf32>
    %613 = arith.subf %610, %612 : vector<2x8x1xf32>
    %614 = math.exp %613 : vector<2x8x1xf32>
    %cst_161 = arith.constant dense<0.000000e+00> : vector<2x8xf32>
    %615 = vector.multi_reduction <add>, %614, %cst_161 [2] : vector<2x8x1xf32> to vector<2x8xf32>
    %616 = vector.shape_cast %615 : vector<2x8xf32> to vector<2x8x1xf32>
    %617 = tpu.reciprocal %616 {approx = true} : vector<2x8x1xf32> -> vector<2x8x1xf32>
    %618 = arith.mulf %614, %617 : vector<2x8x1xf32>
    %619 = arith.truncf %618 : vector<2x8x1xf32> to vector<2x8x1xbf16>
    "tpu.trace_start"() <{level = 10 : i32, message = "bqk,bkd->bqd"}> : () -> ()
    %cst_162 = arith.constant dense<0.000000e+00> : vector<2x8x8xf32>
    %620 = tpu.matmul %619, %604, %cst_162 {dimension_numbers = #tpu.dot_dimension_numbers<[2], [1], [1], [2], [0, 0, 0, 1, 1, 2], [0], [0]>} : vector<2x8x1xbf16>, vector<2x1x8xbf16>, vector<2x8x8xf32> -> vector<2x8x8xf32>
    "tpu.trace_stop"() : () -> ()
    %621 = vector.shape_cast %605 : vector<8x8xf32> to vector<1x8x8xf32>
    %622 = vector.broadcast %621 : vector<1x8x8xf32> to vector<2x8x8xf32>
    %623 = arith.addf %622, %620 : vector<2x8x8xf32>
    %624 = vector.extract_strided_slice %595 {offsets = [0, 0, 8], sizes = [2, 1, 8], strides = [1, 1, 1]} : vector<2x1x32xbf16> to vector<2x1x8xbf16>
    %625 = vector.extract_strided_slice %598 {offsets = [0, 0, 8], sizes = [2, 1, 8], strides = [1, 1, 1]} : vector<2x1x32xbf16> to vector<2x1x8xbf16>
    %626 = vector.extract_strided_slice %602 {offsets = [0, 8], sizes = [8, 8], strides = [1, 1]} : vector<8x32xf32> to vector<8x8xf32>
    %627 = arith.truncf %626 : vector<8x8xf32> to vector<8x8xbf16>
    %628 = vector.shape_cast %627 : vector<8x8xbf16> to vector<1x8x8xbf16>
    %629 = vector.shape_cast %628 : vector<1x8x8xbf16> to vector<1x8x8xbf16>
    %630 = vector.broadcast %629 : vector<1x8x8xbf16> to vector<2x8x8xbf16>
    "tpu.trace_start"() <{level = 10 : i32, message = "bqd,bkd->bqk"}> : () -> ()
    %cst_163 = arith.constant dense<0.000000e+00> : vector<2x8x1xf32>
    %631 = tpu.matmul %630, %624, %cst_163 {dimension_numbers = #tpu.dot_dimension_numbers<[2], [2], [1], [1], [0, 0, 0, 1, 1, 1], [0], [0]>} : vector<2x8x8xbf16>, vector<2x1x8xbf16>, vector<2x8x1xf32> -> vector<2x8x1xf32>
    "tpu.trace_stop"() : () -> ()
    %cst_164 = arith.constant dense<0xFF800000> : vector<2x8xf32>
    %632 = vector.multi_reduction <maximumf>, %631, %cst_164 [2] : vector<2x8x1xf32> to vector<2x8xf32>
    %633 = vector.shape_cast %632 : vector<2x8xf32> to vector<2x8x1xf32>
    %634 = arith.subf %631, %633 : vector<2x8x1xf32>
    %635 = math.exp %634 : vector<2x8x1xf32>
    %cst_165 = arith.constant dense<0.000000e+00> : vector<2x8xf32>
    %636 = vector.multi_reduction <add>, %635, %cst_165 [2] : vector<2x8x1xf32> to vector<2x8xf32>
    %637 = vector.shape_cast %636 : vector<2x8xf32> to vector<2x8x1xf32>
    %638 = tpu.reciprocal %637 {approx = true} : vector<2x8x1xf32> -> vector<2x8x1xf32>
    %639 = arith.mulf %635, %638 : vector<2x8x1xf32>
    %640 = arith.truncf %639 : vector<2x8x1xf32> to vector<2x8x1xbf16>
    "tpu.trace_start"() <{level = 10 : i32, message = "bqk,bkd->bqd"}> : () -> ()
    %cst_166 = arith.constant dense<0.000000e+00> : vector<2x8x8xf32>
    %641 = tpu.matmul %640, %625, %cst_166 {dimension_numbers = #tpu.dot_dimension_numbers<[2], [1], [1], [2], [0, 0, 0, 1, 1, 2], [0], [0]>} : vector<2x8x1xbf16>, vector<2x1x8xbf16>, vector<2x8x8xf32> -> vector<2x8x8xf32>
    "tpu.trace_stop"() : () -> ()
    %642 = vector.shape_cast %626 : vector<8x8xf32> to vector<1x8x8xf32>
    %643 = vector.broadcast %642 : vector<1x8x8xf32> to vector<2x8x8xf32>
    %644 = arith.addf %643, %641 : vector<2x8x8xf32>
    %645 = vector.extract_strided_slice %595 {offsets = [0, 0, 16], sizes = [2, 1, 8], strides = [1, 1, 1]} : vector<2x1x32xbf16> to vector<2x1x8xbf16>
    %646 = vector.extract_strided_slice %598 {offsets = [0, 0, 16], sizes = [2, 1, 8], strides = [1, 1, 1]} : vector<2x1x32xbf16> to vector<2x1x8xbf16>
    %647 = vector.extract_strided_slice %602 {offsets = [0, 16], sizes = [8, 8], strides = [1, 1]} : vector<8x32xf32> to vector<8x8xf32>
    %648 = arith.truncf %647 : vector<8x8xf32> to vector<8x8xbf16>
    %649 = vector.shape_cast %648 : vector<8x8xbf16> to vector<1x8x8xbf16>
    %650 = vector.shape_cast %649 : vector<1x8x8xbf16> to vector<1x8x8xbf16>
    %651 = vector.broadcast %650 : vector<1x8x8xbf16> to vector<2x8x8xbf16>
    "tpu.trace_start"() <{level = 10 : i32, message = "bqd,bkd->bqk"}> : () -> ()
    %cst_167 = arith.constant dense<0.000000e+00> : vector<2x8x1xf32>
    %652 = tpu.matmul %651, %645, %cst_167 {dimension_numbers = #tpu.dot_dimension_numbers<[2], [2], [1], [1], [0, 0, 0, 1, 1, 1], [0], [0]>} : vector<2x8x8xbf16>, vector<2x1x8xbf16>, vector<2x8x1xf32> -> vector<2x8x1xf32>
    "tpu.trace_stop"() : () -> ()
    %cst_168 = arith.constant dense<0xFF800000> : vector<2x8xf32>
    %653 = vector.multi_reduction <maximumf>, %652, %cst_168 [2] : vector<2x8x1xf32> to vector<2x8xf32>
    %654 = vector.shape_cast %653 : vector<2x8xf32> to vector<2x8x1xf32>
    %655 = arith.subf %652, %654 : vector<2x8x1xf32>
    %656 = math.exp %655 : vector<2x8x1xf32>
    %cst_169 = arith.constant dense<0.000000e+00> : vector<2x8xf32>
    %657 = vector.multi_reduction <add>, %656, %cst_169 [2] : vector<2x8x1xf32> to vector<2x8xf32>
    %658 = vector.shape_cast %657 : vector<2x8xf32> to vector<2x8x1xf32>
    %659 = tpu.reciprocal %658 {approx = true} : vector<2x8x1xf32> -> vector<2x8x1xf32>
    %660 = arith.mulf %656, %659 : vector<2x8x1xf32>
    %661 = arith.truncf %660 : vector<2x8x1xf32> to vector<2x8x1xbf16>
    "tpu.trace_start"() <{level = 10 : i32, message = "bqk,bkd->bqd"}> : () -> ()
    %cst_170 = arith.constant dense<0.000000e+00> : vector<2x8x8xf32>
    %662 = tpu.matmul %661, %646, %cst_170 {dimension_numbers = #tpu.dot_dimension_numbers<[2], [1], [1], [2], [0, 0, 0, 1, 1, 2], [0], [0]>} : vector<2x8x1xbf16>, vector<2x1x8xbf16>, vector<2x8x8xf32> -> vector<2x8x8xf32>
    "tpu.trace_stop"() : () -> ()
    %663 = vector.shape_cast %647 : vector<8x8xf32> to vector<1x8x8xf32>
    %664 = vector.broadcast %663 : vector<1x8x8xf32> to vector<2x8x8xf32>
    %665 = arith.addf %664, %662 : vector<2x8x8xf32>
    %666 = vector.extract_strided_slice %595 {offsets = [0, 0, 24], sizes = [2, 1, 8], strides = [1, 1, 1]} : vector<2x1x32xbf16> to vector<2x1x8xbf16>
    %667 = vector.extract_strided_slice %598 {offsets = [0, 0, 24], sizes = [2, 1, 8], strides = [1, 1, 1]} : vector<2x1x32xbf16> to vector<2x1x8xbf16>
    %668 = vector.extract_strided_slice %602 {offsets = [0, 24], sizes = [8, 8], strides = [1, 1]} : vector<8x32xf32> to vector<8x8xf32>
    %669 = arith.truncf %668 : vector<8x8xf32> to vector<8x8xbf16>
    %670 = vector.shape_cast %669 : vector<8x8xbf16> to vector<1x8x8xbf16>
    %671 = vector.shape_cast %670 : vector<1x8x8xbf16> to vector<1x8x8xbf16>
    %672 = vector.broadcast %671 : vector<1x8x8xbf16> to vector<2x8x8xbf16>
    "tpu.trace_start"() <{level = 10 : i32, message = "bqd,bkd->bqk"}> : () -> ()
    %cst_171 = arith.constant dense<0.000000e+00> : vector<2x8x1xf32>
    %673 = tpu.matmul %672, %666, %cst_171 {dimension_numbers = #tpu.dot_dimension_numbers<[2], [2], [1], [1], [0, 0, 0, 1, 1, 1], [0], [0]>} : vector<2x8x8xbf16>, vector<2x1x8xbf16>, vector<2x8x1xf32> -> vector<2x8x1xf32>
    "tpu.trace_stop"() : () -> ()
    %cst_172 = arith.constant dense<0xFF800000> : vector<2x8xf32>
    %674 = vector.multi_reduction <maximumf>, %673, %cst_172 [2] : vector<2x8x1xf32> to vector<2x8xf32>
    %675 = vector.shape_cast %674 : vector<2x8xf32> to vector<2x8x1xf32>
    %676 = arith.subf %673, %675 : vector<2x8x1xf32>
    %677 = math.exp %676 : vector<2x8x1xf32>
    %cst_173 = arith.constant dense<0.000000e+00> : vector<2x8xf32>
    %678 = vector.multi_reduction <add>, %677, %cst_173 [2] : vector<2x8x1xf32> to vector<2x8xf32>
    %679 = vector.shape_cast %678 : vector<2x8xf32> to vector<2x8x1xf32>
    %680 = tpu.reciprocal %679 {approx = true} : vector<2x8x1xf32> -> vector<2x8x1xf32>
    %681 = arith.mulf %677, %680 : vector<2x8x1xf32>
    %682 = arith.truncf %681 : vector<2x8x1xf32> to vector<2x8x1xbf16>
    "tpu.trace_start"() <{level = 10 : i32, message = "bqk,bkd->bqd"}> : () -> ()
    %cst_174 = arith.constant dense<0.000000e+00> : vector<2x8x8xf32>
    %683 = tpu.matmul %682, %667, %cst_174 {dimension_numbers = #tpu.dot_dimension_numbers<[2], [1], [1], [2], [0, 0, 0, 1, 1, 2], [0], [0]>} : vector<2x8x1xbf16>, vector<2x1x8xbf16>, vector<2x8x8xf32> -> vector<2x8x8xf32>
    "tpu.trace_stop"() : () -> ()
    %684 = vector.shape_cast %668 : vector<8x8xf32> to vector<1x8x8xf32>
    %685 = vector.broadcast %684 : vector<1x8x8xf32> to vector<2x8x8xf32>
    %686 = arith.addf %685, %683 : vector<2x8x8xf32>
    %687 = tpu.concatenate %623, %644, %665, %686 in 2 : vector<2x8x8xf32>, vector<2x8x8xf32>, vector<2x8x8xf32>, vector<2x8x8xf32> -> vector<2x8x32xf32>
    %688 = vector.shape_cast %687 : vector<2x8x32xf32> to vector<16x32xf32>
    %689 = arith.truncf %688 : vector<16x32xf32> to vector<16x32xbf16>
    %cst_175 = arith.constant dense<0.000000e+00> : vector<16x32xf32>
    %690 = tpu.matmul %689, %586, %cst_175 {dimension_numbers = #tpu.dot_dimension_numbers<[1], [0], [0], [1], [0, 0, 1, 1], [], []>} : vector<16x32xbf16>, vector<32x32xbf16>, vector<16x32xf32> -> vector<16x32xf32>
    %691 = vector.extract_strided_slice %585 {offsets = [0, 96], sizes = [1, 32], strides = [1, 1]} : vector<1x128xf32> to vector<1x32xf32>
    %692 = vector.broadcast %691 : vector<1x32xf32> to vector<16x32xf32>
    %693 = arith.addf %690, %692 : vector<16x32xf32>
    %cst_176 = arith.constant 0.000000e+00 : f32
    %694 = vector.broadcast %cst_176 : f32 to vector<16x32xf32>
    %695 = arith.maximumf %693, %694 : vector<16x32xf32>
    %696 = vector.shape_cast %695 : vector<16x32xf32> to vector<2x8x32xf32>
    %697 = arith.addf %687, %696 : vector<2x8x32xf32>
    %c0_177 = arith.constant 0 : index
    %c0_178 = arith.constant 0 : index
    %698 = vector.load %arg30[%c0_177, %c0_178] : memref<32x32xbf16, #tpu.memory_space<vmem>>, vector<32x32xbf16>
    %c0_179 = arith.constant 0 : index
    %c0_180 = arith.constant 0 : index
    %699 = vector.load %arg31[%c0_179, %c0_180] : memref<32x64xbf16, #tpu.memory_space<vmem>>, vector<32x64xbf16>
    %c0_181 = arith.constant 0 : index
    %c0_182 = arith.constant 0 : index
    %700 = vector.load %arg32[%c0_181, %c0_182] : memref<1x128xf32, #tpu.memory_space<vmem>>, vector<1x128xf32>
    %c0_183 = arith.constant 0 : index
    %c0_184 = arith.constant 0 : index
    %701 = vector.load %arg33[%c0_183, %c0_184] : memref<32x32xbf16, #tpu.memory_space<vmem>>, vector<32x32xbf16>
    %702 = vector.shape_cast %697 : vector<2x8x32xf32> to vector<16x32xf32>
    %703 = arith.truncf %702 : vector<16x32xf32> to vector<16x32xbf16>
    %cst_185 = arith.constant dense<0.000000e+00> : vector<16x64xf32>
    %704 = tpu.matmul %703, %699, %cst_185 {dimension_numbers = #tpu.dot_dimension_numbers<[1], [0], [0], [1], [0, 0, 1, 1], [], []>} : vector<16x32xbf16>, vector<32x64xbf16>, vector<16x64xf32> -> vector<16x64xf32>
    %705 = vector.extract_strided_slice %700 {offsets = [0, 32], sizes = [1, 64], strides = [1, 1]} : vector<1x128xf32> to vector<1x64xf32>
    %706 = vector.broadcast %705 : vector<1x64xf32> to vector<16x64xf32>
    %707 = arith.addf %704, %706 : vector<16x64xf32>
    %708 = vector.extract_strided_slice %707 {offsets = [0, 0], sizes = [16, 32], strides = [1, 1]} : vector<16x64xf32> to vector<16x32xf32>
    %709 = vector.shape_cast %708 : vector<16x32xf32> to vector<2x8x32xf32>
    %710 = arith.truncf %709 : vector<2x8x32xf32> to vector<2x8x32xbf16>
    %711 = vector.extract_strided_slice %707 {offsets = [0, 32], sizes = [16, 32], strides = [1, 1]} : vector<16x64xf32> to vector<16x32xf32>
    %712 = vector.shape_cast %711 : vector<16x32xf32> to vector<2x8x32xf32>
    %713 = arith.truncf %712 : vector<2x8x32xf32> to vector<2x8x32xbf16>
    %714 = vector.shape_cast %581 : vector<2x1x32xf32> to vector<2x32xf32>
    %715 = arith.truncf %714 : vector<2x32xf32> to vector<2x32xbf16>
    %cst_186 = arith.constant dense<0.000000e+00> : vector<2x32xf32>
    %716 = tpu.matmul %715, %698, %cst_186 {dimension_numbers = #tpu.dot_dimension_numbers<[1], [0], [0], [1], [0, 0, 1, 1], [], []>} : vector<2x32xbf16>, vector<32x32xbf16>, vector<2x32xf32> -> vector<2x32xf32>
    %717 = vector.extract_strided_slice %700 {offsets = [0, 0], sizes = [1, 32], strides = [1, 1]} : vector<1x128xf32> to vector<1x32xf32>
    %718 = vector.broadcast %717 : vector<1x32xf32> to vector<2x32xf32>
    %719 = arith.addf %716, %718 : vector<2x32xf32>
    %720 = vector.shape_cast %719 : vector<2x32xf32> to vector<2x1x32xf32>
    %721 = vector.extract_strided_slice %710 {offsets = [0, 0, 0], sizes = [2, 8, 8], strides = [1, 1, 1]} : vector<2x8x32xbf16> to vector<2x8x8xbf16>
    %722 = vector.extract_strided_slice %713 {offsets = [0, 0, 0], sizes = [2, 8, 8], strides = [1, 1, 1]} : vector<2x8x32xbf16> to vector<2x8x8xbf16>
    %723 = vector.extract_strided_slice %720 {offsets = [0, 0, 0], sizes = [2, 1, 8], strides = [1, 1, 1]} : vector<2x1x32xf32> to vector<2x1x8xf32>
    %724 = arith.truncf %723 : vector<2x1x8xf32> to vector<2x1x8xbf16>
    "tpu.trace_start"() <{level = 10 : i32, message = "bqd,bkd->bqk"}> : () -> ()
    %cst_187 = arith.constant dense<0.000000e+00> : vector<2x1x8xf32>
    %725 = tpu.matmul %724, %721, %cst_187 {dimension_numbers = #tpu.dot_dimension_numbers<[2], [2], [1], [1], [0, 0, 0, 1, 1, 1], [0], [0]>} : vector<2x1x8xbf16>, vector<2x8x8xbf16>, vector<2x1x8xf32> -> vector<2x1x8xf32>
    "tpu.trace_stop"() : () -> ()
    %cst_188 = arith.constant dense<0xFF800000> : vector<2x1xf32>
    %726 = vector.multi_reduction <maximumf>, %725, %cst_188 [2] : vector<2x1x8xf32> to vector<2x1xf32>
    %727 = vector.shape_cast %726 : vector<2x1xf32> to vector<2x1x1xf32>
    %728 = vector.broadcast %727 : vector<2x1x1xf32> to vector<2x1x8xf32>
    %729 = arith.subf %725, %728 : vector<2x1x8xf32>
    %730 = math.exp %729 : vector<2x1x8xf32>
    %cst_189 = arith.constant dense<0.000000e+00> : vector<2x1xf32>
    %731 = vector.multi_reduction <add>, %730, %cst_189 [2] : vector<2x1x8xf32> to vector<2x1xf32>
    %732 = vector.shape_cast %731 : vector<2x1xf32> to vector<2x1x1xf32>
    %733 = tpu.reciprocal %732 {approx = true} : vector<2x1x1xf32> -> vector<2x1x1xf32>
    %734 = vector.broadcast %733 : vector<2x1x1xf32> to vector<2x1x8xf32>
    %735 = arith.mulf %730, %734 : vector<2x1x8xf32>
    %736 = arith.truncf %735 : vector<2x1x8xf32> to vector<2x1x8xbf16>
    "tpu.trace_start"() <{level = 10 : i32, message = "bqk,bkd->bqd"}> : () -> ()
    %cst_190 = arith.constant dense<0.000000e+00> : vector<2x1x8xf32>
    %737 = tpu.matmul %736, %722, %cst_190 {dimension_numbers = #tpu.dot_dimension_numbers<[2], [1], [1], [2], [0, 0, 0, 1, 1, 2], [0], [0]>} : vector<2x1x8xbf16>, vector<2x8x8xbf16>, vector<2x1x8xf32> -> vector<2x1x8xf32>
    "tpu.trace_stop"() : () -> ()
    %738 = arith.addf %723, %737 : vector<2x1x8xf32>
    %739 = vector.extract_strided_slice %710 {offsets = [0, 0, 8], sizes = [2, 8, 8], strides = [1, 1, 1]} : vector<2x8x32xbf16> to vector<2x8x8xbf16>
    %740 = vector.extract_strided_slice %713 {offsets = [0, 0, 8], sizes = [2, 8, 8], strides = [1, 1, 1]} : vector<2x8x32xbf16> to vector<2x8x8xbf16>
    %741 = vector.extract_strided_slice %720 {offsets = [0, 0, 8], sizes = [2, 1, 8], strides = [1, 1, 1]} : vector<2x1x32xf32> to vector<2x1x8xf32>
    %742 = arith.truncf %741 : vector<2x1x8xf32> to vector<2x1x8xbf16>
    "tpu.trace_start"() <{level = 10 : i32, message = "bqd,bkd->bqk"}> : () -> ()
    %cst_191 = arith.constant dense<0.000000e+00> : vector<2x1x8xf32>
    %743 = tpu.matmul %742, %739, %cst_191 {dimension_numbers = #tpu.dot_dimension_numbers<[2], [2], [1], [1], [0, 0, 0, 1, 1, 1], [0], [0]>} : vector<2x1x8xbf16>, vector<2x8x8xbf16>, vector<2x1x8xf32> -> vector<2x1x8xf32>
    "tpu.trace_stop"() : () -> ()
    %cst_192 = arith.constant dense<0xFF800000> : vector<2x1xf32>
    %744 = vector.multi_reduction <maximumf>, %743, %cst_192 [2] : vector<2x1x8xf32> to vector<2x1xf32>
    %745 = vector.shape_cast %744 : vector<2x1xf32> to vector<2x1x1xf32>
    %746 = vector.broadcast %745 : vector<2x1x1xf32> to vector<2x1x8xf32>
    %747 = arith.subf %743, %746 : vector<2x1x8xf32>
    %748 = math.exp %747 : vector<2x1x8xf32>
    %cst_193 = arith.constant dense<0.000000e+00> : vector<2x1xf32>
    %749 = vector.multi_reduction <add>, %748, %cst_193 [2] : vector<2x1x8xf32> to vector<2x1xf32>
    %750 = vector.shape_cast %749 : vector<2x1xf32> to vector<2x1x1xf32>
    %751 = tpu.reciprocal %750 {approx = true} : vector<2x1x1xf32> -> vector<2x1x1xf32>
    %752 = vector.broadcast %751 : vector<2x1x1xf32> to vector<2x1x8xf32>
    %753 = arith.mulf %748, %752 : vector<2x1x8xf32>
    %754 = arith.truncf %753 : vector<2x1x8xf32> to vector<2x1x8xbf16>
    "tpu.trace_start"() <{level = 10 : i32, message = "bqk,bkd->bqd"}> : () -> ()
    %cst_194 = arith.constant dense<0.000000e+00> : vector<2x1x8xf32>
    %755 = tpu.matmul %754, %740, %cst_194 {dimension_numbers = #tpu.dot_dimension_numbers<[2], [1], [1], [2], [0, 0, 0, 1, 1, 2], [0], [0]>} : vector<2x1x8xbf16>, vector<2x8x8xbf16>, vector<2x1x8xf32> -> vector<2x1x8xf32>
    "tpu.trace_stop"() : () -> ()
    %756 = arith.addf %741, %755 : vector<2x1x8xf32>
    %757 = vector.extract_strided_slice %710 {offsets = [0, 0, 16], sizes = [2, 8, 8], strides = [1, 1, 1]} : vector<2x8x32xbf16> to vector<2x8x8xbf16>
    %758 = vector.extract_strided_slice %713 {offsets = [0, 0, 16], sizes = [2, 8, 8], strides = [1, 1, 1]} : vector<2x8x32xbf16> to vector<2x8x8xbf16>
    %759 = vector.extract_strided_slice %720 {offsets = [0, 0, 16], sizes = [2, 1, 8], strides = [1, 1, 1]} : vector<2x1x32xf32> to vector<2x1x8xf32>
    %760 = arith.truncf %759 : vector<2x1x8xf32> to vector<2x1x8xbf16>
    "tpu.trace_start"() <{level = 10 : i32, message = "bqd,bkd->bqk"}> : () -> ()
    %cst_195 = arith.constant dense<0.000000e+00> : vector<2x1x8xf32>
    %761 = tpu.matmul %760, %757, %cst_195 {dimension_numbers = #tpu.dot_dimension_numbers<[2], [2], [1], [1], [0, 0, 0, 1, 1, 1], [0], [0]>} : vector<2x1x8xbf16>, vector<2x8x8xbf16>, vector<2x1x8xf32> -> vector<2x1x8xf32>
    "tpu.trace_stop"() : () -> ()
    %cst_196 = arith.constant dense<0xFF800000> : vector<2x1xf32>
    %762 = vector.multi_reduction <maximumf>, %761, %cst_196 [2] : vector<2x1x8xf32> to vector<2x1xf32>
    %763 = vector.shape_cast %762 : vector<2x1xf32> to vector<2x1x1xf32>
    %764 = vector.broadcast %763 : vector<2x1x1xf32> to vector<2x1x8xf32>
    %765 = arith.subf %761, %764 : vector<2x1x8xf32>
    %766 = math.exp %765 : vector<2x1x8xf32>
    %cst_197 = arith.constant dense<0.000000e+00> : vector<2x1xf32>
    %767 = vector.multi_reduction <add>, %766, %cst_197 [2] : vector<2x1x8xf32> to vector<2x1xf32>
    %768 = vector.shape_cast %767 : vector<2x1xf32> to vector<2x1x1xf32>
    %769 = tpu.reciprocal %768 {approx = true} : vector<2x1x1xf32> -> vector<2x1x1xf32>
    %770 = vector.broadcast %769 : vector<2x1x1xf32> to vector<2x1x8xf32>
    %771 = arith.mulf %766, %770 : vector<2x1x8xf32>
    %772 = arith.truncf %771 : vector<2x1x8xf32> to vector<2x1x8xbf16>
    "tpu.trace_start"() <{level = 10 : i32, message = "bqk,bkd->bqd"}> : () -> ()
    %cst_198 = arith.constant dense<0.000000e+00> : vector<2x1x8xf32>
    %773 = tpu.matmul %772, %758, %cst_198 {dimension_numbers = #tpu.dot_dimension_numbers<[2], [1], [1], [2], [0, 0, 0, 1, 1, 2], [0], [0]>} : vector<2x1x8xbf16>, vector<2x8x8xbf16>, vector<2x1x8xf32> -> vector<2x1x8xf32>
    "tpu.trace_stop"() : () -> ()
    %774 = arith.addf %759, %773 : vector<2x1x8xf32>
    %775 = vector.extract_strided_slice %710 {offsets = [0, 0, 24], sizes = [2, 8, 8], strides = [1, 1, 1]} : vector<2x8x32xbf16> to vector<2x8x8xbf16>
    %776 = vector.extract_strided_slice %713 {offsets = [0, 0, 24], sizes = [2, 8, 8], strides = [1, 1, 1]} : vector<2x8x32xbf16> to vector<2x8x8xbf16>
    %777 = vector.extract_strided_slice %720 {offsets = [0, 0, 24], sizes = [2, 1, 8], strides = [1, 1, 1]} : vector<2x1x32xf32> to vector<2x1x8xf32>
    %778 = arith.truncf %777 : vector<2x1x8xf32> to vector<2x1x8xbf16>
    "tpu.trace_start"() <{level = 10 : i32, message = "bqd,bkd->bqk"}> : () -> ()
    %cst_199 = arith.constant dense<0.000000e+00> : vector<2x1x8xf32>
    %779 = tpu.matmul %778, %775, %cst_199 {dimension_numbers = #tpu.dot_dimension_numbers<[2], [2], [1], [1], [0, 0, 0, 1, 1, 1], [0], [0]>} : vector<2x1x8xbf16>, vector<2x8x8xbf16>, vector<2x1x8xf32> -> vector<2x1x8xf32>
    "tpu.trace_stop"() : () -> ()
    %cst_200 = arith.constant dense<0xFF800000> : vector<2x1xf32>
    %780 = vector.multi_reduction <maximumf>, %779, %cst_200 [2] : vector<2x1x8xf32> to vector<2x1xf32>
    %781 = vector.shape_cast %780 : vector<2x1xf32> to vector<2x1x1xf32>
    %782 = vector.broadcast %781 : vector<2x1x1xf32> to vector<2x1x8xf32>
    %783 = arith.subf %779, %782 : vector<2x1x8xf32>
    %784 = math.exp %783 : vector<2x1x8xf32>
    %cst_201 = arith.constant dense<0.000000e+00> : vector<2x1xf32>
    %785 = vector.multi_reduction <add>, %784, %cst_201 [2] : vector<2x1x8xf32> to vector<2x1xf32>
    %786 = vector.shape_cast %785 : vector<2x1xf32> to vector<2x1x1xf32>
    %787 = tpu.reciprocal %786 {approx = true} : vector<2x1x1xf32> -> vector<2x1x1xf32>
    %788 = vector.broadcast %787 : vector<2x1x1xf32> to vector<2x1x8xf32>
    %789 = arith.mulf %784, %788 : vector<2x1x8xf32>
    %790 = arith.truncf %789 : vector<2x1x8xf32> to vector<2x1x8xbf16>
    "tpu.trace_start"() <{level = 10 : i32, message = "bqk,bkd->bqd"}> : () -> ()
    %cst_202 = arith.constant dense<0.000000e+00> : vector<2x1x8xf32>
    %791 = tpu.matmul %790, %776, %cst_202 {dimension_numbers = #tpu.dot_dimension_numbers<[2], [1], [1], [2], [0, 0, 0, 1, 1, 2], [0], [0]>} : vector<2x1x8xbf16>, vector<2x8x8xbf16>, vector<2x1x8xf32> -> vector<2x1x8xf32>
    "tpu.trace_stop"() : () -> ()
    %792 = arith.addf %777, %791 : vector<2x1x8xf32>
    %793 = tpu.concatenate %738, %756, %774, %792 in 2 : vector<2x1x8xf32>, vector<2x1x8xf32>, vector<2x1x8xf32>, vector<2x1x8xf32> -> vector<2x1x32xf32>
    %794 = vector.shape_cast %793 : vector<2x1x32xf32> to vector<2x32xf32>
    %795 = arith.truncf %794 : vector<2x32xf32> to vector<2x32xbf16>
    %cst_203 = arith.constant dense<0.000000e+00> : vector<2x32xf32>
    %796 = tpu.matmul %795, %701, %cst_203 {dimension_numbers = #tpu.dot_dimension_numbers<[1], [0], [0], [1], [0, 0, 1, 1], [], []>} : vector<2x32xbf16>, vector<32x32xbf16>, vector<2x32xf32> -> vector<2x32xf32>
    %797 = vector.extract_strided_slice %700 {offsets = [0, 96], sizes = [1, 32], strides = [1, 1]} : vector<1x128xf32> to vector<1x32xf32>
    %798 = vector.broadcast %797 : vector<1x32xf32> to vector<2x32xf32>
    %799 = arith.addf %796, %798 : vector<2x32xf32>
    %cst_204 = arith.constant 0.000000e+00 : f32
    %800 = vector.broadcast %cst_204 : f32 to vector<2x32xf32>
    %801 = arith.maximumf %799, %800 : vector<2x32xf32>
    %802 = vector.shape_cast %801 : vector<2x32xf32> to vector<2x1x32xf32>
    %803 = arith.addf %793, %802 : vector<2x1x32xf32>
    %c0_205 = arith.constant 0 : index
    %c0_206 = arith.constant 0 : index
    %804 = vector.load %arg34[%c0_205, %c0_206] : memref<8x32xbf16, #tpu.memory_space<vmem>>, vector<8x32xbf16>
    %c0_207 = arith.constant 0 : index
    %c0_208 = arith.constant 0 : index
    %805 = vector.load %arg35[%c0_207, %c0_208] : memref<32x32xbf16, #tpu.memory_space<vmem>>, vector<32x32xbf16>
    %c0_209 = arith.constant 0 : index
    %c0_210 = arith.constant 0 : index
    %806 = vector.load %arg36[%c0_209, %c0_210] : memref<32x64xbf16, #tpu.memory_space<vmem>>, vector<32x64xbf16>
    %c0_211 = arith.constant 0 : index
    %c0_212 = arith.constant 0 : index
    %807 = vector.load %arg37[%c0_211, %c0_212] : memref<1x128xf32, #tpu.memory_space<vmem>>, vector<1x128xf32>
    %c0_213 = arith.constant 0 : index
    %c0_214 = arith.constant 0 : index
    %808 = vector.load %arg38[%c0_213, %c0_214] : memref<32x32xbf16, #tpu.memory_space<vmem>>, vector<32x32xbf16>
    %809 = vector.shape_cast %803 : vector<2x1x32xf32> to vector<2x32xf32>
    %810 = arith.truncf %809 : vector<2x32xf32> to vector<2x32xbf16>
    %cst_215 = arith.constant dense<0.000000e+00> : vector<2x64xf32>
    %811 = tpu.matmul %810, %806, %cst_215 {dimension_numbers = #tpu.dot_dimension_numbers<[1], [0], [0], [1], [0, 0, 1, 1], [], []>} : vector<2x32xbf16>, vector<32x64xbf16>, vector<2x64xf32> -> vector<2x64xf32>
    %812 = vector.extract_strided_slice %807 {offsets = [0, 32], sizes = [1, 64], strides = [1, 1]} : vector<1x128xf32> to vector<1x64xf32>
    %813 = vector.broadcast %812 : vector<1x64xf32> to vector<2x64xf32>
    %814 = arith.addf %811, %813 : vector<2x64xf32>
    %815 = vector.extract_strided_slice %814 {offsets = [0, 0], sizes = [2, 32], strides = [1, 1]} : vector<2x64xf32> to vector<2x32xf32>
    %816 = vector.shape_cast %815 : vector<2x32xf32> to vector<2x1x32xf32>
    %817 = arith.truncf %816 : vector<2x1x32xf32> to vector<2x1x32xbf16>
    %818 = vector.extract_strided_slice %814 {offsets = [0, 32], sizes = [2, 32], strides = [1, 1]} : vector<2x64xf32> to vector<2x32xf32>
    %819 = vector.shape_cast %818 : vector<2x32xf32> to vector<2x1x32xf32>
    %820 = arith.truncf %819 : vector<2x1x32xf32> to vector<2x1x32xbf16>
    %cst_216 = arith.constant dense<0.000000e+00> : vector<8x32xf32>
    %821 = tpu.matmul %804, %805, %cst_216 {dimension_numbers = #tpu.dot_dimension_numbers<[1], [0], [0], [1], [0, 0, 1, 1], [], []>} : vector<8x32xbf16>, vector<32x32xbf16>, vector<8x32xf32> -> vector<8x32xf32>
    %822 = vector.extract_strided_slice %807 {offsets = [0, 0], sizes = [1, 32], strides = [1, 1]} : vector<1x128xf32> to vector<1x32xf32>
    %823 = vector.broadcast %822 : vector<1x32xf32> to vector<8x32xf32>
    %824 = arith.addf %821, %823 : vector<8x32xf32>
    %825 = vector.extract_strided_slice %817 {offsets = [0, 0, 0], sizes = [2, 1, 8], strides = [1, 1, 1]} : vector<2x1x32xbf16> to vector<2x1x8xbf16>
    %826 = vector.extract_strided_slice %820 {offsets = [0, 0, 0], sizes = [2, 1, 8], strides = [1, 1, 1]} : vector<2x1x32xbf16> to vector<2x1x8xbf16>
    %827 = vector.extract_strided_slice %824 {offsets = [0, 0], sizes = [8, 8], strides = [1, 1]} : vector<8x32xf32> to vector<8x8xf32>
    %828 = arith.truncf %827 : vector<8x8xf32> to vector<8x8xbf16>
    %829 = vector.shape_cast %828 : vector<8x8xbf16> to vector<1x8x8xbf16>
    %830 = vector.shape_cast %829 : vector<1x8x8xbf16> to vector<1x8x8xbf16>
    %831 = vector.broadcast %830 : vector<1x8x8xbf16> to vector<2x8x8xbf16>
    "tpu.trace_start"() <{level = 10 : i32, message = "bqd,bkd->bqk"}> : () -> ()
    %cst_217 = arith.constant dense<0.000000e+00> : vector<2x8x1xf32>
    %832 = tpu.matmul %831, %825, %cst_217 {dimension_numbers = #tpu.dot_dimension_numbers<[2], [2], [1], [1], [0, 0, 0, 1, 1, 1], [0], [0]>} : vector<2x8x8xbf16>, vector<2x1x8xbf16>, vector<2x8x1xf32> -> vector<2x8x1xf32>
    "tpu.trace_stop"() : () -> ()
    %cst_218 = arith.constant dense<0xFF800000> : vector<2x8xf32>
    %833 = vector.multi_reduction <maximumf>, %832, %cst_218 [2] : vector<2x8x1xf32> to vector<2x8xf32>
    %834 = vector.shape_cast %833 : vector<2x8xf32> to vector<2x8x1xf32>
    %835 = arith.subf %832, %834 : vector<2x8x1xf32>
    %836 = math.exp %835 : vector<2x8x1xf32>
    %cst_219 = arith.constant dense<0.000000e+00> : vector<2x8xf32>
    %837 = vector.multi_reduction <add>, %836, %cst_219 [2] : vector<2x8x1xf32> to vector<2x8xf32>
    %838 = vector.shape_cast %837 : vector<2x8xf32> to vector<2x8x1xf32>
    %839 = tpu.reciprocal %838 {approx = true} : vector<2x8x1xf32> -> vector<2x8x1xf32>
    %840 = arith.mulf %836, %839 : vector<2x8x1xf32>
    %841 = arith.truncf %840 : vector<2x8x1xf32> to vector<2x8x1xbf16>
    "tpu.trace_start"() <{level = 10 : i32, message = "bqk,bkd->bqd"}> : () -> ()
    %cst_220 = arith.constant dense<0.000000e+00> : vector<2x8x8xf32>
    %842 = tpu.matmul %841, %826, %cst_220 {dimension_numbers = #tpu.dot_dimension_numbers<[2], [1], [1], [2], [0, 0, 0, 1, 1, 2], [0], [0]>} : vector<2x8x1xbf16>, vector<2x1x8xbf16>, vector<2x8x8xf32> -> vector<2x8x8xf32>
    "tpu.trace_stop"() : () -> ()
    %843 = vector.shape_cast %827 : vector<8x8xf32> to vector<1x8x8xf32>
    %844 = vector.broadcast %843 : vector<1x8x8xf32> to vector<2x8x8xf32>
    %845 = arith.addf %844, %842 : vector<2x8x8xf32>
    %846 = vector.extract_strided_slice %817 {offsets = [0, 0, 8], sizes = [2, 1, 8], strides = [1, 1, 1]} : vector<2x1x32xbf16> to vector<2x1x8xbf16>
    %847 = vector.extract_strided_slice %820 {offsets = [0, 0, 8], sizes = [2, 1, 8], strides = [1, 1, 1]} : vector<2x1x32xbf16> to vector<2x1x8xbf16>
    %848 = vector.extract_strided_slice %824 {offsets = [0, 8], sizes = [8, 8], strides = [1, 1]} : vector<8x32xf32> to vector<8x8xf32>
    %849 = arith.truncf %848 : vector<8x8xf32> to vector<8x8xbf16>
    %850 = vector.shape_cast %849 : vector<8x8xbf16> to vector<1x8x8xbf16>
    %851 = vector.shape_cast %850 : vector<1x8x8xbf16> to vector<1x8x8xbf16>
    %852 = vector.broadcast %851 : vector<1x8x8xbf16> to vector<2x8x8xbf16>
    "tpu.trace_start"() <{level = 10 : i32, message = "bqd,bkd->bqk"}> : () -> ()
    %cst_221 = arith.constant dense<0.000000e+00> : vector<2x8x1xf32>
    %853 = tpu.matmul %852, %846, %cst_221 {dimension_numbers = #tpu.dot_dimension_numbers<[2], [2], [1], [1], [0, 0, 0, 1, 1, 1], [0], [0]>} : vector<2x8x8xbf16>, vector<2x1x8xbf16>, vector<2x8x1xf32> -> vector<2x8x1xf32>
    "tpu.trace_stop"() : () -> ()
    %cst_222 = arith.constant dense<0xFF800000> : vector<2x8xf32>
    %854 = vector.multi_reduction <maximumf>, %853, %cst_222 [2] : vector<2x8x1xf32> to vector<2x8xf32>
    %855 = vector.shape_cast %854 : vector<2x8xf32> to vector<2x8x1xf32>
    %856 = arith.subf %853, %855 : vector<2x8x1xf32>
    %857 = math.exp %856 : vector<2x8x1xf32>
    %cst_223 = arith.constant dense<0.000000e+00> : vector<2x8xf32>
    %858 = vector.multi_reduction <add>, %857, %cst_223 [2] : vector<2x8x1xf32> to vector<2x8xf32>
    %859 = vector.shape_cast %858 : vector<2x8xf32> to vector<2x8x1xf32>
    %860 = tpu.reciprocal %859 {approx = true} : vector<2x8x1xf32> -> vector<2x8x1xf32>
    %861 = arith.mulf %857, %860 : vector<2x8x1xf32>
    %862 = arith.truncf %861 : vector<2x8x1xf32> to vector<2x8x1xbf16>
    "tpu.trace_start"() <{level = 10 : i32, message = "bqk,bkd->bqd"}> : () -> ()
    %cst_224 = arith.constant dense<0.000000e+00> : vector<2x8x8xf32>
    %863 = tpu.matmul %862, %847, %cst_224 {dimension_numbers = #tpu.dot_dimension_numbers<[2], [1], [1], [2], [0, 0, 0, 1, 1, 2], [0], [0]>} : vector<2x8x1xbf16>, vector<2x1x8xbf16>, vector<2x8x8xf32> -> vector<2x8x8xf32>
    "tpu.trace_stop"() : () -> ()
    %864 = vector.shape_cast %848 : vector<8x8xf32> to vector<1x8x8xf32>
    %865 = vector.broadcast %864 : vector<1x8x8xf32> to vector<2x8x8xf32>
    %866 = arith.addf %865, %863 : vector<2x8x8xf32>
    %867 = vector.extract_strided_slice %817 {offsets = [0, 0, 16], sizes = [2, 1, 8], strides = [1, 1, 1]} : vector<2x1x32xbf16> to vector<2x1x8xbf16>
    %868 = vector.extract_strided_slice %820 {offsets = [0, 0, 16], sizes = [2, 1, 8], strides = [1, 1, 1]} : vector<2x1x32xbf16> to vector<2x1x8xbf16>
    %869 = vector.extract_strided_slice %824 {offsets = [0, 16], sizes = [8, 8], strides = [1, 1]} : vector<8x32xf32> to vector<8x8xf32>
    %870 = arith.truncf %869 : vector<8x8xf32> to vector<8x8xbf16>
    %871 = vector.shape_cast %870 : vector<8x8xbf16> to vector<1x8x8xbf16>
    %872 = vector.shape_cast %871 : vector<1x8x8xbf16> to vector<1x8x8xbf16>
    %873 = vector.broadcast %872 : vector<1x8x8xbf16> to vector<2x8x8xbf16>
    "tpu.trace_start"() <{level = 10 : i32, message = "bqd,bkd->bqk"}> : () -> ()
    %cst_225 = arith.constant dense<0.000000e+00> : vector<2x8x1xf32>
    %874 = tpu.matmul %873, %867, %cst_225 {dimension_numbers = #tpu.dot_dimension_numbers<[2], [2], [1], [1], [0, 0, 0, 1, 1, 1], [0], [0]>} : vector<2x8x8xbf16>, vector<2x1x8xbf16>, vector<2x8x1xf32> -> vector<2x8x1xf32>
    "tpu.trace_stop"() : () -> ()
    %cst_226 = arith.constant dense<0xFF800000> : vector<2x8xf32>
    %875 = vector.multi_reduction <maximumf>, %874, %cst_226 [2] : vector<2x8x1xf32> to vector<2x8xf32>
    %876 = vector.shape_cast %875 : vector<2x8xf32> to vector<2x8x1xf32>
    %877 = arith.subf %874, %876 : vector<2x8x1xf32>
    %878 = math.exp %877 : vector<2x8x1xf32>
    %cst_227 = arith.constant dense<0.000000e+00> : vector<2x8xf32>
    %879 = vector.multi_reduction <add>, %878, %cst_227 [2] : vector<2x8x1xf32> to vector<2x8xf32>
    %880 = vector.shape_cast %879 : vector<2x8xf32> to vector<2x8x1xf32>
    %881 = tpu.reciprocal %880 {approx = true} : vector<2x8x1xf32> -> vector<2x8x1xf32>
    %882 = arith.mulf %878, %881 : vector<2x8x1xf32>
    %883 = arith.truncf %882 : vector<2x8x1xf32> to vector<2x8x1xbf16>
    "tpu.trace_start"() <{level = 10 : i32, message = "bqk,bkd->bqd"}> : () -> ()
    %cst_228 = arith.constant dense<0.000000e+00> : vector<2x8x8xf32>
    %884 = tpu.matmul %883, %868, %cst_228 {dimension_numbers = #tpu.dot_dimension_numbers<[2], [1], [1], [2], [0, 0, 0, 1, 1, 2], [0], [0]>} : vector<2x8x1xbf16>, vector<2x1x8xbf16>, vector<2x8x8xf32> -> vector<2x8x8xf32>
    "tpu.trace_stop"() : () -> ()
    %885 = vector.shape_cast %869 : vector<8x8xf32> to vector<1x8x8xf32>
    %886 = vector.broadcast %885 : vector<1x8x8xf32> to vector<2x8x8xf32>
    %887 = arith.addf %886, %884 : vector<2x8x8xf32>
    %888 = vector.extract_strided_slice %817 {offsets = [0, 0, 24], sizes = [2, 1, 8], strides = [1, 1, 1]} : vector<2x1x32xbf16> to vector<2x1x8xbf16>
    %889 = vector.extract_strided_slice %820 {offsets = [0, 0, 24], sizes = [2, 1, 8], strides = [1, 1, 1]} : vector<2x1x32xbf16> to vector<2x1x8xbf16>
    %890 = vector.extract_strided_slice %824 {offsets = [0, 24], sizes = [8, 8], strides = [1, 1]} : vector<8x32xf32> to vector<8x8xf32>
    %891 = arith.truncf %890 : vector<8x8xf32> to vector<8x8xbf16>
    %892 = vector.shape_cast %891 : vector<8x8xbf16> to vector<1x8x8xbf16>
    %893 = vector.shape_cast %892 : vector<1x8x8xbf16> to vector<1x8x8xbf16>
    %894 = vector.broadcast %893 : vector<1x8x8xbf16> to vector<2x8x8xbf16>
    "tpu.trace_start"() <{level = 10 : i32, message = "bqd,bkd->bqk"}> : () -> ()
    %cst_229 = arith.constant dense<0.000000e+00> : vector<2x8x1xf32>
    %895 = tpu.matmul %894, %888, %cst_229 {dimension_numbers = #tpu.dot_dimension_numbers<[2], [2], [1], [1], [0, 0, 0, 1, 1, 1], [0], [0]>} : vector<2x8x8xbf16>, vector<2x1x8xbf16>, vector<2x8x1xf32> -> vector<2x8x1xf32>
    "tpu.trace_stop"() : () -> ()
    %cst_230 = arith.constant dense<0xFF800000> : vector<2x8xf32>
    %896 = vector.multi_reduction <maximumf>, %895, %cst_230 [2] : vector<2x8x1xf32> to vector<2x8xf32>
    %897 = vector.shape_cast %896 : vector<2x8xf32> to vector<2x8x1xf32>
    %898 = arith.subf %895, %897 : vector<2x8x1xf32>
    %899 = math.exp %898 : vector<2x8x1xf32>
    %cst_231 = arith.constant dense<0.000000e+00> : vector<2x8xf32>
    %900 = vector.multi_reduction <add>, %899, %cst_231 [2] : vector<2x8x1xf32> to vector<2x8xf32>
    %901 = vector.shape_cast %900 : vector<2x8xf32> to vector<2x8x1xf32>
    %902 = tpu.reciprocal %901 {approx = true} : vector<2x8x1xf32> -> vector<2x8x1xf32>
    %903 = arith.mulf %899, %902 : vector<2x8x1xf32>
    %904 = arith.truncf %903 : vector<2x8x1xf32> to vector<2x8x1xbf16>
    "tpu.trace_start"() <{level = 10 : i32, message = "bqk,bkd->bqd"}> : () -> ()
    %cst_232 = arith.constant dense<0.000000e+00> : vector<2x8x8xf32>
    %905 = tpu.matmul %904, %889, %cst_232 {dimension_numbers = #tpu.dot_dimension_numbers<[2], [1], [1], [2], [0, 0, 0, 1, 1, 2], [0], [0]>} : vector<2x8x1xbf16>, vector<2x1x8xbf16>, vector<2x8x8xf32> -> vector<2x8x8xf32>
    "tpu.trace_stop"() : () -> ()
    %906 = vector.shape_cast %890 : vector<8x8xf32> to vector<1x8x8xf32>
    %907 = vector.broadcast %906 : vector<1x8x8xf32> to vector<2x8x8xf32>
    %908 = arith.addf %907, %905 : vector<2x8x8xf32>
    %909 = tpu.concatenate %845, %866, %887, %908 in 2 : vector<2x8x8xf32>, vector<2x8x8xf32>, vector<2x8x8xf32>, vector<2x8x8xf32> -> vector<2x8x32xf32>
    %910 = vector.shape_cast %909 : vector<2x8x32xf32> to vector<16x32xf32>
    %911 = arith.truncf %910 : vector<16x32xf32> to vector<16x32xbf16>
    %cst_233 = arith.constant dense<0.000000e+00> : vector<16x32xf32>
    %912 = tpu.matmul %911, %808, %cst_233 {dimension_numbers = #tpu.dot_dimension_numbers<[1], [0], [0], [1], [0, 0, 1, 1], [], []>} : vector<16x32xbf16>, vector<32x32xbf16>, vector<16x32xf32> -> vector<16x32xf32>
    %913 = vector.extract_strided_slice %807 {offsets = [0, 96], sizes = [1, 32], strides = [1, 1]} : vector<1x128xf32> to vector<1x32xf32>
    %914 = vector.broadcast %913 : vector<1x32xf32> to vector<16x32xf32>
    %915 = arith.addf %912, %914 : vector<16x32xf32>
    %cst_234 = arith.constant 0.000000e+00 : f32
    %916 = vector.broadcast %cst_234 : f32 to vector<16x32xf32>
    %917 = arith.maximumf %915, %916 : vector<16x32xf32>
    %918 = vector.shape_cast %917 : vector<16x32xf32> to vector<2x8x32xf32>
    %919 = arith.addf %909, %918 : vector<2x8x32xf32>
    %c0_235 = arith.constant 0 : index
    %c0_236 = arith.constant 0 : index
    %920 = vector.load %arg39[%c0_235, %c0_236] : memref<32x32xbf16, #tpu.memory_space<vmem>>, vector<32x32xbf16>
    %c0_237 = arith.constant 0 : index
    %c0_238 = arith.constant 0 : index
    %921 = vector.load %arg40[%c0_237, %c0_238] : memref<32x64xbf16, #tpu.memory_space<vmem>>, vector<32x64xbf16>
    %c0_239 = arith.constant 0 : index
    %c0_240 = arith.constant 0 : index
    %922 = vector.load %arg41[%c0_239, %c0_240] : memref<1x128xf32, #tpu.memory_space<vmem>>, vector<1x128xf32>
    %c0_241 = arith.constant 0 : index
    %c0_242 = arith.constant 0 : index
    %923 = vector.load %arg42[%c0_241, %c0_242] : memref<32x32xbf16, #tpu.memory_space<vmem>>, vector<32x32xbf16>
    %924 = vector.shape_cast %919 : vector<2x8x32xf32> to vector<16x32xf32>
    %925 = arith.truncf %924 : vector<16x32xf32> to vector<16x32xbf16>
    %cst_243 = arith.constant dense<0.000000e+00> : vector<16x64xf32>
    %926 = tpu.matmul %925, %921, %cst_243 {dimension_numbers = #tpu.dot_dimension_numbers<[1], [0], [0], [1], [0, 0, 1, 1], [], []>} : vector<16x32xbf16>, vector<32x64xbf16>, vector<16x64xf32> -> vector<16x64xf32>
    %927 = vector.extract_strided_slice %922 {offsets = [0, 32], sizes = [1, 64], strides = [1, 1]} : vector<1x128xf32> to vector<1x64xf32>
    %928 = vector.broadcast %927 : vector<1x64xf32> to vector<16x64xf32>
    %929 = arith.addf %926, %928 : vector<16x64xf32>
    %930 = vector.extract_strided_slice %929 {offsets = [0, 0], sizes = [16, 32], strides = [1, 1]} : vector<16x64xf32> to vector<16x32xf32>
    %931 = vector.shape_cast %930 : vector<16x32xf32> to vector<2x8x32xf32>
    %932 = arith.truncf %931 : vector<2x8x32xf32> to vector<2x8x32xbf16>
    %933 = vector.extract_strided_slice %929 {offsets = [0, 32], sizes = [16, 32], strides = [1, 1]} : vector<16x64xf32> to vector<16x32xf32>
    %934 = vector.shape_cast %933 : vector<16x32xf32> to vector<2x8x32xf32>
    %935 = arith.truncf %934 : vector<2x8x32xf32> to vector<2x8x32xbf16>
    %936 = vector.shape_cast %803 : vector<2x1x32xf32> to vector<2x32xf32>
    %937 = arith.truncf %936 : vector<2x32xf32> to vector<2x32xbf16>
    %cst_244 = arith.constant dense<0.000000e+00> : vector<2x32xf32>
    %938 = tpu.matmul %937, %920, %cst_244 {dimension_numbers = #tpu.dot_dimension_numbers<[1], [0], [0], [1], [0, 0, 1, 1], [], []>} : vector<2x32xbf16>, vector<32x32xbf16>, vector<2x32xf32> -> vector<2x32xf32>
    %939 = vector.extract_strided_slice %922 {offsets = [0, 0], sizes = [1, 32], strides = [1, 1]} : vector<1x128xf32> to vector<1x32xf32>
    %940 = vector.broadcast %939 : vector<1x32xf32> to vector<2x32xf32>
    %941 = arith.addf %938, %940 : vector<2x32xf32>
    %942 = vector.shape_cast %941 : vector<2x32xf32> to vector<2x1x32xf32>
    %943 = vector.extract_strided_slice %932 {offsets = [0, 0, 0], sizes = [2, 8, 8], strides = [1, 1, 1]} : vector<2x8x32xbf16> to vector<2x8x8xbf16>
    %944 = vector.extract_strided_slice %935 {offsets = [0, 0, 0], sizes = [2, 8, 8], strides = [1, 1, 1]} : vector<2x8x32xbf16> to vector<2x8x8xbf16>
    %945 = vector.extract_strided_slice %942 {offsets = [0, 0, 0], sizes = [2, 1, 8], strides = [1, 1, 1]} : vector<2x1x32xf32> to vector<2x1x8xf32>
    %946 = arith.truncf %945 : vector<2x1x8xf32> to vector<2x1x8xbf16>
    "tpu.trace_start"() <{level = 10 : i32, message = "bqd,bkd->bqk"}> : () -> ()
    %cst_245 = arith.constant dense<0.000000e+00> : vector<2x1x8xf32>
    %947 = tpu.matmul %946, %943, %cst_245 {dimension_numbers = #tpu.dot_dimension_numbers<[2], [2], [1], [1], [0, 0, 0, 1, 1, 1], [0], [0]>} : vector<2x1x8xbf16>, vector<2x8x8xbf16>, vector<2x1x8xf32> -> vector<2x1x8xf32>
    "tpu.trace_stop"() : () -> ()
    %cst_246 = arith.constant dense<0xFF800000> : vector<2x1xf32>
    %948 = vector.multi_reduction <maximumf>, %947, %cst_246 [2] : vector<2x1x8xf32> to vector<2x1xf32>
    %949 = vector.shape_cast %948 : vector<2x1xf32> to vector<2x1x1xf32>
    %950 = vector.broadcast %949 : vector<2x1x1xf32> to vector<2x1x8xf32>
    %951 = arith.subf %947, %950 : vector<2x1x8xf32>
    %952 = math.exp %951 : vector<2x1x8xf32>
    %cst_247 = arith.constant dense<0.000000e+00> : vector<2x1xf32>
    %953 = vector.multi_reduction <add>, %952, %cst_247 [2] : vector<2x1x8xf32> to vector<2x1xf32>
    %954 = vector.shape_cast %953 : vector<2x1xf32> to vector<2x1x1xf32>
    %955 = tpu.reciprocal %954 {approx = true} : vector<2x1x1xf32> -> vector<2x1x1xf32>
    %956 = vector.broadcast %955 : vector<2x1x1xf32> to vector<2x1x8xf32>
    %957 = arith.mulf %952, %956 : vector<2x1x8xf32>
    %958 = arith.truncf %957 : vector<2x1x8xf32> to vector<2x1x8xbf16>
    "tpu.trace_start"() <{level = 10 : i32, message = "bqk,bkd->bqd"}> : () -> ()
    %cst_248 = arith.constant dense<0.000000e+00> : vector<2x1x8xf32>
    %959 = tpu.matmul %958, %944, %cst_248 {dimension_numbers = #tpu.dot_dimension_numbers<[2], [1], [1], [2], [0, 0, 0, 1, 1, 2], [0], [0]>} : vector<2x1x8xbf16>, vector<2x8x8xbf16>, vector<2x1x8xf32> -> vector<2x1x8xf32>
    "tpu.trace_stop"() : () -> ()
    %960 = arith.addf %945, %959 : vector<2x1x8xf32>
    %961 = vector.extract_strided_slice %932 {offsets = [0, 0, 8], sizes = [2, 8, 8], strides = [1, 1, 1]} : vector<2x8x32xbf16> to vector<2x8x8xbf16>
    %962 = vector.extract_strided_slice %935 {offsets = [0, 0, 8], sizes = [2, 8, 8], strides = [1, 1, 1]} : vector<2x8x32xbf16> to vector<2x8x8xbf16>
    %963 = vector.extract_strided_slice %942 {offsets = [0, 0, 8], sizes = [2, 1, 8], strides = [1, 1, 1]} : vector<2x1x32xf32> to vector<2x1x8xf32>
    %964 = arith.truncf %963 : vector<2x1x8xf32> to vector<2x1x8xbf16>
    "tpu.trace_start"() <{level = 10 : i32, message = "bqd,bkd->bqk"}> : () -> ()
    %cst_249 = arith.constant dense<0.000000e+00> : vector<2x1x8xf32>
    %965 = tpu.matmul %964, %961, %cst_249 {dimension_numbers = #tpu.dot_dimension_numbers<[2], [2], [1], [1], [0, 0, 0, 1, 1, 1], [0], [0]>} : vector<2x1x8xbf16>, vector<2x8x8xbf16>, vector<2x1x8xf32> -> vector<2x1x8xf32>
    "tpu.trace_stop"() : () -> ()
    %cst_250 = arith.constant dense<0xFF800000> : vector<2x1xf32>
    %966 = vector.multi_reduction <maximumf>, %965, %cst_250 [2] : vector<2x1x8xf32> to vector<2x1xf32>
    %967 = vector.shape_cast %966 : vector<2x1xf32> to vector<2x1x1xf32>
    %968 = vector.broadcast %967 : vector<2x1x1xf32> to vector<2x1x8xf32>
    %969 = arith.subf %965, %968 : vector<2x1x8xf32>
    %970 = math.exp %969 : vector<2x1x8xf32>
    %cst_251 = arith.constant dense<0.000000e+00> : vector<2x1xf32>
    %971 = vector.multi_reduction <add>, %970, %cst_251 [2] : vector<2x1x8xf32> to vector<2x1xf32>
    %972 = vector.shape_cast %971 : vector<2x1xf32> to vector<2x1x1xf32>
    %973 = tpu.reciprocal %972 {approx = true} : vector<2x1x1xf32> -> vector<2x1x1xf32>
    %974 = vector.broadcast %973 : vector<2x1x1xf32> to vector<2x1x8xf32>
    %975 = arith.mulf %970, %974 : vector<2x1x8xf32>
    %976 = arith.truncf %975 : vector<2x1x8xf32> to vector<2x1x8xbf16>
    "tpu.trace_start"() <{level = 10 : i32, message = "bqk,bkd->bqd"}> : () -> ()
    %cst_252 = arith.constant dense<0.000000e+00> : vector<2x1x8xf32>
    %977 = tpu.matmul %976, %962, %cst_252 {dimension_numbers = #tpu.dot_dimension_numbers<[2], [1], [1], [2], [0, 0, 0, 1, 1, 2], [0], [0]>} : vector<2x1x8xbf16>, vector<2x8x8xbf16>, vector<2x1x8xf32> -> vector<2x1x8xf32>
    "tpu.trace_stop"() : () -> ()
    %978 = arith.addf %963, %977 : vector<2x1x8xf32>
    %979 = vector.extract_strided_slice %932 {offsets = [0, 0, 16], sizes = [2, 8, 8], strides = [1, 1, 1]} : vector<2x8x32xbf16> to vector<2x8x8xbf16>
    %980 = vector.extract_strided_slice %935 {offsets = [0, 0, 16], sizes = [2, 8, 8], strides = [1, 1, 1]} : vector<2x8x32xbf16> to vector<2x8x8xbf16>
    %981 = vector.extract_strided_slice %942 {offsets = [0, 0, 16], sizes = [2, 1, 8], strides = [1, 1, 1]} : vector<2x1x32xf32> to vector<2x1x8xf32>
    %982 = arith.truncf %981 : vector<2x1x8xf32> to vector<2x1x8xbf16>
    "tpu.trace_start"() <{level = 10 : i32, message = "bqd,bkd->bqk"}> : () -> ()
    %cst_253 = arith.constant dense<0.000000e+00> : vector<2x1x8xf32>
    %983 = tpu.matmul %982, %979, %cst_253 {dimension_numbers = #tpu.dot_dimension_numbers<[2], [2], [1], [1], [0, 0, 0, 1, 1, 1], [0], [0]>} : vector<2x1x8xbf16>, vector<2x8x8xbf16>, vector<2x1x8xf32> -> vector<2x1x8xf32>
    "tpu.trace_stop"() : () -> ()
    %cst_254 = arith.constant dense<0xFF800000> : vector<2x1xf32>
    %984 = vector.multi_reduction <maximumf>, %983, %cst_254 [2] : vector<2x1x8xf32> to vector<2x1xf32>
    %985 = vector.shape_cast %984 : vector<2x1xf32> to vector<2x1x1xf32>
    %986 = vector.broadcast %985 : vector<2x1x1xf32> to vector<2x1x8xf32>
    %987 = arith.subf %983, %986 : vector<2x1x8xf32>
    %988 = math.exp %987 : vector<2x1x8xf32>
    %cst_255 = arith.constant dense<0.000000e+00> : vector<2x1xf32>
    %989 = vector.multi_reduction <add>, %988, %cst_255 [2] : vector<2x1x8xf32> to vector<2x1xf32>
    %990 = vector.shape_cast %989 : vector<2x1xf32> to vector<2x1x1xf32>
    %991 = tpu.reciprocal %990 {approx = true} : vector<2x1x1xf32> -> vector<2x1x1xf32>
    %992 = vector.broadcast %991 : vector<2x1x1xf32> to vector<2x1x8xf32>
    %993 = arith.mulf %988, %992 : vector<2x1x8xf32>
    %994 = arith.truncf %993 : vector<2x1x8xf32> to vector<2x1x8xbf16>
    "tpu.trace_start"() <{level = 10 : i32, message = "bqk,bkd->bqd"}> : () -> ()
    %cst_256 = arith.constant dense<0.000000e+00> : vector<2x1x8xf32>
    %995 = tpu.matmul %994, %980, %cst_256 {dimension_numbers = #tpu.dot_dimension_numbers<[2], [1], [1], [2], [0, 0, 0, 1, 1, 2], [0], [0]>} : vector<2x1x8xbf16>, vector<2x8x8xbf16>, vector<2x1x8xf32> -> vector<2x1x8xf32>
    "tpu.trace_stop"() : () -> ()
    %996 = arith.addf %981, %995 : vector<2x1x8xf32>
    %997 = vector.extract_strided_slice %932 {offsets = [0, 0, 24], sizes = [2, 8, 8], strides = [1, 1, 1]} : vector<2x8x32xbf16> to vector<2x8x8xbf16>
    %998 = vector.extract_strided_slice %935 {offsets = [0, 0, 24], sizes = [2, 8, 8], strides = [1, 1, 1]} : vector<2x8x32xbf16> to vector<2x8x8xbf16>
    %999 = vector.extract_strided_slice %942 {offsets = [0, 0, 24], sizes = [2, 1, 8], strides = [1, 1, 1]} : vector<2x1x32xf32> to vector<2x1x8xf32>
    %1000 = arith.truncf %999 : vector<2x1x8xf32> to vector<2x1x8xbf16>
    "tpu.trace_start"() <{level = 10 : i32, message = "bqd,bkd->bqk"}> : () -> ()
    %cst_257 = arith.constant dense<0.000000e+00> : vector<2x1x8xf32>
    %1001 = tpu.matmul %1000, %997, %cst_257 {dimension_numbers = #tpu.dot_dimension_numbers<[2], [2], [1], [1], [0, 0, 0, 1, 1, 1], [0], [0]>} : vector<2x1x8xbf16>, vector<2x8x8xbf16>, vector<2x1x8xf32> -> vector<2x1x8xf32>
    "tpu.trace_stop"() : () -> ()
    %cst_258 = arith.constant dense<0xFF800000> : vector<2x1xf32>
    %1002 = vector.multi_reduction <maximumf>, %1001, %cst_258 [2] : vector<2x1x8xf32> to vector<2x1xf32>
    %1003 = vector.shape_cast %1002 : vector<2x1xf32> to vector<2x1x1xf32>
    %1004 = vector.broadcast %1003 : vector<2x1x1xf32> to vector<2x1x8xf32>
    %1005 = arith.subf %1001, %1004 : vector<2x1x8xf32>
    %1006 = math.exp %1005 : vector<2x1x8xf32>
    %cst_259 = arith.constant dense<0.000000e+00> : vector<2x1xf32>
    %1007 = vector.multi_reduction <add>, %1006, %cst_259 [2] : vector<2x1x8xf32> to vector<2x1xf32>
    %1008 = vector.shape_cast %1007 : vector<2x1xf32> to vector<2x1x1xf32>
    %1009 = tpu.reciprocal %1008 {approx = true} : vector<2x1x1xf32> -> vector<2x1x1xf32>
    %1010 = vector.broadcast %1009 : vector<2x1x1xf32> to vector<2x1x8xf32>
    %1011 = arith.mulf %1006, %1010 : vector<2x1x8xf32>
    %1012 = arith.truncf %1011 : vector<2x1x8xf32> to vector<2x1x8xbf16>
    "tpu.trace_start"() <{level = 10 : i32, message = "bqk,bkd->bqd"}> : () -> ()
    %cst_260 = arith.constant dense<0.000000e+00> : vector<2x1x8xf32>
    %1013 = tpu.matmul %1012, %998, %cst_260 {dimension_numbers = #tpu.dot_dimension_numbers<[2], [1], [1], [2], [0, 0, 0, 1, 1, 2], [0], [0]>} : vector<2x1x8xbf16>, vector<2x8x8xbf16>, vector<2x1x8xf32> -> vector<2x1x8xf32>
    "tpu.trace_stop"() : () -> ()
    %1014 = arith.addf %999, %1013 : vector<2x1x8xf32>
    %1015 = tpu.concatenate %960, %978, %996, %1014 in 2 : vector<2x1x8xf32>, vector<2x1x8xf32>, vector<2x1x8xf32>, vector<2x1x8xf32> -> vector<2x1x32xf32>
    %1016 = vector.shape_cast %1015 : vector<2x1x32xf32> to vector<2x32xf32>
    %1017 = arith.truncf %1016 : vector<2x32xf32> to vector<2x32xbf16>
    %cst_261 = arith.constant dense<0.000000e+00> : vector<2x32xf32>
    %1018 = tpu.matmul %1017, %923, %cst_261 {dimension_numbers = #tpu.dot_dimension_numbers<[1], [0], [0], [1], [0, 0, 1, 1], [], []>} : vector<2x32xbf16>, vector<32x32xbf16>, vector<2x32xf32> -> vector<2x32xf32>
    %1019 = vector.extract_strided_slice %922 {offsets = [0, 96], sizes = [1, 32], strides = [1, 1]} : vector<1x128xf32> to vector<1x32xf32>
    %1020 = vector.broadcast %1019 : vector<1x32xf32> to vector<2x32xf32>
    %1021 = arith.addf %1018, %1020 : vector<2x32xf32>
    %cst_262 = arith.constant 0.000000e+00 : f32
    %1022 = vector.broadcast %cst_262 : f32 to vector<2x32xf32>
    %1023 = arith.maximumf %1021, %1022 : vector<2x32xf32>
    %1024 = vector.shape_cast %1023 : vector<2x32xf32> to vector<2x1x32xf32>
    %1025 = arith.addf %1015, %1024 : vector<2x1x32xf32>
    %c0_263 = arith.constant 0 : index
    %c0_264 = arith.constant 0 : index
    %1026 = vector.load %arg43[%c0_263, %c0_264] : memref<32x128xbf16, #tpu.memory_space<vmem>>, vector<32x128xbf16>
    %1027 = vector.shape_cast %1025 : vector<2x1x32xf32> to vector<2x32xf32>
    %1028 = arith.truncf %1027 : vector<2x32xf32> to vector<2x32xbf16>
    %cst_265 = arith.constant dense<0.000000e+00> : vector<2x128xf32>
    %1029 = tpu.matmul %1028, %1026, %cst_265 {dimension_numbers = #tpu.dot_dimension_numbers<[1], [0], [0], [1], [0, 0, 1, 1], [], []>} : vector<2x32xbf16>, vector<32x128xbf16>, vector<2x128xf32> -> vector<2x128xf32>
    %1030 = vector.shape_cast %1029 : vector<2x128xf32> to vector<2x1x128xf32>
    %c0_266 = arith.constant 0 : index
    %c0_267 = arith.constant 0 : index
    %c0_268 = arith.constant 0 : index
    %1031 = vector.load %arg44[%c0_266, %c0_267, %c0_268] : memref<2x1x128xf32, #tpu.memory_space<vmem>>, vector<2x1x128xf32>
    tpu.vector_store %arg44[%c0_266, %c0_267, %c0_268], %1030 {strides = array<i32>} : memref<2x1x128xf32, #tpu.memory_space<vmem>>, vector<2x1x128xf32>,
    return
  }
  func.func @transform_0(%arg0: i32) -> (i32, i32, i32) {
    %c0_i32 = arith.constant 0 : i32
    %c0_i32_0 = arith.constant 0 : i32
    %c0_i32_1 = arith.constant 0 : i32
    return %arg0, %c0_i32, %c0_i32_0 : i32, i32, i32
  }
  func.func @transform_1(%arg0: i32) -> (i32, i32) {
    %c0_i32 = arith.constant 0 : i32
    %c0_i32_0 = arith.constant 0 : i32
    %c0_i32_1 = arith.constant 0 : i32
    return %c0_i32, %c0_i32_0 : i32, i32
  }
  func.func @transform_2(%arg0: i32) -> (i32, i32) {
    %c0_i32 = arith.constant 0 : i32
    %c0_i32_0 = arith.constant 0 : i32
    %c0_i32_1 = arith.constant 0 : i32
    return %c0_i32, %c0_i32_0 : i32, i32
  }
  func.func @transform_3(%arg0: i32) -> (i32, i32) {
    %c0_i32 = arith.constant 0 : i32
    %c0_i32_0 = arith.constant 0 : i32
    %c0_i32_1 = arith.constant 0 : i32
    return %c0_i32, %c0_i32_0 : i32, i32
  }
  func.func @transform_4(%arg0: i32) -> (i32, i32) {
    %c0_i32 = arith.constant 0 : i32
    %c0_i32_0 = arith.constant 0 : i32
    %c0_i32_1 = arith.constant 0 : i32
    return %c0_i32, %c0_i32_0 : i32, i32
  }
  func.func @transform_5(%arg0: i32) -> (i32, i32) {
    %c0_i32 = arith.constant 0 : i32
    %c0_i32_0 = arith.constant 0 : i32
    %c0_i32_1 = arith.constant 0 : i32
    return %c0_i32, %c0_i32_0 : i32, i32
  }
  func.func @transform_6(%arg0: i32) -> (i32, i32) {
    %c0_i32 = arith.constant 0 : i32
    %c0_i32_0 = arith.constant 0 : i32
    %c0_i32_1 = arith.constant 0 : i32
    return %c0_i32, %c0_i32_0 : i32, i32
  }
  func.func @transform_7(%arg0: i32) -> (i32, i32) {
    %c0_i32 = arith.constant 0 : i32
    %c0_i32_0 = arith.constant 0 : i32
    %c0_i32_1 = arith.constant 0 : i32
    return %c0_i32, %c0_i32_0 : i32, i32
  }
  func.func @transform_8(%arg0: i32) -> (i32, i32) {
    %c0_i32 = arith.constant 0 : i32
    %c0_i32_0 = arith.constant 0 : i32
    %c0_i32_1 = arith.constant 0 : i32
    return %c0_i32, %c0_i32_0 : i32, i32
  }
  func.func @transform_9(%arg0: i32) -> (i32, i32) {
    %c0_i32 = arith.constant 0 : i32
    %c0_i32_0 = arith.constant 0 : i32
    %c0_i32_1 = arith.constant 0 : i32
    return %c0_i32, %c0_i32_0 : i32, i32
  }
  func.func @transform_10(%arg0: i32) -> (i32, i32) {
    %c0_i32 = arith.constant 0 : i32
    %c0_i32_0 = arith.constant 0 : i32
    %c0_i32_1 = arith.constant 0 : i32
    return %c0_i32, %c0_i32_0 : i32, i32
  }
  func.func @transform_11(%arg0: i32) -> (i32, i32) {
    %c0_i32 = arith.constant 0 : i32
    %c0_i32_0 = arith.constant 0 : i32
    %c0_i32_1 = arith.constant 0 : i32
    return %c0_i32, %c0_i32_0 : i32, i32
  }
  func.func @transform_12(%arg0: i32) -> (i32, i32) {
    %c0_i32 = arith.constant 0 : i32
    %c0_i32_0 = arith.constant 0 : i32
    %c0_i32_1 = arith.constant 0 : i32
    return %c0_i32, %c0_i32_0 : i32, i32
  }
  func.func @transform_13(%arg0: i32) -> (i32, i32) {
    %c0_i32 = arith.constant 0 : i32
    %c0_i32_0 = arith.constant 0 : i32
    %c0_i32_1 = arith.constant 0 : i32
    return %c0_i32, %c0_i32_0 : i32, i32
  }
  func.func @transform_14(%arg0: i32) -> (i32, i32) {
    %c0_i32 = arith.constant 0 : i32
    %c0_i32_0 = arith.constant 0 : i32
    %c0_i32_1 = arith.constant 0 : i32
    return %c0_i32, %c0_i32_0 : i32, i32
  }
  func.func @transform_15(%arg0: i32) -> (i32, i32) {
    %c0_i32 = arith.constant 0 : i32
    %c0_i32_0 = arith.constant 0 : i32
    %c0_i32_1 = arith.constant 0 : i32
    return %c0_i32, %c0_i32_0 : i32, i32
  }
  func.func @transform_16(%arg0: i32) -> (i32, i32) {
    %c0_i32 = arith.constant 0 : i32
    %c0_i32_0 = arith.constant 0 : i32
    %c0_i32_1 = arith.constant 0 : i32
    return %c0_i32, %c0_i32_0 : i32, i32
  }
  func.func @transform_17(%arg0: i32) -> (i32, i32) {
    %c0_i32 = arith.constant 0 : i32
    %c0_i32_0 = arith.constant 0 : i32
    %c0_i32_1 = arith.constant 0 : i32
    return %c0_i32, %c0_i32_0 : i32, i32
  }
  func.func @transform_18(%arg0: i32) -> (i32, i32) {
    %c0_i32 = arith.constant 0 : i32
    %c0_i32_0 = arith.constant 0 : i32
    %c0_i32_1 = arith.constant 0 : i32
    return %c0_i32, %c0_i32_0 : i32, i32
  }
  func.func @transform_19(%arg0: i32) -> (i32, i32) {
    %c0_i32 = arith.constant 0 : i32
    %c0_i32_0 = arith.constant 0 : i32
    %c0_i32_1 = arith.constant 0 : i32
    return %c0_i32, %c0_i32_0 : i32, i32
  }
  func.func @transform_20(%arg0: i32) -> (i32, i32) {
    %c0_i32 = arith.constant 0 : i32
    %c0_i32_0 = arith.constant 0 : i32
    %c0_i32_1 = arith.constant 0 : i32
    return %c0_i32, %c0_i32_0 : i32, i32
  }
  func.func @transform_21(%arg0: i32) -> (i32, i32) {
    %c0_i32 = arith.constant 0 : i32
    %c0_i32_0 = arith.constant 0 : i32
    %c0_i32_1 = arith.constant 0 : i32
    return %c0_i32, %c0_i32_0 : i32, i32
  }
  func.func @transform_22(%arg0: i32) -> (i32, i32) {
    %c0_i32 = arith.constant 0 : i32
    %c0_i32_0 = arith.constant 0 : i32
    %c0_i32_1 = arith.constant 0 : i32
    return %c0_i32, %c0_i32_0 : i32, i32
  }
  func.func @transform_23(%arg0: i32) -> (i32, i32) {
    %c0_i32 = arith.constant 0 : i32
    %c0_i32_0 = arith.constant 0 : i32
    %c0_i32_1 = arith.constant 0 : i32
    return %c0_i32, %c0_i32_0 : i32, i32
  }
  func.func @transform_24(%arg0: i32) -> (i32, i32) {
    %c0_i32 = arith.constant 0 : i32
    %c0_i32_0 = arith.constant 0 : i32
    %c0_i32_1 = arith.constant 0 : i32
    return %c0_i32, %c0_i32_0 : i32, i32
  }
  func.func @transform_25(%arg0: i32) -> (i32, i32) {
    %c0_i32 = arith.constant 0 : i32
    %c0_i32_0 = arith.constant 0 : i32
    %c0_i32_1 = arith.constant 0 : i32
    return %c0_i32, %c0_i32_0 : i32, i32
  }
  func.func @transform_26(%arg0: i32) -> (i32, i32) {
    %c0_i32 = arith.constant 0 : i32
    %c0_i32_0 = arith.constant 0 : i32
    %c0_i32_1 = arith.constant 0 : i32
    return %c0_i32, %c0_i32_0 : i32, i32
  }
  func.func @transform_27(%arg0: i32) -> (i32, i32) {
    %c0_i32 = arith.constant 0 : i32
    %c0_i32_0 = arith.constant 0 : i32
    %c0_i32_1 = arith.constant 0 : i32
    return %c0_i32, %c0_i32_0 : i32, i32
  }
  func.func @transform_28(%arg0: i32) -> (i32, i32) {
    %c0_i32 = arith.constant 0 : i32
    %c0_i32_0 = arith.constant 0 : i32
    %c0_i32_1 = arith.constant 0 : i32
    return %c0_i32, %c0_i32_0 : i32, i32
  }
  func.func @transform_29(%arg0: i32) -> (i32, i32) {
    %c0_i32 = arith.constant 0 : i32
    %c0_i32_0 = arith.constant 0 : i32
    %c0_i32_1 = arith.constant 0 : i32
    return %c0_i32, %c0_i32_0 : i32, i32
  }
  func.func @transform_30(%arg0: i32) -> (i32, i32) {
    %c0_i32 = arith.constant 0 : i32
    %c0_i32_0 = arith.constant 0 : i32
    %c0_i32_1 = arith.constant 0 : i32
    return %c0_i32, %c0_i32_0 : i32, i32
  }
  func.func @transform_31(%arg0: i32) -> (i32, i32) {
    %c0_i32 = arith.constant 0 : i32
    %c0_i32_0 = arith.constant 0 : i32
    %c0_i32_1 = arith.constant 0 : i32
    return %c0_i32, %c0_i32_0 : i32, i32
  }
  func.func @transform_32(%arg0: i32) -> (i32, i32) {
    %c0_i32 = arith.constant 0 : i32
    %c0_i32_0 = arith.constant 0 : i32
    %c0_i32_1 = arith.constant 0 : i32
    return %c0_i32, %c0_i32_0 : i32, i32
  }
  func.func @transform_33(%arg0: i32) -> (i32, i32) {
    %c0_i32 = arith.constant 0 : i32
    %c0_i32_0 = arith.constant 0 : i32
    %c0_i32_1 = arith.constant 0 : i32
    return %c0_i32, %c0_i32_0 : i32, i32
  }
  func.func @transform_34(%arg0: i32) -> (i32, i32) {
    %c0_i32 = arith.constant 0 : i32
    %c0_i32_0 = arith.constant 0 : i32
    %c0_i32_1 = arith.constant 0 : i32
    return %c0_i32, %c0_i32_0 : i32, i32
  }
  func.func @transform_35(%arg0: i32) -> (i32, i32) {
    %c0_i32 = arith.constant 0 : i32
    %c0_i32_0 = arith.constant 0 : i32
    %c0_i32_1 = arith.constant 0 : i32
    return %c0_i32, %c0_i32_0 : i32, i32
  }
  func.func @transform_36(%arg0: i32) -> (i32, i32) {
    %c0_i32 = arith.constant 0 : i32
    %c0_i32_0 = arith.constant 0 : i32
    %c0_i32_1 = arith.constant 0 : i32
    return %c0_i32, %c0_i32_0 : i32, i32
  }
  func.func @transform_37(%arg0: i32) -> (i32, i32) {
    %c0_i32 = arith.constant 0 : i32
    %c0_i32_0 = arith.constant 0 : i32
    %c0_i32_1 = arith.constant 0 : i32
    return %c0_i32, %c0_i32_0 : i32, i32
  }
  func.func @transform_38(%arg0: i32) -> (i32, i32) {
    %c0_i32 = arith.constant 0 : i32
    %c0_i32_0 = arith.constant 0 : i32
    %c0_i32_1 = arith.constant 0 : i32
    return %c0_i32, %c0_i32_0 : i32, i32
  }
  func.func @transform_39(%arg0: i32) -> (i32, i32) {
    %c0_i32 = arith.constant 0 : i32
    %c0_i32_0 = arith.constant 0 : i32
    %c0_i32_1 = arith.constant 0 : i32
    return %c0_i32, %c0_i32_0 : i32, i32
  }
  func.func @transform_40(%arg0: i32) -> (i32, i32) {
    %c0_i32 = arith.constant 0 : i32
    %c0_i32_0 = arith.constant 0 : i32
    %c0_i32_1 = arith.constant 0 : i32
    return %c0_i32, %c0_i32_0 : i32, i32
  }
  func.func @transform_41(%arg0: i32) -> (i32, i32) {
    %c0_i32 = arith.constant 0 : i32
    %c0_i32_0 = arith.constant 0 : i32
    %c0_i32_1 = arith.constant 0 : i32
    return %c0_i32, %c0_i32_0 : i32, i32
  }
  func.func @transform_42(%arg0: i32) -> (i32, i32) {
    %c0_i32 = arith.constant 0 : i32
    %c0_i32_0 = arith.constant 0 : i32
    %c0_i32_1 = arith.constant 0 : i32
    return %c0_i32, %c0_i32_0 : i32, i32
  }
  func.func @transform_43(%arg0: i32) -> (i32, i32, i32) {
    %c0_i32 = arith.constant 0 : i32
    %c0_i32_0 = arith.constant 0 : i32
    %c0_i32_1 = arith.constant 0 : i32
    return %arg0, %c0_i32, %c0_i32_0 : i32, i32, i32
  }
}

</mosaic_0001>

<bundles_post_ra>
// kernel: tpu_custom_call.1
= control target key start
LH: loop header
LB: loop body
LE: loop exit
PB: predicated region body
PF: predicated region fallthrough
CT: control target
= control target key end

     0   :  { %7 = vsyncpa [#allocation3], 0  ;;  %s692_s0 = inlined_call_operand.hbm [shape: f32[8,128], index: 0, kind: input, shape index: {}]   ;;  %s693_s1 = inlined_call_operand.hbm [shape: f32[16,128], index: 1, kind: input, shape index: {}]   ;;  %s694_s2 = inlined_call_operand.hbm [shape: f32[16,128], index: 2, kind: output, shape index: {}]  }
   0x1   :  { %8 = vsyncpa [#allocation6], 0 }
   0x2   :  { %10 = vsyncpa [#allocation6 + $0x1], 0 }
   0x3   :  { %11 = vsyncpa [#allocation4], 0 }
   0x4   :  { %13 = vsyncpa [#allocation4 + $0x1], 0  ;;  %s491_s9 = smov 0   ;;  %s493_s10 = smov 0  }
   0x5   :  { %s495_s11 = smov 0   ;;  %s497_s12 = smov 0  }
   0x6 LB: > { %s512_s13 = sadd.s32 4294967295, %s471_s12   ;;  %s272_s14 = sadd.s32 4294967294, %s471_s12   ;;  %s471_s12 = sphi %s497_s12, %s718_s12   ;;  %s467_s11 = sphi %s495_s11, %s717_s11   ;;  %s463_s10 = sphi %s493_s10, %s716_s10   ;;  %s459_s9 = sphi %s491_s9, %s715_s9  }
   0x7   : > { %p60_p0 = scmp.ne.s32.totalorder %s463_s10, %s459_s9  ;;  %p695_p1 = scmp.eq.s32.totalorder %s512_s13, 0 }
   0x8   : > { %p90_p3 = scmp.eq.s32.totalorder %s272_s14, 1  ;;  %p273_p5 = scmp.ge.s32.totalorder %s471_s12, 1 }
   0x9   : > { %p521_p4 = por %p695_p1, %p60_p0  ;;  %p97_p7 = scmp.lt.s32.totalorder %s471_s12, 3 }
   0xa   : > { %p526_p6 = por %p90_p3, %p60_p0  ;;  %s473_s18 = smov [#allocation2]  }
   0xb   : > { %s698_s15 = scalar_select %p521_p4, 1, 0 }
   0xc   : > { %s699_s16 = scalar_select %p526_p6, 1, 0 }
   0xd   : > { %p531_p8 = pnand %p273_p5, %p97_p7  ;;  %s110_s19 = sshll.u32 %s473_s18, 4  ;;  %s111_s19 = int_to_ptr.vmem [resolvable:$true] %s110_s19 }
   0xe   : > { %s539_s20 = sadd.s32 1, %s471_s12   ;;  %s47_s24 = sadd.s32 1, %s467_s11 }
   0xf   : > { %s700_s17 = scalar_select %p531_p8, 1, 0 }
  0x10   : > { %p294_p10 = pneg %p531_p8  ;;  %s44_s22 = ssub.s32 %s471_s12, %s539_s20 }
  0x11   : > { %p549_p12 = scmp.eq.s32.totalorder %s44_s22, 0  ;;  %s343_s27 = scalar_lea.hbm %s692_s0, 128 }
  0x12   : > { %p543_p11 = pnand %p294_p10, %p695_p1  ;;  %p344_p0 = scmp.ne.s32.totalorder %s692_s0, %s343_s27 }
  0x13   : > { %s702_s23 = scalar_select %p549_p12, 1, 0 }
  0x14   : > { %p345_p3 = pneg %p543_p11  ;;  %p350_p10 = scmp.lt.u32.totalorder %s343_s27, %s692_s0 }
  0x16   : > { %p346_p5 = pnand %p345_p3, %p344_p0 }
  0x18   : > { %p347_p7 = pneg %p346_p5 }
  0x1a   : > { %p352_p9 = pnand %p350_p10, %p347_p7 }
  0x1c   : > { %355 = shalt.err (!%p352_p9)
}
  0x1d   : > { %s356_s4 = scalar_lea.vmem %s111_s19, 128  ;;  %p364_p6 = scmp.lt.s32.totalorder %s111_s19, %s111_s19 }
  0x1e   : > { %p357_p1 = scmp.ne.s32.totalorder %s111_s19, %s356_s4  ;;  %p365_p4 = scmp.lt.s32.totalorder %s356_s4, %s356_s4 }
  0x20   : > { %p359_p2 = pnand %p357_p1, %p345_p3  ;;  %p366_p8 = por %p365_p4, %p364_p6 }
  0x22   : > { %p360_p13 = pneg %p359_p2 }
  0x24   : > { %p367_p12 = pnand %p366_p8, %p360_p13 }
  0x26   : > { %370 = shalt.err (!%p367_p12)
}
  0x27   : > { %297 = dma.hbm_to_vmem [thread:$0]  (!%p543_p11), %s692_s0, 128, %s111_s19, [#allocation3]  }
  0x28   : > { %p703_p1 = scmp.ne.s32.totalorder %s702_s23, 0  ;;  %p55_p2 = scmp.eq.s32.totalorder %s471_s12, 0 }
  0x29   : > { %p704_p4 = scmp.ne.s32.totalorder %s467_s11, %s463_s10  ;;  %p705_p6 = scmp.eq.s32.totalorder %s512_s13, 1 }
  0x2a   : > { %s575_s7 = scalar_select %p703_p1, %s467_s11, %s47_s24  }
  0x2b   : > { %p583_p8 = por %p705_p6, %p704_p4  ;;  %p307_p9 = scmp.lt.s32.totalorder %s471_s12, 2 }
  0x2c   : > { %s121_s14 = sand.u32 1, %s467_s11   ;;  %p707_p12 = pmov %p704_p4 }
  0x2d   : > { %s276_s18 = sshll.u32 %s121_s14, 3  ;;  %s277_s21 = sshll.u32 %s471_s12, 7 }
  0x2e   : > { %p56_p13 = por %p55_p2, %p707_p12  ;;  %s596_s19 = scalar_lea.hbm %s693_s1, %s277_s21 }
  0x2f   : > { %s125_s23 = scalar_lea.vmem [#allocation5], %s276_s18  ;;  %s122_s27 = scalar_lea.sflag [#allocation6], %s121_s14 }
  0x30   : > { %s132_s24 = sshll.u32 %s125_s23, 4  ;;  %p598_p11 = pnand %p307_p9, %p56_p13  ;;  %s602_s24 = int_to_ptr.vmem [resolvable:$true] %s132_s24 }
  0x31   : > { %s371_s28 = scalar_lea.hbm %s596_s19, 128  ;;  %s376_s3 = scalar_lea.hbm %s693_s1, 256 }
  0x32   : > { %p372_p0 = scmp.ne.s32.totalorder %s596_s19, %s371_s28  ;;  %p373_p3 = pneg %p598_p11 }
  0x33   : > { %p377_p10 = scmp.lt.u32.totalorder %s596_s19, %s693_s1  ;;  %p378_p1 = scmp.lt.u32.totalorder %s376_s3, %s371_s28 }
  0x34   : > { %p374_p5 = pnand %p373_p3, %p372_p0  ;;  %p380_p4 = scmp.lt.u32.totalorder %s371_s28, %s596_s19 }
  0x35   : > { %p379_p2 = por %p378_p1, %p377_p10 }
  0x36   : > { %p375_p7 = pneg %p374_p5 }
  0x37   : > { %p381_p6 = por %p380_p4, %p379_p2 }
  0x39   : > { %p382_p9 = pnand %p381_p6, %p375_p7 }
  0x3b   : > { %385 = shalt.err (!%p382_p9)
}
  0x3c   : > { %s386_s6 = scalar_lea.vmem %s602_s24, 128  ;;  %s474_s14 = smov [#allocation5]  }
  0x3d   : > { %p387_p12 = scmp.ne.s32.totalorder %s602_s24, %s386_s6  ;;  %s391_s18 = sshll.u32 %s474_s14, 4  ;;  %s392_s18 = int_to_ptr.vmem [resolvable:$false] %s391_s18 }
  0x3e   : > { %s393_s21 = scalar_lea.vmem %s392_s18, 256  ;;  %p394_p5 = scmp.lt.s32.totalorder %s602_s24, %s392_s18 }
  0x3f   : > { %p389_p13 = pnand %p387_p12, %p373_p3  ;;  %p395_p10 = scmp.lt.s32.totalorder %s393_s21, %s386_s6 }
  0x41   : > { %p390_p0 = pneg %p389_p13  ;;  %p396_p1 = por %p395_p10, %p394_p5 }
  0x43   : > { %p397_p2 = pnand %p396_p1, %p390_p0 }
  0x45   : > { %400 = shalt.err (!%p397_p2)
}
  0x46   : > { %301 = dma.hbm_to_vmem [thread:$0]  (!%p598_p11), %s596_s19, 128, %s602_s24, %s122_s27  }
  0x47   : > { %p709_p7 = scmp.ne.s32.totalorder %s700_s17, 0 }
  0x48   : > { %p710_p3 = scmp.eq.s32.totalorder (!%p709_p7), %s512_s13, 0 }
  0x49   : > { %141 = sbr.rel (%p709_p7) target bundleno = 110 (0x6e), region = 28 }
  0x50   : > { %446 = dma.done.wait (%p710_p3), [#allocation3], 128   ;;  %p711_p4 = pmov %p710_p3 }
  0x51   : > { %s636_s22 = sand.u32 1, %s463_s10   ;;  %p712_p6 = scmp.ne.s32.totalorder %s698_s15, 0 }
  0x52   : > { %448 = vsyncadd (%p711_p4), [#allocation3], 4294967168  ;;  %s280_s25 = sshll.u32 %s636_s22, 3  ;;  %s148_s23 = scalar_lea.sflag [#allocation6], %s636_s22 }
  0x53   : > { %s151_s26 = scalar_lea.vmem [#allocation5], %s280_s25 }
  0x54   : > { %450 = dma.done.wait (%p712_p6), %s148_s23, 128  }
  0x55   : > { %452 = vsyncadd (%p712_p6), %s148_s23, 4294967168  ;;  %s171_s17 = scalar_lea.vmem [#allocation7], %s280_s25  ;;  %s283_s24 = sshll.u32 %s512_s13, 7  ;;  %v172_v0 = vld [vmem:[%s151_s26] sm:$0xff]  ;;  %v173_v1 = vld [vmem:[#allocation2] sm:$0xff] }
  0x56   : > { %s190_s19 = sshll.u32 %s171_s17, 4  ;;  %v174_v2 = vadd.f32 %v173_v1, %v172_v0  ;;  %s650_s29 = scalar_lea.hbm %s694_s2, %s283_s24  ;;  %s645_s19 = int_to_ptr.vmem [resolvable:$true] %s190_s19 }
  0x57   : > { %s177_s15 = scalar_lea.sflag [#allocation4], %s636_s22  ;;  %s401_s30 = scalar_lea.vmem %s645_s19, 128 }
  0x58   : > { %175 = vst [vmem:[%s171_s17] sm:$0xff] %v174_v2  ;;  %p402_p11 = scmp.ne.s32.totalorder %s645_s19, %s401_s30  ;;  %s475_s13 = smov [#allocation7]  }
  0x59   : > { %s405_s3 = sshll.u32 %s475_s13, 4  ;;  %s406_s3 = int_to_ptr.vmem [resolvable:$false] %s405_s3 }
  0x5a   : > { %p403_p9 = pnand %p402_p11, %p583_p8  ;;  %s407_s4 = scalar_lea.vmem %s406_s3, 256 }
  0x5b   : > { %p408_p13 = scmp.lt.s32.totalorder %s645_s19, %s406_s3  ;;  %p409_p0 = scmp.lt.s32.totalorder %s407_s4, %s401_s30 }
  0x5c   : > { %p404_p12 = pneg %p403_p9 }
  0x5d   : > { %p410_p5 = por %p409_p0, %p408_p13 }
  0x5f   : > { %p411_p10 = pnand %p410_p5, %p404_p12 }
  0x61   : > { %414 = shalt.err (!%p411_p10)
}
  0x62   : > { %s415_s5 = scalar_lea.hbm %s650_s29, 128  ;;  %s419_s18 = scalar_lea.hbm %s694_s2, 256 }
  0x63   : > { %p416_p1 = scmp.ne.s32.totalorder %s650_s29, %s415_s5  ;;  %p420_p3 = scmp.lt.u32.totalorder %s650_s29, %s694_s2 }
  0x64   : > { %p421_p4 = scmp.lt.u32.totalorder %s419_s18, %s415_s5  ;;  %p423_p11 = scmp.lt.u32.totalorder %s415_s5, %s650_s29 }
  0x65   : > { %p417_p2 = pnand %p416_p1, %p583_p8 }
  0x66   : > { %p422_p6 = por %p421_p4, %p420_p3 }
  0x67   : > { %p418_p7 = pneg %p417_p2 }
  0x68   : > { %p424_p9 = por %p423_p11, %p422_p6 }
  0x6a   : > { %p425_p12 = pnand %p424_p9, %p418_p7 }
  0x6c   : > { %428 = shalt.err (!%p425_p12)
}
  0x6d   : > { %292 = dma.vmem_to_hbm [thread:$0]  (%p583_p8), %s645_s19, 128, %s650_s29, %s177_s15  }
  0x6e PF: > { %s202_s25 = sand.u32 1, %s459_s9   ;;  %p713_p13 = scmp.ne.s32.totalorder %s699_s16, 0 }
  0x6f   : > { %p714_p0 = scmp.ge.s32.totalorder %s471_s12, 2  ;;  %s203_s23 = scalar_lea.sflag [#allocation4], %s202_s25 }
  0x71   : > { %p303_p5 = pnand %p714_p0, %p713_p13 }
  0x73   : > { %454 = dma.done.wait (!%p303_p5), %s203_s23, 128  }
  0x74   : > { %456 = vsyncadd (!%p303_p5), %s203_s23, 4294967168  ;;  %p16_p10 = scmp.ge.s32.totalorder %s539_s20, 4   ;;  %s715_s9 = smov %s463_s10 }
  0x75   : > { %s716_s10 = smov %s467_s11  ;;  %s717_s11 = smov %s575_s7 }
  0x76   : > { %s718_s12 = smov %s539_s20  ;;  %18 = sbr.rel (!%p16_p10) target bundleno = 6 (0x6), region = 78 }
  0x7d   :  { %208 = vsyncpa [#allocation3], 1 }
  0x7e   :  { %210 = vsyncpa [#allocation3 + $0x1], 1 }
  0x7f   :  { %211 = vsyncpa [#allocation6], 1 }
  0x80   :  { %213 = vsyncpa [#allocation6 + $0x1], 1 }
  0x81   :  { %214 = vsyncpa [#allocation4], 1 }
  0x82   :  { %216 = vsyncpa [#allocation4 + $0x1], 1 }

// kernel: set_transformer_forward.1
= control target key start
LH: loop header
LB: loop body
LE: loop exit
PB: predicated region body
PF: predicated region fallthrough
CT: control target
= control target key end

     0   :  { %s13083_s6 = smov 1   ;;  %s13084_s10 = smov 2   ;;  %s15333_s0 = inlined_call_operand.smem [shape: u32[44], index: -1, kind: input, shape index: {}] }
   0x1   :  { %s13151_s5 = sld [smem:[%s15333_s0]]   ;;  %s13085_s14 = smov 3  }
   0x2   :  { %s13156_s9 = sld [smem:[%s15333_s0 + %s13083_s6]]   ;;  %s13086_s18 = smov 4  }
   0x3   :  { %s13161_s13 = sld [smem:[%s15333_s0 + %s13084_s10]]   ;;  %s13087_s22 = smov 5  }
   0x4   :  { %s13166_s17 = sld [smem:[%s15333_s0 + %s13085_s14]]   ;;  %s13088_s26 = smov 6  }
   0x5   :  { %s13171_s21 = sld [smem:[%s15333_s0 + %s13086_s18]]   ;;  %s13089_s30 = smov 7  }
   0x6   :  { %s13176_s25 = sld [smem:[%s15333_s0 + %s13087_s22]]   ;;  %s13090_s4 = smov 8  }
   0x7   :  { %s13181_s29 = sld [smem:[%s15333_s0 + %s13088_s26]]   ;;  %s13091_s10 = smov 9  }
   0x8   :  { %s13186_s3 = sld [smem:[%s15333_s0 + %s13089_s30]]   ;;  %s13092_s15 = smov 10  }
   0x9   :  { %s13191_s8 = sld [smem:[%s15333_s0 + %s13090_s4]]   ;;  %s13093_s20 = smov 11  }
   0xa   :  { %s13196_s14 = sld [smem:[%s15333_s0 + %s13091_s10]]   ;;  %s13094_s26 = smov 12  }
   0xb   :  { %s13201_s19 = sld [smem:[%s15333_s0 + %s13092_s15]]   ;;  %s13095_s1 = smov 13  }
   0xc   :  { %s13206_s24 = sld [smem:[%s15333_s0 + %s13093_s20]]   ;;  %s13096_s7 = smov 14  }
   0xd   :  { %s13211_s30 = sld [smem:[%s15333_s0 + %s13094_s26]]   ;;  %s13097_s15 = smov 15  }
   0xe   :  { %s13216_s6 = sld [smem:[%s15333_s0 + %s13095_s1]]   ;;  %s13098_s22 = smov 16  }
   0xf   :  { %s13221_s12 = sld [smem:[%s15333_s0 + %s13096_s7]]   ;;  %s13099_s28 = smov 17  }
  0x10   :  { %s13226_s20 = sld [smem:[%s15333_s0 + %s13097_s15]]   ;;  %s13100_s7 = smov 18  }
  0x11   :  { %s13231_s27 = sld [smem:[%s15333_s0 + %s13098_s22]]   ;;  %s13101_s15 = smov 19  }
  0x12   :  { %s13236_s4 = sld [smem:[%s15333_s0 + %s13099_s28]]   ;;  %s13102_s22 = smov 20  }
  0x13   :  { %s13103_s28 = smov 21  }
  0x15   :  { %15352 = sst [smem:[#allocation5_spill]] %s13221_s12 }
  0x16   :  { %15353 = sst [smem:[#allocation6_spill]] %s13226_s20 }
  0x17   :  { %15354 = sst [smem:[#allocation7_spill]] %s13231_s27 }
  0x18   :  { %15355 = sst [smem:[#allocation8_spill]] %s13236_s4 }
  0x19   :  { %s13241_s12 = sld [smem:[%s15333_s0 + %s13100_s7]]   ;;  %s13104_s7 = smov 22  }
  0x1a   :  { %s13246_s20 = sld [smem:[%s15333_s0 + %s13101_s15]]   ;;  %s13105_s15 = smov 23  }
  0x1b   :  { %s13251_s27 = sld [smem:[%s15333_s0 + %s13102_s22]]   ;;  %s13106_s22 = smov 24  }
  0x1c   :  { %s13256_s4 = sld [smem:[%s15333_s0 + %s13103_s28]]   ;;  %s13107_s28 = smov 25  }
  0x1f   :  { %15356 = sst [smem:[#allocation9_spill]] %s13241_s12 }
  0x20   :  { %15357 = sst [smem:[#allocation10_spill]] %s13246_s20 }
  0x21   :  { %15358 = sst [smem:[#allocation11_spill]] %s13251_s27 }
  0x22   :  { %15359 = sst [smem:[#allocation12_spill]] %s13256_s4 }
  0x23   :  { %s13261_s12 = sld [smem:[%s15333_s0 + %s13104_s7]]   ;;  %s13108_s7 = smov 26  }
  0x24   :  { %s13266_s20 = sld [smem:[%s15333_s0 + %s13105_s15]]   ;;  %s13109_s15 = smov 27  }
  0x25   :  { %s13271_s27 = sld [smem:[%s15333_s0 + %s13106_s22]]   ;;  %s13110_s22 = smov 28  }
  0x26   :  { %s13276_s4 = sld [smem:[%s15333_s0 + %s13107_s28]]   ;;  %s13111_s28 = smov 29  }
  0x29   :  { %15360 = sst [smem:[#allocation13_spill]] %s13261_s12 }
  0x2a   :  { %15361 = sst [smem:[#allocation14_spill]] %s13266_s20 }
  0x2b   :  { %15362 = sst [smem:[#allocation15_spill]] %s13271_s27 }
  0x2c   :  { %15363 = sst [smem:[#allocation16_spill]] %s13276_s4 }
  0x2d   :  { %s13281_s12 = sld [smem:[%s15333_s0 + %s13108_s7]]   ;;  %s13112_s7 = smov 30  }
  0x2e   :  { %s13286_s20 = sld [smem:[%s15333_s0 + %s13109_s15]]   ;;  %s13113_s15 = smov 31  }
  0x2f   :  { %s13291_s27 = sld [smem:[%s15333_s0 + %s13110_s22]]   ;;  %s13114_s22 = smov 32  }
  0x30   :  { %s13296_s4 = sld [smem:[%s15333_s0 + %s13111_s28]]   ;;  %s13115_s28 = smov 33  }
  0x33   :  { %15364 = sst [smem:[#allocation17_spill]] %s13281_s12 }
  0x34   :  { %15365 = sst [smem:[#allocation18_spill]] %s13286_s20 }
  0x35   :  { %15366 = sst [smem:[#allocation19_spill]] %s13291_s27 }
  0x36   :  { %15367 = sst [smem:[#allocation20_spill]] %s13296_s4 }
  0x37   :  { %s13301_s12 = sld [smem:[%s15333_s0 + %s13112_s7]]   ;;  %s13116_s7 = smov 34  }
  0x38   :  { %s13306_s20 = sld [smem:[%s15333_s0 + %s13113_s15]]   ;;  %s13117_s15 = smov 35  }
  0x39   :  { %s13311_s27 = sld [smem:[%s15333_s0 + %s13114_s22]]   ;;  %s13118_s22 = smov 36  }
  0x3a   :  { %s13316_s4 = sld [smem:[%s15333_s0 + %s13115_s28]]   ;;  %s13119_s28 = smov 37  }
  0x3d   :  { %15368 = sst [smem:[#allocation21_spill]] %s13301_s12 }
  0x3e   :  { %15369 = sst [smem:[#allocation22_spill]] %s13306_s20 }
  0x3f   :  { %15370 = sst [smem:[#allocation23_spill]] %s13311_s27 }
  0x40   :  { %15371 = sst [smem:[#allocation24_spill]] %s13316_s4 }
  0x41   :  { %s13321_s12 = sld [smem:[%s15333_s0 + %s13116_s7]]   ;;  %s13120_s7 = smov 38  }
  0x42   :  { %s13326_s20 = sld [smem:[%s15333_s0 + %s13117_s15]]   ;;  %s13121_s15 = smov 39  }
  0x43   :  { %s13331_s27 = sld [smem:[%s15333_s0 + %s13118_s22]]   ;;  %s13122_s22 = smov 40  }
  0x44   :  { %s13336_s4 = sld [smem:[%s15333_s0 + %s13119_s28]]   ;;  %s13123_s28 = smov 41  }
  0x47   :  { %15372 = sst [smem:[#allocation25_spill]] %s13321_s12 }
  0x48   :  { %15373 = sst [smem:[#allocation26_spill]] %s13326_s20 }
  0x49   :  { %15374 = sst [smem:[#allocation27_spill]] %s13331_s27 }
  0x4a   :  { %15375 = sst [smem:[#allocation28_spill]] %s13336_s4 }
  0x4b   :  { %s13341_s12 = sld [smem:[%s15333_s0 + %s13120_s7]]   ;;  %s13124_s7 = smov 42  }
  0x4c   :  { %s13346_s20 = sld [smem:[%s15333_s0 + %s13121_s15]]   ;;  %s13125_s15 = smov 43  }
  0x4d   :  { %s13351_s27 = sld [smem:[%s15333_s0 + %s13122_s22]]  }
  0x4e   :  { %s13356_s4 = sld [smem:[%s15333_s0 + %s13123_s28]]  }
  0x51   :  { %15376 = sst [smem:[#allocation29_spill]] %s13341_s12 }
  0x52   :  { %15377 = sst [smem:[#allocation30_spill]] %s13346_s20 }
  0x53   :  { %s13361_s12 = sld [smem:[%s15333_s0 + %s13124_s7]]  }
  0x54   :  { %s13366_s20 = sld [smem:[%s15333_s0 + %s13125_s15]]  }
  0x55   :  { %v189_v0 = vld [vmem:[%s13166_s17] sm:$0xf]  ;;  %vm220_vm0 = vcmask 1043456   ;;  %vm213_vm1 = vcmask 64512   ;;  %v13375_v3 = vld [vmem:[%s13151_s5 + $0x8] sm:$0xff]   ;;  %v13126_v4 = vmov 0.0  }
  0x56   :  { %v13370_v1 = vld [vmem:[%s13151_s5] sm:$0xff]   ;;  %12591 = vmatprep.subr.msk.bf16.mxu0 %vm220_vm0, %v189_v0  ;;  %v222_v2 = vsel %vm220_vm0, %v189_v0, 0  ;;  %11513 = vmatprep.subr.bf16.mxu1 %v13126_v4  ;;  %v12656_v6 = vld [vmem:[%s13161_s13 + $0x8] sm:$0xff]   ;;  %vm13127_vm2 = vmmov 0   ;;  %vm288_vm3 = vcmask 261120   ;;  %s13128_s0 = smov 96  }
  0x57   :  { %11508 = vmatpush3.bf16.msra.mxu0 %v222_v2  ;;  %11509 = vmatprep.mubr.msk.bf16.mxu0 %vm213_vm1, %v13370_v1  ;;  %v12655_v5 = vld [vmem:[%s13161_s13] sm:$0xff]  }
  0x58   :  { %11521 = vmatprep.subr.bf16.mxu0 %v13126_v4  ;;  %11517 = vmatprep.mubr.msk.bf16.mxu1 %vm13127_vm2, %v13126_v4  ;;  %v13388_v7 = vld [vmem:[%s13171_s21] ss:$0 sm:$0xff] }
  0x59   :  { %11514 = vmatpush3.bf16.msra.mxu1 %v12655_v5  ;;  %210 = vrot.lane.b32.xlu0 %v13388_v7, %s13128_s0  ;;  %v184_v8 = vld [vmem:[%s13156_s9] sm:$0xf] }
  0x5a   :  { %11510 = vmatmul.mubr.msk.bf16.vlgmr.msra.gmra.mrb[0].mxu0 %vm213_vm1, %v13375_v3  ;;  %11515 = vmatprep.subr.bf16.mxu1 %v13126_v4 }
  0x5b   :  { %11523 = vmatprep.mubr.msk.bf16.mxu0 %vm13127_vm2, %v13126_v4 }
  0x5d   :  { %11516 = vmatpush3.bf16.msra.mxu1 %v12656_v6 }
  0x5e   :  { %11527 = vmatprep.subr.bf16.mxu1 %v13126_v4 }
  0x60   :  { %11518 = vmatmul.mubr.msk.bf16.vlgmr.msra.gmra.mrb[0].mxu1 %vm288_vm3, %v184_v8 }
  0x61   :  { %11529 = vmatprep.mubr.msk.bf16.mxu1 %vm13127_vm2, %v13126_v4 }
  0x62   :  { %92 = vsyncpa [#allocation3], 0  ;;  %vm422_vm4 = vcmask 130048   ;;  %s13129_s5 = smov 120   ;;  %s13130_s9 = smov 88   ;;  %vm1211_vm5 = vcmask 195584  }
  0x63   :  { %s13131_s13 = smov 112   ;;  %s13132_s17 = smov 80   ;;  %vm5157_vm6 = vcmask 122880   ;;  %vm5955_vm7 = vcmask 1041409   ;;  %vm6324_vm8 = vcmask 1040384   ;;  %vm6320_vm9 = vcmask 7168  }
  0x64   :  { %s13133_s21 = smov 104   ;;  %s13134_s22 = smov 72   ;;  %vm7389_vm10 = vcmask 57344  }
  0x65   :  { %s13135_s23 = smov 8   ;;  %s13136_s26 = smov 16  }
  0x66   :  { %s13137_s28 = smov 24   ;;  %s13138_s1 = smov 32  }
  0x67   :  { %s15387_s2 = sld [smem:[#allocation14_spill]]  ;;  %s15388_s7 = sld [smem:[#allocation17_spill]] }
  0x68   :  { %s15389_s10 = sld [smem:[#allocation16_spill]]  ;;  %s15390_s11 = sld [smem:[#allocation18_spill]] }
  0x69   :  { %s15391_s15 = sld [smem:[#allocation15_spill]]  ;;  %s15392_s16 = sld [smem:[#allocation19_spill]] }
  0x6a   :  { %s15393_s18 = sld [smem:[#allocation20_spill]] }
  0xcb   :  { %v211_v9 = vpop.permute.xlu0 %210 }
 0x12d   :  { %v11511_v10 = vpop.f32.mrb[0].mxu0 }
 0x12e   :  { %v258_v11 = vpop.f32.mrb[1].mxu0  ;;  %v267_v13 = vadd.f32 %v11511_v10, %v211_v9 }
 0x12f   :  { %v11512_v12 = vpop.f32.mrb[2].mxu0  ;;  %v259_v16 = vadd.f32 %v258_v11, %v211_v9 }
 0x130   :  { %v270_v14 = vadd.f32 %v11512_v12, %v211_v9  ;;  %v261_v15 = vpop.f32.mrb[3].mxu0 }
 0x131   :  { %v262_v17 = vadd.f32 %v261_v15, %v211_v9 }
 0x132   :  { %v13400_v18 = vpack.c.bf16 %v270_v14, %v267_v13 }
 0x133   :  { %v13402_v19 = vpack.c.bf16 %v262_v17, %v259_v16  ;;  %v326_v20 = vpop.f32.mrb[0].mxu1 }
 0x134   :  { %v380_v21 = vsel %vm213_vm1, %v13400_v18, 0  ;;  %v13407_v22 = vadd.f32 %v13388_v7, %v326_v20  ;;  %v11519_v23 = vpop.f32.mrb[1].mxu1 }
 0x135   :  { %11528 = vmatpush3.bf16.xpose.msra.mxu1 %v380_v21  ;;  %v337_v24 = vsel %vm213_vm1, %v13402_v19, 0  ;;  %v329_v25 = vpop.f32.mrb[2].mxu1 }
 0x136   :  { %11522 = vmatpush3.bf16.xpose.msra.mxu0 %v337_v24  ;;  %11539 = vmatprep.subr.bf16.mxu1 %v13126_v4  ;;  %v11520_v26 = vpop.f32.mrb[3].mxu1  ;;  %v13415_v27 = vpack.c.bf16 %v13407_v22, %v13407_v22 }
 0x137   :  { %11533 = vmatprep.subr.bf16.mxu0 %v13126_v4 }
 0x13c   :  { %11530 = vmatmul.mubr.msk.bf16.vlgmr.msra.gmra.mrb[4].mxu1 %vm213_vm1, %v13415_v27 }
 0x13d   :  { %11524 = vmatmul.mubr.msk.bf16.vlgmr.msra.gmra.mrb[4].mxu0 %vm213_vm1, %v13415_v27  ;;  %11541 = vmatprep.mubr.msk.bf16.mxu1 %vm13127_vm2, %v13126_v4 }
 0x13e   :  { %11535 = vmatprep.mubr.msk.bf16.mxu0 %vm13127_vm2, %v13126_v4 }
 0x20f   :  { %v416_v28 = vpop.f32.mrb[4].mxu1 }
 0x210   :  { %v373_v29 = vpop.f32.mrb[4].mxu0  ;;  %v11531_v30 = vpop.f32.mrb[5].mxu1  ;;  %v426_v31 = vsel %vm422_vm4, %v416_v28, -inf }
 0x211   :  { %427 = vmax.xlane.f32.xlu1 %v426_v31  ;;  %v11525_v32 = vpop.f32.mrb[5].mxu0  ;;  %v419_v33 = vpop.f32.mrb[6].mxu1  ;;  %v423_v34 = vsel %vm422_vm4, %v373_v29, -inf }
 0x212   :  { %v11532_v35 = vpop.f32.mrb[7].mxu1  ;;  %424 = vmax.xlane.f32.xlu0 %v423_v34  ;;  %v376_v36 = vpop.f32.mrb[6].mxu0 }
 0x213   :  { %v11526_v37 = vpop.f32.mrb[7].mxu0 }
 0x222   :  { %448 = vrot.lane.b32.xlu1 %v13402_v19, %s13128_s0 }
 0x226   :  { %495 = vrot.lane.b32.xlu1 %v13400_v18, %s13128_s0 }
 0x228   :  { %594 = vrot.lane.b32.xlu0 %v13400_v18, %s13129_s5 }
 0x29e   :  { %v428_v38 = vpop.xlane.xlu1 %427 }
 0x29f   :  { %v430_v39 = vsub.f32 %v416_v28, %v428_v38  ;;  %v425_v40 = vpop.xlane.xlu0 %424 }
 0x2a0   :  { %v429_v41 = vsub.f32 %v373_v29, %v425_v40 }
 0x2a1   :  { %v433_v42 = vmul.f32 1.442695, %v430_v39 }
 0x2a2   :  { %v431_v43 = vmul.f32 1.442695, %v429_v41  ;;  %v449_v44 = vpop.permute.xlu1 %448 }
 0x2a3   :  { %12707 = vpow2.f32 %v433_v42  ;;  %11534 = vmatpush3.bf16.msra.mxu0 %v449_v44  ;;  %v595_v54 = vpop.permute.xlu0 %594 }
 0x2a4   :  { %11545 = vmatprep.subr.bf16.mxu0 %v13126_v4  ;;  %12709 = vpow2.f32 %v431_v43  ;;  %v597_v57 = vsel %vm213_vm1, %v595_v54, 0 }
 0x2a6   :  { %v496_v45 = vpop.permute.xlu1 %495 }
 0x2a7   :  { %11540 = vmatpush3.bf16.msra.mxu1 %v496_v45 }
 0x2a8   :  { %11551 = vmatprep.subr.bf16.mxu1 %v13126_v4 }
 0x2ad   :  { %v12708_v46 = vpop.eup %12707 }
 0x2ae   :  { %v438_v47 = vsel %vm422_vm4, %v12708_v46, 0.0  ;;  %v12710_v48 = vpop.eup %12709 }
 0x2af   :  { %439 = vadd.xlane.f32.xlu1 %v438_v47  ;;  %v435_v49 = vsel %vm422_vm4, %v12710_v48, 0.0 }
 0x2b3   :  { %436 = vadd.xlane.f32.xlu1 %v435_v49 }
 0x2c4   :  { %546 = vrot.lane.b32.xlu1 %v13402_v19, %s13129_s5 }
 0x2c8   :  { %544 = vrot.lane.b32.xlu1 %v13415_v27, %s13129_s5 }
 0x33c   :  { %v440_v50 = vpop.xlane.xlu1 %439 }
 0x33d   :  { %12711 = vrcp.f32 %v440_v50 }
 0x340   :  { %v437_v51 = vpop.xlane.xlu1 %436 }
 0x341   :  { %12713 = vrcp.f32 %v437_v51 }
 0x344   :  { %v547_v59 = vpop.permute.xlu1 %546 }
 0x345   :  { %v552_v61 = vsel %vm213_vm1, %v547_v59, 0 }
 0x347   :  { %v12712_v52 = vpop.eup %12711 }
 0x348   :  { %v444_v53 = vmul.f32 %v12712_v52, %v12708_v46  ;;  %v545_v62 = vpop.permute.xlu1 %544 }
 0x34a   :  { %v446_v55 = vpack.c.bf16 %v444_v53, %v444_v53 }
 0x34b   :  { %v12714_v56 = vpop.eup %12713 }
 0x34c   :  { %11542 = vmatmul.mubr.msk.bf16.vlgmr.msra.gmra.mrb[8].mxu1 %vm422_vm4, %v446_v55  ;;  %v443_v58 = vmul.f32 %v12714_v56, %v12710_v48 }
 0x34d   :  { %11552 = vmatpush3.bf16.xpose.msra.mxu1 %v597_v57  ;;  %11553 = vmatprep.mubr.msk.bf16.mxu1 %vm13127_vm2, %v13126_v4 }
 0x34e   :  { %v445_v60 = vpack.c.bf16 %v443_v58, %v443_v58  ;;  %11563 = vmatprep.subr.bf16.mxu1 %v13126_v4 }
 0x350   :  { %11536 = vmatmul.mubr.msk.bf16.vlgmr.msra.gmra.mrb[8].mxu0 %vm422_vm4, %v445_v60 }
 0x351   :  { %11546 = vmatpush3.bf16.xpose.msra.mxu0 %v552_v61  ;;  %11547 = vmatprep.mubr.msk.bf16.mxu0 %vm13127_vm2, %v13126_v4 }
 0x352   :  { %11557 = vmatprep.subr.bf16.mxu0 %v13126_v4 }
 0x354   :  { %11554 = vmatmul.mubr.msk.bf16.vlgmr.msra.gmra.mrb[12].mxu1 %vm213_vm1, %v545_v62 }
 0x355   :  { %11565 = vmatprep.mubr.msk.bf16.mxu1 %vm13127_vm2, %v13126_v4 }
 0x358   :  { %11548 = vmatmul.mubr.msk.bf16.vlgmr.msra.gmra.mrb[12].mxu0 %vm213_vm1, %v545_v62 }
 0x359   :  { %11559 = vmatprep.mubr.msk.bf16.mxu0 %vm13127_vm2, %v13126_v4 }
 0x41f   :  { %v13457_v63 = vpop.f32.mrb[8].mxu1 }
 0x420   :  { %v11543_v0 = vpop.f32.mrb[9].mxu1 }
 0x421   :  { %v538_v2 = vpop.f32.mrb[10].mxu1 }
 0x422   :  { %v11544_v5 = vpop.f32.mrb[11].mxu1 }
 0x423   :  { %v13459_v6 = vpop.f32.mrb[8].mxu0 }
 0x424   :  { %v11537_v8 = vpop.f32.mrb[9].mxu0 }
 0x425   :  { %v491_v9 = vpop.f32.mrb[10].mxu0 }
 0x426   :  { %v11538_v10 = vpop.f32.mrb[11].mxu0 }
 0x427   :  { %v633_v11 = vpop.f32.mrb[12].mxu1 }
 0x428   :  { %v11555_v12 = vpop.f32.mrb[13].mxu1  ;;  %v642_v13 = vsel %vm422_vm4, %v633_v11, -inf }
 0x429   :  { %643 = vmax.xlane.f32.xlu0 %v642_v13  ;;  %v636_v14 = vpop.f32.mrb[14].mxu1 }
 0x42a   :  { %v11556_v15 = vpop.f32.mrb[15].mxu1 }
 0x42b   :  { %v588_v16 = vpop.f32.mrb[12].mxu0 }
 0x42c   :  { %v11549_v17 = vpop.f32.mrb[13].mxu0  ;;  %v639_v20 = vsel %vm422_vm4, %v588_v16, -inf }
 0x42d   :  { %640 = vmax.xlane.f32.xlu1 %v639_v20  ;;  %v591_v21 = vpop.f32.mrb[14].mxu0 }
 0x42e   :  { %v11550_v23 = vpop.f32.mrb[15].mxu0 }
 0x43e   :  { %663 = vrot.lane.b32.xlu1 %v13402_v19, %s13130_s9 }
 0x43f   :  { %709 = vrot.lane.b32.xlu0 %v13400_v18, %s13130_s9 }
 0x442   :  { %767 = vrot.lane.b32.xlu1 %v13402_v19, %s13131_s13 }
 0x443   :  { %765 = vrot.lane.b32.xlu0 %v13415_v27, %s13131_s13 }
 0x4b6   :  { %v644_v24 = vpop.xlane.xlu0 %643 }
 0x4b7   :  { %v646_v25 = vsub.f32 %v633_v11, %v644_v24 }
 0x4b9   :  { %v649_v26 = vmul.f32 1.442695, %v646_v25 }
 0x4ba   :  { %v710_v28 = vpop.permute.xlu0 %709  ;;  %v641_v29 = vpop.xlane.xlu1 %640 }
 0x4bb   :  { %12715 = vpow2.f32 %v649_v26  ;;  %v645_v30 = vsub.f32 %v588_v16, %v641_v29  ;;  %11564 = vmatpush3.bf16.msra.mxu1 %v710_v28 }
 0x4bc   :  { %11575 = vmatprep.subr.bf16.mxu1 %v13126_v4 }
 0x4bd   :  { %v647_v31 = vmul.f32 1.442695, %v645_v30 }
 0x4be   :  { %v664_v32 = vpop.permute.xlu1 %663  ;;  %v766_v49 = vpop.permute.xlu0 %765 }
 0x4bf   :  { %12717 = vpow2.f32 %v647_v31  ;;  %11558 = vmatpush3.bf16.msra.mxu0 %v664_v32 }
 0x4c0   :  { %11569 = vmatprep.subr.bf16.mxu0 %v13126_v4 }
 0x4c2   :  { %v768_v37 = vpop.permute.xlu1 %767 }
 0x4c3   :  { %v773_v48 = vsel %vm213_vm1, %v768_v37, 0 }
 0x4c5   :  { %v12716_v33 = vpop.eup %12715 }
 0x4c6   :  { %v654_v34 = vsel %vm422_vm4, %v12716_v33, 0.0 }
 0x4c7   :  { %655 = vadd.xlane.f32.xlu1 %v654_v34 }
 0x4c9   :  { %v12718_v35 = vpop.eup %12717 }
 0x4ca   :  { %v651_v36 = vsel %vm422_vm4, %v12718_v35, 0.0 }
 0x4cb   :  { %652 = vadd.xlane.f32.xlu1 %v651_v36 }
 0x4dc   :  { %815 = vrot.lane.b32.xlu1 %v13400_v18, %s13131_s13 }
 0x554   :  { %v656_v38 = vpop.xlane.xlu1 %655 }
 0x555   :  { %12719 = vrcp.f32 %v656_v38 }
 0x558   :  { %v653_v39 = vpop.xlane.xlu1 %652 }
 0x559   :  { %12721 = vrcp.f32 %v653_v39 }
 0x55c   :  { %v816_v42 = vpop.permute.xlu1 %815 }
 0x55d   :  { %v818_v45 = vsel %vm213_vm1, %v816_v42, 0 }
 0x55f   :  { %v12720_v40 = vpop.eup %12719 }
 0x560   :  { %v660_v41 = vmul.f32 %v12720_v40, %v12716_v33 }
 0x562   :  { %v662_v43 = vpack.c.bf16 %v660_v41, %v660_v41 }
 0x563   :  { %v12722_v44 = vpop.eup %12721 }
 0x564   :  { %11566 = vmatmul.mubr.msk.bf16.vlgmr.msra.gmra.mrb[16].mxu1 %vm422_vm4, %v662_v43  ;;  %v659_v46 = vmul.f32 %v12722_v44, %v12718_v35 }
 0x565   :  { %11576 = vmatpush3.bf16.xpose.msra.mxu1 %v818_v45  ;;  %11577 = vmatprep.mubr.msk.bf16.mxu1 %vm13127_vm2, %v13126_v4 }
 0x566   :  { %v661_v47 = vpack.c.bf16 %v659_v46, %v659_v46  ;;  %11587 = vmatprep.subr.bf16.mxu1 %v13126_v4 }
 0x568   :  { %11560 = vmatmul.mubr.msk.bf16.vlgmr.msra.gmra.mrb[16].mxu0 %vm422_vm4, %v661_v47 }
 0x569   :  { %11570 = vmatpush3.bf16.xpose.msra.mxu0 %v773_v48  ;;  %11571 = vmatprep.mubr.msk.bf16.mxu0 %vm13127_vm2, %v13126_v4 }
 0x56a   :  { %11581 = vmatprep.subr.bf16.mxu0 %v13126_v4 }
 0x56c   :  { %11578 = vmatmul.mubr.msk.bf16.vlgmr.msra.gmra.mrb[20].mxu1 %vm213_vm1, %v766_v49 }
 0x56d   :  { %11589 = vmatprep.mubr.msk.bf16.mxu1 %vm13127_vm2, %v13126_v4 }
 0x570   :  { %11572 = vmatmul.mubr.msk.bf16.vlgmr.msra.gmra.mrb[20].mxu0 %vm213_vm1, %v766_v49 }
 0x571   :  { %11583 = vmatprep.mubr.msk.bf16.mxu0 %vm13127_vm2, %v13126_v4 }
 0x637   :  { %v13493_v50 = vpop.f32.mrb[16].mxu1 }
 0x638   :  { %v11567_v51 = vpop.f32.mrb[17].mxu1 }
 0x639   :  { %v752_v52 = vpop.f32.mrb[18].mxu1 }
 0x63a   :  { %v11568_v53 = vpop.f32.mrb[19].mxu1 }
 0x63b   :  { %v13495_v54 = vpop.f32.mrb[16].mxu0 }
 0x63c   :  { %v11561_v55 = vpop.f32.mrb[17].mxu0 }
 0x63d   :  { %v706_v56 = vpop.f32.mrb[18].mxu0 }
 0x63e   :  { %v11562_v57 = vpop.f32.mrb[19].mxu0 }
 0x63f   :  { %v854_v58 = vpop.f32.mrb[20].mxu1 }
 0x640   :  { %v11579_v59 = vpop.f32.mrb[21].mxu1  ;;  %v863_v60 = vsel %vm422_vm4, %v854_v58, -inf }
 0x641   :  { %864 = vmax.xlane.f32.xlu0 %v863_v60  ;;  %v857_v61 = vpop.f32.mrb[22].mxu1 }
 0x642   :  { %v11580_v62 = vpop.f32.mrb[23].mxu1 }
 0x643   :  { %v809_v0 = vpop.f32.mrb[20].mxu0 }
 0x644   :  { %v11573_v2 = vpop.f32.mrb[21].mxu0  ;;  %v860_v5 = vsel %vm422_vm4, %v809_v0, -inf }
 0x645   :  { %861 = vmax.xlane.f32.xlu1 %v860_v5  ;;  %v812_v8 = vpop.f32.mrb[22].mxu0 }
 0x646   :  { %v11574_v9 = vpop.f32.mrb[23].mxu0 }
 0x656   :  { %930 = vrot.lane.b32.xlu1 %v13400_v18, %s13132_s17 }
 0x657   :  { %884 = vrot.lane.b32.xlu0 %v13402_v19, %s13132_s17 }
 0x6ce   :  { %v865_v10 = vpop.xlane.xlu0 %864 }
 0x6cf   :  { %v867_v11 = vsub.f32 %v854_v58, %v865_v10 }
 0x6d1   :  { %v870_v12 = vmul.f32 1.442695, %v867_v11 }
 0x6d2   :  { %v885_v13 = vpop.permute.xlu0 %884  ;;  %v862_v14 = vpop.xlane.xlu1 %861 }
 0x6d3   :  { %12723 = vpow2.f32 %v870_v12  ;;  %v866_v15 = vsub.f32 %v809_v0, %v862_v14  ;;  %11582 = vmatpush3.bf16.msra.mxu0 %v885_v13 }
 0x6d4   :  { %11593 = vmatprep.subr.bf16.mxu0 %v13126_v4 }
 0x6d5   :  { %v868_v16 = vmul.f32 1.442695, %v866_v15 }
 0x6d6   :  { %v931_v17 = vpop.permute.xlu1 %930 }
 0x6d7   :  { %12725 = vpow2.f32 %v868_v16  ;;  %11588 = vmatpush3.bf16.msra.mxu1 %v931_v17  ;;  %v12657_v16 = vld [vmem:[%s13176_s25] sm:$0xff]   ;;  %v12658_v17 = vld [vmem:[%s13176_s25 + $0x8] sm:$0xff]   ;;  %s15378_s25 = sld [smem:[#allocation5_spill]] }
 0x6d8   :  { %11599 = vmatprep.subr.bf16.mxu1 %v13126_v4 }
 0x6dd   :  { %v12724_v20 = vpop.eup %12723 }
 0x6de   :  { %v875_v21 = vsel %vm422_vm4, %v12724_v20, 0.0 }
 0x6df   :  { %876 = vadd.xlane.f32.xlu1 %v875_v21 }
 0x6e1   :  { %v12726_v23 = vpop.eup %12725 }
 0x6e2   :  { %v872_v24 = vsel %vm422_vm4, %v12726_v23, 0.0 }
 0x6e3   :  { %873 = vadd.xlane.f32.xlu0 %v872_v24 }
 0x6f0   :  { %988 = vrot.lane.b32.xlu1 %v13402_v19, %s13133_s21 }
 0x6f4   :  { %986 = vrot.lane.b32.xlu1 %v13415_v27, %s13133_s21 }
 0x6f9   :  { %1036 = vrot.lane.b32.xlu0 %v13400_v18, %s13133_s21 }
 0x76c   :  { %v877_v25 = vpop.xlane.xlu1 %876 }
 0x76d   :  { %12727 = vrcp.f32 %v877_v25 }
 0x770   :  { %v874_v26 = vpop.xlane.xlu0 %873  ;;  %v989_v35 = vpop.permute.xlu1 %988 }
 0x771   :  { %12729 = vrcp.f32 %v874_v26  ;;  %v994_v36 = vsel %vm213_vm1, %v989_v35, 0 }
 0x774   :  { %v1037_v30 = vpop.permute.xlu0 %1036  ;;  %v987_v37 = vpop.permute.xlu1 %986 }
 0x775   :  { %v1039_v33 = vsel %vm213_vm1, %v1037_v30, 0 }
 0x777   :  { %v12728_v28 = vpop.eup %12727 }
 0x778   :  { %v881_v29 = vmul.f32 %v12728_v28, %v12724_v20 }
 0x77a   :  { %v883_v31 = vpack.c.bf16 %v881_v29, %v881_v29 }
 0x77b   :  { %v12730_v32 = vpop.eup %12729 }
 0x77c   :  { %11590 = vmatmul.mubr.msk.bf16.vlgmr.msra.gmra.mrb[24].mxu1 %vm422_vm4, %v883_v31  ;;  %v880_v34 = vmul.f32 %v12730_v32, %v12726_v23 }
 0x77d   :  { %11600 = vmatpush3.bf16.xpose.msra.mxu1 %v1039_v33  ;;  %11601 = vmatprep.mubr.msk.bf16.mxu1 %vm13127_vm2, %v13126_v4 }
 0x77e   :  { %v882_v27 = vpack.c.bf16 %v880_v34, %v880_v34  ;;  %11611 = vmatprep.subr.bf16.mxu1 %v13126_v4 }
 0x780   :  { %11584 = vmatmul.mubr.msk.bf16.vlgmr.msra.gmra.mrb[24].mxu0 %vm422_vm4, %v882_v27 }
 0x781   :  { %11594 = vmatpush3.bf16.xpose.msra.mxu0 %v994_v36  ;;  %11595 = vmatprep.mubr.msk.bf16.mxu0 %vm13127_vm2, %v13126_v4 }
 0x782   :  { %11605 = vmatprep.subr.bf16.mxu0 %v13126_v4 }
 0x784   :  { %11602 = vmatmul.mubr.msk.bf16.vlgmr.msra.gmra.mrb[28].mxu1 %vm213_vm1, %v987_v37 }
 0x785   :  { %11613 = vmatprep.mubr.msk.bf16.mxu1 %vm13127_vm2, %v13126_v4 }
 0x788   :  { %11596 = vmatmul.mubr.msk.bf16.vlgmr.msra.gmra.mrb[28].mxu0 %vm213_vm1, %v987_v37 }
 0x789   :  { %11607 = vmatprep.mubr.msk.bf16.mxu0 %vm13127_vm2, %v13126_v4 }
 0x84f   :  { %v970_v38 = vpop.f32.mrb[24].mxu1 }
 0x850   :  { %v11591_v39 = vpop.f32.mrb[25].mxu1 }
 0x851   :  { %v973_v40 = vpop.f32.mrb[26].mxu1 }
 0x852   :  { %v11592_v41 = vpop.f32.mrb[27].mxu1 }
 0x853   :  { %v924_v42 = vpop.f32.mrb[24].mxu0 }
 0x854   :  { %v11585_v43 = vpop.f32.mrb[25].mxu0 }
 0x855   :  { %v927_v44 = vpop.f32.mrb[26].mxu0 }
 0x856   :  { %v11586_v45 = vpop.f32.mrb[27].mxu0 }
 0x857   :  { %v1075_v46 = vpop.f32.mrb[28].mxu1 }
 0x858   :  { %v11603_v47 = vpop.f32.mrb[29].mxu1  ;;  %v1084_v48 = vsel %vm422_vm4, %v1075_v46, -inf }
 0x859   :  { %1085 = vmax.xlane.f32.xlu1 %v1084_v48  ;;  %v1078_v49 = vpop.f32.mrb[30].mxu1  ;;  %v12659_v47 = vld [vmem:[%s13186_s3] sm:$0xff]  }
 0x85a   :  { %v11604_v51 = vpop.f32.mrb[31].mxu1  ;;  %v1278_v48 = vld [vmem:[%s13181_s29] sm:$0xf]  ;;  %s15379_s29 = sld [smem:[#allocation6_spill]] }
 0x85b   :  { %v1030_v52 = vpop.f32.mrb[28].mxu0  ;;  %v1357_v49 = vsel %vm220_vm0, %v1278_v48, 0  ;;  %v13585_v51 = vld [vmem:[%s13191_s8] ss:$0 sm:$0xff]  ;;  %s15381_s8 = sld [smem:[#allocation8_spill]] }
 0x85c   :  { %v11597_v53 = vpop.f32.mrb[29].mxu0  ;;  %v1081_v55 = vsel %vm422_vm4, %v1030_v52, -inf }
 0x85d   :  { %1082 = vmax.xlane.f32.xlu0 %v1081_v55  ;;  %v1033_v56 = vpop.f32.mrb[30].mxu0 }
 0x85e   :  { %v11598_v57 = vpop.f32.mrb[31].mxu0 }
 0x86a   :  { %1105 = vrot.lane.b32.xlu1 %v13402_v19, %s13134_s22 }
 0x86e   :  { %757 = vrot.lane.b32.xlu1 %v13495_v54, %s13135_s23 }
 0x872   :  { %759 = vrot.lane.b32.xlu1 %v13493_v50, %s13135_s23 }
 0x876   :  { %980 = vrot.lane.b32.xlu1 %v970_v38, %s13136_s26  ;;  %v542_v38 = vadd.f32 %v13457_v63, %v13407_v22 }
 0x8e6   :  { %v1086_v58 = vpop.xlane.xlu1 %1085 }
 0x8e7   :  { %v1088_v59 = vsub.f32 %v1075_v46, %v1086_v58 }
 0x8e9   :  { %v1091_v60 = vmul.f32 1.442695, %v1088_v59 }
 0x8ea   :  { %v1106_v61 = vpop.permute.xlu1 %1105  ;;  %v1083_v62 = vpop.xlane.xlu0 %1082 }
 0x8eb   :  { %12731 = vpow2.f32 %v1091_v60  ;;  %v1087_v0 = vsub.f32 %v1030_v52, %v1083_v62  ;;  %11606 = vmatpush3.bf16.msra.mxu0 %v1106_v61 }
 0x8ec   :  { %11617 = vmatprep.subr.bf16.mxu0 %v13126_v4 }
 0x8ed   :  { %v1089_v19 = vmul.f32 1.442695, %v1087_v0 }
 0x8ee   :  { %v758_v30 = vpop.permute.xlu1 %757 }
 0x8ef   :  { %12733 = vpow2.f32 %v1089_v19  ;;  %v763_v35 = vadd.f32 %v758_v30, %v13407_v22 }
 0x8f2   :  { %v760_v31 = vpop.permute.xlu1 %759 }
 0x8f3   :  { %v764_v27 = vadd.f32 %v760_v31, %v13407_v22 }
 0x8f5   :  { %v12732_v2 = vpop.eup %12731 }
 0x8f6   :  { %v1096_v54 = vsel %vm422_vm4, %v12732_v2, 0.0  ;;  %v981_v32 = vpop.permute.xlu1 %980 }
 0x8f7   :  { %1097 = vadd.xlane.f32.xlu0 %v1096_v54  ;;  %v985_v36 = vadd.f32 %v981_v32, %v13407_v22 }
 0x8f9   :  { %v12734_v50 = vpop.eup %12733 }
 0x8fa   :  { %v1093_v5 = vsel %vm422_vm4, %v12734_v50, 0.0 }
 0x8fb   :  { %1094 = vadd.xlane.f32.xlu0 %v1093_v5 }
 0x911   :  { %1151 = vrot.lane.b32.xlu0 %v13400_v18, %s13134_s22 }
 0x915   :  { %978 = vrot.lane.b32.xlu0 %v924_v42, %s13136_s26  ;;  %v1208_v42 = vsel %vm213_vm1, %v542_v38, %v764_v27 }
 0x916   :  { %v1210_v44 = vsel %vm422_vm4, %v1208_v42, %v985_v36 }
 0x984   :  { %v1098_v8 = vpop.xlane.xlu0 %1097 }
 0x985   :  { %12735 = vrcp.f32 %v1098_v8 }
 0x988   :  { %v1095_v9 = vpop.xlane.xlu0 %1094 }
 0x989   :  { %12737 = vrcp.f32 %v1095_v9 }
 0x98c   :  { %v1152_v10 = vpop.permute.xlu0 %1151 }
 0x98d   :  { %11612 = vmatpush3.bf16.msra.mxu1 %v1152_v10 }
 0x98e   :  { %11625 = vmatprep.subr.bf16.mxu1 %v13126_v4 }
 0x98f   :  { %v12736_v11 = vpop.eup %12735 }
 0x990   :  { %v1102_v12 = vmul.f32 %v12736_v11, %v12732_v2  ;;  %v979_v33 = vpop.permute.xlu0 %978 }
 0x991   :  { %v984_v37 = vadd.f32 %v979_v33, %v13407_v22 }
 0x992   :  { %v1104_v13 = vpack.c.bf16 %v1102_v12, %v1102_v12 }
 0x993   :  { %v12738_v14 = vpop.eup %12737 }
 0x994   :  { %11614 = vmatmul.mubr.msk.bf16.vlgmr.msra.gmra.mrb[32].mxu1 %vm422_vm4, %v1104_v13  ;;  %v1101_v15 = vmul.f32 %v12738_v14, %v12734_v50 }
 0x995   :  { %11629 = vmatprep.mubr.msk.bf16.mxu1 %vm13127_vm2, %v13126_v4  ;;  %11626 = vmatpush3.bf16.msra.mxu1 %v12659_v47 }
 0x996   :  { %v1103_v18 = vpack.c.bf16 %v1101_v15, %v1101_v15  ;;  %11627 = vmatprep.subr.bf16.mxu1 %v13126_v4 }
 0x998   :  { %11608 = vmatmul.mubr.msk.bf16.vlgmr.msra.gmra.mrb[32].mxu0 %vm422_vm4, %v1103_v18 }
 0x999   :  { %11621 = vmatprep.mubr.msk.bf16.mxu0 %vm13127_vm2, %v13126_v4  ;;  %11618 = vmatpush3.bf16.msra.mxu0 %v12657_v16 }
 0x99a   :  { %11619 = vmatprep.subr.bf16.mxu0 %v13126_v4 }
 0x99d   :  { %11620 = vmatpush3.bf16.msra.mxu0 %v12658_v17 }
 0x99e   :  { %12592 = vmatprep.subr.msk.bf16.mxu0 %vm220_vm0, %v1278_v48 }
 0xa67   :  { %v1191_v20 = vpop.f32.mrb[32].mxu1 }
 0xa68   :  { %1201 = vrot.lane.b32.xlu1 %v1191_v20, %s13137_s28  ;;  %v11615_v21 = vpop.f32.mrb[33].mxu1 }
 0xa69   :  { %v1194_v23 = vpop.f32.mrb[34].mxu1 }
 0xa6a   :  { %v11616_v24 = vpop.f32.mrb[35].mxu1 }
 0xa6b   :  { %v1145_v25 = vpop.f32.mrb[32].mxu0 }
 0xa6c   :  { %1199 = vrot.lane.b32.xlu0 %v1145_v25, %s13137_s28  ;;  %v11609_v26 = vpop.f32.mrb[33].mxu0  ;;  %1306 = vrot.lane.b32.xlu1 %v13585_v51, %s13128_s0 }
 0xa6d   :  { %v1148_v28 = vpop.f32.mrb[34].mxu0 }
 0xa6e   :  { %v11610_v29 = vpop.f32.mrb[35].mxu0 }
 0xa70   :  { %1227 = vrot.lane.b32.xlu0 %v13388_v7, %s13138_s1  ;;  %v541_v7 = vadd.f32 %v13459_v6, %v13407_v22 }
 0xa72   :  { %v1207_v41 = vsel %vm213_vm1, %v541_v7, %v763_v35 }
 0xa73   :  { %v1209_v45 = vsel %vm422_vm4, %v1207_v41, %v984_v37 }
 0xada   :  { %v1202_v34 = vpop.permute.xlu1 %1201 }
 0xadb   :  { %v1206_v39 = vadd.f32 %v1202_v34, %v13407_v22 }
 0xadd   :  { %v1213_v63 = vsel %vm1211_vm5, %v1210_v44, %v1206_v39 }
 0xade   :  { %v1200_v40 = vpop.permute.xlu0 %1199  ;;  %v1307_v50 = vpop.permute.xlu1 %1306 }
 0xadf   :  { %v1205_v43 = vadd.f32 %v1200_v40, %v13407_v22  ;;  %v12660_v22 = vld [vmem:[%s13186_s3 + $0x8] sm:$0xff]   ;;  %s15380_s3 = sld [smem:[#allocation7_spill]] }
 0xae0   :  { %11628 = vmatpush3.bf16.msra.mxu1 %v12660_v22 }
 0xae1   :  { %v1212_v6 = vsel %vm1211_vm5, %v1209_v45, %v1205_v43  ;;  %11639 = vmatprep.subr.bf16.mxu1 %v13126_v4 }
 0xae2   :  { %v1214_v46 = vpack.c.bf16 %v1213_v63, %v1212_v6 }
 0xae4   :  { %11622 = vmatmul.mubr.msk.bf16.vlgmr.msra.gmra.mrb[36].mxu0 %vm288_vm3, %v1214_v46 }
 0xae5   :  { %11635 = vmatprep.mubr.msk.bf16.mxu0 %vm213_vm1, %v13370_v1  ;;  %11634 = vmatpush3.bf16.msra.mxu0 %v1357_v49  ;;  %v1228_v1 = vpop.permute.xlu0 %1227 }
 0xae6   :  { %11645 = vmatprep.subr.bf16.mxu0 %v13126_v4 }
 0xaec   :  { %11636 = vmatmul.mubr.msk.bf16.vlgmr.msra.gmra.mrb[40].mxu0 %vm213_vm1, %v13375_v3 }
 0xaed   :  { %11647 = vmatprep.mubr.msk.bf16.mxu0 %vm13127_vm2, %v13126_v4 }
 0xbb7   :  { %v1267_v52 = vpop.f32.mrb[36].mxu0 }
 0xbb8   :  { %v1268_v53 = vadd.f32 %v1267_v52, %v1228_v1  ;;  %v11623_v55 = vpop.f32.mrb[37].mxu0 }
 0xbb9   :  { %v1270_v56 = vpop.f32.mrb[38].mxu0 }
 0xbba   :  { %v1274_v57 = vmax.f32 %v1268_v53, 0.0  ;;  %v1271_v58 = vadd.f32 %v1270_v56, %v1228_v1  ;;  %v11624_v59 = vpop.f32.mrb[39].mxu0 }
 0xbbc   :  { %v1275_v60 = vmax.f32 %v1271_v58, 0.0  ;;  %v1276_v61 = vadd.f32 %v1274_v57, %v1212_v6 }
 0xbbe   :  { %v1277_v62 = vadd.f32 %v1275_v60, %v1213_v63 }
 0xbbf   :  { %v11637_v3 = vpop.f32.mrb[40].mxu0 }
 0xbc0   :  { %v1288_v0 = vpack.c.bf16 %v1277_v62, %v1276_v61  ;;  %v1393_v19 = vpop.f32.mrb[41].mxu0  ;;  %v13613_v20 = vadd.f32 %v11637_v3, %v13585_v51 }
 0xbc1   :  { %v11638_v2 = vpop.f32.mrb[42].mxu0  ;;  %v13604_v18 = vadd.f32 %v13585_v51, %v1393_v19 }
 0xbc2   :  { %11630 = vmatmul.mubr.msk.bf16.vlgmr.msra.gmra.mrb[36].mxu1 %vm288_vm3, %v1288_v0  ;;  %v1396_v54 = vpop.f32.mrb[43].mxu0  ;;  %v13616_v21 = vadd.f32 %v11638_v2, %v13585_v51 }
 0xbc3   :  { %11641 = vmatprep.mubr.msk.bf16.mxu1 %vm13127_vm2, %v13126_v4  ;;  %v13607_v16 = vadd.f32 %v13585_v51, %v1396_v54 }
 0xbc4   :  { %v13627_v24 = vpack.c.bf16 %v13616_v21, %v13613_v20 }
 0xbc5   :  { %v13621_v23 = vpack.c.bf16 %v13607_v16, %v13604_v18 }
 0xc95   :  { %v1346_v5 = vpop.f32.mrb[36].mxu1 }
 0xc96   :  { %v1347_v8 = vadd.f32 %v1346_v5, %v1307_v50  ;;  %v11631_v9 = vpop.f32.mrb[37].mxu1 }
 0xc97   :  { %v1349_v10 = vpop.f32.mrb[38].mxu1 }
 0xc98   :  { %v13597_v11 = vpack.c.bf16 %v1347_v8, %v1347_v8  ;;  %v1350_v12 = vadd.f32 %v1349_v10, %v1307_v50  ;;  %v11632_v13 = vpop.f32.mrb[39].mxu1 }
 0xc9a   :  { %v13599_v14 = vpack.c.bf16 %v1350_v12, %v1350_v12  ;;  %v1414_v15 = vsel %vm213_vm1, %v13597_v11, 0 }
 0xc9b   :  { %11640 = vmatpush3.bf16.xpose.msra.mxu1 %v1414_v15 }
 0xc9c   :  { %v1461_v17 = vsel %vm213_vm1, %v13599_v14, 0  ;;  %11651 = vmatprep.subr.bf16.mxu1 %v13126_v4 }
 0xc9d   :  { %11646 = vmatpush3.bf16.xpose.msra.mxu0 %v1461_v17 }
 0xc9e   :  { %11657 = vmatprep.subr.bf16.mxu0 %v13126_v4 }
 0xca2   :  { %11642 = vmatmul.mubr.msk.bf16.vlgmr.msra.gmra.mrb[40].mxu1 %vm213_vm1, %v13621_v23 }
 0xca3   :  { %11653 = vmatprep.mubr.msk.bf16.mxu1 %vm13127_vm2, %v13126_v4 }
 0xca4   :  { %11648 = vmatmul.mubr.msk.bf16.vlgmr.msra.gmra.mrb[44].mxu0 %vm213_vm1, %v13627_v24 }
 0xca5   :  { %11659 = vmatprep.mubr.msk.bf16.mxu0 %vm13127_vm2, %v13126_v4 }
 0xd75   :  { %v1450_v25 = vpop.f32.mrb[40].mxu1 }
 0xd76   :  { %v11643_v26 = vpop.f32.mrb[41].mxu1  ;;  %v1504_v28 = vsel %vm213_vm1, %v1450_v25, -inf }
 0xd77   :  { %v1497_v29 = vpop.f32.mrb[44].mxu0  ;;  %1505 = vmax.xlane.f32.xlu0 %v1504_v28  ;;  %v1453_v30 = vpop.f32.mrb[42].mxu1 }
 0xd78   :  { %v11644_v31 = vpop.f32.mrb[43].mxu1  ;;  %v11649_v32 = vpop.f32.mrb[45].mxu0  ;;  %v1507_v33 = vsel %vm213_vm1, %v1453_v30, -inf  ;;  %v1510_v27 = vsel %vm213_vm1, %v1497_v29, -inf }
 0xd79   :  { %v1500_v34 = vpop.f32.mrb[46].mxu0  ;;  %1508 = vmax.xlane.f32.xlu1 %v1507_v33 }
 0xd7a   :  { %v11650_v35 = vpop.f32.mrb[47].mxu0  ;;  %v1513_v36 = vsel %vm213_vm1, %v1500_v34, -inf }
 0xd7b   :  { %1511 = vmax.xlane.f32.xlu0 %v1510_v27 }
 0xd7f   :  { %1514 = vmax.xlane.f32.xlu0 %v1513_v36 }
 0xd8a   :  { %1551 = vrot.lane.b32.xlu1 %v13597_v11, %s13128_s0 }
 0xe04   :  { %v1506_v37 = vpop.xlane.xlu0 %1505 }
 0xe05   :  { %v1516_v38 = vsub.f32 %v1450_v25, %v1506_v37 }
 0xe06   :  { %v1509_v7 = vpop.xlane.xlu1 %1508 }
 0xe07   :  { %v1520_v39 = vmul.f32 1.442695, %v1516_v38  ;;  %v1517_v40 = vsub.f32 %v1453_v30, %v1509_v7 }
 0xe08   :  { %v1512_v41 = vpop.xlane.xlu0 %1511 }
 0xe09   :  { %12739 = vpow2.f32 %v1520_v39  ;;  %v1522_v42 = vmul.f32 1.442695, %v1517_v40  ;;  %v1518_v43 = vsub.f32 %v1497_v29, %v1512_v41 }
 0xe0a   :  { %v1552_v44 = vpop.permute.xlu1 %1551 }
 0xe0b   :  { %12741 = vpow2.f32 %v1522_v42  ;;  %v1524_v45 = vmul.f32 1.442695, %v1518_v43  ;;  %v1557_v63 = vsel %vm220_vm0, %v1552_v44, 0 }
 0xe0c   :  { %v1515_v6 = vpop.xlane.xlu0 %1514  ;;  %11652 = vmatpush3.bf16.msra.mxu1 %v1557_v63 }
 0xe0d   :  { %12743 = vpow2.f32 %v1524_v45  ;;  %v1519_v46 = vsub.f32 %v1500_v34, %v1515_v6  ;;  %11663 = vmatprep.subr.bf16.mxu1 %v13126_v4 }
 0xe0f   :  { %v1526_v47 = vmul.f32 1.442695, %v1519_v46 }
 0xe11   :  { %12745 = vpow2.f32 %v1526_v47 }
 0xe13   :  { %v12740_v22 = vpop.eup %12739 }
 0xe14   :  { %v1528_v48 = vsel %vm213_vm1, %v12740_v22, 0.0 }
 0xe15   :  { %v12742_v49 = vpop.eup %12741  ;;  %1529 = vadd.xlane.f32.xlu1 %v1528_v48 }
 0xe16   :  { %v1531_v1 = vsel %vm213_vm1, %v12742_v49, 0.0 }
 0xe17   :  { %v12744_v52 = vpop.eup %12743  ;;  %1532 = vadd.xlane.f32.xlu0 %v1531_v1 }
 0xe18   :  { %v1534_v53 = vsel %vm213_vm1, %v12744_v52, 0.0 }
 0xe19   :  { %1535 = vadd.xlane.f32.xlu1 %v1534_v53 }
 0xe1b   :  { %v12746_v55 = vpop.eup %12745 }
 0xe1c   :  { %v1537_v56 = vsel %vm213_vm1, %v12746_v55, 0.0 }
 0xe1d   :  { %1538 = vadd.xlane.f32.xlu0 %v1537_v56 }
 0xe2a   :  { %1657 = vrot.lane.b32.xlu1 %v13597_v11, %s13129_s5 }
 0xe2e   :  { %1709 = vrot.lane.b32.xlu1 %v13599_v14, %s13129_s5 }
 0xe32   :  { %1707 = vrot.lane.b32.xlu1 %v13627_v24, %s13129_s5 }
 0xe33   :  { %1601 = vrot.lane.b32.xlu0 %v13599_v14, %s13128_s0 }
 0xe37   :  { %1655 = vrot.lane.b32.xlu0 %v13621_v23, %s13129_s5 }
 0xea2   :  { %v1530_v57 = vpop.xlane.xlu1 %1529 }
 0xea3   :  { %12747 = vrcp.f32 %v1530_v57 }
 0xea4   :  { %v1533_v58 = vpop.xlane.xlu0 %1532 }
 0xea5   :  { %12749 = vrcp.f32 %v1533_v58 }
 0xea6   :  { %v1536_v59 = vpop.xlane.xlu1 %1535 }
 0xea7   :  { %12751 = vrcp.f32 %v1536_v59 }
 0xeaa   :  { %v1539_v60 = vpop.xlane.xlu0 %1538  ;;  %v1658_v54 = vpop.permute.xlu1 %1657 }
 0xeab   :  { %12753 = vrcp.f32 %v1539_v60  ;;  %v1663_v8 = vsel %vm213_vm1, %v1658_v54, 0 }
 0xead   :  { %v12748_v61 = vpop.eup %12747 }
 0xeae   :  { %v1602_v62 = vpop.permute.xlu0 %1601  ;;  %v1544_v19 = vmul.f32 %v12748_v61, %v12740_v22  ;;  %v1710_v13 = vpop.permute.xlu1 %1709 }
 0xeaf   :  { %v12750_v0 = vpop.eup %12749  ;;  %v1607_v3 = vsel %vm220_vm0, %v1602_v62, 0  ;;  %v1715_v17 = vsel %vm213_vm1, %v1710_v13, 0 }
 0xeb0   :  { %v1545_v2 = vmul.f32 %v12750_v0, %v12742_v49  ;;  %11658 = vmatpush3.bf16.msra.mxu0 %v1607_v3 }
 0xeb1   :  { %11669 = vmatprep.subr.bf16.mxu0 %v13126_v4  ;;  %v12752_v5 = vpop.eup %12751 }
 0xeb2   :  { %v1548_v50 = vpack.c.bf16 %v1545_v2, %v1544_v19  ;;  %v1546_v10 = vmul.f32 %v12752_v5, %v12744_v52  ;;  %v1656_v25 = vpop.permute.xlu0 %1655  ;;  %v1708_v26 = vpop.permute.xlu1 %1707 }
 0xeb4   :  { %11654 = vmatmul.mubr.msk.bf16.vlgmr.msra.gmra.mrb[44].mxu1 %vm213_vm1, %v1548_v50 }
 0xeb5   :  { %v12754_v9 = vpop.eup %12753  ;;  %11664 = vmatpush3.bf16.xpose.msra.mxu1 %v1663_v8  ;;  %11665 = vmatprep.mubr.msk.bf16.mxu1 %vm13127_vm2, %v13126_v4 }
 0xeb6   :  { %v1547_v12 = vmul.f32 %v12754_v9, %v12746_v55  ;;  %11675 = vmatprep.subr.bf16.mxu1 %v13126_v4 }
 0xeb8   :  { %v1549_v15 = vpack.c.bf16 %v1547_v12, %v1546_v10 }
 0xeba   :  { %11660 = vmatmul.mubr.msk.bf16.vlgmr.msra.gmra.mrb[48].mxu0 %vm213_vm1, %v1549_v15 }
 0xebb   :  { %11670 = vmatpush3.bf16.xpose.msra.mxu0 %v1715_v17  ;;  %11671 = vmatprep.mubr.msk.bf16.mxu0 %vm13127_vm2, %v13126_v4 }
 0xebc   :  { %11666 = vmatmul.mubr.msk.bf16.vlgmr.msra.gmra.mrb[48].mxu1 %vm213_vm1, %v1656_v25  ;;  %11681 = vmatprep.subr.bf16.mxu0 %v13126_v4 }
 0xebd   :  { %11677 = vmatprep.mubr.msk.bf16.mxu1 %vm13127_vm2, %v13126_v4 }
 0xec2   :  { %11672 = vmatmul.mubr.msk.bf16.vlgmr.msra.gmra.mrb[52].mxu0 %vm213_vm1, %v1708_v26 }
 0xec3   :  { %11683 = vmatprep.mubr.msk.bf16.mxu0 %vm13127_vm2, %v13126_v4 }
 0xf87   :  { %v13675_v28 = vpop.f32.mrb[44].mxu1 }
 0xf88   :  { %v11655_v29 = vpop.f32.mrb[45].mxu1 }
 0xf89   :  { %v13677_v30 = vpop.f32.mrb[46].mxu1 }
 0xf8a   :  { %v11656_v31 = vpop.f32.mrb[47].mxu1 }
 0xf8d   :  { %v13679_v32 = vpop.f32.mrb[48].mxu0 }
 0xf8e   :  { %v11661_v33 = vpop.f32.mrb[49].mxu0 }
 0xf8f   :  { %v13681_v34 = vpop.f32.mrb[50].mxu0  ;;  %v1699_v35 = vpop.f32.mrb[48].mxu1 }
 0xf90   :  { %v11662_v27 = vpop.f32.mrb[51].mxu0  ;;  %v11667_v36 = vpop.f32.mrb[49].mxu1  ;;  %v1758_v37 = vsel %vm213_vm1, %v1699_v35, -inf }
 0xf91   :  { %1759 = vmax.xlane.f32.xlu0 %v1758_v37  ;;  %v1702_v38 = vpop.f32.mrb[50].mxu1 }
 0xf92   :  { %v11668_v7 = vpop.f32.mrb[51].mxu1  ;;  %v1761_v39 = vsel %vm213_vm1, %v1702_v38, -inf }
 0xf93   :  { %1762 = vmax.xlane.f32.xlu1 %v1761_v39 }
 0xf95   :  { %v1751_v40 = vpop.f32.mrb[52].mxu0 }
 0xf96   :  { %v11673_v41 = vpop.f32.mrb[53].mxu0  ;;  %v1764_v42 = vsel %vm213_vm1, %v1751_v40, -inf }
 0xf97   :  { %v1754_v43 = vpop.f32.mrb[54].mxu0  ;;  %1765 = vmax.xlane.f32.xlu0 %v1764_v42 }
 0xf98   :  { %v11674_v44 = vpop.f32.mrb[55].mxu0  ;;  %v1767_v45 = vsel %vm213_vm1, %v1754_v43, -inf }
 0xf9b   :  { %1768 = vmax.xlane.f32.xlu0 %v1767_v45 }
 0xfa4   :  { %1804 = vrot.lane.b32.xlu1 %v13597_v11, %s13130_s9 }
0x101e   :  { %v1760_v63 = vpop.xlane.xlu0 %1759 }
0x101f   :  { %v1770_v6 = vsub.f32 %v1699_v35, %v1760_v63 }
0x1020   :  { %v1763_v46 = vpop.xlane.xlu1 %1762 }
0x1021   :  { %v1774_v47 = vmul.f32 1.442695, %v1770_v6  ;;  %v1771_v22 = vsub.f32 %v1702_v38, %v1763_v46 }
0x1023   :  { %12755 = vpow2.f32 %v1774_v47  ;;  %v1776_v48 = vmul.f32 1.442695, %v1771_v22 }
0x1024   :  { %v1766_v49 = vpop.xlane.xlu0 %1765  ;;  %v1805_v1 = vpop.permute.xlu1 %1804 }
0x1025   :  { %12757 = vpow2.f32 %v1776_v48  ;;  %v1772_v52 = vsub.f32 %v1751_v40, %v1766_v49  ;;  %v1810_v53 = vsel %vm220_vm0, %v1805_v1, 0 }
0x1026   :  { %11676 = vmatpush3.bf16.msra.mxu1 %v1810_v53 }
0x1027   :  { %v1778_v55 = vmul.f32 1.442695, %v1772_v52  ;;  %11687 = vmatprep.subr.bf16.mxu1 %v13126_v4 }
0x1028   :  { %v1769_v56 = vpop.xlane.xlu0 %1768 }
0x1029   :  { %12759 = vpow2.f32 %v1778_v55  ;;  %v1773_v57 = vsub.f32 %v1754_v43, %v1769_v56 }
0x102b   :  { %v1780_v58 = vmul.f32 1.442695, %v1773_v57 }
0x102d   :  { %v12756_v59 = vpop.eup %12755  ;;  %12761 = vpow2.f32 %v1780_v58 }
0x102e   :  { %v1782_v60 = vsel %vm213_vm1, %v12756_v59, 0.0 }
0x102f   :  { %v12758_v61 = vpop.eup %12757  ;;  %1783 = vadd.xlane.f32.xlu1 %v1782_v60 }
0x1030   :  { %v1785_v62 = vsel %vm213_vm1, %v12758_v61, 0.0 }
0x1031   :  { %1786 = vadd.xlane.f32.xlu0 %v1785_v62 }
0x1033   :  { %v12760_v0 = vpop.eup %12759 }
0x1034   :  { %v1788_v3 = vsel %vm213_vm1, %v12760_v0, 0.0 }
0x1035   :  { %1789 = vadd.xlane.f32.xlu1 %v1788_v3 }
0x1037   :  { %v12762_v19 = vpop.eup %12761 }
0x1038   :  { %v1791_v2 = vsel %vm213_vm1, %v12762_v19, 0.0 }
0x1039   :  { %1792 = vadd.xlane.f32.xlu0 %v1791_v2 }
0x1046   :  { %1924 = vrot.lane.b32.xlu1 %v13597_v11, %s13131_s13 }
0x104a   :  { %1975 = vrot.lane.b32.xlu1 %v13599_v14, %s13131_s13 }
0x104e   :  { %1973 = vrot.lane.b32.xlu1 %v13627_v24, %s13131_s13 }
0x104f   :  { %1853 = vrot.lane.b32.xlu0 %v13599_v14, %s13130_s9 }
0x1053   :  { %1922 = vrot.lane.b32.xlu0 %v13621_v23, %s13131_s13 }
0x10bc   :  { %v1784_v54 = vpop.xlane.xlu1 %1783 }
0x10bd   :  { %12763 = vrcp.f32 %v1784_v54 }
0x10be   :  { %v1787_v50 = vpop.xlane.xlu0 %1786 }
0x10bf   :  { %12765 = vrcp.f32 %v1787_v50 }
0x10c2   :  { %v1790_v5 = vpop.xlane.xlu1 %1789 }
0x10c3   :  { %12767 = vrcp.f32 %v1790_v5 }
0x10c6   :  { %v1793_v8 = vpop.xlane.xlu0 %1792  ;;  %v1925_v17 = vpop.permute.xlu1 %1924 }
0x10c7   :  { %v12764_v9 = vpop.eup %12763  ;;  %12769 = vrcp.f32 %v1793_v8  ;;  %v1930_v29 = vsel %vm213_vm1, %v1925_v17, 0 }
0x10c8   :  { %v1798_v12 = vmul.f32 %v12764_v9, %v12756_v59 }
0x10c9   :  { %v12766_v10 = vpop.eup %12765 }
0x10ca   :  { %v1799_v13 = vmul.f32 %v12766_v10, %v12758_v61  ;;  %v1854_v15 = vpop.permute.xlu0 %1853  ;;  %v1976_v36 = vpop.permute.xlu1 %1975 }
0x10cb   :  { %v1859_v25 = vsel %vm220_vm0, %v1854_v15, 0  ;;  %v1981_v7 = vsel %vm213_vm1, %v1976_v36, 0 }
0x10cc   :  { %11682 = vmatpush3.bf16.msra.mxu0 %v1859_v25  ;;  %v1802_v26 = vpack.c.bf16 %v1799_v13, %v1798_v12 }
0x10cd   :  { %11693 = vmatprep.subr.bf16.mxu0 %v13126_v4  ;;  %v12768_v31 = vpop.eup %12767 }
0x10ce   :  { %11678 = vmatmul.mubr.msk.bf16.vlgmr.msra.gmra.mrb[52].mxu1 %vm213_vm1, %v1802_v26  ;;  %v1800_v35 = vmul.f32 %v12768_v31, %v12760_v0  ;;  %v1923_v38 = vpop.permute.xlu0 %1922  ;;  %v1974_v39 = vpop.permute.xlu1 %1973 }
0x10cf   :  { %11688 = vmatpush3.bf16.xpose.msra.mxu1 %v1930_v29  ;;  %11689 = vmatprep.mubr.msk.bf16.mxu1 %vm13127_vm2, %v13126_v4 }
0x10d0   :  { %11699 = vmatprep.subr.bf16.mxu1 %v13126_v4 }
0x10d1   :  { %v12770_v33 = vpop.eup %12769 }
0x10d2   :  { %v1801_v27 = vmul.f32 %v12770_v33, %v12762_v19 }
0x10d4   :  { %v1803_v37 = vpack.c.bf16 %v1801_v27, %v1800_v35 }
0x10d6   :  { %11684 = vmatmul.mubr.msk.bf16.vlgmr.msra.gmra.mrb[56].mxu0 %vm213_vm1, %v1803_v37  ;;  %11690 = vmatmul.mubr.msk.bf16.vlgmr.msra.gmra.mrb[56].mxu1 %vm213_vm1, %v1923_v38 }
0x10d7   :  { %11694 = vmatpush3.bf16.xpose.msra.mxu0 %v1981_v7  ;;  %11695 = vmatprep.mubr.msk.bf16.mxu0 %vm13127_vm2, %v13126_v4 }
0x10d8   :  { %11701 = vmatprep.mubr.msk.bf16.mxu1 %vm13127_vm2, %v13126_v4  ;;  %11705 = vmatprep.subr.bf16.mxu0 %v13126_v4 }
0x10de   :  { %11696 = vmatmul.mubr.msk.bf16.vlgmr.msra.gmra.mrb[60].mxu0 %vm213_vm1, %v1974_v39 }
0x10df   :  { %11707 = vmatprep.mubr.msk.bf16.mxu0 %vm13127_vm2, %v13126_v4 }
0x11a1   :  { %v13723_v40 = vpop.f32.mrb[52].mxu1 }
0x11a2   :  { %v11679_v41 = vpop.f32.mrb[53].mxu1 }
0x11a3   :  { %v13725_v42 = vpop.f32.mrb[54].mxu1 }
0x11a4   :  { %v11680_v43 = vpop.f32.mrb[55].mxu1 }
0x11a9   :  { %v13727_v44 = vpop.f32.mrb[56].mxu0  ;;  %v1966_v45 = vpop.f32.mrb[56].mxu1 }
0x11aa   :  { %v11685_v63 = vpop.f32.mrb[57].mxu0  ;;  %v11691_v6 = vpop.f32.mrb[57].mxu1  ;;  %v2024_v46 = vsel %vm213_vm1, %v1966_v45, -inf }
0x11ab   :  { %v13730_v47 = vpop.f32.mrb[58].mxu0  ;;  %2025 = vmax.xlane.f32.xlu0 %v2024_v46  ;;  %v1969_v22 = vpop.f32.mrb[58].mxu1 }
0x11ac   :  { %v11686_v48 = vpop.f32.mrb[59].mxu0  ;;  %v11692_v49 = vpop.f32.mrb[59].mxu1  ;;  %v2027_v1 = vsel %vm213_vm1, %v1969_v22, -inf }
0x11ad   :  { %2028 = vmax.xlane.f32.xlu1 %v2027_v1 }
0x11b1   :  { %v2017_v52 = vpop.f32.mrb[60].mxu0 }
0x11b2   :  { %v11697_v53 = vpop.f32.mrb[61].mxu0  ;;  %v2030_v55 = vsel %vm213_vm1, %v2017_v52, -inf }
0x11b3   :  { %v2020_v56 = vpop.f32.mrb[62].mxu0  ;;  %2031 = vmax.xlane.f32.xlu0 %v2030_v55 }
0x11b4   :  { %v11698_v57 = vpop.f32.mrb[63].mxu0  ;;  %v2033_v58 = vsel %vm213_vm1, %v2020_v56, -inf }
0x11b7   :  { %2034 = vmax.xlane.f32.xlu0 %v2033_v58 }
0x11be   :  { %2070 = vrot.lane.b32.xlu1 %v13597_v11, %s13132_s17 }
0x1238   :  { %v2026_v59 = vpop.xlane.xlu0 %2025 }
0x1239   :  { %v2036_v60 = vsub.f32 %v1966_v45, %v2026_v59 }
0x123a   :  { %v2029_v61 = vpop.xlane.xlu1 %2028 }
0x123b   :  { %v2040_v62 = vmul.f32 1.442695, %v2036_v60  ;;  %v2037_v0 = vsub.f32 %v1969_v22, %v2029_v61 }
0x123d   :  { %12771 = vpow2.f32 %v2040_v62  ;;  %v2042_v3 = vmul.f32 1.442695, %v2037_v0 }
0x123e   :  { %v2071_v19 = vpop.permute.xlu1 %2070 }
0x123f   :  { %12773 = vpow2.f32 %v2042_v3  ;;  %v2076_v2 = vsel %vm220_vm0, %v2071_v19, 0 }
0x1240   :  { %v2032_v54 = vpop.xlane.xlu0 %2031  ;;  %11700 = vmatpush3.bf16.msra.mxu1 %v2076_v2 }
0x1241   :  { %v2038_v50 = vsub.f32 %v2017_v52, %v2032_v54  ;;  %11711 = vmatprep.subr.bf16.mxu1 %v13126_v4 }
0x1243   :  { %v2044_v5 = vmul.f32 1.442695, %v2038_v50 }
0x1244   :  { %v2035_v8 = vpop.xlane.xlu0 %2034 }
0x1245   :  { %12775 = vpow2.f32 %v2044_v5  ;;  %v2039_v9 = vsub.f32 %v2020_v56, %v2035_v8 }
0x1247   :  { %v12772_v10 = vpop.eup %12771  ;;  %v2046_v12 = vmul.f32 1.442695, %v2039_v9 }
0x1248   :  { %v2048_v13 = vsel %vm213_vm1, %v12772_v10, 0.0 }
0x1249   :  { %v12774_v15 = vpop.eup %12773  ;;  %12777 = vpow2.f32 %v2046_v12  ;;  %2049 = vadd.xlane.f32.xlu1 %v2048_v13 }
0x124a   :  { %v2051_v17 = vsel %vm213_vm1, %v12774_v15, 0.0 }
0x124b   :  { %2052 = vadd.xlane.f32.xlu0 %v2051_v17 }
0x124f   :  { %v12776_v25 = vpop.eup %12775 }
0x1250   :  { %v2054_v26 = vsel %vm213_vm1, %v12776_v25, 0.0 }
0x1251   :  { %2055 = vadd.xlane.f32.xlu1 %v2054_v26 }
0x1253   :  { %v12778_v29 = vpop.eup %12777 }
0x1254   :  { %v2057_v31 = vsel %vm213_vm1, %v12778_v29, 0.0 }
0x1255   :  { %2058 = vadd.xlane.f32.xlu0 %v2057_v31 }
0x1262   :  { %2190 = vrot.lane.b32.xlu1 %v13597_v11, %s13133_s21 }
0x1266   :  { %2241 = vrot.lane.b32.xlu1 %v13599_v14, %s13133_s21 }
0x126a   :  { %2239 = vrot.lane.b32.xlu1 %v13627_v24, %s13133_s21 }
0x126b   :  { %2119 = vrot.lane.b32.xlu0 %v13599_v14, %s13132_s17 }
0x126f   :  { %2188 = vrot.lane.b32.xlu0 %v13621_v23, %s13133_s21 }
0x12d6   :  { %v2050_v33 = vpop.xlane.xlu1 %2049 }
0x12d7   :  { %12779 = vrcp.f32 %v2050_v33 }
0x12d8   :  { %v2053_v35 = vpop.xlane.xlu0 %2052 }
0x12d9   :  { %12781 = vrcp.f32 %v2053_v35 }
0x12de   :  { %v2056_v27 = vpop.xlane.xlu1 %2055 }
0x12df   :  { %12783 = vrcp.f32 %v2056_v27 }
0x12e1   :  { %v12780_v36 = vpop.eup %12779 }
0x12e2   :  { %v2059_v37 = vpop.xlane.xlu0 %2058  ;;  %v2064_v7 = vmul.f32 %v12780_v36, %v12772_v10  ;;  %v2191_v41 = vpop.permute.xlu1 %2190 }
0x12e3   :  { %v12782_v38 = vpop.eup %12781  ;;  %12785 = vrcp.f32 %v2059_v37  ;;  %v2196_v63 = vsel %vm213_vm1, %v2191_v41, 0 }
0x12e4   :  { %v2065_v39 = vmul.f32 %v12782_v38, %v12774_v15 }
0x12e6   :  { %v2120_v24 = vpop.permute.xlu0 %2119  ;;  %v2068_v43 = vpack.c.bf16 %v2065_v39, %v2064_v7  ;;  %v2242_v48 = vpop.permute.xlu1 %2241 }
0x12e7   :  { %v2125_v45 = vsel %vm220_vm0, %v2120_v24, 0  ;;  %v2247_v52 = vsel %vm213_vm1, %v2242_v48, 0 }
0x12e8   :  { %11702 = vmatmul.mubr.msk.bf16.vlgmr.msra.gmra.mrb[60].mxu1 %vm213_vm1, %v2068_v43  ;;  %11706 = vmatpush3.bf16.msra.mxu0 %v2125_v45 }
0x12e9   :  { %11712 = vmatpush3.bf16.xpose.msra.mxu1 %v2196_v63  ;;  %11713 = vmatprep.mubr.msk.bf16.mxu1 %vm13127_vm2, %v13126_v4  ;;  %v12784_v23 = vpop.eup %12783 }
0x12ea   :  { %11717 = vmatprep.subr.bf16.mxu0 %v13126_v4  ;;  %11723 = vmatprep.subr.bf16.mxu1 %v13126_v4  ;;  %v2066_v46 = vmul.f32 %v12784_v23, %v12776_v25  ;;  %v2189_v49 = vpop.permute.xlu0 %2188  ;;  %v2240_v53 = vpop.permute.xlu1 %2239 }
0x12ed   :  { %v12786_v6 = vpop.eup %12785 }
0x12ee   :  { %v2067_v22 = vmul.f32 %v12786_v6, %v12778_v29 }
0x12f0   :  { %11714 = vmatmul.mubr.msk.bf16.vlgmr.msra.gmra.mrb[64].mxu1 %vm213_vm1, %v2189_v49  ;;  %v2069_v1 = vpack.c.bf16 %v2067_v22, %v2066_v46 }
0x12f1   :  { %11725 = vmatprep.mubr.msk.bf16.mxu1 %vm13127_vm2, %v13126_v4 }
0x12f2   :  { %11708 = vmatmul.mubr.msk.bf16.vlgmr.msra.gmra.mrb[64].mxu0 %vm213_vm1, %v2069_v1 }
0x12f3   :  { %11718 = vmatpush3.bf16.xpose.msra.mxu0 %v2247_v52  ;;  %11719 = vmatprep.mubr.msk.bf16.mxu0 %vm13127_vm2, %v13126_v4 }
0x12f4   :  { %11729 = vmatprep.subr.bf16.mxu0 %v13126_v4 }
0x12fa   :  { %11720 = vmatmul.mubr.msk.bf16.vlgmr.msra.gmra.mrb[68].mxu0 %vm213_vm1, %v2240_v53 }
0x12fb   :  { %11731 = vmatprep.mubr.msk.bf16.mxu0 %vm13127_vm2, %v13126_v4 }
0x13bb   :  { %v2112_v55 = vpop.f32.mrb[60].mxu1 }
0x13bc   :  { %v11703_v56 = vpop.f32.mrb[61].mxu1 }
0x13bd   :  { %v2115_v57 = vpop.f32.mrb[62].mxu1 }
0x13be   :  { %v11704_v58 = vpop.f32.mrb[63].mxu1 }
0x13c3   :  { %v2232_v59 = vpop.f32.mrb[64].mxu1 }
0x13c4   :  { %v11715_v60 = vpop.f32.mrb[65].mxu1  ;;  %v2290_v61 = vsel %vm213_vm1, %v2232_v59, -inf }
0x13c5   :  { %v2161_v62 = vpop.f32.mrb[64].mxu0  ;;  %2291 = vmax.xlane.f32.xlu0 %v2290_v61  ;;  %v2235_v0 = vpop.f32.mrb[66].mxu1 }
0x13c6   :  { %v11709_v3 = vpop.f32.mrb[65].mxu0  ;;  %v11716_v19 = vpop.f32.mrb[67].mxu1  ;;  %v2293_v2 = vsel %vm213_vm1, %v2235_v0, -inf }
0x13c7   :  { %v2164_v54 = vpop.f32.mrb[66].mxu0  ;;  %2294 = vmax.xlane.f32.xlu1 %v2293_v2 }
0x13c8   :  { %v11710_v50 = vpop.f32.mrb[67].mxu0 }
0x13cd   :  { %v2283_v5 = vpop.f32.mrb[68].mxu0 }
0x13ce   :  { %v11721_v8 = vpop.f32.mrb[69].mxu0  ;;  %v2296_v9 = vsel %vm213_vm1, %v2283_v5, -inf }
0x13cf   :  { %v2286_v10 = vpop.f32.mrb[70].mxu0  ;;  %2297 = vmax.xlane.f32.xlu0 %v2296_v9 }
0x13d0   :  { %v11722_v12 = vpop.f32.mrb[71].mxu0  ;;  %v2299_v13 = vsel %vm213_vm1, %v2286_v10, -inf }
0x13d3   :  { %2300 = vmax.xlane.f32.xlu0 %v2299_v13 }
0x1452   :  { %v2292_v15 = vpop.xlane.xlu0 %2291 }
0x1453   :  { %v2302_v17 = vsub.f32 %v2232_v59, %v2292_v15  ;;  %v12661_v59 = vld [vmem:[%s13196_s14] sm:$0xff]  }
0x1454   :  { %v2295_v25 = vpop.xlane.xlu1 %2294 }
0x1455   :  { %v2306_v26 = vmul.f32 1.442695, %v2302_v17  ;;  %v2303_v29 = vsub.f32 %v2235_v0, %v2295_v25 }
0x1457   :  { %12787 = vpow2.f32 %v2306_v26  ;;  %v2308_v31 = vmul.f32 1.442695, %v2303_v29 }
0x1459   :  { %12789 = vpow2.f32 %v2308_v31 }
0x145c   :  { %v2298_v33 = vpop.xlane.xlu0 %2297 }
0x145d   :  { %v2304_v35 = vsub.f32 %v2283_v5, %v2298_v33 }
0x145f   :  { %v2310_v27 = vmul.f32 1.442695, %v2304_v35  ;;  %v1651_v35 = vadd.f32 %v13677_v30, %v13607_v16 }
0x1460   :  { %v2301_v36 = vpop.xlane.xlu0 %2300 }
0x1461   :  { %v12788_v37 = vpop.eup %12787  ;;  %12791 = vpow2.f32 %v2310_v27  ;;  %v2305_v38 = vsub.f32 %v2286_v10, %v2301_v36 }
0x1462   :  { %v2314_v7 = vsel %vm213_vm1, %v12788_v37, 0.0 }
0x1463   :  { %v12790_v39 = vpop.eup %12789  ;;  %v2312_v41 = vmul.f32 1.442695, %v2305_v38  ;;  %2315 = vadd.xlane.f32.xlu1 %v2314_v7 }
0x1464   :  { %v2317_v24 = vsel %vm213_vm1, %v12790_v39, 0.0 }
0x1465   :  { %12793 = vpow2.f32 %v2312_v41  ;;  %2318 = vadd.xlane.f32.xlu0 %v2317_v24 }
0x146b   :  { %v12792_v43 = vpop.eup %12791 }
0x146c   :  { %v2320_v45 = vsel %vm213_vm1, %v12792_v43, 0.0 }
0x146d   :  { %2321 = vadd.xlane.f32.xlu1 %v2320_v45 }
0x146f   :  { %v12794_v63 = vpop.eup %12793 }
0x1470   :  { %v2323_v23 = vsel %vm213_vm1, %v12794_v63, 0.0 }
0x1471   :  { %2324 = vadd.xlane.f32.xlu0 %v2323_v23  ;;  %v1652_v23 = vadd.f32 %v13679_v32, %v13613_v20 }
0x147e   :  { %2336 = vrot.lane.b32.xlu1 %v13597_v11, %s13134_s22 }
0x1482   :  { %1906 = vrot.lane.b32.xlu1 %v13723_v40, %s13135_s23 }
0x1486   :  { %1908 = vrot.lane.b32.xlu1 %v13725_v42, %s13135_s23 }
0x1487   :  { %2385 = vrot.lane.b32.xlu0 %v13599_v14, %s13134_s22 }
0x148a   :  { %1912 = vrot.lane.b32.xlu1 %v13730_v47, %s13135_s23 }
0x148b   :  { %1910 = vrot.lane.b32.xlu0 %v13727_v44, %s13135_s23 }
0x148e   :  { %2174 = vrot.lane.b32.xlu1 %v2115_v57, %s13136_s26 }
0x148f   :  { %2172 = vrot.lane.b32.xlu0 %v2112_v55, %s13136_s26 }
0x1492   :  { %2178 = vrot.lane.b32.xlu1 %v2164_v54, %s13136_s26 }
0x1493   :  { %2176 = vrot.lane.b32.xlu0 %v2161_v62, %s13136_s26  ;;  %v12662_v62 = vld [vmem:[%s13196_s14 + $0x8] sm:$0xff]   ;;  %s15382_s14 = sld [smem:[#allocation9_spill]] }
0x14f0   :  { %v2316_v11 = vpop.xlane.xlu1 %2315 }
0x14f1   :  { %12795 = vrcp.f32 %v2316_v11  ;;  %v1653_v11 = vadd.f32 %v13681_v34, %v13616_v21 }
0x14f2   :  { %v2319_v40 = vpop.xlane.xlu0 %2318 }
0x14f3   :  { %12797 = vrcp.f32 %v2319_v40 }
0x14fa   :  { %v2322_v42 = vpop.xlane.xlu1 %2321 }
0x14fb   :  { %v12796_v14 = vpop.eup %12795  ;;  %12799 = vrcp.f32 %v2322_v42 }
0x14fc   :  { %v2330_v47 = vmul.f32 %v12796_v14, %v12788_v37 }
0x14fd   :  { %v12798_v6 = vpop.eup %12797 }
0x14fe   :  { %v2331_v46 = vmul.f32 %v12798_v6, %v12790_v39  ;;  %v2325_v22 = vpop.xlane.xlu0 %2324  ;;  %v2337_v44 = vpop.permute.xlu1 %2336 }
0x14ff   :  { %12801 = vrcp.f32 %v2325_v22  ;;  %v2342_v48 = vsel %vm220_vm0, %v2337_v44, 0 }
0x1500   :  { %11724 = vmatpush3.bf16.msra.mxu1 %v2342_v48  ;;  %v2334_v49 = vpack.c.bf16 %v2331_v46, %v2330_v47  ;;  %v12665_v48 = vld [vmem:[%s13206_s24] sm:$0xff]  }
0x1501   :  { %11735 = vmatprep.subr.bf16.mxu1 %v12661_v59 }
0x1502   :  { %v2386_v1 = vpop.permute.xlu0 %2385  ;;  %v1907_v5 = vpop.permute.xlu1 %1906 }
0x1503   :  { %v2391_v52 = vsel %vm220_vm0, %v2386_v1, 0  ;;  %11726 = vmatmul.mubr.msk.bf16.vlgmr.msra.gmra.mrb[68].mxu1 %vm213_vm1, %v2334_v49  ;;  %v1918_v25 = vadd.f32 %v1907_v5, %v13604_v18  ;;  %v13849_v49 = vld [vmem:[%s13216_s6] ss:$0 sm:$0xff]  ;;  %v12666_v1 = vld [vmem:[%s13206_s24 + $0x8] sm:$0xff]   ;;  %s15384_s24 = sld [smem:[#allocation11_spill]]  ;;  %s15386_s6 = sld [smem:[#allocation10_spill]] }
0x1504   :  { %11730 = vmatpush3.bf16.msra.mxu0 %v2391_v52  ;;  %11736 = vmatpush3.bf16.msra.mxu1 %v12661_v59  ;;  %v2546_v52 = vld [vmem:[%s13201_s19] sm:$0xf]  ;;  %s15383_s19 = sld [smem:[#allocation12_spill]] }
0x1505   :  { %v12800_v53 = vpop.eup %12799  ;;  %11737 = vmatprep.subr.bf16.mxu1 %v12662_v62 }
0x1506   :  { %v2332_v56 = vmul.f32 %v12800_v53, %v12792_v43  ;;  %v1909_v8 = vpop.permute.xlu1 %1908  ;;  %v1911_v9 = vpop.permute.xlu0 %1910 }
0x1507   :  { %v1919_v26 = vadd.f32 %v1909_v8, %v13607_v16 }
0x1508   :  { %11738 = vmatpush3.bf16.msra.mxu1 %v12662_v62 }
0x1509   :  { %v12802_v55 = vpop.eup %12801  ;;  %11751 = vmatprep.subr.bf16.mxu1 %v13126_v4  ;;  %v2455_v38 = vsel %vm213_vm1, %v1651_v35, %v1919_v26 }
0x150a   :  { %v2333_v57 = vmul.f32 %v12802_v55, %v12794_v63  ;;  %v1913_v10 = vpop.permute.xlu1 %1912  ;;  %v2173_v12 = vpop.permute.xlu0 %2172 }
0x150b   :  { %v2184_v29 = vadd.f32 %v2173_v12, %v13604_v18  ;;  %v1921_v30 = vadd.f32 %v1913_v10, %v13616_v21 }
0x150c   :  { %v2335_v58 = vpack.c.bf16 %v2333_v57, %v2332_v56 }
0x150d   :  { %v2457_v6 = vsel %vm213_vm1, %v1653_v11, %v1921_v30 }
0x150e   :  { %11732 = vmatmul.mubr.msk.bf16.vlgmr.msra.gmra.mrb[72].mxu0 %vm213_vm1, %v2335_v58  ;;  %v2175_v13 = vpop.permute.xlu1 %2174  ;;  %v2177_v15 = vpop.permute.xlu0 %2176 }
0x150f   :  { %v2185_v31 = vadd.f32 %v2175_v13, %v13607_v16  ;;  %v2186_v45 = vadd.f32 %v2177_v15, %v13613_v20 }
0x1511   :  { %v2459_v41 = vsel %vm422_vm4, %v2455_v38, %v2185_v31 }
0x1512   :  { %v2179_v17 = vpop.permute.xlu1 %2178 }
0x1513   :  { %v2187_v63 = vadd.f32 %v2179_v17, %v13616_v21 }
0x1515   :  { %v2461_v22 = vsel %vm422_vm4, %v2457_v6, %v2187_v63 }
0x15d6   :  { %v2378_v60 = vpop.f32.mrb[68].mxu1 }
0x15d7   :  { %2438 = vrot.lane.b32.xlu0 %v2378_v60, %s13137_s28  ;;  %v11727_v61 = vpop.f32.mrb[69].mxu1 }
0x15d8   :  { %v2381_v0 = vpop.f32.mrb[70].mxu1 }
0x15d9   :  { %2440 = vrot.lane.b32.xlu1 %v2381_v0, %s13137_s28  ;;  %v11728_v3 = vpop.f32.mrb[71].mxu1 }
0x15e1   :  { %v2427_v19 = vpop.f32.mrb[72].mxu0 }
0x15e2   :  { %v11733_v2 = vpop.f32.mrb[73].mxu0  ;;  %2442 = vrot.lane.b32.xlu0 %v2427_v19, %s13137_s28 }
0x15e3   :  { %v2430_v54 = vpop.f32.mrb[74].mxu0 }
0x15e4   :  { %v11734_v50 = vpop.f32.mrb[75].mxu0  ;;  %2444 = vrot.lane.b32.xlu1 %v2430_v54, %s13137_s28 }
0x15e6   :  { %2480 = vrot.lane.b32.xlu0 %v13585_v51, %s13138_s1  ;;  %v1650_v51 = vadd.f32 %v13675_v28, %v13604_v18 }
0x15e8   :  { %v2454_v37 = vsel %vm213_vm1, %v1650_v51, %v1918_v25  ;;  %2579 = vrot.lane.b32.xlu1 %v13849_v49, %s13128_s0 }
0x15e9   :  { %v2458_v39 = vsel %vm422_vm4, %v2454_v37, %v2184_v29 }
0x1649   :  { %v2439_v33 = vpop.permute.xlu0 %2438 }
0x164a   :  { %v2450_v27 = vadd.f32 %v2439_v33, %v13604_v18  ;;  %v1920_v18 = vadd.f32 %v1911_v9, %v13613_v20 }
0x164b   :  { %v2441_v36 = vpop.permute.xlu1 %2440 }
0x164c   :  { %v2451_v7 = vadd.f32 %v2441_v36, %v13607_v16  ;;  %v2462_v24 = vsel %vm1211_vm5, %v2458_v39, %v2450_v27  ;;  %v2456_v14 = vsel %vm213_vm1, %v1652_v23, %v1920_v18 }
0x164d   :  { %v2460_v46 = vsel %vm422_vm4, %v2456_v14, %v2186_v45 }
0x164e   :  { %v2463_v28 = vsel %vm1211_vm5, %v2459_v41, %v2451_v7 }
0x164f   :  { %v2466_v43 = vpack.c.bf16 %v2463_v28, %v2462_v24 }
0x1651   :  { %11739 = vmatprep.mubr.msk.bf16.mxu1 %vm288_vm3, %v2466_v43 }
0x1654   :  { %v2443_v16 = vpop.permute.xlu0 %2442 }
0x1655   :  { %v2452_v40 = vadd.f32 %v2443_v16, %v13613_v20  ;;  %v12663_v20 = vld [vmem:[%s13211_s30] sm:$0xff]  }
0x1656   :  { %v2445_v42 = vpop.permute.xlu1 %2444  ;;  %11743 = vmatprep.subr.bf16.mxu0 %v12663_v20 }
0x1657   :  { %v2453_v47 = vadd.f32 %v2445_v42, %v13616_v21  ;;  %v2464_v32 = vsel %vm1211_vm5, %v2460_v46, %v2452_v40  ;;  %11744 = vmatpush3.bf16.msra.mxu0 %v12663_v20  ;;  %v12664_v21 = vld [vmem:[%s13211_s30 + $0x8] sm:$0xff]   ;;  %s15385_s30 = sld [smem:[#allocation13_spill]] }
0x1658   :  { %11745 = vmatprep.subr.bf16.mxu0 %v12664_v21  ;;  %v2481_v53 = vpop.permute.xlu0 %2480 }
0x1659   :  { %v2465_v34 = vsel %vm1211_vm5, %v2461_v22, %v2453_v47 }
0x165a   :  { %v2467_v44 = vpack.c.bf16 %v2465_v34, %v2464_v32  ;;  %v2580_v25 = vpop.permute.xlu1 %2579 }
0x165b   :  { %11746 = vmatpush3.bf16.msra.mxu0 %v12664_v21 }
0x165c   :  { %11740 = vmatmul.mubr.msk.bf16.vlgmr.msra.gmra.mrb[72].mxu1 %vm288_vm3, %v2467_v44  ;;  %11759 = vmatprep.subr.bf16.mxu0 %v13126_v4 }
0x165d   :  { %11755 = vmatprep.mubr.msk.bf16.mxu1 %vm13127_vm2, %v13126_v4  ;;  %11752 = vmatpush3.bf16.msra.mxu1 %v12665_v48 }
0x165e   :  { %11753 = vmatprep.subr.bf16.mxu1 %v13126_v4 }
0x1661   :  { %11754 = vmatpush3.bf16.msra.mxu1 %v12666_v1 }
0x1662   :  { %11765 = vmatprep.subr.bf16.mxu1 %v13126_v4 }
0x1664   :  { %11756 = vmatmul.mubr.msk.bf16.vlgmr.msra.gmra.mrb[76].mxu1 %vm288_vm3, %v2546_v52 }
0x1665   :  { %11767 = vmatprep.mubr.msk.bf16.mxu1 %vm13127_vm2, %v13126_v4 }
0x172f   :  { %v11741_v55 = vpop.f32.mrb[72].mxu1 }
0x1730   :  { %v2532_v56 = vadd.f32 %v11741_v55, %v2481_v53  ;;  %v2523_v57 = vpop.f32.mrb[73].mxu1 }
0x1731   :  { %v2524_v58 = vadd.f32 %v2523_v57, %v2481_v53  ;;  %v11742_v59 = vpop.f32.mrb[74].mxu1 }
0x1732   :  { %v2540_v60 = vmax.f32 %v2532_v56, 0.0  ;;  %v2535_v61 = vadd.f32 %v11742_v59, %v2481_v53  ;;  %v2526_v62 = vpop.f32.mrb[75].mxu1 }
0x1733   :  { %v2538_v0 = vmax.f32 %v2524_v58, 0.0  ;;  %v2527_v3 = vadd.f32 %v2526_v62, %v2481_v53 }
0x1734   :  { %v2541_v19 = vmax.f32 %v2535_v61, 0.0  ;;  %v2544_v54 = vadd.f32 %v2540_v60, %v2464_v32 }
0x1735   :  { %v2539_v2 = vmax.f32 %v2527_v3, 0.0  ;;  %v2542_v5 = vadd.f32 %v2538_v0, %v2462_v24 }
0x1736   :  { %v2545_v50 = vadd.f32 %v2541_v19, %v2465_v34 }
0x1737   :  { %v2543_v8 = vadd.f32 %v2539_v2, %v2463_v28  ;;  %v2689_v12 = vpop.f32.mrb[76].mxu1 }
0x1738   :  { %v13860_v9 = vpack.c.bf16 %v2545_v50, %v2544_v54  ;;  %v11757_v13 = vpop.f32.mrb[77].mxu1  ;;  %v13875_v7 = vadd.f32 %v13849_v49, %v2689_v12 }
0x1739   :  { %v13862_v10 = vpack.c.bf16 %v2543_v8, %v2542_v5  ;;  %v2692_v15 = vpop.f32.mrb[78].mxu1 }
0x173a   :  { %v11758_v17 = vpop.f32.mrb[79].mxu1  ;;  %v13885_v24 = vpack.c.bf16 %v13875_v7, %v13875_v7 }
0x173b   :  { %11747 = vmatprep.mubr.msk.bf16.mxu0 %vm288_vm3, %v13862_v10 }
0x173c   :  { %11748 = vmatmul.mubr.msk.bf16.vlgmr.msra.gmra.mrb[76].mxu0 %vm288_vm3, %v13860_v9 }
0x173d   :  { %11761 = vmatprep.mubr.msk.bf16.mxu0 %vm13127_vm2, %v13126_v4 }
0x180f   :  { %v11749_v26 = vpop.f32.mrb[76].mxu0 }
0x1810   :  { %v2622_v29 = vpop.f32.mrb[77].mxu0  ;;  %v2631_v33 = vadd.f32 %v11749_v26, %v2580_v25 }
0x1811   :  { %v11750_v31 = vpop.f32.mrb[78].mxu0  ;;  %v2623_v27 = vadd.f32 %v2622_v29, %v2580_v25 }
0x1812   :  { %v2634_v51 = vadd.f32 %v11750_v31, %v2580_v25  ;;  %v2625_v35 = vpop.f32.mrb[79].mxu0 }
0x1813   :  { %v2626_v36 = vadd.f32 %v2625_v35, %v2580_v25 }
0x1814   :  { %v13870_v37 = vpack.c.bf16 %v2634_v51, %v2631_v33 }
0x1815   :  { %v13872_v38 = vpack.c.bf16 %v2626_v36, %v2623_v27 }
0x1816   :  { %v2743_v39 = vsel %vm213_vm1, %v13870_v37, 0 }
0x1817   :  { %11766 = vmatpush3.bf16.xpose.msra.mxu1 %v2743_v39  ;;  %v2700_v41 = vsel %vm213_vm1, %v13872_v38, 0 }
0x1818   :  { %11760 = vmatpush3.bf16.xpose.msra.mxu0 %v2700_v41  ;;  %11777 = vmatprep.subr.bf16.mxu1 %v13126_v4 }
0x1819   :  { %11771 = vmatprep.subr.bf16.mxu0 %v13126_v4 }
0x181e   :  { %11768 = vmatmul.mubr.msk.bf16.vlgmr.msra.gmra.mrb[80].mxu1 %vm213_vm1, %v13885_v24 }
0x181f   :  { %11762 = vmatmul.mubr.msk.bf16.vlgmr.msra.gmra.mrb[80].mxu0 %vm213_vm1, %v13885_v24  ;;  %11779 = vmatprep.mubr.msk.bf16.mxu1 %vm13127_vm2, %v13126_v4 }
0x1820   :  { %11773 = vmatprep.mubr.msk.bf16.mxu0 %vm13127_vm2, %v13126_v4 }
0x18f1   :  { %v2779_v28 = vpop.f32.mrb[80].mxu1 }
0x18f2   :  { %v2736_v43 = vpop.f32.mrb[80].mxu0  ;;  %v11769_v18 = vpop.f32.mrb[81].mxu1  ;;  %v2788_v30 = vsel %vm422_vm4, %v2779_v28, -inf }
0x18f3   :  { %2789 = vmax.xlane.f32.xlu1 %v2788_v30  ;;  %v11763_v45 = vpop.f32.mrb[81].mxu0  ;;  %v2782_v63 = vpop.f32.mrb[82].mxu1  ;;  %v2785_v16 = vsel %vm422_vm4, %v2736_v43, -inf }
0x18f4   :  { %v11770_v23 = vpop.f32.mrb[83].mxu1  ;;  %2786 = vmax.xlane.f32.xlu0 %v2785_v16  ;;  %v2739_v11 = vpop.f32.mrb[82].mxu0 }
0x18f5   :  { %v11764_v40 = vpop.f32.mrb[83].mxu0 }
0x1904   :  { %2810 = vrot.lane.b32.xlu1 %v13872_v38, %s13128_s0 }
0x1908   :  { %2908 = vrot.lane.b32.xlu1 %v13872_v38, %s13129_s5 }
0x190c   :  { %2956 = vrot.lane.b32.xlu1 %v13870_v37, %s13129_s5 }
0x1980   :  { %v2790_v42 = vpop.xlane.xlu1 %2789 }
0x1981   :  { %v2792_v14 = vsub.f32 %v2779_v28, %v2790_v42  ;;  %v2787_v6 = vpop.xlane.xlu0 %2786 }
0x1982   :  { %v2791_v47 = vsub.f32 %v2736_v43, %v2787_v6 }
0x1983   :  { %v2795_v46 = vmul.f32 1.442695, %v2792_v14 }
0x1984   :  { %v2793_v22 = vmul.f32 1.442695, %v2791_v47  ;;  %v2811_v32 = vpop.permute.xlu1 %2810 }
0x1985   :  { %12803 = vpow2.f32 %v2795_v46  ;;  %11772 = vmatpush3.bf16.msra.mxu0 %v2811_v32 }
0x1986   :  { %11783 = vmatprep.subr.bf16.mxu0 %v13126_v4  ;;  %12805 = vpow2.f32 %v2793_v22 }
0x1988   :  { %v2909_v52 = vpop.permute.xlu1 %2908 }
0x1989   :  { %v2914_v0 = vsel %vm213_vm1, %v2909_v52, 0 }
0x198c   :  { %v2957_v57 = vpop.permute.xlu1 %2956 }
0x198d   :  { %v2959_v61 = vsel %vm213_vm1, %v2957_v57, 0 }
0x198f   :  { %v12804_v34 = vpop.eup %12803 }
0x1990   :  { %v2800_v44 = vsel %vm422_vm4, %v12804_v34, 0.0  ;;  %v12806_v20 = vpop.eup %12805 }
0x1991   :  { %2801 = vadd.xlane.f32.xlu0 %v2800_v44  ;;  %v2797_v21 = vsel %vm422_vm4, %v12806_v20, 0.0 }
0x1995   :  { %2798 = vadd.xlane.f32.xlu0 %v2797_v21 }
0x19ab   :  { %2857 = vrot.lane.b32.xlu0 %v13870_v37, %s13128_s0 }
0x19af   :  { %2906 = vrot.lane.b32.xlu0 %v13885_v24, %s13129_s5 }
0x1a1e   :  { %v2802_v48 = vpop.xlane.xlu0 %2801 }
0x1a1f   :  { %12807 = vrcp.f32 %v2802_v48 }
0x1a22   :  { %v2799_v1 = vpop.xlane.xlu0 %2798 }
0x1a23   :  { %12809 = vrcp.f32 %v2799_v1 }
0x1a26   :  { %v2858_v53 = vpop.permute.xlu0 %2857 }
0x1a27   :  { %11778 = vmatpush3.bf16.msra.mxu1 %v2858_v53 }
0x1a28   :  { %11789 = vmatprep.subr.bf16.mxu1 %v13126_v4 }
0x1a29   :  { %v12808_v55 = vpop.eup %12807 }
0x1a2a   :  { %v2806_v56 = vmul.f32 %v12808_v55, %v12804_v34  ;;  %v2907_v3 = vpop.permute.xlu0 %2906 }
0x1a2c   :  { %v2808_v58 = vpack.c.bf16 %v2806_v56, %v2806_v56 }
0x1a2d   :  { %v12810_v59 = vpop.eup %12809 }
0x1a2e   :  { %11780 = vmatmul.mubr.msk.bf16.vlgmr.msra.gmra.mrb[84].mxu1 %vm422_vm4, %v2808_v58  ;;  %v2805_v60 = vmul.f32 %v12810_v59, %v12806_v20 }
0x1a2f   :  { %11791 = vmatprep.mubr.msk.bf16.mxu1 %vm13127_vm2, %v13126_v4 }
0x1a30   :  { %11790 = vmatpush3.bf16.xpose.msra.mxu1 %v2959_v61  ;;  %v2807_v62 = vpack.c.bf16 %v2805_v60, %v2805_v60 }
0x1a31   :  { %11801 = vmatprep.subr.bf16.mxu1 %v13126_v4 }
0x1a32   :  { %11774 = vmatmul.mubr.msk.bf16.vlgmr.msra.gmra.mrb[84].mxu0 %vm422_vm4, %v2807_v62 }
0x1a33   :  { %11784 = vmatpush3.bf16.xpose.msra.mxu0 %v2914_v0  ;;  %11785 = vmatprep.mubr.msk.bf16.mxu0 %vm13127_vm2, %v13126_v4 }
0x1a34   :  { %11795 = vmatprep.subr.bf16.mxu0 %v13126_v4 }
0x1a37   :  { %11792 = vmatmul.mubr.msk.bf16.vlgmr.msra.gmra.mrb[88].mxu1 %vm213_vm1, %v2907_v3 }
0x1a38   :  { %11803 = vmatprep.mubr.msk.bf16.mxu1 %vm13127_vm2, %v13126_v4 }
0x1a3a   :  { %11786 = vmatmul.mubr.msk.bf16.vlgmr.msra.gmra.mrb[88].mxu0 %vm213_vm1, %v2907_v3 }
0x1a3b   :  { %11797 = vmatprep.mubr.msk.bf16.mxu0 %vm13127_vm2, %v13126_v4 }
0x1b01   :  { %v13927_v19 = vpop.f32.mrb[84].mxu1 }
0x1b02   :  { %v11781_v2 = vpop.f32.mrb[85].mxu1 }
0x1b03   :  { %v2900_v54 = vpop.f32.mrb[86].mxu1 }
0x1b04   :  { %v11782_v50 = vpop.f32.mrb[87].mxu1 }
0x1b05   :  { %v13929_v5 = vpop.f32.mrb[84].mxu0 }
0x1b06   :  { %v11775_v8 = vpop.f32.mrb[85].mxu0 }
0x1b07   :  { %v2853_v12 = vpop.f32.mrb[86].mxu0 }
0x1b08   :  { %v11776_v13 = vpop.f32.mrb[87].mxu0 }
0x1b0a   :  { %v2995_v15 = vpop.f32.mrb[88].mxu1 }
0x1b0b   :  { %v11793_v17 = vpop.f32.mrb[89].mxu1  ;;  %v3004_v25 = vsel %vm422_vm4, %v2995_v15, -inf }
0x1b0c   :  { %3005 = vmax.xlane.f32.xlu0 %v3004_v25  ;;  %v2998_v26 = vpop.f32.mrb[90].mxu1 }
0x1b0d   :  { %v2950_v29 = vpop.f32.mrb[88].mxu0  ;;  %v11794_v31 = vpop.f32.mrb[91].mxu1 }
0x1b0e   :  { %v11787_v33 = vpop.f32.mrb[89].mxu0  ;;  %v3001_v51 = vsel %vm422_vm4, %v2950_v29, -inf }
0x1b0f   :  { %3002 = vmax.xlane.f32.xlu1 %v3001_v51  ;;  %v2953_v35 = vpop.f32.mrb[90].mxu0 }
0x1b10   :  { %v11788_v27 = vpop.f32.mrb[91].mxu0 }
0x1b20   :  { %3071 = vrot.lane.b32.xlu1 %v13870_v37, %s13130_s9 }
0x1b22   :  { %3025 = vrot.lane.b32.xlu0 %v13872_v38, %s13130_s9 }
0x1b99   :  { %v3006_v36 = vpop.xlane.xlu0 %3005 }
0x1b9a   :  { %v3008_v39 = vsub.f32 %v2995_v15, %v3006_v36 }
0x1b9c   :  { %v3011_v41 = vmul.f32 1.442695, %v3008_v39  ;;  %v3003_v28 = vpop.xlane.xlu1 %3002 }
0x1b9d   :  { %v3007_v43 = vsub.f32 %v2950_v29, %v3003_v28  ;;  %v3026_v18 = vpop.permute.xlu0 %3025 }
0x1b9e   :  { %12811 = vpow2.f32 %v3011_v41  ;;  %11796 = vmatpush3.bf16.msra.mxu0 %v3026_v18 }
0x1b9f   :  { %v3009_v30 = vmul.f32 1.442695, %v3007_v43  ;;  %11807 = vmatprep.subr.bf16.mxu0 %v13126_v4 }
0x1ba0   :  { %v3072_v45 = vpop.permute.xlu1 %3071 }
0x1ba1   :  { %12813 = vpow2.f32 %v3009_v30  ;;  %11802 = vmatpush3.bf16.msra.mxu1 %v3072_v45 }
0x1ba2   :  { %11813 = vmatprep.subr.bf16.mxu1 %v13126_v4 }
0x1ba8   :  { %v12812_v63 = vpop.eup %12811 }
0x1ba9   :  { %v3016_v16 = vsel %vm422_vm4, %v12812_v63, 0.0 }
0x1baa   :  { %3017 = vadd.xlane.f32.xlu1 %v3016_v16 }
0x1bab   :  { %v12814_v23 = vpop.eup %12813 }
0x1bac   :  { %v3013_v11 = vsel %vm422_vm4, %v12814_v23, 0.0 }
0x1bad   :  { %3014 = vadd.xlane.f32.xlu0 %v3013_v11 }
0x1bbb   :  { %3129 = vrot.lane.b32.xlu1 %v13872_v38, %s13131_s13 }
0x1bbf   :  { %3127 = vrot.lane.b32.xlu1 %v13885_v24, %s13131_s13 }
0x1bc3   :  { %3177 = vrot.lane.b32.xlu0 %v13870_v37, %s13131_s13 }
0x1c37   :  { %v3018_v40 = vpop.xlane.xlu1 %3017 }
0x1c38   :  { %12815 = vrcp.f32 %v3018_v40 }
0x1c3a   :  { %v3015_v42 = vpop.xlane.xlu0 %3014 }
0x1c3b   :  { %12817 = vrcp.f32 %v3015_v42  ;;  %v3130_v34 = vpop.permute.xlu1 %3129 }
0x1c3c   :  { %v3135_v21 = vsel %vm213_vm1, %v3130_v34, 0 }
0x1c3e   :  { %v3178_v47 = vpop.permute.xlu0 %3177 }
0x1c3f   :  { %v3180_v44 = vsel %vm213_vm1, %v3178_v47, 0  ;;  %v3128_v48 = vpop.permute.xlu1 %3127 }
0x1c42   :  { %v12816_v14 = vpop.eup %12815 }
0x1c43   :  { %v3022_v6 = vmul.f32 %v12816_v14, %v12812_v63 }
0x1c45   :  { %v12818_v46 = vpop.eup %12817  ;;  %v3024_v22 = vpack.c.bf16 %v3022_v6, %v3022_v6 }
0x1c46   :  { %v3021_v32 = vmul.f32 %v12818_v46, %v12814_v23 }
0x1c47   :  { %11804 = vmatmul.mubr.msk.bf16.vlgmr.msra.gmra.mrb[92].mxu1 %vm422_vm4, %v3024_v22 }
0x1c48   :  { %11814 = vmatpush3.bf16.xpose.msra.mxu1 %v3180_v44  ;;  %v3023_v20 = vpack.c.bf16 %v3021_v32, %v3021_v32  ;;  %11815 = vmatprep.mubr.msk.bf16.mxu1 %vm13127_vm2, %v13126_v4 }
0x1c49   :  { %11825 = vmatprep.subr.bf16.mxu1 %v13126_v4 }
0x1c4a   :  { %11798 = vmatmul.mubr.msk.bf16.vlgmr.msra.gmra.mrb[92].mxu0 %vm422_vm4, %v3023_v20 }
0x1c4b   :  { %11808 = vmatpush3.bf16.xpose.msra.mxu0 %v3135_v21  ;;  %11809 = vmatprep.mubr.msk.bf16.mxu0 %vm13127_vm2, %v13126_v4 }
0x1c4c   :  { %11819 = vmatprep.subr.bf16.mxu0 %v13126_v4 }
0x1c4f   :  { %11816 = vmatmul.mubr.msk.bf16.vlgmr.msra.gmra.mrb[96].mxu1 %vm213_vm1, %v3128_v48 }
0x1c50   :  { %11827 = vmatprep.mubr.msk.bf16.mxu1 %vm13127_vm2, %v13126_v4 }
0x1c52   :  { %11810 = vmatmul.mubr.msk.bf16.vlgmr.msra.gmra.mrb[96].mxu0 %vm213_vm1, %v3128_v48 }
0x1c53   :  { %11821 = vmatprep.mubr.msk.bf16.mxu0 %vm13127_vm2, %v13126_v4 }
0x1d1a   :  { %v13963_v1 = vpop.f32.mrb[92].mxu1 }
0x1d1b   :  { %v11805_v52 = vpop.f32.mrb[93].mxu1 }
0x1d1c   :  { %v3114_v53 = vpop.f32.mrb[94].mxu1 }
0x1d1d   :  { %v13965_v55 = vpop.f32.mrb[92].mxu0  ;;  %v11806_v56 = vpop.f32.mrb[95].mxu1 }
0x1d1e   :  { %v11799_v57 = vpop.f32.mrb[93].mxu0 }
0x1d1f   :  { %v3068_v58 = vpop.f32.mrb[94].mxu0 }
0x1d20   :  { %v11800_v59 = vpop.f32.mrb[95].mxu0 }
0x1d22   :  { %v3216_v60 = vpop.f32.mrb[96].mxu1 }
0x1d23   :  { %v11817_v61 = vpop.f32.mrb[97].mxu1  ;;  %v3225_v62 = vsel %vm422_vm4, %v3216_v60, -inf }
0x1d24   :  { %3226 = vmax.xlane.f32.xlu1 %v3225_v62  ;;  %v3219_v0 = vpop.f32.mrb[98].mxu1 }
0x1d25   :  { %v3171_v3 = vpop.f32.mrb[96].mxu0  ;;  %v11818_v2 = vpop.f32.mrb[99].mxu1 }
0x1d26   :  { %v11811_v54 = vpop.f32.mrb[97].mxu0  ;;  %v3222_v50 = vsel %vm422_vm4, %v3171_v3, -inf }
0x1d27   :  { %3223 = vmax.xlane.f32.xlu0 %v3222_v50  ;;  %v3174_v8 = vpop.f32.mrb[98].mxu0 }
0x1d28   :  { %v11812_v12 = vpop.f32.mrb[99].mxu0 }
0x1d35   :  { %3246 = vrot.lane.b32.xlu1 %v13872_v38, %s13132_s17 }
0x1d39   :  { %3350 = vrot.lane.b32.xlu1 %v13872_v38, %s13133_s21 }
0x1d3d   :  { %3398 = vrot.lane.b32.xlu1 %v13870_v37, %s13133_s21 }
0x1db1   :  { %v3227_v13 = vpop.xlane.xlu1 %3226 }
0x1db2   :  { %v3229_v15 = vsub.f32 %v3216_v60, %v3227_v13 }
0x1db4   :  { %v3232_v17 = vmul.f32 1.442695, %v3229_v15  ;;  %v3224_v25 = vpop.xlane.xlu0 %3223 }
0x1db5   :  { %v3228_v26 = vsub.f32 %v3171_v3, %v3224_v25  ;;  %v3247_v29 = vpop.permute.xlu1 %3246 }
0x1db6   :  { %12819 = vpow2.f32 %v3232_v17  ;;  %11820 = vmatpush3.bf16.msra.mxu0 %v3247_v29 }
0x1db7   :  { %v3230_v31 = vmul.f32 1.442695, %v3228_v26  ;;  %11831 = vmatprep.subr.bf16.mxu0 %v13126_v4 }
0x1db9   :  { %12821 = vpow2.f32 %v3230_v31  ;;  %v3351_v41 = vpop.permute.xlu1 %3350  ;;  %v12667_v31 = vld [vmem:[%s15378_s25] sm:$0xff]  }
0x1dba   :  { %v3356_v11 = vsel %vm213_vm1, %v3351_v41, 0 }
0x1dbd   :  { %v3399_v30 = vpop.permute.xlu1 %3398 }
0x1dbe   :  { %v3401_v23 = vsel %vm213_vm1, %v3399_v30, 0 }
0x1dc0   :  { %v12820_v33 = vpop.eup %12819 }
0x1dc1   :  { %v3237_v51 = vsel %vm422_vm4, %v12820_v33, 0.0 }
0x1dc2   :  { %3238 = vadd.xlane.f32.xlu0 %v3237_v51  ;;  %v12669_v51 = vld [vmem:[%s15379_s29] sm:$0xff]  }
0x1dc3   :  { %v12822_v35 = vpop.eup %12821 }
0x1dc4   :  { %v3234_v27 = vsel %vm422_vm4, %v12822_v35, 0.0 }
0x1dc6   :  { %3235 = vadd.xlane.f32.xlu0 %v3234_v27 }
0x1ddc   :  { %3292 = vrot.lane.b32.xlu0 %v13870_v37, %s13132_s17 }
0x1de0   :  { %3348 = vrot.lane.b32.xlu0 %v13885_v24, %s13133_s21 }
0x1e4f   :  { %v3239_v36 = vpop.xlane.xlu0 %3238 }
0x1e50   :  { %12823 = vrcp.f32 %v3239_v36 }
0x1e53   :  { %v3236_v39 = vpop.xlane.xlu0 %3235 }
0x1e54   :  { %12825 = vrcp.f32 %v3236_v39 }
0x1e57   :  { %v3293_v28 = vpop.permute.xlu0 %3292 }
0x1e58   :  { %11826 = vmatpush3.bf16.msra.mxu1 %v3293_v28 }
0x1e59   :  { %11837 = vmatprep.subr.bf16.mxu1 %v13126_v4 }
0x1e5a   :  { %v12824_v43 = vpop.eup %12823 }
0x1e5b   :  { %v3243_v18 = vmul.f32 %v12824_v43, %v12820_v33  ;;  %v3349_v40 = vpop.permute.xlu0 %3348  ;;  %v12668_v33 = vld [vmem:[%s15378_s25 + $0x8] sm:$0xff]   ;;  %s15394_s25 = sld [smem:[#allocation21_spill]] }
0x1e5d   :  { %v3245_v45 = vpack.c.bf16 %v3243_v18, %v3243_v18 }
0x1e5e   :  { %v12826_v63 = vpop.eup %12825 }
0x1e5f   :  { %11828 = vmatmul.mubr.msk.bf16.vlgmr.msra.gmra.mrb[100].mxu1 %vm422_vm4, %v3245_v45  ;;  %v3242_v16 = vmul.f32 %v12826_v63, %v12822_v35 }
0x1e60   :  { %11839 = vmatprep.mubr.msk.bf16.mxu1 %vm13127_vm2, %v13126_v4 }
0x1e61   :  { %11838 = vmatpush3.bf16.xpose.msra.mxu1 %v3401_v23  ;;  %v3244_v24 = vpack.c.bf16 %v3242_v16, %v3242_v16 }
0x1e62   :  { %11849 = vmatprep.subr.bf16.mxu1 %v13126_v4 }
0x1e63   :  { %11822 = vmatmul.mubr.msk.bf16.vlgmr.msra.gmra.mrb[100].mxu0 %vm422_vm4, %v3244_v24 }
0x1e64   :  { %11832 = vmatpush3.bf16.xpose.msra.mxu0 %v3356_v11  ;;  %11833 = vmatprep.mubr.msk.bf16.mxu0 %vm13127_vm2, %v13126_v4 }
0x1e65   :  { %11843 = vmatprep.subr.bf16.mxu0 %v13126_v4 }
0x1e68   :  { %11840 = vmatmul.mubr.msk.bf16.vlgmr.msra.gmra.mrb[104].mxu1 %vm213_vm1, %v3349_v40 }
0x1e69   :  { %11851 = vmatprep.mubr.msk.bf16.mxu1 %vm13127_vm2, %v13126_v4 }
0x1e6b   :  { %11834 = vmatmul.mubr.msk.bf16.vlgmr.msra.gmra.mrb[104].mxu0 %vm213_vm1, %v3349_v40 }
0x1e6c   :  { %11845 = vmatprep.mubr.msk.bf16.mxu0 %vm13127_vm2, %v13126_v4 }
0x1f32   :  { %v3332_v42 = vpop.f32.mrb[100].mxu1 }
0x1f33   :  { %v11829_v14 = vpop.f32.mrb[101].mxu1 }
0x1f34   :  { %v3335_v6 = vpop.f32.mrb[102].mxu1  ;;  %v2904_v14 = vadd.f32 %v13927_v19, %v13875_v7 }
0x1f35   :  { %v11830_v47 = vpop.f32.mrb[103].mxu1 }
0x1f36   :  { %v3286_v46 = vpop.f32.mrb[100].mxu0 }
0x1f37   :  { %v11823_v22 = vpop.f32.mrb[101].mxu0 }
0x1f38   :  { %v3289_v32 = vpop.f32.mrb[102].mxu0 }
0x1f39   :  { %v11824_v34 = vpop.f32.mrb[103].mxu0 }
0x1f3b   :  { %v3437_v44 = vpop.f32.mrb[104].mxu1 }
0x1f3c   :  { %v11841_v20 = vpop.f32.mrb[105].mxu1  ;;  %v3446_v21 = vsel %vm422_vm4, %v3437_v44, -inf }
0x1f3d   :  { %3447 = vmax.xlane.f32.xlu0 %v3446_v21  ;;  %v3440_v48 = vpop.f32.mrb[106].mxu1  ;;  %v12670_v21 = vld [vmem:[%s15379_s29 + $0x8] sm:$0xff]   ;;  %s15395_s29 = sld [smem:[#allocation22_spill]] }
0x1f3e   :  { %v3392_v52 = vpop.f32.mrb[104].mxu0  ;;  %v11842_v53 = vpop.f32.mrb[107].mxu1  ;;  %v12672_v48 = vld [vmem:[%s15380_s3 + $0x8] sm:$0xff]  }
0x1f3f   :  { %v11835_v56 = vpop.f32.mrb[105].mxu0  ;;  %v3443_v57 = vsel %vm422_vm4, %v3392_v52, -inf }
0x1f40   :  { %3444 = vmax.xlane.f32.xlu1 %v3443_v57  ;;  %v3395_v58 = vpop.f32.mrb[106].mxu0 }
0x1f41   :  { %v11836_v59 = vpop.f32.mrb[107].mxu0 }
0x1fca   :  { %v3448_v60 = vpop.xlane.xlu0 %3447 }
0x1fcb   :  { %v3450_v61 = vsub.f32 %v3437_v44, %v3448_v60 }
0x1fcd   :  { %v3453_v62 = vmul.f32 1.442695, %v3450_v61  ;;  %v3445_v0 = vpop.xlane.xlu1 %3444 }
0x1fce   :  { %v3449_v3 = vsub.f32 %v3392_v52, %v3445_v0  ;;  %v14058_v52 = vld [vmem:[%s15381_s8] ss:$0 sm:$0xff]  ;;  %s15397_s8 = sld [smem:[#allocation26_spill]] }
0x1fcf   :  { %12827 = vpow2.f32 %v3453_v62 }
0x1fd0   :  { %v3451_v2 = vmul.f32 1.442695, %v3449_v3 }
0x1fd2   :  { %12829 = vpow2.f32 %v3451_v2 }
0x1fd9   :  { %v12828_v54 = vpop.eup %12827 }
0x1fda   :  { %v3458_v50 = vsel %vm422_vm4, %v12828_v54, 0.0 }
0x1fdb   :  { %3459 = vadd.xlane.f32.xlu1 %v3458_v50 }
0x1fdc   :  { %v12830_v8 = vpop.eup %12829 }
0x1fdd   :  { %v3455_v12 = vsel %vm422_vm4, %v12830_v8, 0.0 }
0x1fde   :  { %3456 = vadd.xlane.f32.xlu0 %v3455_v12 }
0x1fec   :  { %3513 = vrot.lane.b32.xlu1 %v13870_v37, %s13134_s22 }
0x1ff0   :  { %3119 = vrot.lane.b32.xlu1 %v13965_v55, %s13135_s23 }
0x1ff4   :  { %3340 = vrot.lane.b32.xlu1 %v3286_v46, %s13136_s26  ;;  %3467 = vrot.lane.b32.xlu0 %v13872_v38, %s13134_s22 }
0x1ff8   :  { %3121 = vrot.lane.b32.xlu0 %v13963_v1, %s13135_s23 }
0x1ffc   :  { %3342 = vrot.lane.b32.xlu0 %v3332_v42, %s13136_s26 }
0x2068   :  { %v3460_v13 = vpop.xlane.xlu1 %3459 }
0x2069   :  { %12831 = vrcp.f32 %v3460_v13 }
0x206b   :  { %v3457_v15 = vpop.xlane.xlu0 %3456 }
0x206c   :  { %12833 = vrcp.f32 %v3457_v15  ;;  %v3514_v17 = vpop.permute.xlu1 %3513 }
0x206d   :  { %11850 = vmatpush3.bf16.msra.mxu1 %v3514_v17 }
0x206e   :  { %11863 = vmatprep.subr.bf16.mxu1 %v13126_v4 }
0x206f   :  { %v3468_v37 = vpop.permute.xlu0 %3467 }
0x2070   :  { %11844 = vmatpush3.bf16.msra.mxu0 %v3468_v37  ;;  %v3120_v45 = vpop.permute.xlu1 %3119 }
0x2071   :  { %11855 = vmatprep.subr.bf16.mxu0 %v13126_v4  ;;  %v3125_v23 = vadd.f32 %v3120_v45, %v13875_v7 }
0x2073   :  { %v12832_v38 = vpop.eup %12831  ;;  %v3122_v30 = vpop.permute.xlu0 %3121 }
0x2074   :  { %v3464_v55 = vmul.f32 %v12832_v38, %v12828_v54  ;;  %v3341_v16 = vpop.permute.xlu1 %3340  ;;  %v3126_v24 = vadd.f32 %v3122_v30, %v13875_v7 }
0x2075   :  { %v3346_v40 = vadd.f32 %v3341_v16, %v13875_v7 }
0x2076   :  { %v12834_v1 = vpop.eup %12833  ;;  %v3466_v25 = vpack.c.bf16 %v3464_v55, %v3464_v55  ;;  %v3570_v22 = vsel %vm213_vm1, %v2904_v14, %v3126_v24 }
0x2077   :  { %v3463_v26 = vmul.f32 %v12834_v1, %v12830_v8  ;;  %v3343_v63 = vpop.permute.xlu0 %3342 }
0x2078   :  { %11852 = vmatmul.mubr.msk.bf16.vlgmr.msra.gmra.mrb[108].mxu1 %vm422_vm4, %v3466_v25  ;;  %v3347_v42 = vadd.f32 %v3343_v63, %v13875_v7 }
0x2079   :  { %v3465_v29 = vpack.c.bf16 %v3463_v26, %v3463_v26  ;;  %11867 = vmatprep.mubr.msk.bf16.mxu1 %vm13127_vm2, %v13126_v4 }
0x207a   :  { %v3572_v44 = vsel %vm422_vm4, %v3570_v22, %v3347_v42 }
0x207b   :  { %11846 = vmatmul.mubr.msk.bf16.vlgmr.msra.gmra.mrb[108].mxu0 %vm422_vm4, %v3465_v29 }
0x207c   :  { %11859 = vmatprep.mubr.msk.bf16.mxu0 %vm13127_vm2, %v13126_v4  ;;  %11856 = vmatpush3.bf16.msra.mxu0 %v12667_v31 }
0x207d   :  { %11857 = vmatprep.subr.bf16.mxu0 %v13126_v4 }
0x2080   :  { %11858 = vmatpush3.bf16.msra.mxu0 %v12668_v33 }
0x2081   :  { %11871 = vmatprep.subr.bf16.mxu0 %v12669_v51 }
0x214b   :  { %v3553_v35 = vpop.f32.mrb[108].mxu1 }
0x214c   :  { %3563 = vrot.lane.b32.xlu0 %v3553_v35, %s13137_s28  ;;  %v11853_v27 = vpop.f32.mrb[109].mxu1 }
0x214d   :  { %v3556_v36 = vpop.f32.mrb[110].mxu1 }
0x214e   :  { %v3507_v39 = vpop.f32.mrb[108].mxu0  ;;  %v11854_v41 = vpop.f32.mrb[111].mxu1 }
0x214f   :  { %3561 = vrot.lane.b32.xlu1 %v3507_v39, %s13137_s28  ;;  %v11847_v28 = vpop.f32.mrb[109].mxu0 }
0x2150   :  { %v3510_v43 = vpop.f32.mrb[110].mxu0  ;;  %3670 = vrot.lane.b32.xlu0 %v14058_v52, %s13128_s0 }
0x2151   :  { %v11848_v18 = vpop.f32.mrb[111].mxu0 }
0x2153   :  { %3588 = vrot.lane.b32.xlu1 %v13849_v49, %s13138_s1  ;;  %v2903_v49 = vadd.f32 %v13929_v5, %v13875_v7 }
0x2155   :  { %v3569_v46 = vsel %vm213_vm1, %v2903_v49, %v3125_v23 }
0x2156   :  { %v3571_v34 = vsel %vm422_vm4, %v3569_v46, %v3346_v40 }
0x21be   :  { %v3564_v11 = vpop.permute.xlu0 %3563 }
0x21bf   :  { %v3568_v6 = vadd.f32 %v3564_v11, %v13875_v7 }
0x21c1   :  { %v3562_v47 = vpop.permute.xlu1 %3561  ;;  %v3574_v19 = vsel %vm1211_vm5, %v3572_v44, %v3568_v6 }
0x21c2   :  { %v3567_v32 = vadd.f32 %v3562_v47, %v13875_v7  ;;  %v12671_v7 = vld [vmem:[%s15380_s3] sm:$0xff]   ;;  %v3671_v12 = vpop.permute.xlu0 %3670  ;;  %s15396_s3 = sld [smem:[#allocation23_spill]] }
0x21c3   :  { %11864 = vmatpush3.bf16.msra.mxu1 %v12671_v7 }
0x21c4   :  { %v3573_v20 = vsel %vm1211_vm5, %v3571_v34, %v3567_v32  ;;  %11865 = vmatprep.subr.bf16.mxu1 %v13126_v4 }
0x21c5   :  { %v3575_v5 = vpack.c.bf16 %v3574_v19, %v3573_v20 }
0x21c7   :  { %11860 = vmatmul.mubr.msk.bf16.vlgmr.msra.gmra.mrb[112].mxu0 %vm288_vm3, %v3575_v5  ;;  %11866 = vmatpush3.bf16.msra.mxu1 %v12672_v48 }
0x21c8   :  { %11872 = vmatpush3.bf16.msra.mxu0 %v12669_v51  ;;  %11875 = vmatprep.mubr.msk.bf16.mxu0 %vm288_vm3, %v13862_v10  ;;  %v3589_v10 = vpop.permute.xlu1 %3588 }
0x21c9   :  { %11873 = vmatprep.subr.bf16.mxu0 %v12670_v21  ;;  %11879 = vmatprep.subr.bf16.mxu1 %v13126_v4 }
0x21cc   :  { %11874 = vmatpush3.bf16.msra.mxu0 %v12670_v21 }
0x21cd   :  { %11885 = vmatprep.subr.bf16.mxu0 %v13126_v4 }
0x21cf   :  { %11876 = vmatmul.mubr.msk.bf16.vlgmr.msra.gmra.mrb[116].mxu0 %vm288_vm3, %v13860_v9 }
0x21d0   :  { %11887 = vmatprep.mubr.msk.bf16.mxu0 %vm13127_vm2, %v13126_v4 }
0x229a   :  { %v3628_v53 = vpop.f32.mrb[112].mxu0 }
0x229b   :  { %v3629_v56 = vadd.f32 %v3628_v53, %v3589_v10  ;;  %v11861_v9 = vpop.f32.mrb[113].mxu0 }
0x229c   :  { %v3631_v57 = vpop.f32.mrb[114].mxu0 }
0x229d   :  { %v3635_v58 = vmax.f32 %v3629_v56, 0.0  ;;  %v3632_v59 = vadd.f32 %v3631_v57, %v3589_v10  ;;  %v11862_v60 = vpop.f32.mrb[115].mxu0 }
0x229f   :  { %v3636_v61 = vmax.f32 %v3632_v59, 0.0  ;;  %v3637_v62 = vadd.f32 %v3635_v58, %v3573_v20 }
0x22a1   :  { %v3638_v0 = vadd.f32 %v3636_v61, %v3574_v19 }
0x22a2   :  { %v11877_v3 = vpop.f32.mrb[116].mxu0 }
0x22a3   :  { %v3652_v2 = vpack.c.bf16 %v3638_v0, %v3637_v62  ;;  %v3766_v54 = vpop.f32.mrb[117].mxu0  ;;  %v14086_v35 = vadd.f32 %v11877_v3, %v14058_v52 }
0x22a4   :  { %v11878_v50 = vpop.f32.mrb[118].mxu0  ;;  %v14079_v33 = vadd.f32 %v14058_v52, %v3766_v54 }
0x22a5   :  { %11868 = vmatmul.mubr.msk.bf16.vlgmr.msra.gmra.mrb[112].mxu1 %vm288_vm3, %v3652_v2  ;;  %v3769_v8 = vpop.f32.mrb[119].mxu0  ;;  %v14082_v51 = vadd.f32 %v11878_v50, %v14058_v52 }
0x22a6   :  { %11881 = vmatprep.mubr.msk.bf16.mxu1 %vm13127_vm2, %v13126_v4  ;;  %v14073_v29 = vadd.f32 %v14058_v52, %v3769_v8 }
0x22a7   :  { %v14096_v36 = vpack.c.bf16 %v14082_v51, %v14086_v35 }
0x22a8   :  { %v14090_v27 = vpack.c.bf16 %v14073_v29, %v14079_v33 }
0x2378   :  { %v3710_v13 = vpop.f32.mrb[112].mxu1 }
0x2379   :  { %v3711_v15 = vadd.f32 %v3710_v13, %v3671_v12  ;;  %v11869_v17 = vpop.f32.mrb[113].mxu1 }
0x237a   :  { %v3713_v37 = vpop.f32.mrb[114].mxu1 }
0x237b   :  { %v14066_v38 = vpack.c.bf16 %v3711_v15, %v3711_v15  ;;  %v3714_v55 = vadd.f32 %v3713_v37, %v3671_v12  ;;  %v11870_v1 = vpop.f32.mrb[115].mxu1 }
0x237d   :  { %v14068_v25 = vpack.c.bf16 %v3714_v55, %v3714_v55  ;;  %v3787_v26 = vsel %vm213_vm1, %v14066_v38, 0 }
0x237e   :  { %11880 = vmatpush3.bf16.xpose.msra.mxu1 %v3787_v26 }
0x237f   :  { %v3834_v31 = vsel %vm213_vm1, %v14068_v25, 0  ;;  %11891 = vmatprep.subr.bf16.mxu1 %v13126_v4 }
0x2380   :  { %11886 = vmatpush3.bf16.xpose.msra.mxu0 %v3834_v31 }
0x2381   :  { %11897 = vmatprep.subr.bf16.mxu0 %v13126_v4 }
0x2385   :  { %11882 = vmatmul.mubr.msk.bf16.vlgmr.msra.gmra.mrb[116].mxu1 %vm213_vm1, %v14090_v27 }
0x2386   :  { %11893 = vmatprep.mubr.msk.bf16.mxu1 %vm13127_vm2, %v13126_v4 }
0x2387   :  { %11888 = vmatmul.mubr.msk.bf16.vlgmr.msra.gmra.mrb[120].mxu0 %vm213_vm1, %v14096_v36 }
0x2388   :  { %11899 = vmatprep.mubr.msk.bf16.mxu0 %vm13127_vm2, %v13126_v4 }
0x2458   :  { %v3823_v39 = vpop.f32.mrb[116].mxu1 }
0x2459   :  { %v11883_v41 = vpop.f32.mrb[117].mxu1  ;;  %v3877_v28 = vsel %vm213_vm1, %v3823_v39, -inf }
0x245a   :  { %v3870_v43 = vpop.f32.mrb[120].mxu0  ;;  %3878 = vmax.xlane.f32.xlu1 %v3877_v28  ;;  %v3826_v18 = vpop.f32.mrb[118].mxu1 }
0x245b   :  { %v11884_v30 = vpop.f32.mrb[119].mxu1  ;;  %v11889_v45 = vpop.f32.mrb[121].mxu0  ;;  %v3880_v63 = vsel %vm213_vm1, %v3826_v18, -inf  ;;  %v3883_v11 = vsel %vm213_vm1, %v3870_v43, -inf }
0x245c   :  { %v3873_v16 = vpop.f32.mrb[122].mxu0  ;;  %3881 = vmax.xlane.f32.xlu0 %v3880_v63 }
0x245d   :  { %v11890_v23 = vpop.f32.mrb[123].mxu0  ;;  %v3886_v24 = vsel %vm213_vm1, %v3873_v16, -inf }
0x245e   :  { %3887 = vmax.xlane.f32.xlu1 %v3886_v24 }
0x2460   :  { %3884 = vmax.xlane.f32.xlu0 %v3883_v11 }
0x246f   :  { %3974 = vrot.lane.b32.xlu1 %v14068_v25, %s13128_s0 }
0x2473   :  { %4030 = vrot.lane.b32.xlu1 %v14066_v38, %s13129_s5 }
0x2476   :  { %3924 = vrot.lane.b32.xlu0 %v14066_v38, %s13128_s0 }
0x24e7   :  { %v3879_v40 = vpop.xlane.xlu1 %3878 }
0x24e8   :  { %v3889_v42 = vsub.f32 %v3823_v39, %v3879_v40 }
0x24e9   :  { %v3882_v14 = vpop.xlane.xlu0 %3881 }
0x24ea   :  { %v3893_v49 = vmul.f32 1.442695, %v3889_v42  ;;  %v3890_v6 = vsub.f32 %v3826_v18, %v3882_v14 }
0x24eb   :  { %v3888_v47 = vpop.xlane.xlu1 %3887 }
0x24ec   :  { %12835 = vpow2.f32 %v3893_v49  ;;  %v3895_v46 = vmul.f32 1.442695, %v3890_v6  ;;  %v3892_v22 = vsub.f32 %v3873_v16, %v3888_v47 }
0x24ed   :  { %v3885_v32 = vpop.xlane.xlu0 %3884 }
0x24ee   :  { %12837 = vpow2.f32 %v3895_v46  ;;  %v3899_v34 = vmul.f32 1.442695, %v3892_v22  ;;  %v3891_v44 = vsub.f32 %v3870_v43, %v3885_v32 }
0x24ef   :  { %v3975_v19 = vpop.permute.xlu1 %3974 }
0x24f0   :  { %12839 = vpow2.f32 %v3899_v34  ;;  %v3897_v20 = vmul.f32 1.442695, %v3891_v44  ;;  %v3980_v5 = vsel %vm220_vm0, %v3975_v19, 0 }
0x24f1   :  { %11898 = vmatpush3.bf16.msra.mxu0 %v3980_v5  ;;  %v3925_v21 = vpop.permute.xlu0 %3924 }
0x24f2   :  { %12841 = vpow2.f32 %v3897_v20  ;;  %v3930_v7 = vsel %vm220_vm0, %v3925_v21, 0  ;;  %11909 = vmatprep.subr.bf16.mxu0 %v13126_v4 }
0x24f3   :  { %11892 = vmatpush3.bf16.msra.mxu1 %v3930_v7  ;;  %v4031_v60 = vpop.permute.xlu1 %4030 }
0x24f4   :  { %11903 = vmatprep.subr.bf16.mxu1 %v13126_v4  ;;  %v4036_v17 = vsel %vm213_vm1, %v4031_v60, 0 }
0x24f6   :  { %v12836_v48 = vpop.eup %12835 }
0x24f7   :  { %v3901_v10 = vsel %vm213_vm1, %v12836_v48, 0.0 }
0x24f8   :  { %v12838_v53 = vpop.eup %12837  ;;  %3902 = vadd.xlane.f32.xlu0 %v3901_v10 }
0x24f9   :  { %v3904_v56 = vsel %vm213_vm1, %v12838_v53, 0.0 }
0x24fa   :  { %v12840_v9 = vpop.eup %12839  ;;  %3905 = vadd.xlane.f32.xlu1 %v3904_v56 }
0x24fb   :  { %v3910_v58 = vsel %vm213_vm1, %v12840_v9, 0.0 }
0x24fc   :  { %v12842_v57 = vpop.eup %12841 }
0x24fd   :  { %v3907_v59 = vsel %vm213_vm1, %v12842_v57, 0.0 }
0x24fe   :  { %3911 = vadd.xlane.f32.xlu1 %v3910_v58  ;;  %3908 = vadd.xlane.f32.xlu0 %v3907_v59 }
0x250f   :  { %4028 = vrot.lane.b32.xlu1 %v14090_v27, %s13129_s5 }
0x2514   :  { %4082 = vrot.lane.b32.xlu0 %v14068_v25, %s13129_s5 }
0x2518   :  { %4080 = vrot.lane.b32.xlu0 %v14096_v36, %s13129_s5 }
0x2585   :  { %v3903_v61 = vpop.xlane.xlu0 %3902 }
0x2586   :  { %12843 = vrcp.f32 %v3903_v61 }
0x2587   :  { %v3906_v62 = vpop.xlane.xlu1 %3905 }
0x2588   :  { %12845 = vrcp.f32 %v3906_v62 }
0x258b   :  { %v3912_v0 = vpop.xlane.xlu1 %3911  ;;  %v3909_v3 = vpop.xlane.xlu0 %3908 }
0x258c   :  { %12847 = vrcp.f32 %v3912_v0 }
0x258d   :  { %12849 = vrcp.f32 %v3909_v3 }
0x258f   :  { %v4083_v1 = vpop.permute.xlu0 %4082  ;;  %v4029_v39 = vpop.permute.xlu1 %4028 }
0x2590   :  { %v12844_v2 = vpop.eup %12843  ;;  %v4088_v31 = vsel %vm213_vm1, %v4083_v1, 0 }
0x2591   :  { %v3917_v50 = vmul.f32 %v12844_v2, %v12836_v48 }
0x2592   :  { %v12846_v54 = vpop.eup %12845 }
0x2593   :  { %v3918_v8 = vmul.f32 %v12846_v54, %v12838_v53  ;;  %v4081_v41 = vpop.permute.xlu0 %4080 }
0x2595   :  { %v3921_v12 = vpack.c.bf16 %v3918_v8, %v3917_v50 }
0x2596   :  { %v12848_v13 = vpop.eup %12847 }
0x2597   :  { %v12850_v15 = vpop.eup %12849  ;;  %v3920_v37 = vmul.f32 %v12848_v13, %v12840_v9  ;;  %11894 = vmatmul.mubr.msk.bf16.vlgmr.msra.gmra.mrb[120].mxu1 %vm213_vm1, %v3921_v12 }
0x2598   :  { %v3919_v55 = vmul.f32 %v12850_v15, %v12842_v57  ;;  %11904 = vmatpush3.bf16.xpose.msra.mxu1 %v4036_v17  ;;  %11905 = vmatprep.mubr.msk.bf16.mxu1 %vm13127_vm2, %v13126_v4 }
0x2599   :  { %11915 = vmatprep.subr.bf16.mxu1 %v13126_v4 }
0x259a   :  { %v3922_v26 = vpack.c.bf16 %v3920_v37, %v3919_v55 }
0x259c   :  { %11900 = vmatmul.mubr.msk.bf16.vlgmr.msra.gmra.mrb[124].mxu0 %vm213_vm1, %v3922_v26 }
0x259d   :  { %11910 = vmatpush3.bf16.xpose.msra.mxu0 %v4088_v31  ;;  %11911 = vmatprep.mubr.msk.bf16.mxu0 %vm13127_vm2, %v13126_v4 }
0x259e   :  { %11921 = vmatprep.subr.bf16.mxu0 %v13126_v4 }
0x259f   :  { %11906 = vmatmul.mubr.msk.bf16.vlgmr.msra.gmra.mrb[124].mxu1 %vm213_vm1, %v4029_v39 }
0x25a0   :  { %11917 = vmatprep.mubr.msk.bf16.mxu1 %vm13127_vm2, %v13126_v4 }
0x25a4   :  { %11912 = vmatmul.mubr.msk.bf16.vlgmr.msra.gmra.mrb[128].mxu0 %vm213_vm1, %v4081_v41 }
0x25a5   :  { %11923 = vmatprep.mubr.msk.bf16.mxu0 %vm13127_vm2, %v13126_v4 }
0x266a   :  { %v14144_v28 = vpop.f32.mrb[120].mxu1 }
0x266b   :  { %v11895_v43 = vpop.f32.mrb[121].mxu1 }
0x266c   :  { %v14146_v18 = vpop.f32.mrb[122].mxu1 }
0x266d   :  { %v11896_v30 = vpop.f32.mrb[123].mxu1 }
0x266f   :  { %v14148_v45 = vpop.f32.mrb[124].mxu0 }
0x2670   :  { %v11901_v63 = vpop.f32.mrb[125].mxu0 }
0x2671   :  { %v14150_v16 = vpop.f32.mrb[126].mxu0 }
0x2672   :  { %v11902_v23 = vpop.f32.mrb[127].mxu0  ;;  %v4072_v24 = vpop.f32.mrb[124].mxu1 }
0x2673   :  { %v11907_v11 = vpop.f32.mrb[125].mxu1  ;;  %v4131_v40 = vsel %vm213_vm1, %v4072_v24, -inf }
0x2674   :  { %4132 = vmax.xlane.f32.xlu1 %v4131_v40  ;;  %v4075_v42 = vpop.f32.mrb[126].mxu1 }
0x2675   :  { %v11908_v14 = vpop.f32.mrb[127].mxu1  ;;  %v4134_v49 = vsel %vm213_vm1, %v4075_v42, -inf }
0x2676   :  { %4135 = vmax.xlane.f32.xlu0 %v4134_v49 }
0x2677   :  { %v4124_v6 = vpop.f32.mrb[128].mxu0 }
0x2678   :  { %v11913_v47 = vpop.f32.mrb[129].mxu0  ;;  %v4137_v22 = vsel %vm213_vm1, %v4124_v6, -inf }
0x2679   :  { %v4127_v46 = vpop.f32.mrb[130].mxu0 }
0x267a   :  { %v11914_v32 = vpop.f32.mrb[131].mxu0  ;;  %v4140_v34 = vsel %vm213_vm1, %v4127_v46, -inf  ;;  %4138 = vmax.xlane.f32.xlu0 %v4137_v22 }
0x267b   :  { %4141 = vmax.xlane.f32.xlu1 %v4140_v34 }
0x268c   :  { %4226 = vrot.lane.b32.xlu1 %v14068_v25, %s13130_s9 }
0x2690   :  { %4297 = vrot.lane.b32.xlu1 %v14066_v38, %s13131_s13  ;;  %4177 = vrot.lane.b32.xlu0 %v14066_v38, %s13130_s9 }
0x2701   :  { %v4133_v44 = vpop.xlane.xlu1 %4132 }
0x2702   :  { %v4143_v19 = vsub.f32 %v4072_v24, %v4133_v44 }
0x2703   :  { %v4136_v20 = vpop.xlane.xlu0 %4135 }
0x2704   :  { %v4147_v5 = vmul.f32 1.442695, %v4143_v19  ;;  %v4144_v21 = vsub.f32 %v4075_v42, %v4136_v20 }
0x2706   :  { %12851 = vpow2.f32 %v4147_v5  ;;  %v4149_v7 = vmul.f32 1.442695, %v4144_v21 }
0x2707   :  { %v4139_v48 = vpop.xlane.xlu0 %4138 }
0x2708   :  { %12853 = vpow2.f32 %v4149_v7  ;;  %v4142_v10 = vpop.xlane.xlu1 %4141  ;;  %v4145_v53 = vsub.f32 %v4124_v6, %v4139_v48 }
0x2709   :  { %v4146_v56 = vsub.f32 %v4127_v46, %v4142_v10 }
0x270a   :  { %v4151_v9 = vmul.f32 1.442695, %v4145_v53 }
0x270b   :  { %v4153_v57 = vmul.f32 1.442695, %v4146_v56  ;;  %v4178_v58 = vpop.permute.xlu0 %4177 }
0x270c   :  { %12855 = vpow2.f32 %v4151_v9  ;;  %v4227_v59 = vpop.permute.xlu1 %4226  ;;  %v4183_v60 = vsel %vm220_vm0, %v4178_v58, 0 }
0x270d   :  { %12857 = vpow2.f32 %v4153_v57  ;;  %v4232_v61 = vsel %vm220_vm0, %v4227_v59, 0  ;;  %11916 = vmatpush3.bf16.msra.mxu1 %v4183_v60 }
0x270e   :  { %11922 = vmatpush3.bf16.msra.mxu0 %v4232_v61  ;;  %11927 = vmatprep.subr.bf16.mxu1 %v13126_v4 }
0x270f   :  { %11933 = vmatprep.subr.bf16.mxu0 %v13126_v4 }
0x2710   :  { %v12852_v62 = vpop.eup %12851  ;;  %v4298_v13 = vpop.permute.xlu1 %4297 }
0x2711   :  { %v4155_v0 = vsel %vm213_vm1, %v12852_v62, 0.0  ;;  %v4303_v63 = vsel %vm213_vm1, %v4298_v13, 0 }
0x2712   :  { %v12854_v3 = vpop.eup %12853  ;;  %4156 = vadd.xlane.f32.xlu0 %v4155_v0 }
0x2713   :  { %v4158_v2 = vsel %vm213_vm1, %v12854_v3, 0.0 }
0x2714   :  { %4159 = vadd.xlane.f32.xlu1 %v4158_v2 }
0x2716   :  { %v12856_v54 = vpop.eup %12855 }
0x2717   :  { %v12858_v50 = vpop.eup %12857  ;;  %v4161_v8 = vsel %vm213_vm1, %v12856_v54, 0.0 }
0x2718   :  { %v4164_v12 = vsel %vm213_vm1, %v12858_v50, 0.0  ;;  %4162 = vadd.xlane.f32.xlu0 %v4161_v8 }
0x2719   :  { %4165 = vadd.xlane.f32.xlu1 %v4164_v12 }
0x272a   :  { %4295 = vrot.lane.b32.xlu1 %v14090_v27, %s13131_s13 }
0x272e   :  { %4348 = vrot.lane.b32.xlu0 %v14068_v25, %s13131_s13 }
0x2732   :  { %4346 = vrot.lane.b32.xlu0 %v14096_v36, %s13131_s13 }
0x279f   :  { %v4157_v15 = vpop.xlane.xlu0 %4156 }
0x27a0   :  { %12859 = vrcp.f32 %v4157_v15 }
0x27a1   :  { %v4160_v17 = vpop.xlane.xlu1 %4159 }
0x27a2   :  { %12861 = vrcp.f32 %v4160_v17 }
0x27a5   :  { %v4163_v37 = vpop.xlane.xlu0 %4162 }
0x27a6   :  { %v4166_v55 = vpop.xlane.xlu1 %4165  ;;  %12863 = vrcp.f32 %v4163_v37 }
0x27a7   :  { %12865 = vrcp.f32 %v4166_v55 }
0x27a9   :  { %v4349_v11 = vpop.permute.xlu0 %4348 }
0x27aa   :  { %v12860_v1 = vpop.eup %12859  ;;  %v4354_v42 = vsel %vm213_vm1, %v4349_v11, 0  ;;  %v4296_v14 = vpop.permute.xlu1 %4295 }
0x27ab   :  { %v4171_v31 = vmul.f32 %v12860_v1, %v12852_v62 }
0x27ac   :  { %v12862_v26 = vpop.eup %12861 }
0x27ad   :  { %v4172_v39 = vmul.f32 %v12862_v26, %v12854_v3  ;;  %v4347_v49 = vpop.permute.xlu0 %4346 }
0x27af   :  { %v4175_v41 = vpack.c.bf16 %v4172_v39, %v4171_v31 }
0x27b0   :  { %v12864_v43 = vpop.eup %12863 }
0x27b1   :  { %v12866_v30 = vpop.eup %12865  ;;  %v4173_v23 = vmul.f32 %v12864_v43, %v12856_v54  ;;  %11918 = vmatmul.mubr.msk.bf16.vlgmr.msra.gmra.mrb[128].mxu1 %vm213_vm1, %v4175_v41 }
0x27b2   :  { %v4174_v24 = vmul.f32 %v12866_v30, %v12858_v50  ;;  %11928 = vmatpush3.bf16.xpose.msra.mxu1 %v4303_v63  ;;  %11929 = vmatprep.mubr.msk.bf16.mxu1 %vm13127_vm2, %v13126_v4 }
0x27b3   :  { %11939 = vmatprep.subr.bf16.mxu1 %v13126_v4 }
0x27b4   :  { %v4176_v40 = vpack.c.bf16 %v4174_v24, %v4173_v23 }
0x27b6   :  { %11924 = vmatmul.mubr.msk.bf16.vlgmr.msra.gmra.mrb[132].mxu0 %vm213_vm1, %v4176_v40 }
0x27b7   :  { %11934 = vmatpush3.bf16.xpose.msra.mxu0 %v4354_v42  ;;  %11935 = vmatprep.mubr.msk.bf16.mxu0 %vm13127_vm2, %v13126_v4 }
0x27b8   :  { %11945 = vmatprep.subr.bf16.mxu0 %v13126_v4 }
0x27b9   :  { %11930 = vmatmul.mubr.msk.bf16.vlgmr.msra.gmra.mrb[132].mxu1 %vm213_vm1, %v4296_v14 }
0x27ba   :  { %11941 = vmatprep.mubr.msk.bf16.mxu1 %vm13127_vm2, %v13126_v4 }
0x27be   :  { %11936 = vmatmul.mubr.msk.bf16.vlgmr.msra.gmra.mrb[136].mxu0 %vm213_vm1, %v4347_v49 }
0x27bf   :  { %11947 = vmatprep.mubr.msk.bf16.mxu0 %vm13127_vm2, %v13126_v4 }
0x2884   :  { %v14192_v6 = vpop.f32.mrb[128].mxu1 }
0x2885   :  { %v11919_v47 = vpop.f32.mrb[129].mxu1 }
0x2886   :  { %v14194_v46 = vpop.f32.mrb[130].mxu1 }
0x2887   :  { %v11920_v22 = vpop.f32.mrb[131].mxu1 }
0x2889   :  { %v14196_v32 = vpop.f32.mrb[132].mxu0 }
0x288a   :  { %v11925_v34 = vpop.f32.mrb[133].mxu0 }
0x288b   :  { %v14198_v44 = vpop.f32.mrb[134].mxu0 }
0x288c   :  { %v11926_v19 = vpop.f32.mrb[135].mxu0  ;;  %v4339_v20 = vpop.f32.mrb[132].mxu1 }
0x288d   :  { %v11931_v5 = vpop.f32.mrb[133].mxu1  ;;  %v4397_v21 = vsel %vm213_vm1, %v4339_v20, -inf }
0x288e   :  { %4398 = vmax.xlane.f32.xlu1 %v4397_v21  ;;  %v4342_v7 = vpop.f32.mrb[134].mxu1 }
0x288f   :  { %v11932_v48 = vpop.f32.mrb[135].mxu1  ;;  %v4400_v10 = vsel %vm213_vm1, %v4342_v7, -inf }
0x2890   :  { %4401 = vmax.xlane.f32.xlu0 %v4400_v10 }
0x2891   :  { %v4390_v53 = vpop.f32.mrb[136].mxu0 }
0x2892   :  { %v11937_v56 = vpop.f32.mrb[137].mxu0  ;;  %v4403_v57 = vsel %vm213_vm1, %v4390_v53, -inf }
0x2893   :  { %v4393_v9 = vpop.f32.mrb[138].mxu0 }
0x2894   :  { %v11938_v58 = vpop.f32.mrb[139].mxu0  ;;  %v4406_v59 = vsel %vm213_vm1, %v4393_v9, -inf  ;;  %4404 = vmax.xlane.f32.xlu0 %v4403_v57 }
0x2895   :  { %4407 = vmax.xlane.f32.xlu1 %v4406_v59 }
0x28a6   :  { %4492 = vrot.lane.b32.xlu1 %v14068_v25, %s13132_s17 }
0x28aa   :  { %4563 = vrot.lane.b32.xlu1 %v14066_v38, %s13133_s21  ;;  %4443 = vrot.lane.b32.xlu0 %v14066_v38, %s13132_s17 }
0x291b   :  { %v4399_v60 = vpop.xlane.xlu1 %4398 }
0x291c   :  { %v4409_v61 = vsub.f32 %v4339_v20, %v4399_v60 }
0x291d   :  { %v4402_v62 = vpop.xlane.xlu0 %4401 }
0x291e   :  { %v4413_v0 = vmul.f32 1.442695, %v4409_v61  ;;  %v4410_v3 = vsub.f32 %v4342_v7, %v4402_v62 }
0x2920   :  { %12867 = vpow2.f32 %v4413_v0  ;;  %v4415_v2 = vmul.f32 1.442695, %v4410_v3 }
0x2921   :  { %v4405_v54 = vpop.xlane.xlu0 %4404 }
0x2922   :  { %12869 = vpow2.f32 %v4415_v2  ;;  %v4408_v50 = vpop.xlane.xlu1 %4407  ;;  %v4411_v8 = vsub.f32 %v4390_v53, %v4405_v54 }
0x2923   :  { %v4412_v12 = vsub.f32 %v4393_v9, %v4408_v50 }
0x2924   :  { %v4417_v13 = vmul.f32 1.442695, %v4411_v8 }
0x2925   :  { %v4419_v15 = vmul.f32 1.442695, %v4412_v12  ;;  %v4444_v17 = vpop.permute.xlu0 %4443 }
0x2926   :  { %12871 = vpow2.f32 %v4417_v13  ;;  %v4493_v37 = vpop.permute.xlu1 %4492  ;;  %v4449_v55 = vsel %vm220_vm0, %v4444_v17, 0 }
0x2927   :  { %12873 = vpow2.f32 %v4419_v15  ;;  %v4498_v1 = vsel %vm220_vm0, %v4493_v37, 0  ;;  %11940 = vmatpush3.bf16.msra.mxu1 %v4449_v55 }
0x2928   :  { %11946 = vmatpush3.bf16.msra.mxu0 %v4498_v1  ;;  %11951 = vmatprep.subr.bf16.mxu1 %v13126_v4 }
0x2929   :  { %11957 = vmatprep.subr.bf16.mxu0 %v13126_v4 }
0x292a   :  { %v12868_v26 = vpop.eup %12867  ;;  %v4564_v24 = vpop.permute.xlu1 %4563 }
0x292b   :  { %v4421_v31 = vsel %vm213_vm1, %v12868_v26, 0.0  ;;  %v4569_v5 = vsel %vm213_vm1, %v4564_v24, 0 }
0x292c   :  { %v12870_v39 = vpop.eup %12869  ;;  %4422 = vadd.xlane.f32.xlu0 %v4421_v31 }
0x292d   :  { %v4424_v41 = vsel %vm213_vm1, %v12870_v39, 0.0 }
0x292e   :  { %4425 = vadd.xlane.f32.xlu1 %v4424_v41 }
0x2930   :  { %v12872_v43 = vpop.eup %12871 }
0x2931   :  { %v12874_v30 = vpop.eup %12873  ;;  %v4427_v63 = vsel %vm213_vm1, %v12872_v43, 0.0 }
0x2932   :  { %v4430_v23 = vsel %vm213_vm1, %v12874_v30, 0.0  ;;  %4428 = vadd.xlane.f32.xlu0 %v4427_v63 }
0x2933   :  { %4431 = vadd.xlane.f32.xlu1 %v4430_v23 }
0x2944   :  { %4561 = vrot.lane.b32.xlu1 %v14090_v27, %s13133_s21 }
0x2948   :  { %4614 = vrot.lane.b32.xlu0 %v14068_v25, %s13133_s21 }
0x294c   :  { %4612 = vrot.lane.b32.xlu0 %v14096_v36, %s13133_s21 }
0x29b9   :  { %v4423_v11 = vpop.xlane.xlu0 %4422 }
0x29ba   :  { %12875 = vrcp.f32 %v4423_v11 }
0x29bb   :  { %v4426_v40 = vpop.xlane.xlu1 %4425 }
0x29bc   :  { %12877 = vrcp.f32 %v4426_v40 }
0x29bf   :  { %v4429_v42 = vpop.xlane.xlu0 %4428 }
0x29c0   :  { %v4432_v14 = vpop.xlane.xlu1 %4431  ;;  %12879 = vrcp.f32 %v4429_v42 }
0x29c1   :  { %12881 = vrcp.f32 %v4432_v14 }
0x29c3   :  { %v4615_v7 = vpop.permute.xlu0 %4614 }
0x29c4   :  { %v12876_v49 = vpop.eup %12875  ;;  %v4620_v10 = vsel %vm213_vm1, %v4615_v7, 0  ;;  %v4562_v53 = vpop.permute.xlu1 %4561 }
0x29c5   :  { %v4437_v22 = vmul.f32 %v12876_v49, %v12868_v26 }
0x29c6   :  { %v12878_v47 = vpop.eup %12877 }
0x29c7   :  { %v4438_v34 = vmul.f32 %v12878_v47, %v12870_v39  ;;  %v4613_v56 = vpop.permute.xlu0 %4612 }
0x29c9   :  { %v4441_v27 = vpack.c.bf16 %v4438_v34, %v4437_v22 }
0x29ca   :  { %v12880_v19 = vpop.eup %12879 }
0x29cb   :  { %v12882_v20 = vpop.eup %12881  ;;  %v4439_v21 = vmul.f32 %v12880_v19, %v12872_v43  ;;  %11942 = vmatmul.mubr.msk.bf16.vlgmr.msra.gmra.mrb[136].mxu1 %vm213_vm1, %v4441_v27 }
0x29cc   :  { %v4440_v36 = vmul.f32 %v12882_v20, %v12874_v30  ;;  %11952 = vmatpush3.bf16.xpose.msra.mxu1 %v4569_v5  ;;  %11953 = vmatprep.mubr.msk.bf16.mxu1 %vm13127_vm2, %v13126_v4 }
0x29cd   :  { %11963 = vmatprep.subr.bf16.mxu1 %v13126_v4 }
0x29ce   :  { %v4442_v48 = vpack.c.bf16 %v4440_v36, %v4439_v21 }
0x29d0   :  { %11948 = vmatmul.mubr.msk.bf16.vlgmr.msra.gmra.mrb[140].mxu0 %vm213_vm1, %v4442_v48 }
0x29d1   :  { %11958 = vmatpush3.bf16.xpose.msra.mxu0 %v4620_v10  ;;  %11959 = vmatprep.mubr.msk.bf16.mxu0 %vm13127_vm2, %v13126_v4 }
0x29d2   :  { %11969 = vmatprep.subr.bf16.mxu0 %v13126_v4 }
0x29d3   :  { %11954 = vmatmul.mubr.msk.bf16.vlgmr.msra.gmra.mrb[140].mxu1 %vm213_vm1, %v4562_v53 }
0x29d4   :  { %11965 = vmatprep.mubr.msk.bf16.mxu1 %vm13127_vm2, %v13126_v4 }
0x29d8   :  { %11960 = vmatmul.mubr.msk.bf16.vlgmr.msra.gmra.mrb[144].mxu0 %vm213_vm1, %v4613_v56 }
0x29d9   :  { %11971 = vmatprep.mubr.msk.bf16.mxu0 %vm13127_vm2, %v13126_v4 }
0x2a9e   :  { %v4485_v9 = vpop.f32.mrb[136].mxu1 }
0x2a9f   :  { %v11943_v57 = vpop.f32.mrb[137].mxu1 }
0x2aa0   :  { %v4488_v58 = vpop.f32.mrb[138].mxu1 }
0x2aa1   :  { %v11944_v59 = vpop.f32.mrb[139].mxu1 }
0x2aa3   :  { %v4534_v60 = vpop.f32.mrb[140].mxu0 }
0x2aa4   :  { %v11949_v61 = vpop.f32.mrb[141].mxu0 }
0x2aa5   :  { %v4537_v62 = vpop.f32.mrb[142].mxu0  ;;  %v12674_v61 = vld [vmem:[%s15382_s14 + $0x8] sm:$0xff]  }
0x2aa6   :  { %v11950_v0 = vpop.f32.mrb[143].mxu0  ;;  %v4605_v3 = vpop.f32.mrb[140].mxu1 }
0x2aa7   :  { %v11955_v2 = vpop.f32.mrb[141].mxu1  ;;  %v4663_v54 = vsel %vm213_vm1, %v4605_v3, -inf }
0x2aa8   :  { %4664 = vmax.xlane.f32.xlu1 %v4663_v54  ;;  %v4608_v50 = vpop.f32.mrb[142].mxu1 }
0x2aa9   :  { %v11956_v8 = vpop.f32.mrb[143].mxu1  ;;  %v4666_v12 = vsel %vm213_vm1, %v4608_v50, -inf }
0x2aaa   :  { %4667 = vmax.xlane.f32.xlu0 %v4666_v12 }
0x2aab   :  { %v4656_v13 = vpop.f32.mrb[144].mxu0 }
0x2aac   :  { %v11961_v15 = vpop.f32.mrb[145].mxu0  ;;  %v4669_v37 = vsel %vm213_vm1, %v4656_v13, -inf }
0x2aad   :  { %v4659_v17 = vpop.f32.mrb[146].mxu0 }
0x2aae   :  { %v11962_v55 = vpop.f32.mrb[147].mxu0  ;;  %v4672_v1 = vsel %vm213_vm1, %v4659_v17, -inf  ;;  %4670 = vmax.xlane.f32.xlu0 %v4669_v37 }
0x2aaf   :  { %4673 = vmax.xlane.f32.xlu1 %v4672_v1 }
0x2b35   :  { %v4665_v26 = vpop.xlane.xlu1 %4664 }
0x2b36   :  { %v4675_v31 = vsub.f32 %v4605_v3, %v4665_v26 }
0x2b37   :  { %v4668_v39 = vpop.xlane.xlu0 %4667 }
0x2b38   :  { %v4679_v41 = vmul.f32 1.442695, %v4675_v31  ;;  %v4676_v43 = vsub.f32 %v4608_v50, %v4668_v39 }
0x2b3a   :  { %12883 = vpow2.f32 %v4679_v41  ;;  %v4681_v30 = vmul.f32 1.442695, %v4676_v43 }
0x2b3b   :  { %v4671_v63 = vpop.xlane.xlu0 %4670 }
0x2b3c   :  { %12885 = vpow2.f32 %v4681_v30  ;;  %v4674_v23 = vpop.xlane.xlu1 %4673  ;;  %v4677_v24 = vsub.f32 %v4656_v13, %v4671_v63 }
0x2b3d   :  { %v4678_v11 = vsub.f32 %v4659_v17, %v4674_v23  ;;  %v4024_v23 = vadd.f32 %v14146_v18, %v14073_v29 }
0x2b3e   :  { %v4683_v40 = vmul.f32 1.442695, %v4677_v24 }
0x2b3f   :  { %v4685_v42 = vmul.f32 1.442695, %v4678_v11 }
0x2b40   :  { %12887 = vpow2.f32 %v4683_v40 }
0x2b41   :  { %12889 = vpow2.f32 %v4685_v42 }
0x2b44   :  { %v12884_v14 = vpop.eup %12883 }
0x2b45   :  { %v4687_v49 = vsel %vm213_vm1, %v12884_v14, 0.0 }
0x2b46   :  { %v12886_v47 = vpop.eup %12885  ;;  %4688 = vadd.xlane.f32.xlu0 %v4687_v49 }
0x2b47   :  { %v4690_v22 = vsel %vm213_vm1, %v12886_v47, 0.0 }
0x2b48   :  { %4691 = vadd.xlane.f32.xlu1 %v4690_v22 }
0x2b4a   :  { %v12888_v34 = vpop.eup %12887 }
0x2b4b   :  { %v12890_v27 = vpop.eup %12889  ;;  %v4693_v19 = vsel %vm213_vm1, %v12888_v34, 0.0 }
0x2b4c   :  { %v4696_v20 = vsel %vm213_vm1, %v12890_v27, 0.0  ;;  %4694 = vadd.xlane.f32.xlu0 %v4693_v19 }
0x2b4d   :  { %4697 = vadd.xlane.f32.xlu1 %v4696_v20  ;;  %v4026_v20 = vadd.f32 %v14150_v16, %v14082_v51 }
0x2b5e   :  { %4758 = vrot.lane.b32.xlu1 %v14068_v25, %s13134_s22 }
0x2b62   :  { %4279 = vrot.lane.b32.xlu1 %v14192_v6, %s13135_s23  ;;  %4709 = vrot.lane.b32.xlu0 %v14066_v38, %s13134_s22 }
0x2b66   :  { %4283 = vrot.lane.b32.xlu1 %v14196_v32, %s13135_s23  ;;  %4281 = vrot.lane.b32.xlu0 %v14194_v46, %s13135_s23 }
0x2b6a   :  { %4545 = vrot.lane.b32.xlu1 %v4485_v9, %s13136_s26  ;;  %4285 = vrot.lane.b32.xlu0 %v14198_v44, %s13135_s23 }
0x2b6e   :  { %4549 = vrot.lane.b32.xlu1 %v4534_v60, %s13136_s26  ;;  %4547 = vrot.lane.b32.xlu0 %v4488_v58, %s13136_s26  ;;  %v12673_v60 = vld [vmem:[%s15382_s14] sm:$0xff]   ;;  %s15398_s14 = sld [smem:[#allocation25_spill]] }
0x2b72   :  { %4551 = vrot.lane.b32.xlu0 %v4537_v62, %s13136_s26 }
0x2bd3   :  { %v4689_v25 = vpop.xlane.xlu0 %4688 }
0x2bd4   :  { %12891 = vrcp.f32 %v4689_v25 }
0x2bd5   :  { %v4692_v38 = vpop.xlane.xlu1 %4691 }
0x2bd6   :  { %12893 = vrcp.f32 %v4692_v38 }
0x2bd9   :  { %v4695_v6 = vpop.xlane.xlu0 %4694 }
0x2bda   :  { %v4698_v32 = vpop.xlane.xlu1 %4697  ;;  %12895 = vrcp.f32 %v4695_v6 }
0x2bdb   :  { %12897 = vrcp.f32 %v4698_v32 }
0x2bdd   :  { %v4710_v46 = vpop.permute.xlu0 %4709 }
0x2bde   :  { %v12892_v5 = vpop.eup %12891  ;;  %v4759_v21 = vpop.permute.xlu1 %4758  ;;  %v4715_v44 = vsel %vm220_vm0, %v4710_v46, 0 }
0x2bdf   :  { %v4764_v36 = vsel %vm220_vm0, %v4759_v21, 0  ;;  %11964 = vmatpush3.bf16.msra.mxu1 %v4715_v44  ;;  %v4703_v48 = vmul.f32 %v12892_v5, %v12884_v14 }
0x2be0   :  { %v12894_v7 = vpop.eup %12893  ;;  %11970 = vmatpush3.bf16.msra.mxu0 %v4764_v36  ;;  %11975 = vmatprep.subr.bf16.mxu1 %v12673_v60  ;;  %v12675_v36 = vld [vmem:[%s15383_s19] sm:$0xff]  }
0x2be1   :  { %v4704_v10 = vmul.f32 %v12894_v7, %v12886_v47  ;;  %v4282_v15 = vpop.permute.xlu0 %4281  ;;  %11983 = vmatprep.subr.bf16.mxu0 %v12675_v36  ;;  %v12677_v7 = vld [vmem:[%s15384_s24] sm:$0xff]  }
0x2be2   :  { %v4280_v13 = vpop.permute.xlu1 %4279  ;;  %v4292_v41 = vadd.f32 %v4282_v15, %v14073_v29 }
0x2be3   :  { %v4707_v53 = vpack.c.bf16 %v4704_v10, %v4703_v48  ;;  %v4291_v39 = vadd.f32 %v4280_v13, %v14079_v33  ;;  %v4936_v48 = vlaneseq  ;;  %v12678_v10 = vld [vmem:[%s15384_s24 + $0x8] sm:$0xff]   ;;  %s15400_s24 = sld [smem:[#allocation24_spill]] }
0x2be4   :  { %v12896_v56 = vpop.eup %12895  ;;  %v4828_v42 = vsel %vm213_vm1, %v4024_v23, %v4292_v41 }
0x2be5   :  { %v12898_v9 = vpop.eup %12897  ;;  %v4705_v57 = vmul.f32 %v12896_v56, %v12888_v34  ;;  %11966 = vmatmul.mubr.msk.bf16.vlgmr.msra.gmra.mrb[144].mxu1 %vm213_vm1, %v4707_v53  ;;  %v4286_v37 = vpop.permute.xlu0 %4285  ;;  %v14319_v53 = vshrl.u32 %v4936_v48, 7  ;;  %v4928_v56 = vld [vmem:[%s15385_s30] sm:$0x1]  ;;  %s15401_s30 = sld [smem:[#allocation28_spill]] }
0x2be6   :  { %v4706_v58 = vmul.f32 %v12898_v9, %v12890_v27  ;;  %11976 = vmatpush3.bf16.msra.mxu1 %v12673_v60  ;;  %v4284_v17 = vpop.permute.xlu1 %4283  ;;  %v4294_v47 = vadd.f32 %v4286_v37, %v14082_v51 }
0x2be7   :  { %11977 = vmatprep.subr.bf16.mxu1 %v12674_v61  ;;  %v4293_v49 = vadd.f32 %v4284_v17, %v14086_v35  ;;  %v4938_v9 = vsub.s32 0, %v14319_v53 }
0x2be8   :  { %v4708_v59 = vpack.c.bf16 %v4706_v58, %v4705_v57  ;;  %v4830_v46 = vsel %vm213_vm1, %v4026_v20, %v4294_v47  ;;  %v4919_v57 = vld [vmem:[%s15386_s6] sm:$0x1]  ;;  %s15402_s6 = sld [smem:[#allocation29_spill]] }
0x2be9   :  { %v4548_v1 = vpop.permute.xlu0 %4547  ;;  %v14324_v58 = vrot.slane %v4928_v56, %v4938_v9 }
0x2bea   :  { %11972 = vmatmul.mubr.msk.bf16.vlgmr.msra.gmra.mrb[148].mxu0 %vm213_vm1, %v4708_v59  ;;  %11978 = vmatpush3.bf16.msra.mxu1 %v12674_v61  ;;  %v4546_v55 = vpop.permute.xlu1 %4545  ;;  %v4558_v30 = vadd.f32 %v4548_v1, %v14073_v29 }
0x2beb   :  { %11991 = vmatprep.subr.bf16.mxu1 %v13126_v4  ;;  %v4557_v43 = vadd.f32 %v4546_v55, %v14079_v33  ;;  %11984 = vmatpush3.bf16.msra.mxu0 %v12675_v36 }
0x2bed   :  { %v4552_v31 = vpop.permute.xlu0 %4551 }
0x2bee   :  { %v4550_v26 = vpop.permute.xlu1 %4549  ;;  %v4560_v18 = vadd.f32 %v4552_v31, %v14082_v51 }
0x2bef   :  { %v4559_v34 = vadd.f32 %v4550_v26, %v14086_v35 }
0x2bf0   :  { %v4834_v21 = vsel %vm422_vm4, %v4830_v46, %v4560_v18 }
0x2cb8   :  { %v4751_v62 = vpop.f32.mrb[144].mxu1 }
0x2cb9   :  { %4811 = vrot.lane.b32.xlu1 %v4751_v62, %s13137_s28  ;;  %v11967_v0 = vpop.f32.mrb[145].mxu1 }
0x2cba   :  { %v4754_v3 = vpop.f32.mrb[146].mxu1 }
0x2cbb   :  { %4813 = vrot.lane.b32.xlu0 %v4754_v3, %s13137_s28  ;;  %v11968_v2 = vpop.f32.mrb[147].mxu1 }
0x2cbd   :  { %v4800_v54 = vpop.f32.mrb[148].mxu0 }
0x2cbe   :  { %v11973_v50 = vpop.f32.mrb[149].mxu0  ;;  %4815 = vrot.lane.b32.xlu1 %v4800_v54, %s13137_s28 }
0x2cbf   :  { %v4803_v8 = vpop.f32.mrb[150].mxu0 }
0x2cc0   :  { %v11974_v12 = vpop.f32.mrb[151].mxu0  ;;  %4817 = vrot.lane.b32.xlu0 %v4803_v8, %s13137_s28 }
0x2cc2   :  { %4853 = vrot.lane.b32.xlu1 %v14058_v52, %s13138_s1  ;;  %v4023_v52 = vadd.f32 %v14144_v28, %v14079_v33  ;;  %v4832_v28 = vsel %vm422_vm4, %v4828_v42, %v4558_v30 }
0x2cc4   :  { %v4827_v40 = vsel %vm213_vm1, %v4023_v52, %v4291_v39  ;;  %4952 = vrot.lane.b32.xlu0 %v14324_v58, %s13128_s0 }
0x2cc5   :  { %v4831_v22 = vsel %vm422_vm4, %v4827_v40, %v4557_v43 }
0x2d2b   :  { %v4812_v63 = vpop.permute.xlu1 %4811 }
0x2d2c   :  { %v4823_v24 = vadd.f32 %v4812_v63, %v14079_v33 }
0x2d2d   :  { %v4814_v11 = vpop.permute.xlu0 %4813 }
0x2d2e   :  { %v4824_v14 = vadd.f32 %v4814_v11, %v14073_v29  ;;  %v4835_v33 = vsel %vm1211_vm5, %v4831_v22, %v4823_v24  ;;  %v4025_v29 = vadd.f32 %v14148_v45, %v14086_v35 }
0x2d30   :  { %v4836_v27 = vsel %vm1211_vm5, %v4832_v28, %v4824_v14  ;;  %v4816_v19 = vpop.permute.xlu1 %4815  ;;  %v4829_v32 = vsel %vm213_vm1, %v4025_v29, %v4293_v49 }
0x2d31   :  { %v4839_v25 = vpack.c.bf16 %v4836_v27, %v4835_v33  ;;  %v4825_v38 = vadd.f32 %v4816_v19, %v14086_v35  ;;  %v4833_v45 = vsel %vm422_vm4, %v4829_v32, %v4559_v34 }
0x2d32   :  { %v4818_v6 = vpop.permute.xlu0 %4817 }
0x2d33   :  { %v4826_v5 = vadd.f32 %v4818_v6, %v14082_v51  ;;  %11979 = vmatprep.mubr.msk.bf16.mxu1 %vm288_vm3, %v4839_v25  ;;  %v4837_v16 = vsel %vm1211_vm5, %v4833_v45, %v4825_v38  ;;  %v12676_v51 = vld [vmem:[%s15383_s19 + $0x8] sm:$0xff]   ;;  %s15399_s19 = sld [smem:[#allocation27_spill]] }
0x2d34   :  { %11985 = vmatprep.subr.bf16.mxu0 %v12676_v51  ;;  %v4854_v59 = vpop.permute.xlu1 %4853 }
0x2d35   :  { %v4838_v35 = vsel %vm1211_vm5, %v4834_v21, %v4826_v5  ;;  %11986 = vmatpush3.bf16.msra.mxu0 %v12676_v51 }
0x2d36   :  { %v4840_v44 = vpack.c.bf16 %v4838_v35, %v4837_v16  ;;  %11999 = vmatprep.subr.bf16.mxu0 %v13126_v4  ;;  %v4953_v63 = vpop.permute.xlu0 %4952 }
0x2d38   :  { %11980 = vmatmul.mubr.msk.bf16.vlgmr.msra.gmra.mrb[148].mxu1 %vm288_vm3, %v4840_v44 }
0x2d39   :  { %11995 = vmatprep.mubr.msk.bf16.mxu1 %vm13127_vm2, %v13126_v4  ;;  %11992 = vmatpush3.bf16.msra.mxu1 %v12677_v7 }
0x2d3a   :  { %11993 = vmatprep.subr.bf16.mxu1 %v13126_v4 }
0x2d3d   :  { %11994 = vmatpush3.bf16.msra.mxu1 %v12678_v10 }
0x2d3e   :  { %12005 = vmatprep.subr.bf16.mxu1 %v13126_v4 }
0x2d40   :  { %11996 = vmatmul.mubr.msk.bf16.vlgmr.msra.gmra.mrb[152].mxu1 %vm288_vm3, %v4919_v57 }
0x2d41   :  { %12007 = vmatprep.mubr.msk.bf16.mxu1 %vm13127_vm2, %v13126_v4 }
0x2e0b   :  { %v11981_v60 = vpop.f32.mrb[148].mxu1 }
0x2e0c   :  { %v4905_v61 = vadd.f32 %v11981_v60, %v4854_v59  ;;  %v4896_v62 = vpop.f32.mrb[149].mxu1 }
0x2e0d   :  { %v4897_v0 = vadd.f32 %v4896_v62, %v4854_v59  ;;  %v11982_v3 = vpop.f32.mrb[150].mxu1 }
0x2e0e   :  { %v4913_v2 = vmax.f32 %v4905_v61, 0.0  ;;  %v4908_v54 = vadd.f32 %v11982_v3, %v4854_v59  ;;  %v4899_v50 = vpop.f32.mrb[151].mxu1 }
0x2e0f   :  { %v4911_v8 = vmax.f32 %v4897_v0, 0.0  ;;  %v4900_v12 = vadd.f32 %v4899_v50, %v4854_v59 }
0x2e10   :  { %v4914_v13 = vmax.f32 %v4908_v54, 0.0  ;;  %v4917_v17 = vadd.f32 %v4913_v2, %v4837_v16 }
0x2e11   :  { %v4912_v15 = vmax.f32 %v4900_v12, 0.0  ;;  %v4915_v55 = vadd.f32 %v4911_v8, %v4835_v33 }
0x2e12   :  { %v4918_v37 = vadd.f32 %v4914_v13, %v4838_v35 }
0x2e13   :  { %v4916_v1 = vadd.f32 %v4912_v15, %v4836_v27  ;;  %v5061_v39 = vpop.f32.mrb[152].mxu1 }
0x2e14   :  { %v4934_v26 = vpack.c.bf16 %v4918_v37, %v4917_v17  ;;  %v11997_v41 = vpop.f32.mrb[153].mxu1  ;;  %v14340_v28 = vadd.f32 %v5061_v39, %v4928_v56 }
0x2e15   :  { %v4933_v31 = vpack.c.bf16 %v4916_v1, %v4915_v55  ;;  %v5064_v43 = vpop.f32.mrb[154].mxu1 }
0x2e16   :  { %v11998_v30 = vpop.f32.mrb[155].mxu1  ;;  %v14350_v33 = vpack.c.bf16 %v14340_v28, %v14340_v28 }
0x2e17   :  { %11987 = vmatprep.mubr.msk.bf16.mxu0 %vm288_vm3, %v4933_v31 }
0x2e18   :  { %11988 = vmatmul.mubr.msk.bf16.vlgmr.msra.gmra.mrb[152].mxu0 %vm288_vm3, %v4934_v26 }
0x2e19   :  { %12001 = vmatprep.mubr.msk.bf16.mxu0 %vm13127_vm2, %v13126_v4 }
0x2eeb   :  { %v11989_v52 = vpop.f32.mrb[152].mxu0 }
0x2eec   :  { %v4995_v23 = vpop.f32.mrb[153].mxu0  ;;  %v5004_v11 = vadd.f32 %v11989_v52, %v4953_v63 }
0x2eed   :  { %v11990_v24 = vpop.f32.mrb[154].mxu0  ;;  %v4996_v14 = vadd.f32 %v4995_v23, %v4953_v63 }
0x2eee   :  { %v5007_v40 = vadd.f32 %v11990_v24, %v4953_v63  ;;  %v4998_v42 = vpop.f32.mrb[155].mxu0 }
0x2eef   :  { %v4999_v49 = vadd.f32 %v4998_v42, %v4953_v63 }
0x2ef0   :  { %v14336_v47 = vpack.c.bf16 %v5007_v40, %v5004_v11 }
0x2ef1   :  { %v14338_v22 = vpack.c.bf16 %v4999_v49, %v4996_v14 }
0x2ef2   :  { %v5115_v34 = vsel %vm213_vm1, %v14336_v47, 0 }
0x2ef3   :  { %12006 = vmatpush3.bf16.xpose.msra.mxu1 %v5115_v34  ;;  %v5072_v18 = vsel %vm213_vm1, %v14338_v22, 0 }
0x2ef4   :  { %12000 = vmatpush3.bf16.xpose.msra.mxu0 %v5072_v18  ;;  %12017 = vmatprep.subr.bf16.mxu1 %v13126_v4 }
0x2ef5   :  { %12011 = vmatprep.subr.bf16.mxu0 %v13126_v4 }
0x2efa   :  { %12008 = vmatmul.mubr.msk.bf16.vlgmr.msra.gmra.mrb[156].mxu1 %vm213_vm1, %v14350_v33 }
0x2efb   :  { %12002 = vmatmul.mubr.msk.bf16.vlgmr.msra.gmra.mrb[156].mxu0 %vm213_vm1, %v14350_v33  ;;  %12019 = vmatprep.mubr.msk.bf16.mxu1 %vm13127_vm2, %v13126_v4 }
0x2efc   :  { %12013 = vmatprep.mubr.msk.bf16.mxu0 %vm13127_vm2, %v13126_v4 }
0x2fcd   :  { %v5151_v27 = vpop.f32.mrb[156].mxu1 }
0x2fce   :  { %v5108_v19 = vpop.f32.mrb[156].mxu0  ;;  %v12009_v29 = vpop.f32.mrb[157].mxu1  ;;  %v5161_v20 = vsel %vm5157_vm6, %v5151_v27, -inf }
0x2fcf   :  { %5162 = vmax.xlane.f32.xlu1 %v5161_v20  ;;  %v12003_v25 = vpop.f32.mrb[157].mxu0  ;;  %v5154_v38 = vpop.f32.mrb[158].mxu1  ;;  %v5158_v6 = vsel %vm5157_vm6, %v5108_v19, -inf }
0x2fd0   :  { %v12010_v32 = vpop.f32.mrb[159].mxu1  ;;  %5159 = vmax.xlane.f32.xlu0 %v5158_v6  ;;  %v5111_v46 = vpop.f32.mrb[158].mxu0 }
0x2fd1   :  { %v12004_v5 = vpop.f32.mrb[159].mxu0 }
0x2fe0   :  { %5183 = vrot.lane.b32.xlu1 %v14338_v22, %s13128_s0 }
0x2fe4   :  { %5329 = vrot.lane.b32.xlu1 %v14336_v47, %s13129_s5 }
0x2fe6   :  { %5230 = vrot.lane.b32.xlu0 %v14336_v47, %s13128_s0 }
0x305c   :  { %v5163_v45 = vpop.xlane.xlu1 %5162 }
0x305d   :  { %v5165_v21 = vsub.f32 %v5151_v27, %v5163_v45  ;;  %v5160_v16 = vpop.xlane.xlu0 %5159 }
0x305e   :  { %v5164_v35 = vsub.f32 %v5108_v19, %v5160_v16 }
0x305f   :  { %v5168_v44 = vmul.f32 1.442695, %v5165_v21 }
0x3060   :  { %v5166_v36 = vmul.f32 1.442695, %v5164_v35  ;;  %v5184_v51 = vpop.permute.xlu1 %5183 }
0x3061   :  { %12899 = vpow2.f32 %v5168_v44  ;;  %12012 = vmatpush3.bf16.msra.mxu0 %v5184_v51  ;;  %v5231_v7 = vpop.permute.xlu0 %5230 }
0x3062   :  { %12901 = vpow2.f32 %v5166_v36  ;;  %12018 = vmatpush3.bf16.msra.mxu1 %v5231_v7  ;;  %12023 = vmatprep.subr.bf16.mxu0 %v13126_v4 }
0x3063   :  { %12029 = vmatprep.subr.bf16.mxu1 %v13126_v4 }
0x3064   :  { %v5330_v57 = vpop.permute.xlu1 %5329 }
0x3065   :  { %v5332_v8 = vsel %vm213_vm1, %v5330_v57, 0 }
0x306b   :  { %v12900_v48 = vpop.eup %12899 }
0x306c   :  { %v12902_v10 = vpop.eup %12901  ;;  %v5173_v56 = vsel %vm5157_vm6, %v12900_v48, 0.0 }
0x306d   :  { %5174 = vadd.xlane.f32.xlu0 %v5173_v56  ;;  %v5170_v9 = vsel %vm5157_vm6, %v12902_v10, 0.0 }
0x306e   :  { %5171 = vadd.xlane.f32.xlu1 %v5170_v9 }
0x307f   :  { %5279 = vrot.lane.b32.xlu1 %v14350_v33, %s13129_s5 }
0x3083   :  { %5281 = vrot.lane.b32.xlu0 %v14338_v22, %s13129_s5 }
0x30fa   :  { %v5175_v59 = vpop.xlane.xlu0 %5174 }
0x30fb   :  { %12903 = vrcp.f32 %v5175_v59  ;;  %v5172_v60 = vpop.xlane.xlu1 %5171 }
0x30fc   :  { %12905 = vrcp.f32 %v5172_v60 }
0x30fe   :  { %v5282_v2 = vpop.permute.xlu0 %5281 }
0x30ff   :  { %v5287_v12 = vsel %vm213_vm1, %v5282_v2, 0  ;;  %v5280_v13 = vpop.permute.xlu1 %5279 }
0x3105   :  { %v12904_v61 = vpop.eup %12903 }
0x3106   :  { %v12906_v62 = vpop.eup %12905  ;;  %v5179_v0 = vmul.f32 %v12904_v61, %v12900_v48 }
0x3107   :  { %v5178_v3 = vmul.f32 %v12906_v62, %v12902_v10 }
0x3108   :  { %v5181_v54 = vpack.c.bf16 %v5179_v0, %v5179_v0 }
0x3109   :  { %v5180_v50 = vpack.c.bf16 %v5178_v3, %v5178_v3 }
0x310a   :  { %12020 = vmatmul.mubr.msk.bf16.vlgmr.msra.gmra.mrb[160].mxu1 %vm422_vm4, %v5181_v54 }
0x310b   :  { %12030 = vmatpush3.bf16.xpose.msra.mxu1 %v5332_v8  ;;  %12014 = vmatmul.mubr.msk.bf16.vlgmr.msra.gmra.mrb[160].mxu0 %vm422_vm4, %v5180_v50 }
0x310c   :  { %12024 = vmatpush3.bf16.xpose.msra.mxu0 %v5287_v12  ;;  %12031 = vmatprep.mubr.msk.bf16.mxu1 %vm13127_vm2, %v13126_v4 }
0x310d   :  { %12025 = vmatprep.mubr.msk.bf16.mxu0 %vm13127_vm2, %v13126_v4  ;;  %12041 = vmatprep.subr.bf16.mxu1 %v13126_v4 }
0x310e   :  { %12035 = vmatprep.subr.bf16.mxu0 %v13126_v4 }
0x3112   :  { %12032 = vmatmul.mubr.msk.bf16.vlgmr.msra.gmra.mrb[164].mxu1 %vm213_vm1, %v5280_v13 }
0x3113   :  { %12026 = vmatmul.mubr.msk.bf16.vlgmr.msra.gmra.mrb[164].mxu0 %vm213_vm1, %v5280_v13  ;;  %12043 = vmatprep.mubr.msk.bf16.mxu1 %vm13127_vm2, %v13126_v4 }
0x3114   :  { %12037 = vmatprep.mubr.msk.bf16.mxu0 %vm13127_vm2, %v13126_v4 }
0x31dd   :  { %v14392_v15 = vpop.f32.mrb[160].mxu1 }
0x31de   :  { %v14394_v17 = vpop.f32.mrb[160].mxu0  ;;  %v12021_v37 = vpop.f32.mrb[161].mxu1 }
0x31df   :  { %v12015_v55 = vpop.f32.mrb[161].mxu0  ;;  %v5273_v1 = vpop.f32.mrb[162].mxu1 }
0x31e0   :  { %v5226_v26 = vpop.f32.mrb[162].mxu0  ;;  %v12022_v31 = vpop.f32.mrb[163].mxu1 }
0x31e1   :  { %v12016_v39 = vpop.f32.mrb[163].mxu0 }
0x31e5   :  { %v5368_v41 = vpop.f32.mrb[164].mxu1 }
0x31e6   :  { %v5323_v43 = vpop.f32.mrb[164].mxu0  ;;  %v12033_v30 = vpop.f32.mrb[165].mxu1  ;;  %v5377_v63 = vsel %vm5157_vm6, %v5368_v41, -inf }
0x31e7   :  { %5378 = vmax.xlane.f32.xlu0 %v5377_v63  ;;  %v12027_v52 = vpop.f32.mrb[165].mxu0  ;;  %v5371_v23 = vpop.f32.mrb[166].mxu1  ;;  %v5374_v24 = vsel %vm5157_vm6, %v5323_v43, -inf }
0x31e8   :  { %v12034_v11 = vpop.f32.mrb[167].mxu1  ;;  %5375 = vmax.xlane.f32.xlu1 %v5374_v24  ;;  %v5326_v40 = vpop.f32.mrb[166].mxu0 }
0x31e9   :  { %v12028_v42 = vpop.f32.mrb[167].mxu0 }
0x31f9   :  { %5444 = vrot.lane.b32.xlu1 %v14336_v47, %s13130_s9 }
0x31fd   :  { %5550 = vrot.lane.b32.xlu1 %v14336_v47, %s13131_s13 }
0x3201   :  { %5502 = vrot.lane.b32.xlu1 %v14338_v22, %s13131_s13 }
0x3274   :  { %v5379_v14 = vpop.xlane.xlu0 %5378 }
0x3275   :  { %v5381_v49 = vsub.f32 %v5368_v41, %v5379_v14  ;;  %v5376_v34 = vpop.xlane.xlu1 %5375 }
0x3276   :  { %v5380_v18 = vsub.f32 %v5323_v43, %v5376_v34 }
0x3277   :  { %v5384_v27 = vmul.f32 1.442695, %v5381_v49 }
0x3278   :  { %v5382_v19 = vmul.f32 1.442695, %v5380_v18 }
0x3279   :  { %12907 = vpow2.f32 %v5384_v27  ;;  %v5445_v29 = vpop.permute.xlu1 %5444 }
0x327a   :  { %12042 = vmatpush3.bf16.msra.mxu1 %v5445_v29  ;;  %12909 = vpow2.f32 %v5382_v19 }
0x327b   :  { %12053 = vmatprep.subr.bf16.mxu1 %v13126_v4 }
0x327d   :  { %v5551_v21 = vpop.permute.xlu1 %5550 }
0x327e   :  { %v5553_v36 = vsel %vm213_vm1, %v5551_v21, 0 }
0x3281   :  { %v5503_v7 = vpop.permute.xlu1 %5502 }
0x3282   :  { %v5508_v10 = vsel %vm213_vm1, %v5503_v7, 0 }
0x3283   :  { %v12908_v20 = vpop.eup %12907 }
0x3284   :  { %v5389_v25 = vsel %vm5157_vm6, %v12908_v20, 0.0  ;;  %v12910_v38 = vpop.eup %12909 }
0x3285   :  { %5390 = vadd.xlane.f32.xlu0 %v5389_v25  ;;  %v5386_v6 = vsel %vm5157_vm6, %v12910_v38, 0.0 }
0x3289   :  { %5387 = vadd.xlane.f32.xlu0 %v5386_v6 }
0x329f   :  { %5398 = vrot.lane.b32.xlu0 %v14338_v22, %s13130_s9 }
0x32a3   :  { %5500 = vrot.lane.b32.xlu0 %v14350_v33, %s13131_s13 }
0x3312   :  { %v5391_v32 = vpop.xlane.xlu0 %5390 }
0x3313   :  { %12911 = vrcp.f32 %v5391_v32 }
0x3316   :  { %v5388_v46 = vpop.xlane.xlu0 %5387 }
0x3317   :  { %12913 = vrcp.f32 %v5388_v46 }
0x331a   :  { %v5399_v5 = vpop.permute.xlu0 %5398 }
0x331b   :  { %12036 = vmatpush3.bf16.msra.mxu0 %v5399_v5 }
0x331c   :  { %12047 = vmatprep.subr.bf16.mxu0 %v13126_v4 }
0x331d   :  { %v12912_v45 = vpop.eup %12911 }
0x331e   :  { %v5395_v16 = vmul.f32 %v12912_v45, %v12908_v20  ;;  %v5501_v56 = vpop.permute.xlu0 %5500 }
0x3320   :  { %v5397_v35 = vpack.c.bf16 %v5395_v16, %v5395_v16 }
0x3321   :  { %v12914_v44 = vpop.eup %12913 }
0x3322   :  { %12044 = vmatmul.mubr.msk.bf16.vlgmr.msra.gmra.mrb[168].mxu1 %vm422_vm4, %v5397_v35  ;;  %v5394_v51 = vmul.f32 %v12914_v44, %v12910_v38 }
0x3323   :  { %12054 = vmatpush3.bf16.xpose.msra.mxu1 %v5553_v36  ;;  %12055 = vmatprep.mubr.msk.bf16.mxu1 %vm13127_vm2, %v13126_v4 }
0x3324   :  { %v5396_v48 = vpack.c.bf16 %v5394_v51, %v5394_v51  ;;  %12065 = vmatprep.subr.bf16.mxu1 %v13126_v4 }
0x3326   :  { %12038 = vmatmul.mubr.msk.bf16.vlgmr.msra.gmra.mrb[168].mxu0 %vm422_vm4, %v5396_v48 }
0x3327   :  { %12048 = vmatpush3.bf16.xpose.msra.mxu0 %v5508_v10  ;;  %12049 = vmatprep.mubr.msk.bf16.mxu0 %vm13127_vm2, %v13126_v4 }
0x3328   :  { %12059 = vmatprep.subr.bf16.mxu0 %v13126_v4 }
0x332a   :  { %12056 = vmatmul.mubr.msk.bf16.vlgmr.msra.gmra.mrb[172].mxu1 %vm213_vm1, %v5501_v56 }
0x332b   :  { %12067 = vmatprep.mubr.msk.bf16.mxu1 %vm13127_vm2, %v13126_v4 }
0x332e   :  { %12050 = vmatmul.mubr.msk.bf16.vlgmr.msra.gmra.mrb[172].mxu0 %vm213_vm1, %v5501_v56 }
0x332f   :  { %12061 = vmatprep.mubr.msk.bf16.mxu0 %vm13127_vm2, %v13126_v4 }
0x33f5   :  { %v14428_v9 = vpop.f32.mrb[168].mxu1 }
0x33f6   :  { %v12045_v57 = vpop.f32.mrb[169].mxu1 }
0x33f7   :  { %v5487_v59 = vpop.f32.mrb[170].mxu1 }
0x33f8   :  { %v12046_v60 = vpop.f32.mrb[171].mxu1 }
0x33f9   :  { %v14430_v61 = vpop.f32.mrb[168].mxu0 }
0x33fa   :  { %v12039_v62 = vpop.f32.mrb[169].mxu0 }
0x33fb   :  { %v5441_v0 = vpop.f32.mrb[170].mxu0 }
0x33fc   :  { %v12040_v3 = vpop.f32.mrb[171].mxu0 }
0x33fd   :  { %v5589_v2 = vpop.f32.mrb[172].mxu1 }
0x33fe   :  { %v12057_v54 = vpop.f32.mrb[173].mxu1  ;;  %v5598_v50 = vsel %vm5157_vm6, %v5589_v2, -inf }
0x33ff   :  { %5599 = vmax.xlane.f32.xlu1 %v5598_v50  ;;  %v5592_v8 = vpop.f32.mrb[174].mxu1 }
0x3400   :  { %v12058_v12 = vpop.f32.mrb[175].mxu1 }
0x3401   :  { %v5544_v13 = vpop.f32.mrb[172].mxu0 }
0x3402   :  { %v12051_v37 = vpop.f32.mrb[173].mxu0  ;;  %v5595_v55 = vsel %vm5157_vm6, %v5544_v13, -inf }
0x3403   :  { %5596 = vmax.xlane.f32.xlu0 %v5595_v55  ;;  %v5547_v1 = vpop.f32.mrb[174].mxu0 }
0x3404   :  { %v12052_v26 = vpop.f32.mrb[175].mxu0 }
0x3410   :  { %5619 = vrot.lane.b32.xlu1 %v14338_v22, %s13132_s17 }
0x3414   :  { %5771 = vrot.lane.b32.xlu1 %v14336_v47, %s13133_s21 }
0x3419   :  { %5665 = vrot.lane.b32.xlu0 %v14336_v47, %s13132_s17 }
0x348c   :  { %v5600_v31 = vpop.xlane.xlu1 %5599 }
0x348d   :  { %v5602_v39 = vsub.f32 %v5589_v2, %v5600_v31 }
0x348f   :  { %v5605_v41 = vmul.f32 1.442695, %v5602_v39 }
0x3490   :  { %v5620_v43 = vpop.permute.xlu1 %5619  ;;  %v5597_v30 = vpop.xlane.xlu0 %5596 }
0x3491   :  { %12915 = vpow2.f32 %v5605_v41  ;;  %v5601_v63 = vsub.f32 %v5544_v13, %v5597_v30  ;;  %12060 = vmatpush3.bf16.msra.mxu0 %v5620_v43  ;;  %v12679_v30 = vld [vmem:[%s15387_s2] sm:$0xff]  }
0x3492   :  { %12071 = vmatprep.subr.bf16.mxu0 %v13126_v4 }
0x3493   :  { %v5603_v52 = vmul.f32 1.442695, %v5601_v63  ;;  %v12680_v63 = vld [vmem:[%s15387_s2 + $0x8] sm:$0xff]   ;;  %s15403_s2 = sld [smem:[#allocation30_spill]] }
0x3494   :  { %v5666_v23 = vpop.permute.xlu0 %5665  ;;  %v5772_v14 = vpop.permute.xlu1 %5771 }
0x3495   :  { %12917 = vpow2.f32 %v5603_v52  ;;  %12066 = vmatpush3.bf16.msra.mxu1 %v5666_v23  ;;  %v5774_v20 = vsel %vm213_vm1, %v5772_v14, 0 }
0x3496   :  { %12077 = vmatprep.subr.bf16.mxu1 %v13126_v4 }
0x349b   :  { %v12916_v24 = vpop.eup %12915 }
0x349c   :  { %v5610_v11 = vsel %vm5157_vm6, %v12916_v24, 0.0 }
0x349d   :  { %5611 = vadd.xlane.f32.xlu0 %v5610_v11 }
0x349f   :  { %v12918_v40 = vpop.eup %12917 }
0x34a0   :  { %v5607_v42 = vsel %vm5157_vm6, %v12918_v40, 0.0 }
0x34a1   :  { %5608 = vadd.xlane.f32.xlu1 %v5607_v42 }
0x34b2   :  { %5721 = vrot.lane.b32.xlu1 %v14350_v33, %s13133_s21 }
0x34b3   :  { %5723 = vrot.lane.b32.xlu0 %v14338_v22, %s13133_s21 }
0x352a   :  { %v5612_v49 = vpop.xlane.xlu0 %5611 }
0x352b   :  { %12919 = vrcp.f32 %v5612_v49 }
0x352e   :  { %v5609_v34 = vpop.xlane.xlu1 %5608  ;;  %v5724_v38 = vpop.permute.xlu0 %5723 }
0x352f   :  { %12921 = vrcp.f32 %v5609_v34  ;;  %v5729_v6 = vsel %vm213_vm1, %v5724_v38, 0 }
0x3532   :  { %v5722_v32 = vpop.permute.xlu1 %5721 }
0x3535   :  { %v12920_v18 = vpop.eup %12919 }
0x3536   :  { %v5616_v27 = vmul.f32 %v12920_v18, %v12916_v24 }
0x3538   :  { %v5618_v19 = vpack.c.bf16 %v5616_v27, %v5616_v27 }
0x3539   :  { %v12922_v29 = vpop.eup %12921 }
0x353a   :  { %12068 = vmatmul.mubr.msk.bf16.vlgmr.msra.gmra.mrb[176].mxu1 %vm422_vm4, %v5618_v19  ;;  %v5615_v25 = vmul.f32 %v12922_v29, %v12918_v40 }
0x353b   :  { %12078 = vmatpush3.bf16.xpose.msra.mxu1 %v5774_v20  ;;  %12079 = vmatprep.mubr.msk.bf16.mxu1 %vm13127_vm2, %v13126_v4  ;;  %v5277_v20 = vadd.f32 %v14392_v15, %v14340_v28 }
0x353c   :  { %v5617_v33 = vpack.c.bf16 %v5615_v25, %v5615_v25  ;;  %12089 = vmatprep.subr.bf16.mxu1 %v13126_v4 }
0x353e   :  { %12062 = vmatmul.mubr.msk.bf16.vlgmr.msra.gmra.mrb[176].mxu0 %vm422_vm4, %v5617_v33 }
0x353f   :  { %12072 = vmatpush3.bf16.xpose.msra.mxu0 %v5729_v6  ;;  %12073 = vmatprep.mubr.msk.bf16.mxu0 %vm13127_vm2, %v13126_v4 }
0x3540   :  { %12083 = vmatprep.subr.bf16.mxu0 %v13126_v4 }
0x3542   :  { %12080 = vmatmul.mubr.msk.bf16.vlgmr.msra.gmra.mrb[180].mxu1 %vm213_vm1, %v5722_v32 }
0x3543   :  { %12091 = vmatprep.mubr.msk.bf16.mxu1 %vm13127_vm2, %v13126_v4 }
0x3546   :  { %12074 = vmatmul.mubr.msk.bf16.vlgmr.msra.gmra.mrb[180].mxu0 %vm213_vm1, %v5722_v32 }
0x3547   :  { %12085 = vmatprep.mubr.msk.bf16.mxu0 %vm13127_vm2, %v13126_v4 }
0x360d   :  { %v5705_v46 = vpop.f32.mrb[176].mxu1 }
0x360e   :  { %v12069_v5 = vpop.f32.mrb[177].mxu1 }
0x360f   :  { %v5708_v45 = vpop.f32.mrb[178].mxu1 }
0x3610   :  { %v12070_v21 = vpop.f32.mrb[179].mxu1  ;;  %v5276_v45 = vadd.f32 %v14394_v17, %v14340_v28 }
0x3611   :  { %v5659_v16 = vpop.f32.mrb[176].mxu0 }
0x3612   :  { %v12063_v35 = vpop.f32.mrb[177].mxu0 }
0x3613   :  { %v5662_v44 = vpop.f32.mrb[178].mxu0 }
0x3614   :  { %v12064_v36 = vpop.f32.mrb[179].mxu0 }
0x3615   :  { %v5810_v51 = vpop.f32.mrb[180].mxu1 }
0x3616   :  { %v12081_v7 = vpop.f32.mrb[181].mxu1  ;;  %v5819_v48 = vsel %vm5157_vm6, %v5810_v51, -inf }
0x3617   :  { %5820 = vmax.xlane.f32.xlu0 %v5819_v48  ;;  %v5813_v10 = vpop.f32.mrb[182].mxu1 }
0x3618   :  { %v12082_v56 = vpop.f32.mrb[183].mxu1 }
0x3619   :  { %v5765_v57 = vpop.f32.mrb[180].mxu0 }
0x361a   :  { %v12075_v59 = vpop.f32.mrb[181].mxu0  ;;  %v5816_v60 = vsel %vm5157_vm6, %v5765_v57, -inf }
0x361b   :  { %5817 = vmax.xlane.f32.xlu1 %v5816_v60  ;;  %v5768_v62 = vpop.f32.mrb[182].mxu0  ;;  %v12682_v59 = vld [vmem:[%s15388_s7 + $0x8] sm:$0xff]   ;;  %v12683_v60 = vld [vmem:[%s15389_s10] sm:$0xff]  }
0x361c   :  { %v12076_v0 = vpop.f32.mrb[183].mxu0  ;;  %v14520_v62 = vld [vmem:[%s15390_s11] ss:$0 sm:$0xff] }
0x361d   :  { %v12684_v0 = vld [vmem:[%s15389_s10 + $0x8] sm:$0xff]  }
0x362c   :  { %5886 = vrot.lane.b32.xlu1 %v14336_v47, %s13134_s22 }
0x3630   :  { %5494 = vrot.lane.b32.xlu1 %v14428_v9, %s13135_s23 }
0x3634   :  { %5715 = vrot.lane.b32.xlu1 %v5705_v46, %s13136_s26 }
0x36a4   :  { %v5821_v3 = vpop.xlane.xlu0 %5820 }
0x36a5   :  { %v5823_v2 = vsub.f32 %v5810_v51, %v5821_v3  ;;  %v6044_v3 = vld [vmem:[%s15391_s15] sm:$0xf] }
0x36a7   :  { %v5826_v54 = vmul.f32 1.442695, %v5823_v2  ;;  %v13139_v2 = vmov 1966171168  }
0x36a8   :  { %v5818_v50 = vpop.xlane.xlu1 %5817 }
0x36a9   :  { %12923 = vpow2.f32 %v5826_v54  ;;  %v5822_v8 = vsub.f32 %v5765_v57, %v5818_v50  ;;  %v6019_v54 = vunpack.c.l.s4 %v13139_v2 }
0x36ab   :  { %v5824_v12 = vmul.f32 1.442695, %v5822_v8  ;;  %v6020_v50 = vunpack.c.0.s8 %v6019_v54 }
0x36ac   :  { %v5887_v13 = vpop.permute.xlu1 %5886 }
0x36ad   :  { %12925 = vpow2.f32 %v5824_v12  ;;  %12090 = vmatpush3.bf16.msra.mxu1 %v5887_v13  ;;  %v14532_v13 = vsub.s32 %v6020_v50, %v14319_v53 }
0x36ae   :  { %12103 = vmatprep.subr.bf16.mxu1 %v13126_v4 }
0x36b0   :  { %v5495_v34 = vpop.permute.xlu1 %5494 }
0x36b1   :  { %v5499_v19 = vadd.f32 %v5495_v34, %v14340_v28 }
0x36b3   :  { %v12924_v37 = vpop.eup %12923  ;;  %v5943_v33 = vsel %vm213_vm1, %v5277_v20, %v5499_v19 }
0x36b4   :  { %v5831_v47 = vsel %vm5157_vm6, %v12924_v37, 0.0  ;;  %v5716_v27 = vpop.permute.xlu1 %5715 }
0x36b5   :  { %5832 = vadd.xlane.f32.xlu0 %v5831_v47  ;;  %v5720_v29 = vadd.f32 %v5716_v27, %v14340_v28 }
0x36b7   :  { %v12926_v55 = vpop.eup %12925  ;;  %v5945_v46 = vsel %vm422_vm4, %v5943_v33, %v5720_v29 }
0x36b8   :  { %v5828_v9 = vsel %vm5157_vm6, %v12926_v55, 0.0 }
0x36b9   :  { %5829 = vadd.xlane.f32.xlu0 %v5828_v9 }
0x36cf   :  { %5840 = vrot.lane.b32.xlu0 %v14338_v22, %s13134_s22 }
0x36d3   :  { %5492 = vrot.lane.b32.xlu0 %v14430_v61, %s13135_s23 }
0x36d7   :  { %5713 = vrot.lane.b32.xlu0 %v5659_v16, %s13136_s26 }
0x36db   :  { %5970 = vrot.lane.b32.xlu0 %v14324_v58, %s13138_s1 }
0x3742   :  { %v5833_v1 = vpop.xlane.xlu0 %5832 }
0x3743   :  { %12927 = vrcp.f32 %v5833_v1 }
0x3746   :  { %v5830_v26 = vpop.xlane.xlu0 %5829 }
0x3747   :  { %12929 = vrcp.f32 %v5830_v26 }
0x374a   :  { %v5841_v31 = vpop.permute.xlu0 %5840 }
0x374b   :  { %12084 = vmatpush3.bf16.msra.mxu0 %v5841_v31 }
0x374c   :  { %12095 = vmatprep.subr.bf16.mxu0 %v13126_v4 }
0x374d   :  { %v12928_v39 = vpop.eup %12927 }
0x374e   :  { %v5837_v22 = vmul.f32 %v12928_v39, %v12924_v37  ;;  %v5493_v18 = vpop.permute.xlu0 %5492 }
0x374f   :  { %v5498_v6 = vadd.f32 %v5493_v18, %v14340_v28 }
0x3750   :  { %v5839_v41 = vpack.c.bf16 %v5837_v22, %v5837_v22 }
0x3751   :  { %v12930_v43 = vpop.eup %12929  ;;  %v5942_v35 = vsel %vm213_vm1, %v5276_v45, %v5498_v6 }
0x3752   :  { %12092 = vmatmul.mubr.msk.bf16.vlgmr.msra.gmra.mrb[184].mxu1 %vm422_vm4, %v5839_v41  ;;  %v5836_v61 = vmul.f32 %v12930_v43, %v12926_v55  ;;  %v5714_v25 = vpop.permute.xlu0 %5713 }
0x3753   :  { %12107 = vmatprep.mubr.msk.bf16.mxu1 %vm13127_vm2, %v13126_v4  ;;  %v5719_v5 = vadd.f32 %v5714_v25, %v14340_v28 }
0x3754   :  { %v5838_v58 = vpack.c.bf16 %v5836_v61, %v5836_v61 }
0x3755   :  { %v5944_v36 = vsel %vm422_vm4, %v5942_v35, %v5719_v5 }
0x3756   :  { %12086 = vmatmul.mubr.msk.bf16.vlgmr.msra.gmra.mrb[184].mxu0 %vm422_vm4, %v5838_v58  ;;  %v5971_v8 = vpop.permute.xlu0 %5970 }
0x3757   :  { %12099 = vmatprep.mubr.msk.bf16.mxu0 %vm13127_vm2, %v13126_v4  ;;  %12096 = vmatpush3.bf16.msra.mxu0 %v12679_v30 }
0x3758   :  { %12097 = vmatprep.subr.bf16.mxu0 %v13126_v4 }
0x375b   :  { %12098 = vmatpush3.bf16.msra.mxu0 %v12680_v63 }
0x375c   :  { %12111 = vmatprep.subr.bf16.mxu0 %v13126_v4 }
0x3825   :  { %v5926_v52 = vpop.f32.mrb[184].mxu1 }
0x3826   :  { %5936 = vrot.lane.b32.xlu1 %v5926_v52, %s13137_s28  ;;  %v12093_v23 = vpop.f32.mrb[185].mxu1 }
0x3827   :  { %v5929_v24 = vpop.f32.mrb[186].mxu1 }
0x3828   :  { %v12094_v11 = vpop.f32.mrb[187].mxu1 }
0x3829   :  { %v5880_v40 = vpop.f32.mrb[184].mxu0 }
0x382a   :  { %5934 = vrot.lane.b32.xlu1 %v5880_v40, %s13137_s28  ;;  %v12087_v42 = vpop.f32.mrb[185].mxu0 }
0x382b   :  { %v5883_v14 = vpop.f32.mrb[186].mxu0 }
0x382c   :  { %v12088_v49 = vpop.f32.mrb[187].mxu0 }
0x382e   :  { %6084 = vrot.lane.b32.xlu1 %v14520_v62, %s13128_s0 }
0x3898   :  { %v5937_v38 = vpop.permute.xlu1 %5936 }
0x3899   :  { %v5941_v32 = vadd.f32 %v5937_v38, %v14340_v28 }
0x389b   :  { %v5947_v21 = vsel %vm1211_vm5, %v5945_v46, %v5941_v32 }
0x389c   :  { %v5949_v16 = vpack.c.bf16 %v5947_v21, %v5947_v21  ;;  %v5935_v15 = vpop.permute.xlu1 %5934 }
0x389d   :  { %v5940_v44 = vadd.f32 %v5935_v15, %v14340_v28  ;;  %v12681_v28 = vld [vmem:[%s15388_s7] sm:$0xff]  }
0x389e   :  { %v5953_v51 = vunpack.c.l.b16 %v5949_v16  ;;  %12104 = vmatpush3.bf16.msra.mxu1 %v12681_v28 }
0x389f   :  { %v5946_v7 = vsel %vm1211_vm5, %v5944_v36, %v5940_v44  ;;  %12105 = vmatprep.subr.bf16.mxu1 %v13126_v4 }
0x38a0   :  { %v5948_v48 = vpack.c.bf16 %v5946_v7, %v5946_v7  ;;  %v5954_v17 = vrot.slane %v5953_v51, 7  ;;  %v6085_v14 = vpop.permute.xlu1 %6084 }
0x38a2   :  { %v5952_v10 = vunpack.c.l.b16 %v5948_v48  ;;  %12106 = vmatpush3.bf16.msra.mxu1 %v12682_v59 }
0x38a3   :  { %12119 = vmatprep.subr.bf16.mxu1 %v13126_v4 }
0x38a4   :  { %v5956_v56 = vsel %vm5955_vm7, %v5954_v17, %v5952_v10 }
0x38a5   :  { %v5957_v57 = vpack.c.b16 %v5956_v56, %v5956_v56 }
0x38a7   :  { %12100 = vmatmul.mubr.msk.bf16.vlgmr.msra.gmra.mrb[188].mxu0 %vm288_vm3, %v5957_v57 }
0x38a8   :  { %12115 = vmatprep.mubr.msk.bf16.mxu0 %vm13127_vm2, %v13126_v4  ;;  %12112 = vmatpush3.bf16.msra.mxu0 %v12683_v60 }
0x38a9   :  { %12113 = vmatprep.subr.bf16.mxu0 %v13126_v4 }
0x38ac   :  { %12114 = vmatpush3.bf16.msra.mxu0 %v12684_v0 }
0x38ad   :  { %12125 = vmatprep.subr.bf16.mxu0 %v13126_v4 }
0x38af   :  { %12116 = vmatmul.mubr.msk.bf16.vlgmr.msra.gmra.mrb[192].mxu0 %vm288_vm3, %v6044_v3 }
0x38b0   :  { %12127 = vmatprep.mubr.msk.bf16.mxu0 %vm13127_vm2, %v13126_v4 }
0x397a   :  { %v6010_v12 = vpop.f32.mrb[188].mxu0 }
0x397b   :  { %v6011_v37 = vadd.f32 %v6010_v12, %v5971_v8  ;;  %v12101_v47 = vpop.f32.mrb[189].mxu0 }
0x397c   :  { %v6013_v55 = vpop.f32.mrb[190].mxu0 }
0x397d   :  { %v6016_v9 = vmax.f32 %v6011_v37, 0.0  ;;  %v12102_v1 = vpop.f32.mrb[191].mxu0 }
0x397f   :  { %v6024_v26 = vrot.slane %v6016_v9, %v14532_v13 }
0x3981   :  { %v6025_v31 = vcombine.high %v6024_v26, %v6024_v26  ;;  %v6032_v39 = vrot.slane %v6024_v26, %v14532_v13 }
0x3982   :  { %v6207_v24 = vpop.f32.mrb[192].mxu0 }
0x3983   :  { %v6039_v22 = vrot.slane %v6025_v31, %v14532_v13  ;;  %v6042_v41 = vadd.f32 %v6032_v39, %v5946_v7  ;;  %v12117_v11 = vpop.f32.mrb[193].mxu0  ;;  %v14550_v46 = vadd.f32 %v14520_v62, %v6207_v24 }
0x3984   :  { %v6210_v40 = vpop.f32.mrb[194].mxu0 }
0x3985   :  { %v6043_v43 = vadd.f32 %v6039_v22, %v5947_v21  ;;  %v6058_v61 = vpack.c.bf16 %v6042_v41, %v6042_v41  ;;  %v12118_v42 = vpop.f32.mrb[195].mxu0  ;;  %v6213_v45 = vpack.c.bf16 %v14550_v46, %v14550_v46  ;;  %v13140_v21 = vmov 0  }
0x3986   :  { %v14579_v16 = vsel %vm6324_vm8, 65535, %v13140_v21 }
0x3987   :  { %v6059_v58 = vpack.c.bf16 %v6043_v43, %v6043_v43  ;;  %v6067_v63 = vunpack.c.l.b16 %v6058_v61 }
0x3989   :  { %v6068_v30 = vunpack.c.l.b16 %v6059_v58 }
0x398b   :  { %v6069_v53 = vrot.slane %v6068_v30, 7 }
0x398d   :  { %v6070_v52 = vsel %vm5955_vm7, %v6069_v53, %v6067_v63 }
0x398e   :  { %v14538_v23 = vpack.c.b16 %v6070_v52, %v6070_v52 }
0x3990   :  { %12108 = vmatmul.mubr.msk.bf16.vlgmr.msra.gmra.mrb[188].mxu1 %vm288_vm3, %v14538_v23 }
0x3991   :  { %12121 = vmatprep.mubr.msk.bf16.mxu1 %vm13127_vm2, %v13126_v4 }
0x3a63   :  { %v6124_v49 = vpop.f32.mrb[188].mxu1 }
0x3a64   :  { %v6125_v34 = vadd.f32 %v6124_v49, %v6085_v14  ;;  %v12109_v18 = vpop.f32.mrb[189].mxu1 }
0x3a65   :  { %v6127_v27 = vpop.f32.mrb[190].mxu1 }
0x3a66   :  { %v6137_v19 = vrot.slane %v6125_v34, %v14532_v13  ;;  %v12110_v29 = vpop.f32.mrb[191].mxu1 }
0x3a68   :  { %v6138_v20 = vcombine.high %v6137_v19, %v6137_v19  ;;  %v6145_v25 = vrot.slane %v6137_v19, %v14532_v13 }
0x3a6a   :  { %v6152_v38 = vrot.slane %v6138_v20, %v14532_v13  ;;  %v6155_v33 = vpack.c.bf16 %v6145_v25, %v6145_v25 }
0x3a6c   :  { %v6156_v6 = vpack.c.bf16 %v6152_v38, %v6152_v38  ;;  %6318 = vrot.lane.b32.xlu0 %v6155_v33, %s13128_s0  ;;  %v6218_v32 = vsel %vm213_vm1, %v6155_v33, 0 }
0x3a6d   :  { %12120 = vmatpush3.bf16.xpose.msra.mxu1 %v6218_v32 }
0x3a6e   :  { %6371 = vrot.lane.b32.xlu1 %v6156_v6, %s13128_s0  ;;  %v6261_v5 = vsel %vm213_vm1, %v6156_v6, 0  ;;  %12131 = vmatprep.subr.bf16.mxu1 %v13126_v4 }
0x3a6f   :  { %12126 = vmatpush3.bf16.xpose.msra.mxu0 %v6261_v5 }
0x3a70   :  { %6424 = vrot.lane.b32.xlu0 %v6155_v33, %s13129_s5  ;;  %12137 = vmatprep.subr.bf16.mxu0 %v13126_v4 }
0x3a72   :  { %6472 = vrot.lane.b32.xlu1 %v6156_v6, %s13129_s5 }
0x3a74   :  { %6422 = vrot.lane.b32.xlu0 %v6213_v45, %s13129_s5  ;;  %12122 = vmatmul.mubr.msk.bf16.vlgmr.msra.gmra.mrb[192].mxu1 %vm213_vm1, %v6213_v45 }
0x3a75   :  { %12133 = vmatprep.mubr.msk.bf16.mxu1 %vm13127_vm2, %v13126_v4 }
0x3a76   :  { %6531 = vrot.lane.b32.xlu1 %v6155_v33, %s13130_s9  ;;  %12128 = vmatmul.mubr.msk.bf16.vlgmr.msra.gmra.mrb[196].mxu0 %vm213_vm1, %v6213_v45 }
0x3a77   :  { %12139 = vmatprep.mubr.msk.bf16.mxu0 %vm13127_vm2, %v13126_v4 }
0x3a78   :  { %6579 = vrot.lane.b32.xlu0 %v6156_v6, %s13130_s9 }
0x3a7a   :  { %6639 = vrot.lane.b32.xlu1 %v6155_v33, %s13131_s13 }
0x3a7c   :  { %6687 = vrot.lane.b32.xlu0 %v6156_v6, %s13131_s13 }
0x3a7e   :  { %6637 = vrot.lane.b32.xlu1 %v6213_v45, %s13131_s13 }
0x3a80   :  { %6746 = vrot.lane.b32.xlu0 %v6155_v33, %s13132_s17 }
0x3a82   :  { %6794 = vrot.lane.b32.xlu1 %v6156_v6, %s13132_s17 }
0x3a84   :  { %6854 = vrot.lane.b32.xlu0 %v6155_v33, %s13133_s21 }
0x3a86   :  { %6902 = vrot.lane.b32.xlu1 %v6156_v6, %s13133_s21 }
0x3a88   :  { %6852 = vrot.lane.b32.xlu0 %v6213_v45, %s13133_s21 }
0x3a8a   :  { %6961 = vrot.lane.b32.xlu1 %v6155_v33, %s13134_s22 }
0x3a8c   :  { %7009 = vrot.lane.b32.xlu0 %v6156_v6, %s13134_s22 }
0x3ade   :  { %v6319_v15 = vpop.permute.xlu0 %6318 }
0x3adf   :  { %v6328_v35 = vand.u32 %v14579_v16, %v6319_v15 }
0x3ae0   :  { %v6372_v44 = vpop.permute.xlu1 %6371 }
0x3ae1   :  { %v6377_v36 = vand.u32 %v6372_v44, %v14579_v16  ;;  %12132 = vmatpush3.bf16.msra.mxu1 %v6328_v35 }
0x3ae2   :  { %12143 = vmatprep.subr.bf16.mxu1 %v13126_v4  ;;  %v6425_v50 = vpop.permute.xlu0 %6424 }
0x3ae3   :  { %12138 = vmatpush3.bf16.msra.mxu0 %v6377_v36  ;;  %v6430_v1 = vsel %vm213_vm1, %v6425_v50, 0 }
0x3ae4   :  { %12149 = vmatprep.subr.bf16.mxu0 %v13126_v4  ;;  %v6473_v47 = vpop.permute.xlu1 %6472 }
0x3ae5   :  { %v6475_v39 = vsel %vm213_vm1, %v6473_v47, 0 }
0x3ae6   :  { %v6423_v26 = vpop.permute.xlu0 %6422 }
0x3ae8   :  { %v6532_v22 = vpop.permute.xlu1 %6531 }
0x3ae9   :  { %v6537_v43 = vand.u32 %v6532_v22, %v14579_v16 }
0x3aea   :  { %v6580_v41 = vpop.permute.xlu0 %6579 }
0x3aeb   :  { %v6585_v61 = vand.u32 %v6580_v41, %v14579_v16 }
0x3aec   :  { %v6640_v5 = vpop.permute.xlu1 %6639 }
0x3aee   :  { %v6688_v35 = vpop.permute.xlu0 %6687 }
0x3b47   :  { %v6254_v51 = vpop.f32.mrb[192].mxu1 }
0x3b48   :  { %v6303_v7 = vsub.f32 %v6254_v51, %v6254_v51  ;;  %v12123_v48 = vpop.f32.mrb[193].mxu1  ;;  %v6645_v51 = vsel %vm213_vm1, %v6640_v5, 0 }
0x3b49   :  { %v6257_v17 = vpop.f32.mrb[194].mxu1  ;;  %v6297_v10 = vpop.f32.mrb[196].mxu0 }
0x3b4a   :  { %v6305_v56 = vmul.f32 1.442695, %v6303_v7  ;;  %v6304_v57 = vsub.f32 %v6297_v10, %v6297_v10  ;;  %v12124_v28 = vpop.f32.mrb[195].mxu1  ;;  %v12129_v59 = vpop.f32.mrb[197].mxu0  ;;  %v6690_v17 = vsel %vm213_vm1, %v6688_v35, 0 }
0x3b4b   :  { %v6300_v60 = vpop.f32.mrb[198].mxu0  ;;  %v6638_v7 = vpop.permute.xlu1 %6637 }
0x3b4c   :  { %12931 = vpow2.f32 %v6305_v56  ;;  %v6307_v0 = vmul.f32 1.442695, %v6304_v57  ;;  %v12130_v3 = vpop.f32.mrb[199].mxu0  ;;  %v6747_v10 = vpop.permute.xlu0 %6746 }
0x3b4d   :  { %v6752_v57 = vand.u32 %v6747_v10, %v14579_v16 }
0x3b4e   :  { %12933 = vpow2.f32 %v6307_v0 }
0x3b4f   :  { %v6795_v56 = vpop.permute.xlu1 %6794 }
0x3b50   :  { %v6800_v28 = vand.u32 %v6795_v56, %v14579_v16 }
0x3b56   :  { %v12932_v2 = vpop.eup %12931 }
0x3b57   :  { %12935 = vrcp.f32 %v12932_v2 }
0x3b58   :  { %v12934_v54 = vpop.eup %12933 }
0x3b59   :  { %12937 = vrcp.f32 %v12934_v54 }
0x3b61   :  { %v12936_v8 = vpop.eup %12935 }
0x3b62   :  { %v6313_v12 = vmul.f32 %v12936_v8, %v12932_v2 }
0x3b63   :  { %v12938_v37 = vpop.eup %12937 }
0x3b64   :  { %v6315_v55 = vpack.c.bf16 %v6313_v12, %v6313_v12  ;;  %v6314_v9 = vmul.f32 %v12938_v37, %v12934_v54 }
0x3b66   :  { %12134 = vmatmul.mubr.msk.bf16.vlgmr.msra.gmra.mrb[196].mxu1 %vm6320_vm9, %v6315_v55  ;;  %v6316_v31 = vpack.c.bf16 %v6314_v9, %v6314_v9 }
0x3b67   :  { %12144 = vmatpush3.bf16.xpose.msra.mxu1 %v6430_v1  ;;  %12145 = vmatprep.mubr.msk.bf16.mxu1 %vm13127_vm2, %v13126_v4 }
0x3b68   :  { %12140 = vmatmul.mubr.msk.bf16.vlgmr.msra.gmra.mrb[200].mxu0 %vm6320_vm9, %v6316_v31  ;;  %12155 = vmatprep.subr.bf16.mxu1 %v13126_v4 }
0x3b69   :  { %12150 = vmatpush3.bf16.xpose.msra.mxu0 %v6475_v39  ;;  %12151 = vmatprep.mubr.msk.bf16.mxu0 %vm13127_vm2, %v13126_v4 }
0x3b6a   :  { %12161 = vmatprep.subr.bf16.mxu0 %v13126_v4 }
0x3b6e   :  { %12146 = vmatmul.mubr.msk.bf16.vlgmr.msra.gmra.mrb[200].mxu1 %vm213_vm1, %v6423_v26 }
0x3b6f   :  { %12156 = vmatpush3.bf16.msra.mxu1 %v6537_v43  ;;  %12157 = vmatprep.mubr.msk.bf16.mxu1 %vm13127_vm2, %v13126_v4 }
0x3b70   :  { %12152 = vmatmul.mubr.msk.bf16.vlgmr.msra.gmra.mrb[204].mxu0 %vm213_vm1, %v6423_v26  ;;  %12167 = vmatprep.subr.bf16.mxu1 %v13126_v4 }
0x3b71   :  { %12162 = vmatpush3.bf16.msra.mxu0 %v6585_v61  ;;  %12163 = vmatprep.mubr.msk.bf16.mxu0 %vm13127_vm2, %v13126_v4 }
0x3b72   :  { %12173 = vmatprep.subr.bf16.mxu0 %v13126_v4 }
0x3c39   :  { %v14605_v58 = vpop.f32.mrb[196].mxu1 }
0x3c3a   :  { %v12135_v30 = vpop.f32.mrb[197].mxu1 }
0x3c3b   :  { %v6367_v63 = vpop.f32.mrb[198].mxu1  ;;  %v14607_v53 = vpop.f32.mrb[200].mxu0 }
0x3c3c   :  { %v12136_v52 = vpop.f32.mrb[199].mxu1  ;;  %v12141_v24 = vpop.f32.mrb[201].mxu0 }
0x3c3d   :  { %v6416_v11 = vpop.f32.mrb[202].mxu0  ;;  %v6855_v63 = vpop.permute.xlu0 %6854 }
0x3c3e   :  { %v12142_v40 = vpop.f32.mrb[203].mxu0 }
0x3c3f   :  { %v6903_v40 = vpop.permute.xlu1 %6902 }
0x3c41   :  { %v6466_v42 = vpop.f32.mrb[200].mxu1 }
0x3c42   :  { %v6517_v14 = vsub.f32 %v6466_v42, %v6466_v42  ;;  %v12147_v49 = vpop.f32.mrb[201].mxu1 }
0x3c43   :  { %v6469_v34 = vpop.f32.mrb[202].mxu1  ;;  %v6511_v18 = vpop.f32.mrb[204].mxu0  ;;  %v6860_v49 = vsel %vm213_vm1, %v6855_v63, 0 }
0x3c44   :  { %v6519_v27 = vmul.f32 1.442695, %v6517_v14  ;;  %v6518_v19 = vsub.f32 %v6511_v18, %v6511_v18  ;;  %v12148_v29 = vpop.f32.mrb[203].mxu1  ;;  %v12153_v20 = vpop.f32.mrb[205].mxu0 }
0x3c45   :  { %v6514_v25 = vpop.f32.mrb[206].mxu0  ;;  %v6853_v34 = vpop.permute.xlu0 %6852 }
0x3c46   :  { %12939 = vpow2.f32 %v6519_v27  ;;  %v6521_v38 = vmul.f32 1.442695, %v6518_v19  ;;  %v12154_v33 = vpop.f32.mrb[207].mxu0  ;;  %v6905_v27 = vsel %vm213_vm1, %v6903_v40, 0  ;;  %v6962_v19 = vpop.permute.xlu1 %6961 }
0x3c47   :  { %v6967_v20 = vand.u32 %v6962_v19, %v14579_v16 }
0x3c48   :  { %12941 = vpow2.f32 %v6521_v38 }
0x3c49   :  { %v7010_v29 = vpop.permute.xlu0 %7009 }
0x3c4a   :  { %v7015_v25 = vand.u32 %v7010_v29, %v14579_v16 }
0x3c50   :  { %v12940_v6 = vpop.eup %12939 }
0x3c51   :  { %12943 = vrcp.f32 %v12940_v6 }
0x3c52   :  { %v12942_v32 = vpop.eup %12941 }
0x3c53   :  { %12945 = vrcp.f32 %v12942_v32 }
0x3c5b   :  { %v12944_v45 = vpop.eup %12943 }
0x3c5c   :  { %v6527_v21 = vmul.f32 %v12944_v45, %v12940_v6 }
0x3c5d   :  { %v12946_v15 = vpop.eup %12945 }
0x3c5e   :  { %v6529_v44 = vpack.c.bf16 %v6527_v21, %v6527_v21  ;;  %v6528_v36 = vmul.f32 %v12946_v15, %v12942_v32 }
0x3c60   :  { %12158 = vmatmul.mubr.msk.bf16.vlgmr.msra.gmra.mrb[204].mxu1 %vm6320_vm9, %v6529_v44  ;;  %v6530_v48 = vpack.c.bf16 %v6528_v36, %v6528_v36 }
0x3c61   :  { %12168 = vmatpush3.bf16.xpose.msra.mxu1 %v6645_v51  ;;  %12169 = vmatprep.mubr.msk.bf16.mxu1 %vm13127_vm2, %v13126_v4 }
0x3c62   :  { %12164 = vmatmul.mubr.msk.bf16.vlgmr.msra.gmra.mrb[208].mxu0 %vm6320_vm9, %v6530_v48  ;;  %12179 = vmatprep.subr.bf16.mxu1 %v13126_v4 }
0x3c63   :  { %12174 = vmatpush3.bf16.xpose.msra.mxu0 %v6690_v17  ;;  %12175 = vmatprep.mubr.msk.bf16.mxu0 %vm13127_vm2, %v13126_v4 }
0x3c64   :  { %12185 = vmatprep.subr.bf16.mxu0 %v13126_v4 }
0x3c68   :  { %12170 = vmatmul.mubr.msk.bf16.vlgmr.msra.gmra.mrb[208].mxu1 %vm213_vm1, %v6638_v7 }
0x3c69   :  { %12180 = vmatpush3.bf16.msra.mxu1 %v6752_v57  ;;  %12181 = vmatprep.mubr.msk.bf16.mxu1 %vm13127_vm2, %v13126_v4 }
0x3c6a   :  { %12176 = vmatmul.mubr.msk.bf16.vlgmr.msra.gmra.mrb[212].mxu0 %vm213_vm1, %v6638_v7  ;;  %12191 = vmatprep.subr.bf16.mxu1 %v13126_v4 }
0x3c6b   :  { %12186 = vmatpush3.bf16.msra.mxu0 %v6800_v28  ;;  %12187 = vmatprep.mubr.msk.bf16.mxu0 %vm13127_vm2, %v13126_v4 }
0x3c6c   :  { %12197 = vmatprep.subr.bf16.mxu0 %v13126_v4 }
0x3d33   :  { %v6573_v59 = vpop.f32.mrb[204].mxu1 }
0x3d34   :  { %6629 = vrot.lane.b32.xlu1 %v6573_v59, %s13135_s23  ;;  %v12159_v60 = vpop.f32.mrb[205].mxu1 }
0x3d35   :  { %v6576_v0 = vpop.f32.mrb[206].mxu1  ;;  %v6621_v3 = vpop.f32.mrb[208].mxu0 }
0x3d36   :  { %v12160_v2 = vpop.f32.mrb[207].mxu1  ;;  %6631 = vrot.lane.b32.xlu0 %v6621_v3, %s13135_s23  ;;  %v12165_v54 = vpop.f32.mrb[209].mxu0 }
0x3d37   :  { %v6624_v50 = vpop.f32.mrb[210].mxu0 }
0x3d38   :  { %v12166_v8 = vpop.f32.mrb[211].mxu0 }
0x3d3b   :  { %v6681_v12 = vpop.f32.mrb[208].mxu1 }
0x3d3c   :  { %v6732_v37 = vsub.f32 %v6681_v12, %v6681_v12  ;;  %v12171_v47 = vpop.f32.mrb[209].mxu1 }
0x3d3d   :  { %v6684_v55 = vpop.f32.mrb[210].mxu1  ;;  %v6726_v9 = vpop.f32.mrb[212].mxu0  ;;  %v12686_v47 = vld [vmem:[%s15392_s16 + $0x8] sm:$0xff]  }
0x3d3e   :  { %v6734_v1 = vmul.f32 1.442695, %v6732_v37  ;;  %v6733_v26 = vsub.f32 %v6726_v9, %v6726_v9  ;;  %v12172_v31 = vpop.f32.mrb[211].mxu1  ;;  %v12177_v39 = vpop.f32.mrb[213].mxu0  ;;  %v12685_v37 = vld [vmem:[%s15392_s16] sm:$0xff]  }
0x3d3f   :  { %v6729_v22 = vpop.f32.mrb[214].mxu0 }
0x3d40   :  { %12947 = vpow2.f32 %v6734_v1  ;;  %v6736_v41 = vmul.f32 1.442695, %v6733_v26  ;;  %v12178_v43 = vpop.f32.mrb[215].mxu0 }
0x3d42   :  { %12949 = vpow2.f32 %v6736_v41 }
0x3d4a   :  { %v12948_v61 = vpop.eup %12947 }
0x3d4b   :  { %12951 = vrcp.f32 %v12948_v61 }
0x3d4c   :  { %v12950_v30 = vpop.eup %12949 }
0x3d4d   :  { %12953 = vrcp.f32 %v12950_v30 }
0x3d55   :  { %v12952_v52 = vpop.eup %12951 }
0x3d56   :  { %v6742_v24 = vmul.f32 %v12952_v52, %v12948_v61 }
0x3d57   :  { %v12954_v11 = vpop.eup %12953 }
0x3d58   :  { %v6744_v42 = vpack.c.bf16 %v6742_v24, %v6742_v24  ;;  %v6743_v14 = vmul.f32 %v12954_v11, %v12950_v30 }
0x3d5a   :  { %12182 = vmatmul.mubr.msk.bf16.vlgmr.msra.gmra.mrb[212].mxu1 %vm6320_vm9, %v6744_v42  ;;  %v6745_v18 = vpack.c.bf16 %v6743_v14, %v6743_v14  ;;  %v6419_v14 = vadd.f32 %v14605_v58, %v14550_v46 }
0x3d5b   :  { %12192 = vmatpush3.bf16.xpose.msra.mxu1 %v6860_v49  ;;  %12193 = vmatprep.mubr.msk.bf16.mxu1 %vm13127_vm2, %v13126_v4 }
0x3d5c   :  { %12188 = vmatmul.mubr.msk.bf16.vlgmr.msra.gmra.mrb[216].mxu0 %vm6320_vm9, %v6745_v18  ;;  %12203 = vmatprep.subr.bf16.mxu1 %v13126_v4 }
0x3d5d   :  { %12198 = vmatpush3.bf16.xpose.msra.mxu0 %v6905_v27  ;;  %12199 = vmatprep.mubr.msk.bf16.mxu0 %vm13127_vm2, %v13126_v4 }
0x3d5e   :  { %12209 = vmatprep.subr.bf16.mxu0 %v13126_v4 }
0x3d62   :  { %12194 = vmatmul.mubr.msk.bf16.vlgmr.msra.gmra.mrb[216].mxu1 %vm213_vm1, %v6853_v34 }
0x3d63   :  { %12204 = vmatpush3.bf16.msra.mxu1 %v6967_v20  ;;  %12205 = vmatprep.mubr.msk.bf16.mxu1 %vm13127_vm2, %v13126_v4 }
0x3d64   :  { %12200 = vmatmul.mubr.msk.bf16.vlgmr.msra.gmra.mrb[220].mxu0 %vm213_vm1, %v6853_v34  ;;  %12215 = vmatprep.subr.bf16.mxu1 %v13126_v4 }
0x3d65   :  { %12210 = vmatpush3.bf16.msra.mxu0 %v7015_v25  ;;  %12211 = vmatprep.mubr.msk.bf16.mxu0 %vm13127_vm2, %v13126_v4 }
0x3d66   :  { %12223 = vmatprep.subr.bf16.mxu0 %v13126_v4 }
0x3da6   :  { %v6630_v43 = vpop.permute.xlu1 %6629 }
0x3da7   :  { %v6635_v52 = vadd.f32 %v6630_v43, %v14550_v46 }
0x3da8   :  { %v6632_v61 = vpop.permute.xlu0 %6631 }
0x3da9   :  { %v6636_v24 = vadd.f32 %v6632_v61, %v14550_v46  ;;  %v7067_v18 = vsel %vm213_vm1, %v6419_v14, %v6635_v52 }
0x3e2d   :  { %v6788_v38 = vpop.f32.mrb[212].mxu1 }
0x3e2e   :  { %6844 = vrot.lane.b32.xlu1 %v6788_v38, %s13136_s26  ;;  %v12183_v33 = vpop.f32.mrb[213].mxu1 }
0x3e2f   :  { %v6791_v6 = vpop.f32.mrb[214].mxu1  ;;  %v6836_v32 = vpop.f32.mrb[216].mxu0  ;;  %v12688_v33 = vld [vmem:[%s15393_s18 + $0x8] sm:$0xff]  }
0x3e30   :  { %v12184_v5 = vpop.f32.mrb[215].mxu1  ;;  %6846 = vrot.lane.b32.xlu0 %v6836_v32, %s13136_s26  ;;  %v12189_v45 = vpop.f32.mrb[217].mxu0  ;;  %v12690_v6 = vld [vmem:[%s15394_s25 + $0x8] sm:$0xff]   ;;  %v14698_v32 = vld [vmem:[%s15395_s29] ss:$0 sm:$0xff] }
0x3e31   :  { %v6839_v21 = vpop.f32.mrb[218].mxu0 }
0x3e32   :  { %v12190_v15 = vpop.f32.mrb[219].mxu0 }
0x3e35   :  { %v6896_v35 = vpop.f32.mrb[216].mxu1 }
0x3e36   :  { %v6947_v44 = vsub.f32 %v6896_v35, %v6896_v35  ;;  %v12195_v36 = vpop.f32.mrb[217].mxu1 }
0x3e37   :  { %v6899_v51 = vpop.f32.mrb[218].mxu1  ;;  %v6941_v7 = vpop.f32.mrb[220].mxu0 }
0x3e38   :  { %v6949_v48 = vmul.f32 1.442695, %v6947_v44  ;;  %v6948_v17 = vsub.f32 %v6941_v7, %v6941_v7  ;;  %v12196_v10 = vpop.f32.mrb[219].mxu1  ;;  %v12201_v56 = vpop.f32.mrb[221].mxu0 }
0x3e39   :  { %v6944_v57 = vpop.f32.mrb[222].mxu0 }
0x3e3a   :  { %12955 = vpow2.f32 %v6949_v48  ;;  %v6951_v28 = vmul.f32 1.442695, %v6948_v17  ;;  %v12202_v59 = vpop.f32.mrb[223].mxu0 }
0x3e3c   :  { %12957 = vpow2.f32 %v6951_v28 }
0x3e44   :  { %v12956_v60 = vpop.eup %12955 }
0x3e45   :  { %12959 = vrcp.f32 %v12956_v60 }
0x3e46   :  { %v12958_v0 = vpop.eup %12957 }
0x3e47   :  { %12961 = vrcp.f32 %v12958_v0 }
0x3e4f   :  { %v12960_v3 = vpop.eup %12959 }
0x3e50   :  { %v6957_v2 = vmul.f32 %v12960_v3, %v12956_v60 }
0x3e51   :  { %v12962_v54 = vpop.eup %12961 }
0x3e52   :  { %v6959_v50 = vpack.c.bf16 %v6957_v2, %v6957_v2  ;;  %v6958_v8 = vmul.f32 %v12962_v54, %v12958_v0 }
0x3e54   :  { %12206 = vmatmul.mubr.msk.bf16.vlgmr.msra.gmra.mrb[220].mxu1 %vm6320_vm9, %v6959_v50  ;;  %v6960_v12 = vpack.c.bf16 %v6958_v8, %v6958_v8 }
0x3e55   :  { %12219 = vmatprep.mubr.msk.bf16.mxu1 %vm13127_vm2, %v13126_v4  ;;  %12216 = vmatpush3.bf16.msra.mxu1 %v12685_v37 }
0x3e56   :  { %12212 = vmatmul.mubr.msk.bf16.vlgmr.msra.gmra.mrb[224].mxu0 %vm6320_vm9, %v6960_v12  ;;  %12217 = vmatprep.subr.bf16.mxu1 %v13126_v4 }
0x3e57   :  { %12227 = vmatprep.mubr.msk.bf16.mxu0 %vm13127_vm2, %v13126_v4 }
0x3e59   :  { %12218 = vmatpush3.bf16.msra.mxu1 %v12686_v47 }
0x3e5a   :  { %12231 = vmatprep.subr.bf16.mxu1 %v13126_v4 }
0x3ea0   :  { %v6845_v30 = vpop.permute.xlu1 %6844 }
0x3ea1   :  { %v6850_v11 = vadd.f32 %v6845_v30, %v14550_v46 }
0x3ea2   :  { %v6847_v63 = vpop.permute.xlu0 %6846 }
0x3ea3   :  { %v6851_v40 = vadd.f32 %v6847_v63, %v14550_v46  ;;  %v7069_v29 = vsel %vm422_vm4, %v7067_v18, %v6850_v11 }
0x3f27   :  { %v7003_v55 = vpop.f32.mrb[220].mxu1 }
0x3f28   :  { %7059 = vrot.lane.b32.xlu1 %v7003_v55, %s13137_s28  ;;  %v12207_v9 = vpop.f32.mrb[221].mxu1 }
0x3f29   :  { %v7006_v1 = vpop.f32.mrb[222].mxu1  ;;  %v7051_v26 = vpop.f32.mrb[224].mxu0 }
0x3f2a   :  { %v12208_v31 = vpop.f32.mrb[223].mxu1  ;;  %7061 = vrot.lane.b32.xlu0 %v7051_v26, %s13137_s28  ;;  %v12213_v39 = vpop.f32.mrb[225].mxu0 }
0x3f2b   :  { %v7054_v22 = vpop.f32.mrb[226].mxu0 }
0x3f2c   :  { %v12214_v41 = vpop.f32.mrb[227].mxu0  ;;  %7086 = vrot.lane.b32.xlu1 %v14520_v62, %s13138_s1  ;;  %v6420_v62 = vadd.f32 %v14607_v53, %v14550_v46  ;;  %v12687_v53 = vld [vmem:[%s15393_s18] sm:$0xff]  }
0x3f2e   :  { %v7068_v27 = vsel %vm213_vm1, %v6420_v62, %v6636_v24  ;;  %7168 = vrot.lane.b32.xlu0 %v14698_v32, %s13128_s0 }
0x3f2f   :  { %v7070_v20 = vsel %vm422_vm4, %v7068_v27, %v6851_v40 }
0x3f9a   :  { %v7060_v42 = vpop.permute.xlu1 %7059 }
0x3f9b   :  { %v7065_v49 = vadd.f32 %v7060_v42, %v14550_v46 }
0x3f9c   :  { %v7062_v34 = vpop.permute.xlu0 %7061 }
0x3f9d   :  { %v7066_v19 = vadd.f32 %v7062_v34, %v14550_v46  ;;  %v7071_v25 = vsel %vm1211_vm5, %v7069_v29, %v7065_v49  ;;  %v12689_v46 = vld [vmem:[%s15394_s25] sm:$0xff]  }
0x3f9e   :  { %12224 = vmatpush3.bf16.msra.mxu0 %v12689_v46  ;;  %v7087_v5 = vpop.permute.xlu1 %7086 }
0x3f9f   :  { %v7072_v58 = vsel %vm1211_vm5, %v7070_v20, %v7066_v19  ;;  %12225 = vmatprep.subr.bf16.mxu0 %v13126_v4 }
0x3fa0   :  { %v7073_v38 = vpack.c.bf16 %v7072_v58, %v7071_v25  ;;  %v7169_v60 = vpop.permute.xlu0 %7168 }
0x3fa2   :  { %12220 = vmatmul.mubr.msk.bf16.vlgmr.msra.gmra.mrb[224].mxu1 %vm288_vm3, %v7073_v38  ;;  %12226 = vmatpush3.bf16.msra.mxu0 %v12690_v6 }
0x3fa3   :  { %12232 = vmatpush3.bf16.msra.mxu1 %v12687_v53  ;;  %12235 = vmatprep.mubr.msk.bf16.mxu1 %vm13127_vm2, %v13126_v4 }
0x3fa4   :  { %12233 = vmatprep.subr.bf16.mxu1 %v13126_v4  ;;  %12239 = vmatprep.subr.bf16.mxu0 %v13126_v4 }
0x3fa7   :  { %12234 = vmatpush3.bf16.msra.mxu1 %v12688_v33 }
0x3fa8   :  { %12245 = vmatprep.subr.bf16.mxu1 %v13126_v4 }
0x3faa   :  { %12236 = vmatmul.mubr.msk.bf16.vlgmr.msra.gmra.mrb[228].mxu1 %vm288_vm3, %v14538_v23 }
0x3fab   :  { %12247 = vmatprep.mubr.msk.bf16.mxu1 %vm13127_vm2, %v13126_v4 }
0x4075   :  { %v7126_v45 = vpop.f32.mrb[224].mxu1 }
0x4076   :  { %v7127_v21 = vadd.f32 %v7126_v45, %v7087_v5  ;;  %v12221_v23 = vpop.f32.mrb[225].mxu1 }
0x4077   :  { %v7129_v15 = vpop.f32.mrb[226].mxu1 }
0x4078   :  { %v7133_v35 = vmax.f32 %v7127_v21, 0.0  ;;  %v7130_v44 = vadd.f32 %v7129_v15, %v7087_v5  ;;  %v12222_v36 = vpop.f32.mrb[227].mxu1 }
0x407a   :  { %v7134_v51 = vmax.f32 %v7130_v44, 0.0  ;;  %v7135_v7 = vadd.f32 %v7133_v35, %v7071_v25 }
0x407c   :  { %v7136_v48 = vadd.f32 %v7134_v51, %v7072_v58 }
0x407d   :  { %v7264_v17 = vpop.f32.mrb[228].mxu1 }
0x407e   :  { %v7150_v10 = vpack.c.bf16 %v7136_v48, %v7135_v7  ;;  %v12237_v56 = vpop.f32.mrb[229].mxu1  ;;  %v7265_v59 = vadd.f32 %v14698_v32, %v7264_v17 }
0x407f   :  { %v7267_v57 = vpop.f32.mrb[230].mxu1 }
0x4080   :  { %12228 = vmatmul.mubr.msk.bf16.vlgmr.msra.gmra.mrb[228].mxu0 %vm288_vm3, %v7150_v10  ;;  %v12238_v28 = vpop.f32.mrb[231].mxu1  ;;  %v7277_v3 = vrot.slane %v7265_v59, %v14532_v13 }
0x4081   :  { %12241 = vmatprep.mubr.msk.bf16.mxu0 %vm13127_vm2, %v13126_v4 }
0x4082   :  { %v7278_v47 = vcombine.high %v7277_v3, %v7277_v3  ;;  %v14715_v1 = vrot.slane %v7277_v3, %v14532_v13 }
0x4084   :  { %v14721_v31 = vrot.slane %v7278_v47, %v14532_v13  ;;  %v14726_v39 = vpack.c.bf16 %v14715_v1, %v14715_v1 }
0x4086   :  { %v14732_v22 = vpack.c.bf16 %v14721_v31, %v14721_v31 }
0x4153   :  { %v7208_v0 = vpop.f32.mrb[228].mxu0 }
0x4154   :  { %v7209_v2 = vadd.f32 %v7208_v0, %v7169_v60  ;;  %v12229_v54 = vpop.f32.mrb[229].mxu0 }
0x4155   :  { %v7211_v50 = vpop.f32.mrb[230].mxu0 }
0x4156   :  { %v14708_v8 = vpack.c.bf16 %v7209_v2, %v7209_v2  ;;  %v7212_v12 = vadd.f32 %v7211_v50, %v7169_v60  ;;  %v12230_v37 = vpop.f32.mrb[231].mxu0 }
0x4158   :  { %v14710_v55 = vpack.c.bf16 %v7212_v12, %v7212_v12  ;;  %v7301_v9 = vsel %vm213_vm1, %v14708_v8, 0 }
0x4159   :  { %12240 = vmatpush3.bf16.xpose.msra.mxu0 %v7301_v9 }
0x415a   :  { %v7347_v26 = vsel %vm213_vm1, %v14710_v55, 0  ;;  %12251 = vmatprep.subr.bf16.mxu0 %v13126_v4 }
0x415b   :  { %12246 = vmatpush3.bf16.xpose.msra.mxu1 %v7347_v26 }
0x415c   :  { %12257 = vmatprep.subr.bf16.mxu1 %v13126_v4 }
0x4160   :  { %12242 = vmatmul.mubr.msk.bf16.vlgmr.msra.gmra.mrb[232].mxu0 %vm213_vm1, %v14726_v39 }
0x4161   :  { %12253 = vmatprep.mubr.msk.bf16.mxu0 %vm13127_vm2, %v13126_v4 }
0x4162   :  { %12248 = vmatmul.mubr.msk.bf16.vlgmr.msra.gmra.mrb[232].mxu1 %vm213_vm1, %v14732_v22 }
0x4163   :  { %12259 = vmatprep.mubr.msk.bf16.mxu1 %vm13127_vm2, %v13126_v4 }
0x4233   :  { %v7337_v41 = vpop.f32.mrb[232].mxu0 }
0x4234   :  { %v12243_v43 = vpop.f32.mrb[233].mxu0  ;;  %v7390_v61 = vsel %vm7389_vm10, %v7337_v41, -inf }
0x4235   :  { %v7383_v30 = vpop.f32.mrb[232].mxu1  ;;  %7391 = vmax.xlane.f32.xlu0 %v7390_v61  ;;  %v7340_v63 = vpop.f32.mrb[234].mxu0 }
0x4236   :  { %v12244_v52 = vpop.f32.mrb[235].mxu0  ;;  %v12249_v24 = vpop.f32.mrb[233].mxu1  ;;  %v7393_v11 = vsel %vm7389_vm10, %v7383_v30, -inf }
0x4237   :  { %7394 = vmax.xlane.f32.xlu1 %v7393_v11  ;;  %v7386_v40 = vpop.f32.mrb[234].mxu1 }
0x4238   :  { %v12250_v42 = vpop.f32.mrb[235].mxu1 }
0x4248   :  { %7415 = vrot.lane.b32.xlu1 %v14708_v8, %s13128_s0 }
0x424b   :  { %7464 = vrot.lane.b32.xlu0 %v14710_v55, %s13128_s0 }
0x424c   :  { %7568 = vrot.lane.b32.xlu1 %v14710_v55, %s13129_s5 }
0x42c2   :  { %v7392_v14 = vpop.xlane.xlu0 %7391 }
0x42c3   :  { %v7396_v62 = vsub.f32 %v7337_v41, %v7392_v14 }
0x42c4   :  { %v7395_v49 = vpop.xlane.xlu1 %7394 }
0x42c5   :  { %v7398_v34 = vmul.f32 1.442695, %v7396_v62  ;;  %v7397_v18 = vsub.f32 %v7383_v30, %v7395_v49 }
0x42c6   :  { %v7465_v27 = vpop.permute.xlu0 %7464 }
0x42c7   :  { %12963 = vpow2.f32 %v7398_v34  ;;  %v7400_v19 = vmul.f32 1.442695, %v7397_v18  ;;  %v7470_v29 = vsel %vm220_vm0, %v7465_v27, 0 }
0x42c8   :  { %v7416_v20 = vpop.permute.xlu1 %7415  ;;  %12258 = vmatpush3.bf16.msra.mxu1 %v7470_v29 }
0x42c9   :  { %12965 = vpow2.f32 %v7400_v19  ;;  %v7421_v25 = vsel %vm220_vm0, %v7416_v20, 0  ;;  %12269 = vmatprep.subr.bf16.mxu1 %v13126_v4 }
0x42ca   :  { %12252 = vmatpush3.bf16.msra.mxu0 %v7421_v25 }
0x42cb   :  { %12263 = vmatprep.subr.bf16.mxu0 %v13126_v4 }
0x42cc   :  { %v7569_v46 = vpop.permute.xlu1 %7568 }
0x42cd   :  { %v7574_v7 = vsel %vm213_vm1, %v7569_v46, 0 }
0x42d1   :  { %v12964_v58 = vpop.eup %12963 }
0x42d2   :  { %v7402_v53 = vsel %vm7389_vm10, %v12964_v58, 0.0 }
0x42d3   :  { %v12966_v38 = vpop.eup %12965  ;;  %7403 = vadd.xlane.f32.xlu1 %v7402_v53 }
0x42d4   :  { %v7405_v33 = vsel %vm7389_vm10, %v12966_v38, 0.0 }
0x42d5   :  { %7406 = vadd.xlane.f32.xlu0 %v7405_v33 }
0x42e4   :  { %7566 = vrot.lane.b32.xlu1 %v14732_v22, %s13129_s5 }
0x42eb   :  { %7517 = vrot.lane.b32.xlu0 %v14708_v8, %s13129_s5 }
0x42ef   :  { %7515 = vrot.lane.b32.xlu0 %v14726_v39, %s13129_s5 }
0x4360   :  { %v7404_v6 = vpop.xlane.xlu1 %7403 }
0x4361   :  { %12967 = vrcp.f32 %v7404_v6 }
0x4362   :  { %v7407_v5 = vpop.xlane.xlu0 %7406 }
0x4363   :  { %12969 = vrcp.f32 %v7407_v5 }
0x4364   :  { %v7567_v17 = vpop.permute.xlu1 %7566 }
0x4366   :  { %v7518_v15 = vpop.permute.xlu0 %7517 }
0x4367   :  { %v7523_v36 = vsel %vm213_vm1, %v7518_v15, 0 }
0x436a   :  { %v7516_v48 = vpop.permute.xlu0 %7515 }
0x436b   :  { %v12968_v45 = vpop.eup %12967 }
0x436c   :  { %v7410_v21 = vmul.f32 %v12968_v45, %v12964_v58 }
0x436d   :  { %v12970_v23 = vpop.eup %12969 }
0x436e   :  { %v7412_v35 = vpack.c.bf16 %v7410_v21, %v7410_v21  ;;  %v7411_v44 = vmul.f32 %v12970_v23, %v12966_v38 }
0x4370   :  { %12254 = vmatmul.mubr.msk.bf16.vlgmr.msra.gmra.mrb[236].mxu0 %vm213_vm1, %v7412_v35  ;;  %v7413_v51 = vpack.c.bf16 %v7411_v44, %v7411_v44 }
0x4371   :  { %12264 = vmatpush3.bf16.xpose.msra.mxu0 %v7523_v36  ;;  %12265 = vmatprep.mubr.msk.bf16.mxu0 %vm13127_vm2, %v13126_v4 }
0x4372   :  { %12260 = vmatmul.mubr.msk.bf16.vlgmr.msra.gmra.mrb[236].mxu1 %vm213_vm1, %v7413_v51  ;;  %12275 = vmatprep.subr.bf16.mxu0 %v13126_v4 }
0x4373   :  { %12270 = vmatpush3.bf16.xpose.msra.mxu1 %v7574_v7  ;;  %12271 = vmatprep.mubr.msk.bf16.mxu1 %vm13127_vm2, %v13126_v4 }
0x4374   :  { %12281 = vmatprep.subr.bf16.mxu1 %v13126_v4 }
0x4378   :  { %12266 = vmatmul.mubr.msk.bf16.vlgmr.msra.gmra.mrb[240].mxu0 %vm213_vm1, %v7516_v48 }
0x4379   :  { %12277 = vmatprep.mubr.msk.bf16.mxu0 %vm13127_vm2, %v13126_v4 }
0x437a   :  { %12272 = vmatmul.mubr.msk.bf16.vlgmr.msra.gmra.mrb[240].mxu1 %vm213_vm1, %v7567_v17 }
0x437b   :  { %12283 = vmatprep.mubr.msk.bf16.mxu1 %vm13127_vm2, %v13126_v4 }
0x4443   :  { %v14776_v10 = vpop.f32.mrb[236].mxu0 }
0x4444   :  { %v12255_v56 = vpop.f32.mrb[237].mxu0 }
0x4445   :  { %v7460_v57 = vpop.f32.mrb[238].mxu0  ;;  %v14778_v28 = vpop.f32.mrb[236].mxu1 }
0x4446   :  { %v12256_v59 = vpop.f32.mrb[239].mxu0  ;;  %v12261_v60 = vpop.f32.mrb[237].mxu1 }
0x4447   :  { %v7509_v0 = vpop.f32.mrb[238].mxu1 }
0x4448   :  { %v12262_v3 = vpop.f32.mrb[239].mxu1 }
0x444b   :  { %v7559_v2 = vpop.f32.mrb[240].mxu0 }
0x444c   :  { %v12267_v54 = vpop.f32.mrb[241].mxu0  ;;  %v7616_v50 = vsel %vm7389_vm10, %v7559_v2, -inf }
0x444d   :  { %v7610_v12 = vpop.f32.mrb[240].mxu1  ;;  %7617 = vmax.xlane.f32.xlu0 %v7616_v50  ;;  %v7562_v37 = vpop.f32.mrb[242].mxu0 }
0x444e   :  { %v12268_v47 = vpop.f32.mrb[243].mxu0  ;;  %v12273_v9 = vpop.f32.mrb[241].mxu1  ;;  %v7619_v26 = vsel %vm7389_vm10, %v7610_v12, -inf }
0x444f   :  { %7620 = vmax.xlane.f32.xlu1 %v7619_v26  ;;  %v7613_v41 = vpop.f32.mrb[242].mxu1 }
0x4450   :  { %v12274_v43 = vpop.f32.mrb[243].mxu1 }
0x4460   :  { %7640 = vrot.lane.b32.xlu1 %v14708_v8, %s13130_s9 }
0x4463   :  { %7688 = vrot.lane.b32.xlu0 %v14710_v55, %s13130_s9 }
0x4464   :  { %7826 = vrot.lane.b32.xlu1 %v14710_v55, %s13131_s13 }
0x44da   :  { %v7618_v61 = vpop.xlane.xlu0 %7617 }
0x44db   :  { %v7622_v30 = vsub.f32 %v7559_v2, %v7618_v61 }
0x44dc   :  { %v7621_v63 = vpop.xlane.xlu1 %7620 }
0x44dd   :  { %v7624_v52 = vmul.f32 1.442695, %v7622_v30  ;;  %v7623_v24 = vsub.f32 %v7610_v12, %v7621_v63 }
0x44de   :  { %v7689_v11 = vpop.permute.xlu0 %7688 }
0x44df   :  { %12971 = vpow2.f32 %v7624_v52  ;;  %v7626_v40 = vmul.f32 1.442695, %v7623_v24  ;;  %v7694_v42 = vsel %vm220_vm0, %v7689_v11, 0 }
0x44e0   :  { %v7641_v14 = vpop.permute.xlu1 %7640  ;;  %12282 = vmatpush3.bf16.msra.mxu1 %v7694_v42 }
0x44e1   :  { %12973 = vpow2.f32 %v7626_v40  ;;  %v7646_v62 = vsel %vm220_vm0, %v7641_v14, 0  ;;  %12293 = vmatprep.subr.bf16.mxu1 %v13126_v4 }
0x44e2   :  { %12276 = vmatpush3.bf16.msra.mxu0 %v7646_v62 }
0x44e3   :  { %12287 = vmatprep.subr.bf16.mxu0 %v13126_v4 }
0x44e4   :  { %v7827_v19 = vpop.permute.xlu1 %7826 }
0x44e5   :  { %v7832_v45 = vsel %vm213_vm1, %v7827_v19, 0 }
0x44e9   :  { %v12972_v49 = vpop.eup %12971 }
0x44ea   :  { %v7628_v34 = vsel %vm7389_vm10, %v12972_v49, 0.0 }
0x44eb   :  { %v12974_v18 = vpop.eup %12973  ;;  %7629 = vadd.xlane.f32.xlu1 %v7628_v34 }
0x44ec   :  { %v7631_v27 = vsel %vm7389_vm10, %v12974_v18, 0.0 }
0x44ed   :  { %7632 = vadd.xlane.f32.xlu0 %v7631_v27 }
0x44fc   :  { %7824 = vrot.lane.b32.xlu1 %v14732_v22, %s13131_s13 }
0x4503   :  { %7776 = vrot.lane.b32.xlu0 %v14708_v8, %s13131_s13 }
0x4507   :  { %7774 = vrot.lane.b32.xlu0 %v14726_v39, %s13131_s13 }
0x4578   :  { %v7630_v29 = vpop.xlane.xlu1 %7629 }
0x4579   :  { %12975 = vrcp.f32 %v7630_v29 }
0x457a   :  { %v7633_v20 = vpop.xlane.xlu0 %7632 }
0x457b   :  { %12977 = vrcp.f32 %v7633_v20 }
0x457c   :  { %v7825_v23 = vpop.permute.xlu1 %7824 }
0x457e   :  { %v7777_v38 = vpop.permute.xlu0 %7776 }
0x457f   :  { %v7782_v6 = vsel %vm213_vm1, %v7777_v38, 0 }
0x4582   :  { %v7775_v21 = vpop.permute.xlu0 %7774 }
0x4583   :  { %v12976_v25 = vpop.eup %12975 }
0x4584   :  { %v7636_v58 = vmul.f32 %v12976_v25, %v12972_v49 }
0x4585   :  { %v12978_v53 = vpop.eup %12977 }
0x4586   :  { %v7637_v33 = vmul.f32 %v12978_v53, %v12974_v18  ;;  %v7638_v46 = vpack.c.bf16 %v7636_v58, %v7636_v58 }
0x4588   :  { %12278 = vmatmul.mubr.msk.bf16.vlgmr.msra.gmra.mrb[244].mxu0 %vm213_vm1, %v7638_v46  ;;  %v7639_v5 = vpack.c.bf16 %v7637_v33, %v7637_v33 }
0x4589   :  { %12288 = vmatpush3.bf16.xpose.msra.mxu0 %v7782_v6  ;;  %12289 = vmatprep.mubr.msk.bf16.mxu0 %vm13127_vm2, %v13126_v4 }
0x458a   :  { %12284 = vmatmul.mubr.msk.bf16.vlgmr.msra.gmra.mrb[244].mxu1 %vm213_vm1, %v7639_v5  ;;  %12299 = vmatprep.subr.bf16.mxu0 %v13126_v4 }
0x458b   :  { %12294 = vmatpush3.bf16.xpose.msra.mxu1 %v7832_v45  ;;  %12295 = vmatprep.mubr.msk.bf16.mxu1 %vm13127_vm2, %v13126_v4 }
0x458c   :  { %12305 = vmatprep.subr.bf16.mxu1 %v13126_v4 }
0x4590   :  { %12290 = vmatmul.mubr.msk.bf16.vlgmr.msra.gmra.mrb[248].mxu0 %vm213_vm1, %v7775_v21 }
0x4591   :  { %12301 = vmatprep.mubr.msk.bf16.mxu0 %vm13127_vm2, %v13126_v4 }
0x4592   :  { %12296 = vmatmul.mubr.msk.bf16.vlgmr.msra.gmra.mrb[248].mxu1 %vm213_vm1, %v7825_v23 }
0x4593   :  { %12307 = vmatprep.mubr.msk.bf16.mxu1 %vm13127_vm2, %v13126_v4 }
0x465b   :  { %v14816_v15 = vpop.f32.mrb[244].mxu0 }
0x465c   :  { %v12279_v35 = vpop.f32.mrb[245].mxu0 }
0x465d   :  { %v7685_v44 = vpop.f32.mrb[246].mxu0  ;;  %v14818_v36 = vpop.f32.mrb[244].mxu1 }
0x465e   :  { %v12280_v51 = vpop.f32.mrb[247].mxu0  ;;  %v12285_v7 = vpop.f32.mrb[245].mxu1 }
0x465f   :  { %v7733_v48 = vpop.f32.mrb[246].mxu1 }
0x4660   :  { %v12286_v17 = vpop.f32.mrb[247].mxu1 }
0x4663   :  { %v7818_v56 = vpop.f32.mrb[248].mxu0 }
0x4664   :  { %v12291_v57 = vpop.f32.mrb[249].mxu0  ;;  %v7874_v59 = vsel %vm7389_vm10, %v7818_v56, -inf }
0x4665   :  { %v7868_v60 = vpop.f32.mrb[248].mxu1  ;;  %7875 = vmax.xlane.f32.xlu0 %v7874_v59  ;;  %v7821_v0 = vpop.f32.mrb[250].mxu0 }
0x4666   :  { %v12292_v3 = vpop.f32.mrb[251].mxu0  ;;  %v12297_v2 = vpop.f32.mrb[249].mxu1  ;;  %v7877_v54 = vsel %vm7389_vm10, %v7868_v60, -inf }
0x4667   :  { %7878 = vmax.xlane.f32.xlu1 %v7877_v54  ;;  %v7871_v50 = vpop.f32.mrb[250].mxu1 }
0x4668   :  { %v12298_v12 = vpop.f32.mrb[251].mxu1 }
0x4678   :  { %7898 = vrot.lane.b32.xlu1 %v14708_v8, %s13132_s17 }
0x467b   :  { %7946 = vrot.lane.b32.xlu0 %v14710_v55, %s13132_s17 }
0x467c   :  { %8084 = vrot.lane.b32.xlu1 %v14710_v55, %s13133_s21 }
0x46f2   :  { %v7876_v37 = vpop.xlane.xlu0 %7875 }
0x46f3   :  { %v7880_v47 = vsub.f32 %v7818_v56, %v7876_v37 }
0x46f4   :  { %v7879_v9 = vpop.xlane.xlu1 %7878 }
0x46f5   :  { %v7882_v26 = vmul.f32 1.442695, %v7880_v47  ;;  %v7881_v41 = vsub.f32 %v7868_v60, %v7879_v9 }
0x46f6   :  { %v7947_v43 = vpop.permute.xlu0 %7946 }
0x46f7   :  { %12979 = vpow2.f32 %v7882_v26  ;;  %v7884_v61 = vmul.f32 1.442695, %v7881_v41  ;;  %v7952_v30 = vsel %vm220_vm0, %v7947_v43, 0  ;;  %v7758_v41 = vrot.slane %v14818_v36, %v14532_v13 }
0x46f8   :  { %v7899_v63 = vpop.permute.xlu1 %7898  ;;  %12306 = vmatpush3.bf16.msra.mxu1 %v7952_v30  ;;  %v7744_v43 = vrot.slane %v14816_v15, %v14532_v13 }
0x46f9   :  { %12981 = vpow2.f32 %v7884_v61  ;;  %v7904_v52 = vsel %vm220_vm0, %v7899_v63, 0  ;;  %12317 = vmatprep.subr.bf16.mxu1 %v13126_v4  ;;  %v7765_v61 = vrot.slane %v7758_v41, %v14532_v13 }
0x46fa   :  { %12300 = vmatpush3.bf16.msra.mxu0 %v7904_v52  ;;  %v7751_v63 = vrot.slane %v7744_v43, %v14532_v13  ;;  %v12694_v43 = vld [vmem:[%s15397_s8 + $0x8] sm:$0xff]  }
0x46fb   :  { %12311 = vmatprep.subr.bf16.mxu0 %v13126_v4 }
0x46fc   :  { %v8085_v14 = vpop.permute.xlu1 %8084 }
0x4701   :  { %v12980_v24 = vpop.eup %12979 }
0x4702   :  { %v7886_v11 = vsel %vm7389_vm10, %v12980_v24, 0.0 }
0x4703   :  { %v12982_v40 = vpop.eup %12981  ;;  %7887 = vadd.xlane.f32.xlu1 %v7886_v11 }
0x4704   :  { %v7889_v42 = vsel %vm7389_vm10, %v12982_v40, 0.0 }
0x4705   :  { %7890 = vadd.xlane.f32.xlu0 %v7889_v42 }
0x4714   :  { %8082 = vrot.lane.b32.xlu1 %v14732_v22, %s13133_s21 }
0x471b   :  { %8034 = vrot.lane.b32.xlu0 %v14708_v8, %s13133_s21 }
0x471f   :  { %8032 = vrot.lane.b32.xlu0 %v14726_v39, %s13133_s21  ;;  %v8090_v39 = vsel %vm213_vm1, %v8085_v14, 0 }
0x4790   :  { %v7888_v62 = vpop.xlane.xlu1 %7887 }
0x4791   :  { %12983 = vrcp.f32 %v7888_v62 }
0x4792   :  { %v7891_v49 = vpop.xlane.xlu0 %7890 }
0x4793   :  { %12985 = vrcp.f32 %v7891_v49 }
0x4794   :  { %v8083_v53 = vpop.permute.xlu1 %8082 }
0x4796   :  { %v8035_v19 = vpop.permute.xlu0 %8034 }
0x4797   :  { %v8040_v25 = vsel %vm213_vm1, %v8035_v19, 0  ;;  %v12691_v19 = vld [vmem:[%s15396_s3] sm:$0xff]  }
0x479a   :  { %v8033_v58 = vpop.permute.xlu0 %8032 }
0x479b   :  { %v12984_v34 = vpop.eup %12983 }
0x479c   :  { %v7894_v18 = vmul.f32 %v12984_v34, %v12980_v24 }
0x479d   :  { %v12986_v27 = vpop.eup %12985 }
0x479e   :  { %v7895_v29 = vmul.f32 %v12986_v27, %v12982_v40  ;;  %v7896_v20 = vpack.c.bf16 %v7894_v18, %v7894_v18 }
0x47a0   :  { %12302 = vmatmul.mubr.msk.bf16.vlgmr.msra.gmra.mrb[252].mxu0 %vm213_vm1, %v7896_v20  ;;  %v7897_v22 = vpack.c.bf16 %v7895_v29, %v7895_v29 }
0x47a1   :  { %12312 = vmatpush3.bf16.xpose.msra.mxu0 %v8040_v25  ;;  %12313 = vmatprep.mubr.msk.bf16.mxu0 %vm13127_vm2, %v13126_v4 }
0x47a2   :  { %12308 = vmatmul.mubr.msk.bf16.vlgmr.msra.gmra.mrb[252].mxu1 %vm213_vm1, %v7897_v22  ;;  %12323 = vmatprep.subr.bf16.mxu0 %v13126_v4 }
0x47a3   :  { %12318 = vmatpush3.bf16.xpose.msra.mxu1 %v8090_v39  ;;  %12319 = vmatprep.mubr.msk.bf16.mxu1 %vm13127_vm2, %v13126_v4 }
0x47a4   :  { %12329 = vmatprep.subr.bf16.mxu1 %v13126_v4 }
0x47a8   :  { %12314 = vmatmul.mubr.msk.bf16.vlgmr.msra.gmra.mrb[0].mxu0 %vm213_vm1, %v8033_v58 }
0x47a9   :  { %12325 = vmatprep.mubr.msk.bf16.mxu0 %vm13127_vm2, %v13126_v4 }
0x47aa   :  { %12320 = vmatmul.mubr.msk.bf16.vlgmr.msra.gmra.mrb[0].mxu1 %vm213_vm1, %v8083_v53 }
0x47ab   :  { %12331 = vmatprep.mubr.msk.bf16.mxu1 %vm13127_vm2, %v13126_v4 }
0x4873   :  { %v7940_v38 = vpop.f32.mrb[252].mxu0 }
0x4874   :  { %v12303_v33 = vpop.f32.mrb[253].mxu0  ;;  %v8002_v52 = vrot.slane %v7940_v38, %v14532_v13  ;;  %v12692_v38 = vld [vmem:[%s15396_s3 + $0x8] sm:$0xff]  }
0x4875   :  { %v7943_v46 = vpop.f32.mrb[254].mxu0  ;;  %v7988_v6 = vpop.f32.mrb[252].mxu1 }
0x4876   :  { %v12304_v5 = vpop.f32.mrb[255].mxu0  ;;  %v12309_v45 = vpop.f32.mrb[253].mxu1  ;;  %v8016_v30 = vrot.slane %v7988_v6, %v14532_v13  ;;  %v8009_v36 = vrot.slane %v8002_v52, %v14532_v13  ;;  %v8391_v52 = vld [vmem:[%s15400_s24] sm:$0xf] }
0x4877   :  { %v7991_v21 = vpop.f32.mrb[254].mxu1 }
0x4878   :  { %v12310_v23 = vpop.f32.mrb[255].mxu1 }
0x487b   :  { %v8076_v35 = vpop.f32.mrb[0].mxu0 }
0x487c   :  { %v12315_v44 = vpop.f32.mrb[1].mxu0  ;;  %v8132_v51 = vsel %vm7389_vm10, %v8076_v35, -inf }
0x487d   :  { %v8126_v7 = vpop.f32.mrb[0].mxu1  ;;  %8133 = vmax.xlane.f32.xlu0 %v8132_v51  ;;  %v8079_v48 = vpop.f32.mrb[2].mxu0  ;;  %v7513_v44 = vadd.f32 %v14778_v28, %v14721_v31 }
0x487e   :  { %v12316_v17 = vpop.f32.mrb[3].mxu0  ;;  %v12321_v56 = vpop.f32.mrb[1].mxu1  ;;  %v8135_v57 = vsel %vm7389_vm10, %v8126_v7, -inf }
0x487f   :  { %8136 = vmax.xlane.f32.xlu1 %v8135_v57  ;;  %v8129_v59 = vpop.f32.mrb[2].mxu1 }
0x4880   :  { %v12322_v60 = vpop.f32.mrb[3].mxu1 }
0x490a   :  { %v8134_v0 = vpop.xlane.xlu0 %8133 }
0x490b   :  { %v8138_v3 = vsub.f32 %v8076_v35, %v8134_v0  ;;  %v7512_v0 = vadd.f32 %v14776_v10, %v14715_v1 }
0x490c   :  { %v8137_v2 = vpop.xlane.xlu1 %8136 }
0x490d   :  { %v8140_v54 = vmul.f32 1.442695, %v8138_v3  ;;  %v8139_v50 = vsub.f32 %v8126_v7, %v8137_v2 }
0x490f   :  { %12987 = vpow2.f32 %v8140_v54  ;;  %v8142_v12 = vmul.f32 1.442695, %v8139_v50 }
0x4911   :  { %12989 = vpow2.f32 %v8142_v12 }
0x4919   :  { %v12988_v37 = vpop.eup %12987 }
0x491a   :  { %v8144_v47 = vsel %vm7389_vm10, %v12988_v37, 0.0 }
0x491b   :  { %v12990_v9 = vpop.eup %12989  ;;  %8145 = vadd.xlane.f32.xlu1 %v8144_v47 }
0x491c   :  { %v8147_v26 = vsel %vm7389_vm10, %v12990_v9, 0.0 }
0x491d   :  { %8148 = vadd.xlane.f32.xlu0 %v8147_v26 }
0x492c   :  { %8156 = vrot.lane.b32.xlu1 %v14708_v8, %s13134_s22  ;;  %v8023_v8 = vrot.slane %v8016_v30, %v14532_v13  ;;  %v14926_v30 = vld [vmem:[%s15399_s19] ss:$0 sm:$0xff] }
0x4930   :  { %7768 = vrot.lane.b32.xlu1 %v7765_v61, %s13135_s23  ;;  %v12695_v61 = vld [vmem:[%s15398_s14] sm:$0xff]  }
0x4933   :  { %8204 = vrot.lane.b32.xlu0 %v14710_v55, %s13134_s22 }
0x4934   :  { %7766 = vrot.lane.b32.xlu1 %v7751_v63, %s13135_s23  ;;  %v12696_v63 = vld [vmem:[%s15398_s14 + $0x8] sm:$0xff]  }
0x4937   :  { %8026 = vrot.lane.b32.xlu0 %v8023_v8, %s13136_s26 }
0x4938   :  { %8024 = vrot.lane.b32.xlu1 %v8009_v36, %s13136_s26 }
0x493c   :  { %8317 = vrot.lane.b32.xlu1 %v14698_v32, %s13138_s1 }
0x49a8   :  { %v8146_v15 = vpop.xlane.xlu1 %8145 }
0x49a9   :  { %12991 = vrcp.f32 %v8146_v15 }
0x49aa   :  { %v8149_v24 = vpop.xlane.xlu0 %8148 }
0x49ab   :  { %12993 = vrcp.f32 %v8149_v24 }
0x49ac   :  { %v8157_v11 = vpop.permute.xlu1 %8156 }
0x49ad   :  { %v8162_v55 = vsel %vm220_vm0, %v8157_v11, 0 }
0x49ae   :  { %12324 = vmatpush3.bf16.msra.mxu0 %v8162_v55  ;;  %v8205_v40 = vpop.permute.xlu0 %8204 }
0x49af   :  { %v8210_v42 = vsel %vm220_vm0, %v8205_v40, 0  ;;  %12335 = vmatprep.subr.bf16.mxu0 %v13126_v4 }
0x49b0   :  { %12330 = vmatpush3.bf16.msra.mxu1 %v8210_v42  ;;  %v7769_v45 = vpop.permute.xlu1 %7768 }
0x49b1   :  { %12343 = vmatprep.subr.bf16.mxu1 %v13126_v4  ;;  %v7773_v23 = vadd.f32 %v7769_v45, %v14721_v31 }
0x49b2   :  { %v8027_v35 = vpop.permute.xlu0 %8026 }
0x49b3   :  { %v12992_v14 = vpop.eup %12991  ;;  %v8031_v51 = vadd.f32 %v8027_v35, %v14721_v31  ;;  %v8291_v7 = vsel %vm213_vm1, %v7513_v44, %v7773_v23 }
0x49b4   :  { %v8152_v62 = vmul.f32 %v12992_v14, %v12988_v37  ;;  %v7767_v21 = vpop.permute.xlu1 %7766 }
0x49b5   :  { %v12994_v32 = vpop.eup %12993  ;;  %v7772_v56 = vadd.f32 %v7767_v21, %v14715_v1  ;;  %v8293_v59 = vsel %vm422_vm4, %v8291_v7, %v8031_v51 }
0x49b6   :  { %v8154_v49 = vpack.c.bf16 %v8152_v62, %v8152_v62  ;;  %v8153_v34 = vmul.f32 %v12994_v32, %v12990_v9 }
0x49b7   :  { %v8290_v54 = vsel %vm213_vm1, %v7512_v0, %v7772_v56 }
0x49b8   :  { %v8155_v18 = vpack.c.bf16 %v8153_v34, %v8153_v34  ;;  %12326 = vmatmul.mubr.msk.bf16.vlgmr.msra.gmra.mrb[4].mxu0 %vm213_vm1, %v8154_v49  ;;  %v8025_v48 = vpop.permute.xlu1 %8024 }
0x49b9   :  { %12339 = vmatprep.mubr.msk.bf16.mxu0 %vm13127_vm2, %v13126_v4  ;;  %12336 = vmatpush3.bf16.msra.mxu0 %v12691_v19  ;;  %v8030_v60 = vadd.f32 %v8025_v48, %v14715_v1 }
0x49ba   :  { %12332 = vmatmul.mubr.msk.bf16.vlgmr.msra.gmra.mrb[4].mxu1 %vm213_vm1, %v8155_v18  ;;  %12337 = vmatprep.subr.bf16.mxu0 %v13126_v4 }
0x49bb   :  { %12347 = vmatprep.mubr.msk.bf16.mxu1 %vm13127_vm2, %v13126_v4  ;;  %v8292_v12 = vsel %vm422_vm4, %v8290_v54, %v8030_v60 }
0x49bc   :  { %v8318_v8 = vpop.permute.xlu1 %8317 }
0x49bd   :  { %12338 = vmatpush3.bf16.msra.mxu0 %v12692_v38 }
0x49be   :  { %12351 = vmatprep.subr.bf16.mxu0 %v13126_v4 }
0x4a8b   :  { %v8198_v27 = vpop.f32.mrb[4].mxu0 }
0x4a8c   :  { %v12327_v29 = vpop.f32.mrb[5].mxu0  ;;  %v8260_v33 = vrot.slane %v8198_v27, %v14532_v13 }
0x4a8d   :  { %v8201_v20 = vpop.f32.mrb[6].mxu0  ;;  %v8246_v25 = vpop.f32.mrb[4].mxu1 }
0x4a8e   :  { %v8274_v22 = vrot.slane %v8246_v25, %v14532_v13  ;;  %v12328_v39 = vpop.f32.mrb[7].mxu0  ;;  %v12333_v58 = vpop.f32.mrb[5].mxu1  ;;  %v8267_v5 = vrot.slane %v8260_v33, %v14532_v13 }
0x4a8f   :  { %v8249_v53 = vpop.f32.mrb[6].mxu1 }
0x4a90   :  { %v8281_v46 = vrot.slane %v8274_v22, %v14532_v13  ;;  %v12334_v6 = vpop.f32.mrb[7].mxu1 }
0x4a92   :  { %8284 = vrot.lane.b32.xlu0 %v8281_v46, %s13137_s28 }
0x4a96   :  { %8282 = vrot.lane.b32.xlu0 %v8267_v5, %s13137_s28 }
0x4a9a   :  { %8431 = vrot.lane.b32.xlu0 %v14926_v30, %s13128_s0 }
0x4b04   :  { %v8285_v17 = vpop.permute.xlu0 %8284 }
0x4b05   :  { %v8289_v57 = vadd.f32 %v8285_v17, %v14721_v31 }
0x4b07   :  { %v8295_v28 = vsel %vm1211_vm5, %v8293_v59, %v8289_v57 }
0x4b08   :  { %v8297_v3 = vpack.c.bf16 %v8295_v28, %v8295_v28  ;;  %v8283_v2 = vpop.permute.xlu0 %8282 }
0x4b09   :  { %v8288_v50 = vadd.f32 %v8283_v2, %v14715_v1  ;;  %v12693_v1 = vld [vmem:[%s15397_s8] sm:$0xff]  }
0x4b0a   :  { %v8301_v31 = vunpack.c.l.b16 %v8297_v3  ;;  %12344 = vmatpush3.bf16.msra.mxu1 %v12693_v1 }
0x4b0b   :  { %v8294_v37 = vsel %vm1211_vm5, %v8292_v12, %v8288_v50  ;;  %12345 = vmatprep.subr.bf16.mxu1 %v13126_v4 }
0x4b0c   :  { %v8296_v47 = vpack.c.bf16 %v8294_v37, %v8294_v37  ;;  %v8302_v10 = vrot.slane %v8301_v31, 7  ;;  %v8432_v33 = vpop.permute.xlu0 %8431 }
0x4b0e   :  { %v8300_v9 = vunpack.c.l.b16 %v8296_v47  ;;  %12346 = vmatpush3.bf16.msra.mxu1 %v12694_v43 }
0x4b0f   :  { %12359 = vmatprep.subr.bf16.mxu1 %v13126_v4 }
0x4b10   :  { %v8303_v26 = vsel %vm5955_vm7, %v8302_v10, %v8300_v9 }
0x4b11   :  { %v8304_v41 = vpack.c.b16 %v8303_v26, %v8303_v26 }
0x4b13   :  { %12340 = vmatmul.mubr.msk.bf16.vlgmr.msra.gmra.mrb[8].mxu0 %vm288_vm3, %v8304_v41 }
0x4b14   :  { %12355 = vmatprep.mubr.msk.bf16.mxu0 %vm13127_vm2, %v13126_v4  ;;  %12352 = vmatpush3.bf16.msra.mxu0 %v12695_v61 }
0x4b15   :  { %12353 = vmatprep.subr.bf16.mxu0 %v13126_v4 }
0x4b18   :  { %12354 = vmatpush3.bf16.msra.mxu0 %v12696_v63 }
0x4b19   :  { %12365 = vmatprep.subr.bf16.mxu0 %v13126_v4 }
0x4b1b   :  { %12356 = vmatmul.mubr.msk.bf16.vlgmr.msra.gmra.mrb[12].mxu0 %vm288_vm3, %v8391_v52 }
0x4b1c   :  { %12367 = vmatprep.mubr.msk.bf16.mxu0 %vm13127_vm2, %v13126_v4 }
0x4be6   :  { %v8357_v36 = vpop.f32.mrb[8].mxu0 }
0x4be7   :  { %v8358_v15 = vadd.f32 %v8357_v36, %v8318_v8  ;;  %v12341_v24 = vpop.f32.mrb[9].mxu0 }
0x4be8   :  { %v8360_v11 = vpop.f32.mrb[10].mxu0 }
0x4be9   :  { %v8363_v55 = vmax.f32 %v8358_v15, 0.0  ;;  %v12342_v40 = vpop.f32.mrb[11].mxu0 }
0x4beb   :  { %v8371_v42 = vrot.slane %v8363_v55, %v14532_v13 }
0x4bed   :  { %v8372_v14 = vcombine.high %v8371_v42, %v8371_v42  ;;  %v8379_v62 = vrot.slane %v8371_v42, %v14532_v13 }
0x4bee   :  { %v8554_v39 = vpop.f32.mrb[12].mxu0 }
0x4bef   :  { %v8386_v32 = vrot.slane %v8372_v14, %v14532_v13  ;;  %v8389_v49 = vadd.f32 %v8379_v62, %v8294_v37  ;;  %v12357_v58 = vpop.f32.mrb[13].mxu0  ;;  %v14953_v56 = vadd.f32 %v14926_v30, %v8554_v39 }
0x4bf0   :  { %v8557_v53 = vpop.f32.mrb[14].mxu0 }
0x4bf1   :  { %v8390_v34 = vadd.f32 %v8386_v32, %v8295_v28  ;;  %v8405_v18 = vpack.c.bf16 %v8389_v49, %v8389_v49  ;;  %v12358_v38 = vpop.f32.mrb[15].mxu0  ;;  %v8560_v59 = vpack.c.bf16 %v14953_v56, %v14953_v56 }
0x4bf3   :  { %v8406_v27 = vpack.c.bf16 %v8390_v34, %v8390_v34  ;;  %v8414_v29 = vunpack.c.l.b16 %v8405_v18 }
0x4bf5   :  { %v8415_v19 = vunpack.c.l.b16 %v8406_v27 }
0x4bf7   :  { %v8416_v20 = vrot.slane %v8415_v19, 7 }
0x4bf9   :  { %v8417_v25 = vsel %vm5955_vm7, %v8416_v20, %v8414_v29 }
0x4bfa   :  { %v14941_v22 = vpack.c.b16 %v8417_v25, %v8417_v25 }
0x4bfc   :  { %12348 = vmatmul.mubr.msk.bf16.vlgmr.msra.gmra.mrb[8].mxu1 %vm288_vm3, %v14941_v22 }
0x4bfd   :  { %12361 = vmatprep.mubr.msk.bf16.mxu1 %vm13127_vm2, %v13126_v4 }
0x4ccf   :  { %v8471_v46 = vpop.f32.mrb[8].mxu1 }
0x4cd0   :  { %v8472_v6 = vadd.f32 %v8471_v46, %v8432_v33  ;;  %v12349_v5 = vpop.f32.mrb[9].mxu1 }
0x4cd1   :  { %v8474_v45 = vpop.f32.mrb[10].mxu1 }
0x4cd2   :  { %v8484_v21 = vrot.slane %v8472_v6, %v14532_v13  ;;  %v12350_v23 = vpop.f32.mrb[11].mxu1 }
0x4cd4   :  { %v8485_v35 = vcombine.high %v8484_v21, %v8484_v21  ;;  %v8492_v44 = vrot.slane %v8484_v21, %v14532_v13 }
0x4cd6   :  { %v8499_v51 = vrot.slane %v8485_v35, %v14532_v13  ;;  %v8502_v7 = vpack.c.bf16 %v8492_v44, %v8492_v44 }
0x4cd8   :  { %v8503_v48 = vpack.c.bf16 %v8499_v51, %v8499_v51  ;;  %8665 = vrot.lane.b32.xlu1 %v8502_v7, %s13128_s0  ;;  %v8565_v17 = vsel %vm213_vm1, %v8502_v7, 0 }
0x4cd9   :  { %12360 = vmatpush3.bf16.xpose.msra.mxu1 %v8565_v17 }
0x4cda   :  { %8714 = vrot.lane.b32.xlu0 %v8503_v48, %s13128_s0  ;;  %v8608_v57 = vsel %vm213_vm1, %v8503_v48, 0  ;;  %12371 = vmatprep.subr.bf16.mxu1 %v13126_v4 }
0x4cdb   :  { %12366 = vmatpush3.bf16.xpose.msra.mxu0 %v8608_v57 }
0x4cdc   :  { %8767 = vrot.lane.b32.xlu1 %v8502_v7, %s13129_s5  ;;  %12377 = vmatprep.subr.bf16.mxu0 %v13126_v4 }
0x4cde   :  { %8815 = vrot.lane.b32.xlu0 %v8503_v48, %s13129_s5 }
0x4ce0   :  { %8765 = vrot.lane.b32.xlu1 %v8560_v59, %s13129_s5  ;;  %12362 = vmatmul.mubr.msk.bf16.vlgmr.msra.gmra.mrb[12].mxu1 %vm213_vm1, %v8560_v59 }
0x4ce1   :  { %12373 = vmatprep.mubr.msk.bf16.mxu1 %vm13127_vm2, %v13126_v4 }
0x4ce2   :  { %8874 = vrot.lane.b32.xlu0 %v8502_v7, %s13130_s9  ;;  %12368 = vmatmul.mubr.msk.bf16.vlgmr.msra.gmra.mrb[16].mxu0 %vm213_vm1, %v8560_v59 }
0x4ce3   :  { %12379 = vmatprep.mubr.msk.bf16.mxu0 %vm13127_vm2, %v13126_v4 }
0x4ce4   :  { %8922 = vrot.lane.b32.xlu1 %v8503_v48, %s13130_s9 }
0x4ce6   :  { %8982 = vrot.lane.b32.xlu0 %v8502_v7, %s13131_s13 }
0x4ce8   :  { %9030 = vrot.lane.b32.xlu1 %v8503_v48, %s13131_s13 }
0x4cea   :  { %8980 = vrot.lane.b32.xlu0 %v8560_v59, %s13131_s13 }
0x4cec   :  { %9089 = vrot.lane.b32.xlu1 %v8502_v7, %s13132_s17 }
0x4cee   :  { %9137 = vrot.lane.b32.xlu0 %v8503_v48, %s13132_s17 }
0x4cf0   :  { %9197 = vrot.lane.b32.xlu1 %v8502_v7, %s13133_s21 }
0x4cf2   :  { %9245 = vrot.lane.b32.xlu0 %v8503_v48, %s13133_s21 }
0x4cf4   :  { %9195 = vrot.lane.b32.xlu1 %v8560_v59, %s13133_s21 }
0x4cf6   :  { %9304 = vrot.lane.b32.xlu0 %v8502_v7, %s13134_s22 }
0x4cf8   :  { %9352 = vrot.lane.b32.xlu1 %v8503_v48, %s13134_s22 }
0x4d4a   :  { %v8666_v60 = vpop.permute.xlu1 %8665 }
0x4d4b   :  { %v8671_v0 = vand.u32 %v8666_v60, %v14579_v16 }
0x4d4c   :  { %v8715_v28 = vpop.permute.xlu0 %8714 }
0x4d4d   :  { %v8720_v3 = vand.u32 %v8715_v28, %v14579_v16  ;;  %12372 = vmatpush3.bf16.msra.mxu1 %v8671_v0 }
0x4d4e   :  { %12383 = vmatprep.subr.bf16.mxu1 %v13126_v4  ;;  %v8768_v63 = vpop.permute.xlu1 %8767 }
0x4d4f   :  { %12378 = vmatpush3.bf16.msra.mxu0 %v8720_v3  ;;  %v8773_v55 = vsel %vm213_vm1, %v8768_v63, 0 }
0x4d50   :  { %12389 = vmatprep.subr.bf16.mxu0 %v13126_v4  ;;  %v8816_v15 = vpop.permute.xlu0 %8815 }
0x4d51   :  { %v8818_v14 = vsel %vm213_vm1, %v8816_v15, 0 }
0x4d52   :  { %v8766_v40 = vpop.permute.xlu1 %8765 }
0x4d54   :  { %v8875_v62 = vpop.permute.xlu0 %8874 }
0x4d55   :  { %v8880_v49 = vand.u32 %v8875_v62, %v14579_v16 }
0x4d56   :  { %v8923_v32 = vpop.permute.xlu1 %8922 }
0x4d57   :  { %v8928_v34 = vand.u32 %v8923_v32, %v14579_v16 }
0x4d58   :  { %v8983_v17 = vpop.permute.xlu0 %8982 }
0x4d5a   :  { %v9031_v0 = vpop.permute.xlu1 %9030 }
0x4db3   :  { %v8601_v2 = vpop.f32.mrb[12].mxu1 }
0x4db4   :  { %v8650_v54 = vsub.f32 %v8601_v2, %v8601_v2  ;;  %v12363_v50 = vpop.f32.mrb[13].mxu1  ;;  %v8988_v2 = vsel %vm213_vm1, %v8983_v17, 0 }
0x4db5   :  { %v8604_v12 = vpop.f32.mrb[14].mxu1  ;;  %v8644_v31 = vpop.f32.mrb[16].mxu0 }
0x4db6   :  { %v8652_v37 = vmul.f32 1.442695, %v8650_v54  ;;  %v8651_v47 = vsub.f32 %v8644_v31, %v8644_v31  ;;  %v12364_v10 = vpop.f32.mrb[15].mxu1  ;;  %v12369_v9 = vpop.f32.mrb[17].mxu0  ;;  %v9033_v12 = vsel %vm213_vm1, %v9031_v0, 0 }
0x4db7   :  { %v8647_v26 = vpop.f32.mrb[18].mxu0  ;;  %v8981_v54 = vpop.permute.xlu0 %8980 }
0x4db8   :  { %12995 = vpow2.f32 %v8652_v37  ;;  %v8654_v41 = vmul.f32 1.442695, %v8651_v47  ;;  %v12370_v1 = vpop.f32.mrb[19].mxu0  ;;  %v9090_v31 = vpop.permute.xlu1 %9089 }
0x4db9   :  { %v9095_v47 = vand.u32 %v9090_v31, %v14579_v16 }
0x4dba   :  { %12997 = vpow2.f32 %v8654_v41 }
0x4dbb   :  { %v9138_v37 = vpop.permute.xlu0 %9137 }
0x4dbc   :  { %v9143_v10 = vand.u32 %v9138_v37, %v14579_v16 }
0x4dc2   :  { %v12996_v43 = vpop.eup %12995 }
0x4dc3   :  { %12999 = vrcp.f32 %v12996_v43 }
0x4dc4   :  { %v12998_v61 = vpop.eup %12997 }
0x4dc5   :  { %13001 = vrcp.f32 %v12998_v61 }
0x4dcd   :  { %v13000_v52 = vpop.eup %12999 }
0x4dce   :  { %v8660_v8 = vmul.f32 %v13000_v52, %v12996_v43 }
0x4dcf   :  { %v13002_v36 = vpop.eup %13001 }
0x4dd0   :  { %v8662_v24 = vpack.c.bf16 %v8660_v8, %v8660_v8  ;;  %v8661_v11 = vmul.f32 %v13002_v36, %v12998_v61 }
0x4dd2   :  { %v8663_v42 = vpack.c.bf16 %v8661_v11, %v8661_v11  ;;  %12374 = vmatmul.mubr.msk.bf16.vlgmr.msra.gmra.mrb[16].mxu1 %vm6320_vm9, %v8662_v24 }
0x4dd3   :  { %12384 = vmatpush3.bf16.xpose.msra.mxu1 %v8773_v55  ;;  %12385 = vmatprep.mubr.msk.bf16.mxu1 %vm13127_vm2, %v13126_v4 }
0x4dd4   :  { %12380 = vmatmul.mubr.msk.bf16.vlgmr.msra.gmra.mrb[20].mxu0 %vm6320_vm9, %v8663_v42  ;;  %12395 = vmatprep.subr.bf16.mxu1 %v13126_v4 }
0x4dd5   :  { %12390 = vmatpush3.bf16.xpose.msra.mxu0 %v8818_v14  ;;  %12391 = vmatprep.mubr.msk.bf16.mxu0 %vm13127_vm2, %v13126_v4 }
0x4dd6   :  { %12401 = vmatprep.subr.bf16.mxu0 %v13126_v4 }
0x4dda   :  { %12386 = vmatmul.mubr.msk.bf16.vlgmr.msra.gmra.mrb[20].mxu1 %vm213_vm1, %v8766_v40 }
0x4ddb   :  { %12396 = vmatpush3.bf16.msra.mxu1 %v8880_v49  ;;  %12397 = vmatprep.mubr.msk.bf16.mxu1 %vm13127_vm2, %v13126_v4 }
0x4ddc   :  { %12392 = vmatmul.mubr.msk.bf16.vlgmr.msra.gmra.mrb[24].mxu0 %vm213_vm1, %v8766_v40  ;;  %12407 = vmatprep.subr.bf16.mxu1 %v13126_v4 }
0x4ddd   :  { %12402 = vmatpush3.bf16.msra.mxu0 %v8928_v34  ;;  %12403 = vmatprep.mubr.msk.bf16.mxu0 %vm13127_vm2, %v13126_v4 }
0x4dde   :  { %12413 = vmatprep.subr.bf16.mxu0 %v13126_v4 }
0x4ea5   :  { %v15006_v18 = vpop.f32.mrb[16].mxu1 }
0x4ea6   :  { %v12375_v27 = vpop.f32.mrb[17].mxu1 }
0x4ea7   :  { %v8710_v19 = vpop.f32.mrb[18].mxu1  ;;  %v15008_v29 = vpop.f32.mrb[20].mxu0 }
0x4ea8   :  { %v12376_v20 = vpop.f32.mrb[19].mxu1  ;;  %v12381_v25 = vpop.f32.mrb[21].mxu0 }
0x4ea9   :  { %v8759_v39 = vpop.f32.mrb[22].mxu0  ;;  %v9198_v19 = vpop.permute.xlu1 %9197 }
0x4eaa   :  { %v12382_v58 = vpop.f32.mrb[23].mxu0 }
0x4eab   :  { %v9246_v58 = vpop.permute.xlu0 %9245 }
0x4ead   :  { %v8809_v53 = vpop.f32.mrb[20].mxu1 }
0x4eae   :  { %v8860_v38 = vsub.f32 %v8809_v53, %v8809_v53  ;;  %v12387_v33 = vpop.f32.mrb[21].mxu1 }
0x4eaf   :  { %v8812_v46 = vpop.f32.mrb[22].mxu1  ;;  %v8854_v6 = vpop.f32.mrb[24].mxu0  ;;  %v9203_v33 = vsel %vm213_vm1, %v9198_v19, 0 }
0x4eb0   :  { %v8862_v5 = vmul.f32 1.442695, %v8860_v38  ;;  %v8861_v45 = vsub.f32 %v8854_v6, %v8854_v6  ;;  %v12388_v21 = vpop.f32.mrb[23].mxu1  ;;  %v12393_v23 = vpop.f32.mrb[25].mxu0 }
0x4eb1   :  { %v8857_v35 = vpop.f32.mrb[26].mxu0  ;;  %v9196_v46 = vpop.permute.xlu1 %9195 }
0x4eb2   :  { %13003 = vpow2.f32 %v8862_v5  ;;  %v8864_v44 = vmul.f32 1.442695, %v8861_v45  ;;  %v12394_v51 = vpop.f32.mrb[27].mxu0  ;;  %v9248_v5 = vsel %vm213_vm1, %v9246_v58, 0  ;;  %v9305_v45 = vpop.permute.xlu0 %9304 }
0x4eb3   :  { %v9310_v23 = vand.u32 %v9305_v45, %v14579_v16 }
0x4eb4   :  { %13005 = vpow2.f32 %v8864_v44 }
0x4eb5   :  { %v9353_v21 = vpop.permute.xlu1 %9352 }
0x4eb6   :  { %v9358_v35 = vand.u32 %v9353_v21, %v14579_v16 }
0x4ebc   :  { %v13004_v7 = vpop.eup %13003 }
0x4ebd   :  { %13007 = vrcp.f32 %v13004_v7 }
0x4ebe   :  { %v13006_v48 = vpop.eup %13005 }
0x4ebf   :  { %13009 = vrcp.f32 %v13006_v48 }
0x4ec7   :  { %v13008_v57 = vpop.eup %13007 }
0x4ec8   :  { %v8870_v59 = vmul.f32 %v13008_v57, %v13004_v7 }
0x4ec9   :  { %v13010_v60 = vpop.eup %13009 }
0x4eca   :  { %v8872_v28 = vpack.c.bf16 %v8870_v59, %v8870_v59  ;;  %v8871_v3 = vmul.f32 %v13010_v60, %v13006_v48 }
0x4ecc   :  { %v8873_v50 = vpack.c.bf16 %v8871_v3, %v8871_v3  ;;  %12398 = vmatmul.mubr.msk.bf16.vlgmr.msra.gmra.mrb[24].mxu1 %vm6320_vm9, %v8872_v28 }
0x4ecd   :  { %12408 = vmatpush3.bf16.xpose.msra.mxu1 %v8988_v2  ;;  %12409 = vmatprep.mubr.msk.bf16.mxu1 %vm13127_vm2, %v13126_v4 }
0x4ece   :  { %12404 = vmatmul.mubr.msk.bf16.vlgmr.msra.gmra.mrb[28].mxu0 %vm6320_vm9, %v8873_v50  ;;  %12419 = vmatprep.subr.bf16.mxu1 %v13126_v4 }
0x4ecf   :  { %12414 = vmatpush3.bf16.xpose.msra.mxu0 %v9033_v12  ;;  %12415 = vmatprep.mubr.msk.bf16.mxu0 %vm13127_vm2, %v13126_v4 }
0x4ed0   :  { %12425 = vmatprep.subr.bf16.mxu0 %v13126_v4 }
0x4ed4   :  { %12410 = vmatmul.mubr.msk.bf16.vlgmr.msra.gmra.mrb[28].mxu1 %vm213_vm1, %v8981_v54 }
0x4ed5   :  { %12420 = vmatpush3.bf16.msra.mxu1 %v9095_v47  ;;  %12421 = vmatprep.mubr.msk.bf16.mxu1 %vm13127_vm2, %v13126_v4 }
0x4ed6   :  { %12416 = vmatmul.mubr.msk.bf16.vlgmr.msra.gmra.mrb[32].mxu0 %vm213_vm1, %v8981_v54  ;;  %12431 = vmatprep.subr.bf16.mxu1 %v13126_v4 }
0x4ed7   :  { %12426 = vmatpush3.bf16.msra.mxu0 %v9143_v10  ;;  %12427 = vmatprep.mubr.msk.bf16.mxu0 %vm13127_vm2, %v13126_v4 }
0x4ed8   :  { %12437 = vmatprep.subr.bf16.mxu0 %v13126_v4 }
0x4f9f   :  { %v8916_v9 = vpop.f32.mrb[24].mxu1 }
0x4fa0   :  { %8972 = vrot.lane.b32.xlu0 %v8916_v9, %s13135_s23  ;;  %v12399_v26 = vpop.f32.mrb[25].mxu1 }
0x4fa1   :  { %v8919_v41 = vpop.f32.mrb[26].mxu1  ;;  %v8964_v1 = vpop.f32.mrb[28].mxu0 }
0x4fa2   :  { %v12400_v43 = vpop.f32.mrb[27].mxu1  ;;  %8974 = vrot.lane.b32.xlu1 %v8964_v1, %s13135_s23  ;;  %v12405_v61 = vpop.f32.mrb[29].mxu0 }
0x4fa3   :  { %v8967_v63 = vpop.f32.mrb[30].mxu0 }
0x4fa4   :  { %v12406_v52 = vpop.f32.mrb[31].mxu0 }
0x4fa7   :  { %v9024_v8 = vpop.f32.mrb[28].mxu1 }
0x4fa8   :  { %v9075_v36 = vsub.f32 %v9024_v8, %v9024_v8  ;;  %v12411_v15 = vpop.f32.mrb[29].mxu1  ;;  %v12697_v8 = vld [vmem:[%s15401_s30] sm:$0xff]  }
0x4fa9   :  { %v9027_v24 = vpop.f32.mrb[30].mxu1  ;;  %v9069_v11 = vpop.f32.mrb[32].mxu0 }
0x4faa   :  { %v9077_v55 = vmul.f32 1.442695, %v9075_v36  ;;  %v9076_v40 = vsub.f32 %v9069_v11, %v9069_v11  ;;  %v12412_v42 = vpop.f32.mrb[31].mxu1  ;;  %v12417_v14 = vpop.f32.mrb[33].mxu0  ;;  %v12698_v36 = vld [vmem:[%s15401_s30 + $0x8] sm:$0xff]  }
0x4fab   :  { %v9072_v62 = vpop.f32.mrb[34].mxu0 }
0x4fac   :  { %13011 = vpow2.f32 %v9077_v55  ;;  %v9079_v32 = vmul.f32 1.442695, %v9076_v40  ;;  %v12418_v49 = vpop.f32.mrb[35].mxu0 }
0x4fae   :  { %13013 = vpow2.f32 %v9079_v32 }
0x4fb6   :  { %v13012_v34 = vpop.eup %13011 }
0x4fb7   :  { %13015 = vrcp.f32 %v13012_v34 }
0x4fb8   :  { %v13014_v27 = vpop.eup %13013 }
0x4fb9   :  { %13017 = vrcp.f32 %v13014_v27 }
0x4fc1   :  { %v13016_v20 = vpop.eup %13015 }
0x4fc2   :  { %v9085_v25 = vmul.f32 %v13016_v20, %v13012_v34 }
0x4fc3   :  { %v13018_v39 = vpop.eup %13017 }
0x4fc4   :  { %v9087_v53 = vpack.c.bf16 %v9085_v25, %v9085_v25  ;;  %v9086_v38 = vmul.f32 %v13018_v39, %v13014_v27 }
0x4fc6   :  { %v9088_v6 = vpack.c.bf16 %v9086_v38, %v9086_v38  ;;  %12422 = vmatmul.mubr.msk.bf16.vlgmr.msra.gmra.mrb[32].mxu1 %vm6320_vm9, %v9087_v53  ;;  %v8762_v53 = vadd.f32 %v15006_v18, %v14953_v56 }
0x4fc7   :  { %12432 = vmatpush3.bf16.xpose.msra.mxu1 %v9203_v33  ;;  %12433 = vmatprep.mubr.msk.bf16.mxu1 %vm13127_vm2, %v13126_v4 }
0x4fc8   :  { %12428 = vmatmul.mubr.msk.bf16.vlgmr.msra.gmra.mrb[36].mxu0 %vm6320_vm9, %v9088_v6  ;;  %12443 = vmatprep.subr.bf16.mxu1 %v13126_v4 }
0x4fc9   :  { %12438 = vmatpush3.bf16.xpose.msra.mxu0 %v9248_v5  ;;  %12439 = vmatprep.mubr.msk.bf16.mxu0 %vm13127_vm2, %v13126_v4 }
0x4fca   :  { %12449 = vmatprep.subr.bf16.mxu0 %v13126_v4 }
0x4fce   :  { %12434 = vmatmul.mubr.msk.bf16.vlgmr.msra.gmra.mrb[36].mxu1 %vm213_vm1, %v9196_v46 }
0x4fcf   :  { %12444 = vmatpush3.bf16.msra.mxu1 %v9310_v23  ;;  %12445 = vmatprep.mubr.msk.bf16.mxu1 %vm13127_vm2, %v13126_v4 }
0x4fd0   :  { %12440 = vmatmul.mubr.msk.bf16.vlgmr.msra.gmra.mrb[40].mxu0 %vm213_vm1, %v9196_v46  ;;  %12455 = vmatprep.subr.bf16.mxu1 %v13126_v4 }
0x4fd1   :  { %12450 = vmatpush3.bf16.msra.mxu0 %v9358_v35  ;;  %12451 = vmatprep.mubr.msk.bf16.mxu0 %vm13127_vm2, %v13126_v4 }
0x4fd2   :  { %12463 = vmatprep.subr.bf16.mxu0 %v13126_v4 }
0x5012   :  { %v8973_v32 = vpop.permute.xlu0 %8972 }
0x5013   :  { %v8978_v19 = vadd.f32 %v8973_v32, %v14953_v56 }
0x5014   :  { %v8975_v49 = vpop.permute.xlu1 %8974 }
0x5015   :  { %v8979_v20 = vadd.f32 %v8975_v49, %v14953_v56  ;;  %v9410_v46 = vsel %vm213_vm1, %v8762_v53, %v8978_v19 }
0x5099   :  { %v9131_v44 = vpop.f32.mrb[32].mxu1 }
0x509a   :  { %9187 = vrot.lane.b32.xlu0 %v9131_v44, %s13136_s26  ;;  %v12423_v51 = vpop.f32.mrb[33].mxu1  ;;  %v12700_v44 = vld [vmem:[%s15402_s6 + $0x8] sm:$0xff]  }
0x509b   :  { %v9134_v7 = vpop.f32.mrb[34].mxu1  ;;  %v9179_v16 = vpop.f32.mrb[36].mxu0  ;;  %v12702_v51 = vld [vmem:[%s15403_s2 + $0x8] sm:$0xff]  }
0x509c   :  { %v12424_v48 = vpop.f32.mrb[35].mxu1  ;;  %9189 = vrot.lane.b32.xlu1 %v9179_v16, %s13136_s26  ;;  %v12429_v17 = vpop.f32.mrb[37].mxu0  ;;  %v15099_v7 = vld [vmem:[%s13351_s27] ss:$0 sm:$0xff] }
0x509d   :  { %v9182_v57 = vpop.f32.mrb[38].mxu0 }
0x509e   :  { %v12430_v59 = vpop.f32.mrb[39].mxu0 }
0x50a1   :  { %v9239_v60 = vpop.f32.mrb[36].mxu1 }
0x50a2   :  { %v9290_v0 = vsub.f32 %v9239_v60, %v9239_v60  ;;  %v12435_v28 = vpop.f32.mrb[37].mxu1 }
0x50a3   :  { %v9242_v3 = vpop.f32.mrb[38].mxu1  ;;  %v9284_v2 = vpop.f32.mrb[40].mxu0 }
0x50a4   :  { %v9292_v54 = vmul.f32 1.442695, %v9290_v0  ;;  %v9291_v50 = vsub.f32 %v9284_v2, %v9284_v2  ;;  %v12436_v12 = vpop.f32.mrb[39].mxu1  ;;  %v12441_v31 = vpop.f32.mrb[41].mxu0 }
0x50a5   :  { %v9287_v37 = vpop.f32.mrb[42].mxu0 }
0x50a6   :  { %13019 = vpow2.f32 %v9292_v54  ;;  %v9294_v47 = vmul.f32 1.442695, %v9291_v50  ;;  %v12442_v10 = vpop.f32.mrb[43].mxu0 }
0x50a8   :  { %13021 = vpow2.f32 %v9294_v47 }
0x50b0   :  { %v13020_v9 = vpop.eup %13019 }
0x50b1   :  { %13023 = vrcp.f32 %v13020_v9 }
0x50b2   :  { %v13022_v26 = vpop.eup %13021 }
0x50b3   :  { %13025 = vrcp.f32 %v13022_v26 }
0x50bb   :  { %v13024_v41 = vpop.eup %13023 }
0x50bc   :  { %v9300_v1 = vmul.f32 %v13024_v41, %v13020_v9 }
0x50bd   :  { %v13026_v43 = vpop.eup %13025 }
0x50be   :  { %v9302_v61 = vpack.c.bf16 %v9300_v1, %v9300_v1  ;;  %v9301_v63 = vmul.f32 %v13026_v43, %v13022_v26 }
0x50c0   :  { %v9303_v52 = vpack.c.bf16 %v9301_v63, %v9301_v63  ;;  %12446 = vmatmul.mubr.msk.bf16.vlgmr.msra.gmra.mrb[40].mxu1 %vm6320_vm9, %v9302_v61 }
0x50c1   :  { %12459 = vmatprep.mubr.msk.bf16.mxu1 %vm13127_vm2, %v13126_v4  ;;  %12456 = vmatpush3.bf16.msra.mxu1 %v12697_v8 }
0x50c2   :  { %12452 = vmatmul.mubr.msk.bf16.vlgmr.msra.gmra.mrb[44].mxu0 %vm6320_vm9, %v9303_v52  ;;  %12457 = vmatprep.subr.bf16.mxu1 %v13126_v4 }
0x50c3   :  { %12467 = vmatprep.mubr.msk.bf16.mxu0 %vm13127_vm2, %v13126_v4 }
0x50c5   :  { %12458 = vmatpush3.bf16.msra.mxu1 %v12698_v36 }
0x50c6   :  { %12471 = vmatprep.subr.bf16.mxu1 %v13126_v4 }
0x510c   :  { %v9188_v34 = vpop.permute.xlu0 %9187 }
0x510d   :  { %v9193_v25 = vadd.f32 %v9188_v34, %v14953_v56 }
0x510e   :  { %v9190_v27 = vpop.permute.xlu1 %9189 }
0x510f   :  { %v9194_v39 = vadd.f32 %v9190_v27, %v14953_v56  ;;  %v9412_v45 = vsel %vm422_vm4, %v9410_v46, %v9193_v25 }
0x5193   :  { %v9346_v15 = vpop.f32.mrb[40].mxu1 }
0x5194   :  { %9402 = vrot.lane.b32.xlu0 %v9346_v15, %s13137_s28  ;;  %v12447_v24 = vpop.f32.mrb[41].mxu1 }
0x5195   :  { %v9349_v11 = vpop.f32.mrb[42].mxu1  ;;  %v9394_v55 = vpop.f32.mrb[44].mxu0 }
0x5196   :  { %v12448_v40 = vpop.f32.mrb[43].mxu1  ;;  %9404 = vrot.lane.b32.xlu1 %v9394_v55, %s13137_s28  ;;  %v12453_v42 = vpop.f32.mrb[45].mxu0 }
0x5197   :  { %v9397_v14 = vpop.f32.mrb[46].mxu0 }
0x5198   :  { %v12454_v62 = vpop.f32.mrb[47].mxu0  ;;  %9429 = vrot.lane.b32.xlu0 %v14926_v30, %s13138_s1  ;;  %v8763_v30 = vadd.f32 %v15008_v29, %v14953_v56  ;;  %v12699_v29 = vld [vmem:[%s15402_s6] sm:$0xff]  }
0x519a   :  { %v9411_v6 = vsel %vm213_vm1, %v8763_v30, %v8979_v20  ;;  %9511 = vrot.lane.b32.xlu1 %v15099_v7, %s13128_s0 }
0x519b   :  { %v9413_v21 = vsel %vm422_vm4, %v9411_v6, %v9194_v39 }
0x5206   :  { %v9403_v58 = vpop.permute.xlu0 %9402 }
0x5207   :  { %v9408_v38 = vadd.f32 %v9403_v58, %v14953_v56 }
0x5208   :  { %v9405_v33 = vpop.permute.xlu1 %9404 }
0x5209   :  { %v9409_v5 = vadd.f32 %v9405_v33, %v14953_v56  ;;  %v9414_v23 = vsel %vm1211_vm5, %v9412_v45, %v9408_v38  ;;  %v12701_v56 = vld [vmem:[%s15403_s2] sm:$0xff]  }
0x520a   :  { %12464 = vmatpush3.bf16.msra.mxu0 %v12701_v56  ;;  %v9430_v16 = vpop.permute.xlu0 %9429 }
0x520b   :  { %v9415_v18 = vsel %vm1211_vm5, %v9413_v21, %v9409_v5  ;;  %12465 = vmatprep.subr.bf16.mxu0 %v13126_v4 }
0x520c   :  { %v9416_v35 = vpack.c.bf16 %v9415_v18, %v9414_v23  ;;  %v9512_v10 = vpop.permute.xlu1 %9511 }
0x520e   :  { %12460 = vmatmul.mubr.msk.bf16.vlgmr.msra.gmra.mrb[44].mxu1 %vm288_vm3, %v9416_v35  ;;  %12466 = vmatpush3.bf16.msra.mxu0 %v12702_v51 }
0x520f   :  { %12472 = vmatpush3.bf16.msra.mxu1 %v12699_v29  ;;  %12475 = vmatprep.mubr.msk.bf16.mxu1 %vm13127_vm2, %v13126_v4 }
0x5210   :  { %12473 = vmatprep.subr.bf16.mxu1 %v13126_v4  ;;  %12479 = vmatprep.subr.bf16.mxu0 %v13126_v4 }
0x5213   :  { %12474 = vmatpush3.bf16.msra.mxu1 %v12700_v44 }
0x5214   :  { %12485 = vmatprep.subr.bf16.mxu1 %v13126_v4 }
0x5216   :  { %12476 = vmatmul.mubr.msk.bf16.vlgmr.msra.gmra.mrb[48].mxu1 %vm288_vm3, %v14941_v22 }
0x5217   :  { %12487 = vmatprep.mubr.msk.bf16.mxu1 %vm13127_vm2, %v13126_v4 }
0x52e1   :  { %v9469_v48 = vpop.f32.mrb[44].mxu1 }
0x52e2   :  { %v9470_v17 = vadd.f32 %v9469_v48, %v9430_v16  ;;  %v12461_v22 = vpop.f32.mrb[45].mxu1 }
0x52e3   :  { %v9472_v57 = vpop.f32.mrb[46].mxu1 }
0x52e4   :  { %v9476_v59 = vmax.f32 %v9470_v17, 0.0  ;;  %v9473_v60 = vadd.f32 %v9472_v57, %v9430_v16  ;;  %v12462_v0 = vpop.f32.mrb[47].mxu1 }
0x52e6   :  { %v9477_v28 = vmax.f32 %v9473_v60, 0.0  ;;  %v9478_v3 = vadd.f32 %v9476_v59, %v9414_v23 }
0x52e8   :  { %v9479_v2 = vadd.f32 %v9477_v28, %v9415_v18 }
0x52e9   :  { %v9607_v54 = vpop.f32.mrb[48].mxu1 }
0x52ea   :  { %v9493_v50 = vpack.c.bf16 %v9479_v2, %v9478_v3  ;;  %v12477_v12 = vpop.f32.mrb[49].mxu1  ;;  %v9608_v47 = vadd.f32 %v15099_v7, %v9607_v54 }
0x52eb   :  { %v9610_v31 = vpop.f32.mrb[50].mxu1 }
0x52ec   :  { %12468 = vmatmul.mubr.msk.bf16.vlgmr.msra.gmra.mrb[48].mxu0 %vm288_vm3, %v9493_v50  ;;  %v12478_v37 = vpop.f32.mrb[51].mxu1  ;;  %v9620_v26 = vrot.slane %v9608_v47, %v14532_v13 }
0x52ed   :  { %12481 = vmatprep.mubr.msk.bf16.mxu0 %vm13127_vm2, %v13126_v4 }
0x52ee   :  { %v9621_v8 = vcombine.high %v9620_v26, %v9620_v26  ;;  %v15116_v24 = vrot.slane %v9620_v26, %v14532_v13 }
0x52f0   :  { %v15122_v55 = vrot.slane %v9621_v8, %v14532_v13  ;;  %v15127_v40 = vpack.c.bf16 %v15116_v24, %v15116_v24 }
0x52f2   :  { %v15131_v42 = vpack.c.bf16 %v15122_v55, %v15122_v55 }
0x53bf   :  { %v9551_v9 = vpop.f32.mrb[48].mxu0 }
0x53c0   :  { %v9552_v41 = vadd.f32 %v9551_v9, %v9512_v10  ;;  %v12469_v1 = vpop.f32.mrb[49].mxu0 }
0x53c1   :  { %v9554_v43 = vpop.f32.mrb[50].mxu0 }
0x53c2   :  { %v15109_v61 = vpack.c.bf16 %v9552_v41, %v9552_v41  ;;  %v9555_v63 = vadd.f32 %v9554_v43, %v9512_v10  ;;  %v12470_v52 = vpop.f32.mrb[51].mxu0 }
0x53c4   :  { %v15111_v36 = vpack.c.bf16 %v9555_v63, %v9555_v63  ;;  %v9644_v15 = vsel %vm213_vm1, %v15109_v61, 0 }
0x53c5   :  { %12480 = vmatpush3.bf16.xpose.msra.mxu0 %v9644_v15 }
0x53c6   :  { %v9690_v11 = vsel %vm213_vm1, %v15111_v36, 0  ;;  %12491 = vmatprep.subr.bf16.mxu0 %v13126_v4 }
0x53c7   :  { %12486 = vmatpush3.bf16.xpose.msra.mxu1 %v9690_v11 }
0x53c8   :  { %12497 = vmatprep.subr.bf16.mxu1 %v13126_v4 }
0x53cc   :  { %12482 = vmatmul.mubr.msk.bf16.vlgmr.msra.gmra.mrb[52].mxu0 %vm213_vm1, %v15127_v40 }
0x53cd   :  { %12493 = vmatprep.mubr.msk.bf16.mxu0 %vm13127_vm2, %v13126_v4 }
0x53ce   :  { %12488 = vmatmul.mubr.msk.bf16.vlgmr.msra.gmra.mrb[52].mxu1 %vm213_vm1, %v15131_v42 }
0x53cf   :  { %12499 = vmatprep.mubr.msk.bf16.mxu1 %vm13127_vm2, %v13126_v4 }
0x549f   :  { %v9680_v14 = vpop.f32.mrb[52].mxu0 }
0x54a0   :  { %v12483_v62 = vpop.f32.mrb[53].mxu0  ;;  %v9732_v32 = vsel %vm7389_vm10, %v9680_v14, -inf }
0x54a1   :  { %v9726_v49 = vpop.f32.mrb[52].mxu1  ;;  %9733 = vmax.xlane.f32.xlu1 %v9732_v32  ;;  %v9683_v34 = vpop.f32.mrb[54].mxu0 }
0x54a2   :  { %v12484_v27 = vpop.f32.mrb[55].mxu0  ;;  %v12489_v19 = vpop.f32.mrb[53].mxu1  ;;  %v9735_v20 = vsel %vm7389_vm10, %v9726_v49, -inf }
0x54a3   :  { %9736 = vmax.xlane.f32.xlu0 %v9735_v20  ;;  %v9729_v25 = vpop.f32.mrb[54].mxu1 }
0x54a4   :  { %v12490_v39 = vpop.f32.mrb[55].mxu1 }
0x54b2   :  { %9806 = vrot.lane.b32.xlu1 %v15111_v36, %s13128_s0 }
0x54b6   :  { %9910 = vrot.lane.b32.xlu1 %v15111_v36, %s13129_s5 }
0x54ba   :  { %9859 = vrot.lane.b32.xlu1 %v15109_v61, %s13129_s5 }
0x54be   :  { %9857 = vrot.lane.b32.xlu1 %v15127_v40, %s13129_s5 }
0x552e   :  { %v9734_v58 = vpop.xlane.xlu1 %9733 }
0x552f   :  { %v9738_v53 = vsub.f32 %v9680_v14, %v9734_v58 }
0x5530   :  { %v9737_v30 = vpop.xlane.xlu0 %9736 }
0x5531   :  { %v9740_v38 = vmul.f32 1.442695, %v9738_v53  ;;  %v9739_v33 = vsub.f32 %v9726_v49, %v9737_v30 }
0x5532   :  { %v9807_v46 = vpop.permute.xlu1 %9806 }
0x5533   :  { %13027 = vpow2.f32 %v9740_v38  ;;  %v9742_v6 = vmul.f32 1.442695, %v9739_v33  ;;  %v9812_v5 = vsel %vm220_vm0, %v9807_v46, 0 }
0x5534   :  { %12498 = vmatpush3.bf16.msra.mxu1 %v9812_v5 }
0x5535   :  { %13029 = vpow2.f32 %v9742_v6  ;;  %12509 = vmatprep.subr.bf16.mxu1 %v13126_v4 }
0x5536   :  { %v9911_v56 = vpop.permute.xlu1 %9910 }
0x5537   :  { %v9916_v28 = vsel %vm213_vm1, %v9911_v56, 0 }
0x553a   :  { %v9860_v57 = vpop.permute.xlu1 %9859 }
0x553b   :  { %v9865_v60 = vsel %vm213_vm1, %v9860_v57, 0 }
0x553d   :  { %v13028_v45 = vpop.eup %13027 }
0x553e   :  { %v9744_v21 = vsel %vm7389_vm10, %v13028_v45, 0.0  ;;  %v9858_v3 = vpop.permute.xlu1 %9857 }
0x553f   :  { %v13030_v23 = vpop.eup %13029  ;;  %9745 = vadd.xlane.f32.xlu0 %v9744_v21 }
0x5540   :  { %v9747_v18 = vsel %vm7389_vm10, %v13030_v23, 0.0 }
0x5543   :  { %9748 = vadd.xlane.f32.xlu0 %v9747_v18 }
0x5559   :  { %9757 = vrot.lane.b32.xlu0 %v15109_v61, %s13128_s0 }
0x555d   :  { %9908 = vrot.lane.b32.xlu0 %v15131_v42, %s13129_s5 }
0x55cc   :  { %v9746_v29 = vpop.xlane.xlu0 %9745 }
0x55cd   :  { %13031 = vrcp.f32 %v9746_v29 }
0x55d0   :  { %v9749_v35 = vpop.xlane.xlu0 %9748 }
0x55d1   :  { %13033 = vrcp.f32 %v9749_v35 }
0x55d4   :  { %v9758_v44 = vpop.permute.xlu0 %9757 }
0x55d5   :  { %v9763_v51 = vsel %vm220_vm0, %v9758_v44, 0 }
0x55d6   :  { %12492 = vmatpush3.bf16.msra.mxu0 %v9763_v51 }
0x55d7   :  { %v13032_v16 = vpop.eup %13031  ;;  %12503 = vmatprep.subr.bf16.mxu0 %v13126_v4 }
0x55d8   :  { %v9752_v48 = vmul.f32 %v13032_v16, %v13028_v45  ;;  %v9909_v2 = vpop.permute.xlu0 %9908 }
0x55da   :  { %v9754_v17 = vpack.c.bf16 %v9752_v48, %v9752_v48 }
0x55db   :  { %v13034_v22 = vpop.eup %13033 }
0x55dc   :  { %v9753_v59 = vmul.f32 %v13034_v22, %v13030_v23  ;;  %12494 = vmatmul.mubr.msk.bf16.vlgmr.msra.gmra.mrb[56].mxu0 %vm213_vm1, %v9754_v17 }
0x55dd   :  { %12505 = vmatprep.mubr.msk.bf16.mxu0 %vm13127_vm2, %v13126_v4 }
0x55de   :  { %v9755_v0 = vpack.c.bf16 %v9753_v59, %v9753_v59 }
0x55df   :  { %12504 = vmatpush3.bf16.xpose.msra.mxu0 %v9865_v60 }
0x55e0   :  { %12500 = vmatmul.mubr.msk.bf16.vlgmr.msra.gmra.mrb[56].mxu1 %vm213_vm1, %v9755_v0  ;;  %12515 = vmatprep.subr.bf16.mxu0 %v13126_v4 }
0x55e1   :  { %12510 = vmatpush3.bf16.xpose.msra.mxu1 %v9916_v28  ;;  %12511 = vmatprep.mubr.msk.bf16.mxu1 %vm13127_vm2, %v13126_v4 }
0x55e2   :  { %12521 = vmatprep.subr.bf16.mxu1 %v13126_v4 }
0x55e6   :  { %12506 = vmatmul.mubr.msk.bf16.vlgmr.msra.gmra.mrb[60].mxu0 %vm213_vm1, %v9858_v3 }
0x55e7   :  { %12517 = vmatprep.mubr.msk.bf16.mxu0 %vm13127_vm2, %v13126_v4 }
0x55e8   :  { %12512 = vmatmul.mubr.msk.bf16.vlgmr.msra.gmra.mrb[60].mxu1 %vm213_vm1, %v9909_v2 }
0x55e9   :  { %12523 = vmatprep.mubr.msk.bf16.mxu1 %vm13127_vm2, %v13126_v4 }
0x56af   :  { %v15177_v54 = vpop.f32.mrb[56].mxu0 }
0x56b0   :  { %v12495_v50 = vpop.f32.mrb[57].mxu0 }
0x56b1   :  { %v9802_v12 = vpop.f32.mrb[58].mxu0 }
0x56b2   :  { %v12496_v31 = vpop.f32.mrb[59].mxu0 }
0x56b3   :  { %v15179_v37 = vpop.f32.mrb[56].mxu1 }
0x56b4   :  { %v12501_v47 = vpop.f32.mrb[57].mxu1 }
0x56b5   :  { %v9851_v10 = vpop.f32.mrb[58].mxu1 }
0x56b6   :  { %v12502_v9 = vpop.f32.mrb[59].mxu1 }
0x56b9   :  { %v9901_v26 = vpop.f32.mrb[60].mxu0 }
0x56ba   :  { %v12507_v41 = vpop.f32.mrb[61].mxu0  ;;  %v9958_v1 = vsel %vm7389_vm10, %v9901_v26, -inf }
0x56bb   :  { %v9952_v43 = vpop.f32.mrb[60].mxu1  ;;  %9959 = vmax.xlane.f32.xlu1 %v9958_v1  ;;  %v9904_v63 = vpop.f32.mrb[62].mxu0 }
0x56bc   :  { %v12508_v52 = vpop.f32.mrb[63].mxu0  ;;  %v12513_v8 = vpop.f32.mrb[61].mxu1  ;;  %v9961_v15 = vsel %vm7389_vm10, %v9952_v43, -inf }
0x56bd   :  { %9962 = vmax.xlane.f32.xlu0 %v9961_v15  ;;  %v9955_v11 = vpop.f32.mrb[62].mxu1 }
0x56be   :  { %v12514_v14 = vpop.f32.mrb[63].mxu1 }
0x56cc   :  { %10030 = vrot.lane.b32.xlu1 %v15111_v36, %s13130_s9 }
0x56d0   :  { %10168 = vrot.lane.b32.xlu1 %v15111_v36, %s13131_s13 }
0x56d4   :  { %10118 = vrot.lane.b32.xlu1 %v15109_v61, %s13131_s13 }
0x56d8   :  { %10116 = vrot.lane.b32.xlu1 %v15127_v40, %s13131_s13 }
0x5748   :  { %v9960_v62 = vpop.xlane.xlu1 %9959 }
0x5749   :  { %v9964_v32 = vsub.f32 %v9901_v26, %v9960_v62 }
0x574a   :  { %v9963_v49 = vpop.xlane.xlu0 %9962 }
0x574b   :  { %v9966_v34 = vmul.f32 1.442695, %v9964_v32  ;;  %v9965_v27 = vsub.f32 %v9952_v43, %v9963_v49 }
0x574c   :  { %v10031_v19 = vpop.permute.xlu1 %10030 }
0x574d   :  { %13035 = vpow2.f32 %v9966_v34  ;;  %v9968_v20 = vmul.f32 1.442695, %v9965_v27  ;;  %v10036_v25 = vsel %vm220_vm0, %v10031_v19, 0 }
0x574e   :  { %12522 = vmatpush3.bf16.msra.mxu1 %v10036_v25 }
0x574f   :  { %13037 = vpow2.f32 %v9968_v20  ;;  %12533 = vmatprep.subr.bf16.mxu1 %v13126_v4 }
0x5750   :  { %v10169_v6 = vpop.permute.xlu1 %10168 }
0x5751   :  { %v10174_v51 = vsel %vm213_vm1, %v10169_v6, 0 }
0x5754   :  { %v10119_v29 = vpop.permute.xlu1 %10118 }
0x5755   :  { %v10124_v44 = vsel %vm213_vm1, %v10119_v29, 0 }
0x5757   :  { %v13036_v39 = vpop.eup %13035 }
0x5758   :  { %v9970_v58 = vsel %vm7389_vm10, %v13036_v39, 0.0  ;;  %v10117_v16 = vpop.permute.xlu1 %10116 }
0x5759   :  { %v13038_v53 = vpop.eup %13037  ;;  %9971 = vadd.xlane.f32.xlu0 %v9970_v58 }
0x575a   :  { %v9973_v30 = vsel %vm7389_vm10, %v13038_v53, 0.0 }
0x575d   :  { %9974 = vadd.xlane.f32.xlu0 %v9973_v30 }
0x5773   :  { %9982 = vrot.lane.b32.xlu0 %v15109_v61, %s13130_s9 }
0x5777   :  { %10166 = vrot.lane.b32.xlu0 %v15131_v42, %s13131_s13 }
0x57e6   :  { %v9972_v38 = vpop.xlane.xlu0 %9971 }
0x57e7   :  { %13039 = vrcp.f32 %v9972_v38 }
0x57ea   :  { %v9975_v33 = vpop.xlane.xlu0 %9974 }
0x57eb   :  { %13041 = vrcp.f32 %v9975_v33 }
0x57ee   :  { %v9983_v46 = vpop.permute.xlu0 %9982 }
0x57ef   :  { %v9988_v5 = vsel %vm220_vm0, %v9983_v46, 0 }
0x57f0   :  { %12516 = vmatpush3.bf16.msra.mxu0 %v9988_v5 }
0x57f1   :  { %v13040_v45 = vpop.eup %13039  ;;  %12527 = vmatprep.subr.bf16.mxu0 %v13126_v4 }
0x57f2   :  { %v9978_v21 = vmul.f32 %v13040_v45, %v13036_v39  ;;  %v10167_v48 = vpop.permute.xlu0 %10166 }
0x57f4   :  { %v9980_v23 = vpack.c.bf16 %v9978_v21, %v9978_v21 }
0x57f5   :  { %v13042_v18 = vpop.eup %13041 }
0x57f6   :  { %v9979_v35 = vmul.f32 %v13042_v18, %v13038_v53  ;;  %12518 = vmatmul.mubr.msk.bf16.vlgmr.msra.gmra.mrb[64].mxu0 %vm213_vm1, %v9980_v23 }
0x57f7   :  { %12529 = vmatprep.mubr.msk.bf16.mxu0 %vm13127_vm2, %v13126_v4 }
0x57f8   :  { %v9981_v56 = vpack.c.bf16 %v9979_v35, %v9979_v35 }
0x57f9   :  { %12528 = vmatpush3.bf16.xpose.msra.mxu0 %v10124_v44 }
0x57fa   :  { %12524 = vmatmul.mubr.msk.bf16.vlgmr.msra.gmra.mrb[64].mxu1 %vm213_vm1, %v9981_v56  ;;  %12539 = vmatprep.subr.bf16.mxu0 %v13126_v4 }
0x57fb   :  { %12534 = vmatpush3.bf16.xpose.msra.mxu1 %v10174_v51  ;;  %12535 = vmatprep.mubr.msk.bf16.mxu1 %vm13127_vm2, %v13126_v4 }
0x57fc   :  { %12545 = vmatprep.subr.bf16.mxu1 %v13126_v4 }
0x5800   :  { %12530 = vmatmul.mubr.msk.bf16.vlgmr.msra.gmra.mrb[68].mxu0 %vm213_vm1, %v10117_v16 }
0x5801   :  { %12541 = vmatprep.mubr.msk.bf16.mxu0 %vm13127_vm2, %v13126_v4 }
0x5802   :  { %12536 = vmatmul.mubr.msk.bf16.vlgmr.msra.gmra.mrb[68].mxu1 %vm213_vm1, %v10167_v48 }
0x5803   :  { %12547 = vmatprep.mubr.msk.bf16.mxu1 %vm13127_vm2, %v13126_v4 }
0x58c9   :  { %v15217_v17 = vpop.f32.mrb[64].mxu0 }
0x58ca   :  { %v12519_v22 = vpop.f32.mrb[65].mxu0 }
0x58cb   :  { %v10027_v57 = vpop.f32.mrb[66].mxu0 }
0x58cc   :  { %v12520_v59 = vpop.f32.mrb[67].mxu0 }
0x58cd   :  { %v15219_v60 = vpop.f32.mrb[64].mxu1 }
0x58ce   :  { %v12525_v0 = vpop.f32.mrb[65].mxu1 }
0x58cf   :  { %v10075_v28 = vpop.f32.mrb[66].mxu1 }
0x58d0   :  { %v12526_v3 = vpop.f32.mrb[67].mxu1 }
0x58d3   :  { %v10160_v2 = vpop.f32.mrb[68].mxu0 }
0x58d4   :  { %v12531_v50 = vpop.f32.mrb[69].mxu0  ;;  %v10216_v12 = vsel %vm7389_vm10, %v10160_v2, -inf }
0x58d5   :  { %v10210_v31 = vpop.f32.mrb[68].mxu1  ;;  %10217 = vmax.xlane.f32.xlu1 %v10216_v12  ;;  %v10163_v47 = vpop.f32.mrb[70].mxu0 }
0x58d6   :  { %v12532_v10 = vpop.f32.mrb[71].mxu0  ;;  %v12537_v9 = vpop.f32.mrb[69].mxu1  ;;  %v10219_v26 = vsel %vm7389_vm10, %v10210_v31, -inf }
0x58d7   :  { %10220 = vmax.xlane.f32.xlu0 %v10219_v26  ;;  %v10213_v41 = vpop.f32.mrb[70].mxu1 }
0x58d8   :  { %v12538_v1 = vpop.f32.mrb[71].mxu1 }
0x58e6   :  { %10288 = vrot.lane.b32.xlu1 %v15111_v36, %s13132_s17 }
0x58ea   :  { %10426 = vrot.lane.b32.xlu1 %v15111_v36, %s13133_s21 }
0x58ee   :  { %10376 = vrot.lane.b32.xlu1 %v15109_v61, %s13133_s21 }
0x58f2   :  { %10374 = vrot.lane.b32.xlu1 %v15127_v40, %s13133_s21 }
0x5962   :  { %v10218_v43 = vpop.xlane.xlu1 %10217 }
0x5963   :  { %v10222_v63 = vsub.f32 %v10160_v2, %v10218_v43 }
0x5964   :  { %v10221_v52 = vpop.xlane.xlu0 %10220 }
0x5965   :  { %v10224_v8 = vmul.f32 1.442695, %v10222_v63  ;;  %v10223_v15 = vsub.f32 %v10210_v31, %v10221_v52  ;;  %v10100_v31 = vrot.slane %v15219_v60, %v14532_v13 }
0x5966   :  { %v10289_v11 = vpop.permute.xlu1 %10288 }
0x5967   :  { %13043 = vpow2.f32 %v10224_v8  ;;  %v10226_v14 = vmul.f32 1.442695, %v10223_v15  ;;  %v10294_v62 = vsel %vm220_vm0, %v10289_v11, 0  ;;  %v10107_v47 = vrot.slane %v10100_v31, %v14532_v13 }
0x5968   :  { %12546 = vmatpush3.bf16.msra.mxu1 %v10294_v62  ;;  %v10086_v62 = vrot.slane %v15217_v17, %v14532_v13 }
0x5969   :  { %13045 = vpow2.f32 %v10226_v14  ;;  %12557 = vmatprep.subr.bf16.mxu1 %v13126_v4 }
0x596a   :  { %v10427_v25 = vpop.permute.xlu1 %10426 }
0x596b   :  { %v10432_v5 = vsel %vm213_vm1, %v10427_v25, 0 }
0x596e   :  { %v10377_v33 = vpop.permute.xlu1 %10376 }
0x5971   :  { %v13044_v32 = vpop.eup %13043 }
0x5972   :  { %v10228_v49 = vsel %vm7389_vm10, %v13044_v32, 0.0  ;;  %v10375_v45 = vpop.permute.xlu1 %10374 }
0x5973   :  { %v13046_v34 = vpop.eup %13045  ;;  %10229 = vadd.xlane.f32.xlu0 %v10228_v49 }
0x5974   :  { %v10231_v40 = vsel %vm7389_vm10, %v13046_v34, 0.0 }
0x5977   :  { %10232 = vadd.xlane.f32.xlu0 %v10231_v40 }
0x598d   :  { %10240 = vrot.lane.b32.xlu0 %v15109_v61, %s13132_s17 }
0x5991   :  { %10424 = vrot.lane.b32.xlu0 %v15131_v42, %s13133_s21  ;;  %v10382_v42 = vsel %vm213_vm1, %v10377_v33, 0  ;;  %v12703_v33 = vld [vmem:[%s13356_s4] sm:$0xff]  }
0x5a00   :  { %v10230_v27 = vpop.xlane.xlu0 %10229 }
0x5a01   :  { %13047 = vrcp.f32 %v10230_v27 }
0x5a04   :  { %v10233_v19 = vpop.xlane.xlu0 %10232 }
0x5a05   :  { %13049 = vrcp.f32 %v10233_v19 }
0x5a08   :  { %v10241_v20 = vpop.permute.xlu0 %10240 }
0x5a09   :  { %v10246_v39 = vsel %vm220_vm0, %v10241_v20, 0 }
0x5a0a   :  { %12540 = vmatpush3.bf16.msra.mxu0 %v10246_v39 }
0x5a0b   :  { %v13048_v58 = vpop.eup %13047  ;;  %12551 = vmatprep.subr.bf16.mxu0 %v13126_v4 }
0x5a0c   :  { %v10236_v53 = vmul.f32 %v13048_v58, %v13044_v32  ;;  %v10425_v21 = vpop.permute.xlu0 %10424  ;;  %v10093_v32 = vrot.slane %v10086_v62, %v14532_v13 }
0x5a0e   :  { %v10238_v30 = vpack.c.bf16 %v10236_v53, %v10236_v53 }
0x5a0f   :  { %v13050_v38 = vpop.eup %13049 }
0x5a10   :  { %v10237_v46 = vmul.f32 %v13050_v38, %v13046_v34  ;;  %12542 = vmatmul.mubr.msk.bf16.vlgmr.msra.gmra.mrb[72].mxu0 %vm213_vm1, %v10238_v30 }
0x5a11   :  { %12553 = vmatprep.mubr.msk.bf16.mxu0 %vm13127_vm2, %v13126_v4 }
0x5a12   :  { %v10239_v6 = vpack.c.bf16 %v10237_v46, %v10237_v46 }
0x5a13   :  { %12552 = vmatpush3.bf16.xpose.msra.mxu0 %v10382_v42 }
0x5a14   :  { %12548 = vmatmul.mubr.msk.bf16.vlgmr.msra.gmra.mrb[72].mxu1 %vm213_vm1, %v10239_v6  ;;  %12563 = vmatprep.subr.bf16.mxu0 %v13126_v4 }
0x5a15   :  { %12558 = vmatpush3.bf16.xpose.msra.mxu1 %v10432_v5  ;;  %12559 = vmatprep.mubr.msk.bf16.mxu1 %vm13127_vm2, %v13126_v4 }
0x5a16   :  { %12569 = vmatprep.subr.bf16.mxu1 %v13126_v4 }
0x5a1a   :  { %12554 = vmatmul.mubr.msk.bf16.vlgmr.msra.gmra.mrb[76].mxu0 %vm213_vm1, %v10375_v45 }
0x5a1b   :  { %12565 = vmatprep.mubr.msk.bf16.mxu0 %vm13127_vm2, %v13126_v4 }
0x5a1c   :  { %12560 = vmatmul.mubr.msk.bf16.vlgmr.msra.gmra.mrb[76].mxu1 %vm213_vm1, %v10425_v21  ;;  %v12704_v21 = vld [vmem:[%s13356_s4 + $0x8] sm:$0xff]  }
0x5a1d   :  { %12571 = vmatprep.mubr.msk.bf16.mxu1 %vm13127_vm2, %v13126_v4 }
0x5ae3   :  { %v10282_v23 = vpop.f32.mrb[72].mxu0 }
0x5ae4   :  { %v12543_v18 = vpop.f32.mrb[73].mxu0  ;;  %v10344_v49 = vrot.slane %v10282_v23, %v14532_v13 }
0x5ae5   :  { %v10285_v29 = vpop.f32.mrb[74].mxu0 }
0x5ae6   :  { %v12544_v35 = vpop.f32.mrb[75].mxu0  ;;  %v10351_v34 = vrot.slane %v10344_v49, %v14532_v13 }
0x5ae7   :  { %v10330_v44 = vpop.f32.mrb[72].mxu1 }
0x5ae8   :  { %v12549_v56 = vpop.f32.mrb[73].mxu1  ;;  %v10358_v10 = vrot.slane %v10330_v44, %v14532_v13 }
0x5ae9   :  { %v10333_v51 = vpop.f32.mrb[74].mxu1 }
0x5aea   :  { %v12550_v16 = vpop.f32.mrb[75].mxu1  ;;  %v10365_v9 = vrot.slane %v10358_v10, %v14532_v13 }
0x5aed   :  { %v10418_v48 = vpop.f32.mrb[76].mxu0 }
0x5aee   :  { %v12555_v22 = vpop.f32.mrb[77].mxu0  ;;  %v10474_v57 = vsel %vm7389_vm10, %v10418_v48, -inf }
0x5aef   :  { %v10468_v59 = vpop.f32.mrb[76].mxu1  ;;  %10475 = vmax.xlane.f32.xlu1 %v10474_v57  ;;  %v10421_v0 = vpop.f32.mrb[78].mxu0  ;;  %v9855_v22 = vadd.f32 %v15179_v37, %v15122_v55 }
0x5af0   :  { %v12556_v28 = vpop.f32.mrb[79].mxu0  ;;  %v12561_v3 = vpop.f32.mrb[77].mxu1  ;;  %v10477_v2 = vsel %vm7389_vm10, %v10468_v59, -inf }
0x5af1   :  { %10478 = vmax.xlane.f32.xlu0 %v10477_v2  ;;  %v10471_v50 = vpop.f32.mrb[78].mxu1 }
0x5af2   :  { %v12562_v12 = vpop.f32.mrb[79].mxu1 }
0x5af3   :  { %v9854_v12 = vadd.f32 %v15177_v54, %v15116_v24 }
0x5b00   :  { %10546 = vrot.lane.b32.xlu1 %v15111_v36, %s13134_s22 }
0x5b04   :  { %10110 = vrot.lane.b32.xlu1 %v10107_v47, %s13135_s23 }
0x5b08   :  { %10368 = vrot.lane.b32.xlu1 %v10365_v9, %s13136_s26 }
0x5b7c   :  { %v10476_v26 = vpop.xlane.xlu1 %10475 }
0x5b7d   :  { %v10480_v41 = vsub.f32 %v10418_v48, %v10476_v26 }
0x5b7e   :  { %v10479_v1 = vpop.xlane.xlu0 %10478 }
0x5b7f   :  { %v10482_v43 = vmul.f32 1.442695, %v10480_v41  ;;  %v10481_v63 = vsub.f32 %v10468_v59, %v10479_v1 }
0x5b80   :  { %v10547_v52 = vpop.permute.xlu1 %10546 }
0x5b81   :  { %13051 = vpow2.f32 %v10482_v43  ;;  %v10484_v60 = vmul.f32 1.442695, %v10481_v63  ;;  %v10552_v36 = vsel %vm220_vm0, %v10547_v52, 0 }
0x5b82   :  { %12570 = vmatpush3.bf16.msra.mxu1 %v10552_v36  ;;  %v12706_v36 = vld [vmem:[%s13361_s12 + $0x8] sm:$0xff]  }
0x5b83   :  { %13053 = vpow2.f32 %v10484_v60  ;;  %12583 = vmatprep.subr.bf16.mxu1 %v13126_v4  ;;  %v12705_v60 = vld [vmem:[%s13361_s12] sm:$0xff]   ;;  %s13141_s12 = smov [#allocation2]  }
0x5b84   :  { %v10111_v44 = vpop.permute.xlu1 %10110  ;;  %s10833_s27 = sshll.u32 %s13141_s12, 4  ;;  %s10834_s27 = int_to_ptr.vmem [resolvable:$true] %s10833_s27 }
0x5b85   :  { %v10115_v16 = vadd.f32 %v10111_v44, %v15122_v55  ;;  %s13059_s4 = scalar_lea.vmem %s10834_s27, 32  ;;  %p13064_p1 = scmp.lt.s32.totalorder %s10834_s27, %s10834_s27 }
0x5b86   :  { %p13060_p0 = scmp.ne.s32.totalorder %s10834_s27, %s13059_s4  ;;  %p13065_p2 = scmp.lt.s32.totalorder %s13059_s4, %s13059_s4 }
0x5b87   :  { %v10633_v0 = vsel %vm213_vm1, %v9855_v22, %v10115_v16 }
0x5b88   :  { %v10369_v51 = vpop.permute.xlu1 %10368  ;;  %p13066_p3 = por %p13065_p2, %p13064_p1 }
0x5b89   :  { %v10373_v48 = vadd.f32 %v10369_v51, %v15122_v55 }
0x5b8a   :  { %p13067_p4 = pnand %p13066_p3, %p13060_p0 }
0x5b8b   :  { %v13052_v8 = vpop.eup %13051  ;;  %v10635_v2 = vsel %vm422_vm4, %v10633_v0, %v10373_v48 }
0x5b8c   :  { %v10486_v15 = vsel %vm7389_vm10, %v13052_v8, 0.0 }
0x5b8d   :  { %v13054_v11 = vpop.eup %13053  ;;  %10487 = vadd.xlane.f32.xlu0 %v10486_v15 }
0x5b8e   :  { %v10489_v14 = vsel %vm7389_vm10, %v13054_v11, 0.0 }
0x5b91   :  { %10490 = vadd.xlane.f32.xlu0 %v10489_v14 }
0x5ba7   :  { %10498 = vrot.lane.b32.xlu0 %v15109_v61, %s13134_s22 }
0x5bab   :  { %10108 = vrot.lane.b32.xlu0 %v10093_v32, %s13135_s23 }
0x5baf   :  { %10366 = vrot.lane.b32.xlu0 %v10351_v34, %s13136_s26 }
0x5bb3   :  { %10659 = vrot.lane.b32.xlu0 %v15099_v7, %s13138_s1 }
0x5c1a   :  { %v10488_v40 = vpop.xlane.xlu0 %10487 }
0x5c1b   :  { %13055 = vrcp.f32 %v10488_v40 }
0x5c1e   :  { %v10491_v27 = vpop.xlane.xlu0 %10490 }
0x5c1f   :  { %13057 = vrcp.f32 %v10491_v27 }
0x5c22   :  { %v10499_v17 = vpop.permute.xlu0 %10498 }
0x5c23   :  { %v10504_v61 = vsel %vm220_vm0, %v10499_v17, 0 }
0x5c24   :  { %12564 = vmatpush3.bf16.msra.mxu0 %v10504_v61 }
0x5c25   :  { %v13056_v19 = vpop.eup %13055  ;;  %12575 = vmatprep.subr.bf16.mxu0 %v13126_v4 }
0x5c26   :  { %v10494_v20 = vmul.f32 %v13056_v19, %v13052_v8  ;;  %v10109_v56 = vpop.permute.xlu0 %10108 }
0x5c27   :  { %v10114_v28 = vadd.f32 %v10109_v56, %v15116_v24 }
0x5c28   :  { %v10496_v25 = vpack.c.bf16 %v10494_v20, %v10494_v20 }
0x5c29   :  { %v13058_v39 = vpop.eup %13057  ;;  %v10632_v10 = vsel %vm213_vm1, %v9854_v12, %v10114_v28 }
0x5c2a   :  { %v10495_v58 = vmul.f32 %v13058_v39, %v13054_v11  ;;  %12566 = vmatmul.mubr.msk.bf16.vlgmr.msra.gmra.mrb[80].mxu0 %vm213_vm1, %v10496_v25  ;;  %v10367_v57 = vpop.permute.xlu0 %10366 }
0x5c2b   :  { %12579 = vmatprep.mubr.msk.bf16.mxu0 %vm13127_vm2, %v13126_v4  ;;  %12576 = vmatpush3.bf16.msra.mxu0 %v12703_v33  ;;  %v10372_v50 = vadd.f32 %v10367_v57, %v15116_v24 }
0x5c2c   :  { %v10497_v7 = vpack.c.bf16 %v10495_v58, %v10495_v58  ;;  %12577 = vmatprep.subr.bf16.mxu0 %v13126_v4 }
0x5c2d   :  { %v10634_v26 = vsel %vm422_vm4, %v10632_v10, %v10372_v50 }
0x5c2e   :  { %12572 = vmatmul.mubr.msk.bf16.vlgmr.msra.gmra.mrb[80].mxu1 %vm213_vm1, %v10497_v7 }
0x5c2f   :  { %12587 = vmatprep.mubr.msk.bf16.mxu1 %vm13127_vm2, %v13126_v4  ;;  %12578 = vmatpush3.bf16.msra.mxu0 %v12704_v21 }
0x5c30   :  { %12584 = vmatpush3.bf16.msra.mxu1 %v12705_v60 }
0x5c31   :  { %12585 = vmatprep.subr.bf16.mxu1 %v13126_v4 }
0x5c34   :  { %12586 = vmatpush3.bf16.msra.mxu1 %v12706_v36 }
0x5cfd   :  { %v10540_v53 = vpop.f32.mrb[80].mxu0 }
0x5cfe   :  { %v12567_v30 = vpop.f32.mrb[81].mxu0  ;;  %v10602_v23 = vrot.slane %v10540_v53, %v14532_v13 }
0x5cff   :  { %v10543_v38 = vpop.f32.mrb[82].mxu0 }
0x5d00   :  { %v12568_v46 = vpop.f32.mrb[83].mxu0  ;;  %v10609_v35 = vrot.slane %v10602_v23, %v14532_v13 }
0x5d01   :  { %v10588_v42 = vpop.f32.mrb[80].mxu1 }
0x5d02   :  { %v10616_v6 = vrot.slane %v10588_v42, %v14532_v13  ;;  %v12573_v5 = vpop.f32.mrb[81].mxu1 }
0x5d03   :  { %v10591_v45 = vpop.f32.mrb[82].mxu1 }
0x5d04   :  { %v10623_v18 = vrot.slane %v10616_v6, %v14532_v13  ;;  %v12574_v29 = vpop.f32.mrb[83].mxu1 }
0x5d06   :  { %10626 = vrot.lane.b32.xlu1 %v10623_v18, %s13137_s28 }
0x5d0a   :  { %10624 = vrot.lane.b32.xlu1 %v10609_v35, %s13137_s28 }
0x5d78   :  { %v10627_v59 = vpop.permute.xlu1 %10626 }
0x5d79   :  { %v10631_v3 = vadd.f32 %v10627_v59, %v15122_v55 }
0x5d7b   :  { %v10637_v31 = vsel %vm1211_vm5, %v10635_v2, %v10631_v3 }
0x5d7c   :  { %v10639_v47 = vpack.c.bf16 %v10637_v31, %v10637_v31  ;;  %v10625_v37 = vpop.permute.xlu1 %10624 }
0x5d7d   :  { %v10630_v9 = vadd.f32 %v10625_v37, %v15116_v24  ;;  %v10660_v24 = vpop.permute.xlu0 %10659 }
0x5d7e   :  { %v10643_v55 = vunpack.c.l.b16 %v10639_v47 }
0x5d7f   :  { %v10636_v41 = vsel %vm1211_vm5, %v10634_v26, %v10630_v9 }
0x5d80   :  { %v10638_v1 = vpack.c.bf16 %v10636_v41, %v10636_v41  ;;  %v10644_v43 = vrot.slane %v10643_v55, 7 }
0x5d82   :  { %v10642_v63 = vunpack.c.l.b16 %v10638_v1 }
0x5d84   :  { %v10645_v52 = vsel %vm5955_vm7, %v10644_v43, %v10642_v63 }
0x5d85   :  { %v10646_v54 = vpack.c.b16 %v10645_v52, %v10645_v52 }
0x5d87   :  { %12580 = vmatmul.mubr.msk.bf16.vlgmr.msra.gmra.mrb[84].mxu0 %vm288_vm3, %v10646_v54 }
0x5e5a   :  { %v10699_v8 = vpop.f32.mrb[84].mxu0 }
0x5e5b   :  { %v10700_v15 = vadd.f32 %v10699_v8, %v10660_v24  ;;  %v12581_v11 = vpop.f32.mrb[85].mxu0 }
0x5e5c   :  { %v10702_v14 = vpop.f32.mrb[86].mxu0 }
0x5e5d   :  { %v10705_v62 = vmax.f32 %v10700_v15, 0.0  ;;  %v12582_v32 = vpop.f32.mrb[87].mxu0 }
0x5e5f   :  { %v10713_v49 = vrot.slane %v10705_v62, %v14532_v13 }
0x5e61   :  { %v10714_v34 = vcombine.high %v10713_v49, %v10713_v49  ;;  %v10721_v40 = vrot.slane %v10713_v49, %v14532_v13 }
0x5e63   :  { %v10728_v27 = vrot.slane %v10714_v34, %v14532_v13  ;;  %v10731_v17 = vadd.f32 %v10721_v40, %v10636_v41 }
0x5e65   :  { %v10732_v61 = vadd.f32 %v10728_v27, %v10637_v31  ;;  %v10737_v19 = vpack.c.bf16 %v10731_v17, %v10731_v17 }
0x5e67   :  { %v10738_v4 = vpack.c.bf16 %v10732_v61, %v10732_v61  ;;  %v10741_v25 = vunpack.c.l.b16 %v10737_v19 }
0x5e69   :  { %v10742_v20 = vunpack.c.l.b16 %v10738_v4 }
0x5e6b   :  { %v10743_v39 = vrot.slane %v10742_v20, 7 }
0x5e6d   :  { %v10744_v58 = vsel %vm5955_vm7, %v10743_v39, %v10741_v25 }
0x5e6e   :  { %v10745_v7 = vpack.c.b16 %v10744_v58, %v10744_v58 }
0x5e70   :  { %12588 = vmatmul.mubr.msk.bf16.vlgmr.msra.gmra.mrb[84].mxu1 %vm288_vm3, %v10745_v7 }
0x5f43   :  { %v10795_v53 = vpop.f32.mrb[84].mxu1 }
0x5f44   :  { %v10808_v30 = vrot.slane %v10795_v53, %v14532_v13  ;;  %v12589_v38 = vpop.f32.mrb[85].mxu1 }
0x5f45   :  { %v10798_v33 = vpop.f32.mrb[86].mxu1 }
0x5f46   :  { %v10809_v46 = vcombine.high %v10808_v30, %v10808_v30  ;;  %11128 = vst.sshfl [vmem:[#allocation2] sm:$0x1 pattern:$0x73625140] %v10808_v30  ;;  %v12590_v42 = vpop.f32.mrb[87].mxu1 }
0x5f48   :  { %11129 = vst.sshfl [vmem:[#allocation2 + $0x1] sm:$0x1 pattern:$0x73625140] %v10809_v46 }
0x5f49   :  { %13070 = shalt.err (!%p13067_p4)
}
0x5f4a   :  { %s13071_s0 = scalar_lea.hbm %s13366_s20, 32 }
0x5f4b   :  { %p13072_p5 = scmp.ne.s32.totalorder %s13366_s20, %s13071_s0  ;;  %p13075_p6 = scmp.lt.u32.totalorder %s13071_s0, %s13366_s20 }
0x5f4d   :  { %p13077_p7 = pnand %p13075_p6, %p13072_p5 }
0x5f4f   :  { %13080 = shalt.err (!%p13077_p7)
}
0x5f50   :  { %s13142_s5 = smov 1  }
0x5f51   :  { %10839 = dma.vmem_to_hbm [thread:$0]  %s10834_s27, 32, %s13366_s20, [#allocation3], %s13136_s26, %s13136_s26, %s13142_s5  }
0x5f52   :  { %13081 = dma.done.wait [#allocation3], 32  }
0x5f53   :  { %13082 = vsyncadd [#allocation3], 4294967264 }
0x5f54   :  { %10843 = vsyncpa [#allocation3], 1 }

</bundles_post_ra>
